<compile_context>
chip_gen: v6e
topology: v6e:2x2x1
jax: 0.10.0
libtpu: 0.0.40
codegen_flags: <defaults>
</compile_context>

<pallas_src>
import math
import functools

import jax
import jax.numpy as jnp
from jax import lax
from jax.experimental import pallas as pl
from jax.experimental.pallas import tpu as pltpu

F32 = jnp.float32
BF16 = jnp.bfloat16


def _round_up(x, m):
    return (x + m - 1) // m * m


def _compute_vmem_limit():
    # ~48 MiB on v7x (64 MiB physical VMEM), ~100 MiB on v5e/v6e (128 MiB).
    try:
        info = pltpu.get_tpu_info()
        cap = int(getattr(info, "vmem_capacity_bytes", 128 * 1024 * 1024))
    except Exception:
        cap = 64 * 1024 * 1024
    return max(32 * 1024 * 1024, min(cap - 16 * 1024 * 1024, 100 * 1024 * 1024))


VMEM_LIMIT = _compute_vmem_limit()


def _cparams(sem):
    return pltpu.CompilerParams(dimension_semantics=sem,
                                vmem_limit_bytes=VMEM_LIMIT)


# ----------------------------------------------------------------------------
# Stride-1 convolution: L-tiled (halo), lane-dense Cout, roll-combined taps
# ----------------------------------------------------------------------------

CONV_L_TILE = 256     # output rows per grid step (keeps the fp32 acc small)
CONV_C_TILE = 128     # lane-dense output tile; matches v5e's native MXU width


def _conv_kernel(x_ref, w_ref, b_ref, o_ref, *, K, tl):
    xs = x_ref[0, 0]                                    # (R, Cin) bf16
    R = xs.shape[0]
    acc = jnp.dot(xs, w_ref[0], preferred_element_type=jnp.float32)
    for k in range(1, K):                               # static tap loop
        y = jnp.dot(xs, w_ref[k], preferred_element_type=jnp.float32)
        # Row i of the output needs y[i + k]; combine with an XLU roll
        # (separate VLIW slot from the MXU push) instead of sublane-offset
        # slices of the input slab, which would relayout the whole block.
        acc = acc + pltpu.roll(y, (R - k) % R, 0)
    o_ref[0, 0] = (acc[:tl, :] + b_ref[...]).astype(o_ref.dtype)


def pl_conv_s1(x, w_kio, bias, out_dtype=BF16):
    """Valid stride-1 conv, channels-last x:(B,Lin,Cin), w:(K,Cin,Cout)."""
    B, Lin, Cin = x.shape
    K, _, Cout = w_kio.shape
    Lout = Lin - K + 1

    Coutp = _round_up(Cout, CONV_C_TILE)                # lane-dense outputs
    n_j = Coutp // CONV_C_TILE

    tl = Lout if Lout <= CONV_L_TILE else CONV_L_TILE
    nL = pl.cdiv(Lout, tl)
    R = _round_up(tl + K - 1, 8)                        # tile rows incl. halo
    need = (nL - 1) * tl + R                            # >= Lin by construction

    xp = jnp.pad(x.astype(BF16), ((0, 0), (0, need - Lin), (0, 0)))
    xt = jnp.concatenate(
        [xp[:, i * tl:i * tl + R, :][:, None] for i in range(nL)], axis=1)

    w_p = jnp.pad(w_kio.astype(BF16), ((0, 0), (0, 0), (0, Coutp - Cout)))
    b_full = jnp.zeros((Cout,), F32) if bias is None else bias.astype(F32)
    b_p = jnp.pad(b_full.reshape(1, Cout), ((0, 0), (0, Coutp - Cout)))

    out = pl.pallas_call(
        functools.partial(_conv_kernel, K=K, tl=tl),
        out_shape=jax.ShapeDtypeStruct((B, nL, tl, Coutp), out_dtype),
        grid=(B, nL, n_j),
        in_specs=[pl.BlockSpec((1, 1, R, Cin), lambda b, i, j: (b, i, 0, 0)),
                  pl.BlockSpec((K, Cin, CONV_C_TILE), lambda b, i, j: (0, 0, j)),
                  pl.BlockSpec((1, CONV_C_TILE), lambda b, i, j: (0, j))],
        out_specs=pl.BlockSpec((1, 1, tl, CONV_C_TILE),
                               lambda b, i, j: (b, i, 0, j)),
        compiler_params=_cparams(("parallel", "parallel", "parallel")),
    )(xt, w_p, b_p)
    out = out.reshape(B, nL * tl, Coutp)
    return out[:, :Lout, :Cout]


def conv1d_cl(x, w, b, padding=0, out_dtype=BF16):
    """nn.Conv1d (stride 1) on channels-last x; w is PyTorch (Cout, Cin, K)."""
    if padding:
        x = jnp.pad(x, ((0, 0), (padding, padding), (0, 0)))
    w_kio = jnp.transpose(w, (2, 1, 0))
    return pl_conv_s1(x, w_kio, b, out_dtype=out_dtype)


def downsample_conv(x, w, b):
    """Conv1d(k=4, s=2, p=1) == stride-1 K=2 conv on a phase-folded input."""
    B, L, Cin = x.shape
    xp = jnp.pad(x, ((0, 0), (1, 1), (0, 0)))                  # (B, L+2, Cin)
    xf = xp.reshape(B, (L + 2) // 2, 2 * Cin)                  # [x[2m-1], x[2m]]
    w_kio = jnp.transpose(w, (2, 1, 0)).astype(F32)            # (4, Cin, Cout)
    w0 = jnp.concatenate([w_kio[0], w_kio[1]], axis=0)[None]   # (1, 2Cin, Cout)
    w1 = jnp.concatenate([w_kio[2], w_kio[3]], axis=0)[None]
    return pl_conv_s1(xf, jnp.concatenate([w0, w1], axis=0), b)


def upsample_conv(x, w, b):
    """Upsample(x2, nearest) + Conv1d(k=3, p=1), fused via phase-packed weights."""
    B, L, Cin = x.shape
    Cout = w.shape[0]
    w_kio = jnp.transpose(w, (2, 1, 0)).astype(F32)            # (3, Cin, Cout)
    z = jnp.zeros_like(w_kio[0])
    t0 = jnp.concatenate([w_kio[0], z], axis=1)                # even | odd phase
    t1 = jnp.concatenate([w_kio[1] + w_kio[2], w_kio[0] + w_kio[1]], axis=1)
    t2 = jnp.concatenate([z, w_kio[2]], axis=1)
    w2 = jnp.stack([t0, t1, t2], axis=0)                       # (3, Cin, 2*Cout)
    b2 = jnp.concatenate([b, b], axis=0)
    xp = jnp.pad(x, ((0, 0), (1, 1), (0, 0)))
    y = pl_conv_s1(xp, w2, b2)                                  # (B, L, 2*Cout)
    return y.reshape(B, 2 * L, Cout)


# ----------------------------------------------------------------------------
# Fused GroupNorm + (scale+1)*x + shift + SiLU  (channels-last, per batch)
# ----------------------------------------------------------------------------

def _gn_kernel(x_ref, g_ref, b_ref, ss_ref, o_ref, *, groups, inv_gsize):
    x = x_ref[0].astype(jnp.float32)                    # (L, C)
    C = x.shape[-1]
    cg = C // groups

    def group_avg(row):                                  # (1, C) -> (1, C)
        parts = []
        for g in range(groups):
            s = jnp.sum(row[:, g * cg:(g + 1) * cg], axis=-1, keepdims=True)
            parts.append(jnp.broadcast_to(s * inv_gsize, (1, cg)))
        return jnp.concatenate(parts, axis=-1)

    s1 = jnp.sum(x, axis=0, keepdims=True)               # reduce L first
    mean = group_avg(s1)
    d = x - mean
    s2 = jnp.sum(d * d, axis=0, keepdims=True)           # centered (two-pass) var
    var = group_avg(s2)
    y = d * lax.rsqrt(var + 1e-5) * g_ref[...] + b_ref[...]
    ss = ss_ref[0]                                        # (2, C)
    y = y * (ss[0:1, :] + 1.0) + ss[1:2, :]
    o_ref[0] = (y * jax.nn.sigmoid(y)).astype(o_ref.dtype)


def pl_groupnorm_ss_silu(x, gamma, beta, ss, groups):
    # TODO(synk): for very long sequences, emit per-channel sums from the conv
    # epilogue and L-tile the normalize pass (v7x VMEM); full-L here.
    B, L, C = x.shape
    if ss is None:
        ss = jnp.zeros((B, 2, C), F32)
    inv = 1.0 / float((C // groups) * L)
    return pl.pallas_call(
        functools.partial(_gn_kernel, groups=groups, inv_gsize=inv),
        out_shape=jax.ShapeDtypeStruct((B, L, C), BF16),
        grid=(B,),
        in_specs=[pl.BlockSpec((1, L, C), lambda b: (b, 0, 0)),
                  pl.BlockSpec((1, C), lambda b: (0, 0)),
                  pl.BlockSpec((1, C), lambda b: (0, 0)),
                  pl.BlockSpec((1, 2, C), lambda b: (b, 0, 0))],
        out_specs=pl.BlockSpec((1, L, C), lambda b: (b, 0, 0)),
        compiler_params=_cparams(("parallel",)),
    )(x.astype(BF16), gamma.reshape(1, C).astype(F32),
      beta.reshape(1, C).astype(F32), ss.astype(F32))


# ----------------------------------------------------------------------------
# Fully fused Residual(PreNorm(Attention / LinearAttention)) kernel
# ----------------------------------------------------------------------------

def _attn_res_kernel(x_ref, g_ref, wqkv_ref, wout_ref, bout_ref, lng_ref, o_ref,
                     *, heads, dim_head, scale, linear):
    x = x_ref[0].astype(jnp.float32)                     # (L, C)
    # PreNorm: per-position channel LayerNorm (centered variance, eps 1e-5).
    mean = jnp.mean(x, axis=-1, keepdims=True)
    d = x - mean
    var = jnp.mean(d * d, axis=-1, keepdims=True)
    xn = d * lax.rsqrt(var + 1e-5) * g_ref[...]

    qkv = jnp.dot(xn.astype(jnp.bfloat16), wqkv_ref[...],
                  preferred_element_type=jnp.float32)    # (L, 3*H*d) f32
    Hd = heads * dim_head

    # TODO(synk): lane-pack the dim_head=32 softmax of the linear-attention
    # path onto the full (L, H*d) layout (segment reduce) for full lane use.
    outs = []
    for h in range(heads):                                # static head loop
        q = qkv[:, h * dim_head:(h + 1) * dim_head]
        k = qkv[:, Hd + h * dim_head:Hd + (h + 1) * dim_head]
        v = qkv[:, 2 * Hd + h * dim_head:2 * Hd + (h + 1) * dim_head]
        if linear:
            q = jnp.exp(q - jnp.max(q, axis=-1, keepdims=True))
            q = q / jnp.sum(q, axis=-1, keepdims=True) * scale   # softmax over d
            k = jnp.exp(k - jnp.max(k, axis=0, keepdims=True))
            k = k / jnp.sum(k, axis=0, keepdims=True)            # softmax over L
            ctx = lax.dot_general(k.astype(jnp.bfloat16), v.astype(jnp.bfloat16),
                                  (((0,), (0,)), ((), ())),
                                  preferred_element_type=jnp.float32)   # (d, d)
            oh = jnp.dot(q.astype(jnp.bfloat16), ctx.astype(jnp.bfloat16),
                         preferred_element_type=jnp.float32)            # (L, d)
        else:
            sim = lax.dot_general(q.astype(jnp.bfloat16), k.astype(jnp.bfloat16),
                                  (((1,), (1,)), ((), ())),
                                  preferred_element_type=jnp.float32) * scale
            sim = sim - jnp.max(sim, axis=-1, keepdims=True)
            e = jnp.exp(sim)
            attn = e / jnp.sum(e, axis=-1, keepdims=True)
            oh = jnp.dot(attn.astype(jnp.bfloat16), v.astype(jnp.bfloat16),
                         preferred_element_type=jnp.float32)
        outs.append(oh)

    out = jnp.concatenate(outs, axis=-1).astype(jnp.bfloat16)     # (L, H*d)
    y = jnp.dot(out, wout_ref[...],
                preferred_element_type=jnp.float32) + bout_ref[...]
    if linear:
        # LinearAttention.to_out = Conv1d + channel LayerNorm (post-LN).
        m2 = jnp.mean(y, axis=-1, keepdims=True)
        d2 = y - m2
        v2 = jnp.mean(d2 * d2, axis=-1, keepdims=True)
        y = d2 * lax.rsqrt(v2 + 1e-5) * lng_ref[...]
    o_ref[0] = (y + x).astype(o_ref.dtype)


def attn_residual(x, p, heads, dim_head, *, linear):
    """Residual(PreNorm(attn)) on channels-last x:(B,L,C), fully fused."""
    # TODO(synk): flash-tile the kv axis / split heads into the grid for very
    # long sequences; at this model's bottleneck sizes one block per batch
    # element fits comfortably in VMEM.
    B, L, C = x.shape
    Hd = heads * dim_head
    w_qkv = jnp.transpose(p['qkv_w'][:, :, 0]).astype(BF16)       # (C, 3*Hd)
    w_out = jnp.transpose(p['out_w'][:, :, 0]).astype(BF16)       # (Hd, C)
    b_out = p['out_b'].reshape(1, C).astype(F32)
    g = p['norm_g'].reshape(1, C).astype(F32)
    ln_g = (p['ln_g'].reshape(1, C).astype(F32) if linear
            else jnp.ones((1, C), F32))
    kern = functools.partial(_attn_res_kernel, heads=heads, dim_head=dim_head,
                             scale=dim_head ** -0.5, linear=linear)
    return pl.pallas_call(
        kern,
        out_shape=jax.ShapeDtypeStruct((B, L, C), BF16),
        grid=(B,),
        in_specs=[pl.BlockSpec((1, L, C), lambda b: (b, 0, 0)),
                  pl.BlockSpec((1, C), lambda b: (0, 0)),
                  pl.BlockSpec((C, 3 * Hd), lambda b: (0, 0)),
                  pl.BlockSpec((Hd, C), lambda b: (0, 0)),
                  pl.BlockSpec((1, C), lambda b: (0, 0)),
                  pl.BlockSpec((1, C), lambda b: (0, 0))],
        out_specs=pl.BlockSpec((1, L, C), lambda b: (b, 0, 0)),
        compiler_params=_cparams(("parallel",)),
    )(x.astype(BF16), g, w_qkv, w_out, b_out, ln_g)


# ----------------------------------------------------------------------------
# Model layers
# ----------------------------------------------------------------------------

def mlp2(x, p):
    # Tiny (M = batch) MLP: left to XLA per review (pallas pad/slice overhead
    # exceeds the matmul itself).  Exact erf-GELU as in the reference.
    h = jnp.dot(x, p['w1'].T) + p['b1']
    h = jax.nn.gelu(h, approximate=False)
    return jnp.dot(h, p['w2'].T) + p['b2']


def sinusoidal_pos_emb(t, dim):
    half = dim // 2
    freqs = jnp.exp(jnp.arange(half, dtype=F32) * (-math.log(10000.0) / (half - 1)))
    args = t.astype(F32)[:, None] * freqs[None, :]
    return jnp.concatenate([jnp.sin(args), jnp.cos(args)], axis=-1)


def block_fwd(x, p, groups, ss=None):
    # WeightStandardizedConv: standardize weights over (Cin, K), eps 1e-5.
    w = p['w'].astype(F32)
    mean = jnp.mean(w, axis=(1, 2), keepdims=True)
    var = jnp.mean((w - mean) ** 2, axis=(1, 2), keepdims=True)
    wn = (w - mean) * lax.rsqrt(var + 1e-5)
    h = conv1d_cl(x, wn, p['b'], padding=1)
    return pl_groupnorm_ss_silu(h, p['gn_g'], p['gn_b'], ss, groups)


def resnet_block(x, p, t, c, groups):
    cond = jax.nn.silu(jnp.concatenate([t, c], axis=-1))
    cond = jnp.dot(cond, p['mlp_w'].T) + p['mlp_b']        # tiny: XLA matmul
    B = x.shape[0]
    dim_out = cond.shape[1] // 2
    ss = cond.reshape(B, 2, dim_out)                        # [scale; shift]
    h = block_fwd(x, p['block1'], groups, ss)
    h = block_fwd(h, p['block2'], groups, None)
    if 'res_w' in p:
        res = conv1d_cl(x, p['res_w'], p['res_b'])          # 1x1 res conv
    else:
        res = x
    return h + res.astype(h.dtype)


# ----------------------------------------------------------------------------
# Deterministic parameter initialization (shapes follow the PyTorch __init__)
# ----------------------------------------------------------------------------

class KeyGen:
    def __init__(self, seed):
        self._key = jax.random.PRNGKey(seed)

    def __call__(self):
        self._key, sub = jax.random.split(self._key)
        return sub


def init_conv(kg, c_out, c_in, k, bias=True):
    bound = 1.0 / math.sqrt(c_in * k)
    w = jax.random.uniform(kg(), (c_out, c_in, k), F32, -bound, bound)
    b = jax.random.uniform(kg(), (c_out,), F32, -bound, bound) if bias else None
    return w, b


def init_linear(kg, out_f, in_f):
    bound = 1.0 / math.sqrt(in_f)
    w = jax.random.uniform(kg(), (out_f, in_f), F32, -bound, bound)
    b = jax.random.uniform(kg(), (out_f,), F32, -bound, bound)
    return w, b


def init_block(kg, dim_in, dim_out):
    w, b = init_conv(kg, dim_out, dim_in, 3)
    return {'w': w, 'b': b,
            'gn_g': jnp.ones((dim_out,), F32),
            'gn_b': jnp.zeros((dim_out,), F32)}


def init_resnet(kg, dim_in, dim_out, cond_dim):
    mw, mb = init_linear(kg, dim_out * 2, cond_dim)
    p = {'mlp_w': mw, 'mlp_b': mb,
         'block1': init_block(kg, dim_in, dim_out),
         'block2': init_block(kg, dim_out, dim_out)}
    if dim_in != dim_out:
        p['res_w'], p['res_b'] = init_conv(kg, dim_out, dim_in, 1)
    return p


def init_linattn(kg, dim, heads, dim_head):
    hidden = heads * dim_head
    qkv_w, _ = init_conv(kg, hidden * 3, dim, 1, bias=False)
    out_w, out_b = init_conv(kg, dim, hidden, 1)
    return {'norm_g': jnp.ones((dim,), F32), 'qkv_w': qkv_w,
            'out_w': out_w, 'out_b': out_b, 'ln_g': jnp.ones((dim,), F32)}


def init_attn(kg, dim, heads, dim_head):
    hidden = heads * dim_head
    qkv_w, _ = init_conv(kg, hidden * 3, dim, 1, bias=False)
    out_w, out_b = init_conv(kg, dim, hidden, 1)
    return {'norm_g': jnp.ones((dim,), F32), 'qkv_w': qkv_w,
            'out_w': out_w, 'out_b': out_b}


def init_unet(seed, *, dim, num_classes, channels, dim_mults, heads, dim_head):
    kg = KeyGen(seed)
    init_dim = dim
    time_dim = dim * 4
    classes_dim = dim * 4
    cond_dim = time_dim + classes_dim
    dims = [init_dim] + [dim * m for m in dim_mults]
    in_out = list(zip(dims[:-1], dims[1:]))

    p = {}
    p['init_w'], p['init_b'] = init_conv(kg, init_dim, channels, 7)

    w1, b1 = init_linear(kg, time_dim, dim)
    w2, b2 = init_linear(kg, time_dim, time_dim)
    p['time_mlp'] = {'w1': w1, 'b1': b1, 'w2': w2, 'b2': b2}

    p['classes_emb'] = jax.random.normal(kg(), (num_classes, dim), F32)
    p['null_classes_emb'] = jax.random.normal(kg(), (dim,), F32)
    cw1, cb1 = init_linear(kg, classes_dim, dim)
    cw2, cb2 = init_linear(kg, classes_dim, classes_dim)
    p['classes_mlp'] = {'w1': cw1, 'b1': cb1, 'w2': cw2, 'b2': cb2}

    downs = []
    for ind, (di, do) in enumerate(in_out):
        is_last = ind >= len(in_out) - 1
        st = {'block1': init_resnet(kg, di, di, cond_dim),
              'block2': init_resnet(kg, di, di, cond_dim),
              'attn': init_linattn(kg, di, heads, dim_head)}
        if not is_last:
            st['down_w'], st['down_b'] = init_conv(kg, do, di, 4)   # k=4, s=2, p=1
        else:
            st['down_w'], st['down_b'] = init_conv(kg, do, di, 3)   # k=3, p=1
        downs.append(st)
    p['downs'] = downs

    mid = dims[-1]
    p['mid_block1'] = init_resnet(kg, mid, mid, cond_dim)
    p['mid_attn'] = init_attn(kg, mid, heads, dim_head)
    p['mid_block2'] = init_resnet(kg, mid, mid, cond_dim)

    ups = []
    for ind, (di, do) in enumerate(reversed(in_out)):
        st = {'block1': init_resnet(kg, do + di, do, cond_dim),
              'block2': init_resnet(kg, do + di, do, cond_dim),
              'attn': init_linattn(kg, do, heads, dim_head)}
        st['up_w'], st['up_b'] = init_conv(kg, di, do, 3)
        ups.append(st)
    p['ups'] = ups

    p['final_res'] = init_resnet(kg, dim * 2, dim, cond_dim)
    p['final_w'], p['final_b'] = init_conv(kg, channels, dim, 1)
    return p


# ----------------------------------------------------------------------------
# Full forward (cond_drop_prob = 0 -> deterministic classifier-free path)
# ----------------------------------------------------------------------------

def unet_forward(params, x, time, classes, *, dim, groups, heads, dim_head):
    # TODO(synk): prob_mask_like classifier-free cond dropout is stochastic;
    # this implements the deterministic cond_drop_prob=0 branch.
    classes_emb = params['classes_emb'][classes]                  # (B, dim)
    c = mlp2(classes_emb, params['classes_mlp'])                  # (B, 4*dim)
    t = mlp2(sinusoidal_pos_emb(time, dim), params['time_mlp'])   # (B, 4*dim)

    x = jnp.transpose(x, (0, 2, 1))                               # NCL -> NLC
    x = conv1d_cl(x, params['init_w'], params['init_b'], padding=3)
    r = x

    h = []
    n_down = len(params['downs'])
    for ind, st in enumerate(params['downs']):
        is_last = ind == n_down - 1
        x = resnet_block(x, st['block1'], t, c, groups)
        h.append(x)
        x = resnet_block(x, st['block2'], t, c, groups)
        x = attn_residual(x, st['attn'], heads, dim_head, linear=True)
        h.append(x)
        if not is_last:
            x = downsample_conv(x, st['down_w'], st['down_b'])
        else:
            x = conv1d_cl(x, st['down_w'], st['down_b'], padding=1)

    x = resnet_block(x, params['mid_block1'], t, c, groups)
    x = attn_residual(x, params['mid_attn'], heads, dim_head, linear=False)
    x = resnet_block(x, params['mid_block2'], t, c, groups)

    n_up = len(params['ups'])
    for ind, st in enumerate(params['ups']):
        is_last = ind == n_up - 1
        x = jnp.concatenate([x, h.pop()], axis=-1)
        x = resnet_block(x, st['block1'], t, c, groups)
        x = jnp.concatenate([x, h.pop()], axis=-1)
        x = resnet_block(x, st['block2'], t, c, groups)
        x = attn_residual(x, st['attn'], heads, dim_head, linear=True)
        if not is_last:
            x = upsample_conv(x, st['up_w'], st['up_b'])
        else:
            x = conv1d_cl(x, st['up_w'], st['up_b'], padding=1)

    x = jnp.concatenate([x, r], axis=-1)
    x = resnet_block(x, params['final_res'], t, c, groups)
    out = conv1d_cl(x, params['final_w'], params['final_b'], out_dtype=F32)
    return jnp.transpose(out, (0, 2, 1))                          # NLC -> NCL


# ----------------------------------------------------------------------------

if __name__ == "__main__":
    # Small config: dim=8, dim_mults=(1, 2), channels=3, groups=4.
    DIM = 8
    NUM_CLASSES = 10
    CHANNELS = 3
    DIM_MULTS = (1, 2)
    GROUPS = 4
    HEADS = 4
    DIM_HEAD = 32
    B, L = 2, 16

    params = init_unet(1, dim=DIM, num_classes=NUM_CLASSES, channels=CHANNELS,
                       dim_mults=DIM_MULTS, heads=HEADS, dim_head=DIM_HEAD)

    kx, kt, kc = jax.random.split(jax.random.PRNGKey(0), 3)
    x = jax.random.normal(kx, (B, CHANNELS, L), F32)
    time = jax.random.uniform(kt, (B,), F32, 0.0, 1000.0)
    classes = jax.random.randint(kc, (B,), 0, NUM_CLASSES)

    fwd = jax.jit(functools.partial(unet_forward, dim=DIM, groups=GROUPS,
                                    heads=HEADS, dim_head=DIM_HEAD))
    out = jax.block_until_ready(fwd(params, x, time, classes))
    assert out.shape == (B, CHANNELS, L), out.shape
    assert bool(jnp.all(jnp.isfinite(out)))
    print("KERNEL_OK")
</pallas_src>

<mosaic_0001>
module attributes {stable_mosaic.version = 11 : i64} {
  func.func @_conv_kernel(%arg0: i32, %arg1: i32, %arg2: i32, %arg3: memref<1x1x24x8xbf16, #tpu.memory_space<vmem>>, %arg4: memref<3x8x128xbf16, #tpu.memory_space<vmem>>, %arg5: memref<1x128xf32, #tpu.memory_space<vmem>>, %arg6: memref<1x1x16x128xbf16, #tpu.memory_space<vmem>>) attributes {dimension_semantics = [#tpu.dimension_semantics<parallel>, #tpu.dimension_semantics<parallel>, #tpu.dimension_semantics<parallel>], iteration_bounds = array<i64: 2, 1, 1>, scalar_prefetch = 0 : i64, scratch_operands = 0 : i64, tpu.core_type = #tpu.core_type<tc>, window_params = [{transform_indices = @transform_0, window_bounds = array<i64: 1, 1, 24, 8>}, {transform_indices = @transform_1, window_bounds = array<i64: 3, 8, 128>}, {transform_indices = @transform_2, window_bounds = array<i64: 1, 128>}, {transform_indices = @transform_3, window_bounds = array<i64: 1, 1, 16, 128>}]} {
    %c0 = arith.constant 0 : index
    %c0_0 = arith.constant 0 : index
    %c0_1 = arith.constant 0 : index
    %c0_2 = arith.constant 0 : index
    %0 = vector.load %arg3[%c0, %c0_0, %c0_1, %c0_2] : memref<1x1x24x8xbf16, #tpu.memory_space<vmem>>, vector<1x1x24x8xbf16>
    %1 = vector.shape_cast %0 : vector<1x1x24x8xbf16> to vector<24x8xbf16>
    %c0_3 = arith.constant 0 : index
    %c0_4 = arith.constant 0 : index
    %c0_5 = arith.constant 0 : index
    %2 = vector.load %arg4[%c0_3, %c0_4, %c0_5] : memref<3x8x128xbf16, #tpu.memory_space<vmem>>, vector<1x8x128xbf16>
    %3 = vector.shape_cast %2 : vector<1x8x128xbf16> to vector<8x128xbf16>
    %cst = arith.constant dense<0.000000e+00> : vector<24x128xf32>
    %4 = tpu.matmul %1, %3, %cst {dimension_numbers = #tpu.dot_dimension_numbers<[1], [0], [0], [1], [0, 0, 1, 1], [], []>} : vector<24x8xbf16>, vector<8x128xbf16>, vector<24x128xf32> -> vector<24x128xf32>
    %c1 = arith.constant 1 : index
    %c0_6 = arith.constant 0 : index
    %c0_7 = arith.constant 0 : index
    %5 = vector.load %arg4[%c1, %c0_6, %c0_7] : memref<3x8x128xbf16, #tpu.memory_space<vmem>>, vector<1x8x128xbf16>
    %6 = vector.shape_cast %5 : vector<1x8x128xbf16> to vector<8x128xbf16>
    %cst_8 = arith.constant dense<0.000000e+00> : vector<24x128xf32>
    %7 = tpu.matmul %1, %6, %cst_8 {dimension_numbers = #tpu.dot_dimension_numbers<[1], [0], [0], [1], [0, 0, 1, 1], [], []>} : vector<24x8xbf16>, vector<8x128xbf16>, vector<24x128xf32> -> vector<24x128xf32>
    %c23_i32 = arith.constant 23 : i32
    %8 = tpu.dynamic_rotate %7 by %c23_i32 dim 0 : vector<24x128xf32>, i32 -> vector<24x128xf32>
    %9 = arith.addf %4, %8 : vector<24x128xf32>
    %c2 = arith.constant 2 : index
    %c0_9 = arith.constant 0 : index
    %c0_10 = arith.constant 0 : index
    %10 = vector.load %arg4[%c2, %c0_9, %c0_10] : memref<3x8x128xbf16, #tpu.memory_space<vmem>>, vector<1x8x128xbf16>
    %11 = vector.shape_cast %10 : vector<1x8x128xbf16> to vector<8x128xbf16>
    %cst_11 = arith.constant dense<0.000000e+00> : vector<24x128xf32>
    %12 = tpu.matmul %1, %11, %cst_11 {dimension_numbers = #tpu.dot_dimension_numbers<[1], [0], [0], [1], [0, 0, 1, 1], [], []>} : vector<24x8xbf16>, vector<8x128xbf16>, vector<24x128xf32> -> vector<24x128xf32>
    %c22_i32 = arith.constant 22 : i32
    %13 = tpu.dynamic_rotate %12 by %c22_i32 dim 0 : vector<24x128xf32>, i32 -> vector<24x128xf32>
    %14 = arith.addf %9, %13 : vector<24x128xf32>
    %15 = vector.extract_strided_slice %14 {offsets = [0, 0], sizes = [16, 128], strides = [1, 1]} : vector<24x128xf32> to vector<16x128xf32>
    %c0_12 = arith.constant 0 : index
    %c0_13 = arith.constant 0 : index
    %16 = vector.load %arg5[%c0_12, %c0_13] : memref<1x128xf32, #tpu.memory_space<vmem>>, vector<1x128xf32>
    %17 = vector.broadcast %16 : vector<1x128xf32> to vector<16x128xf32>
    %18 = arith.addf %15, %17 : vector<16x128xf32>
    %19 = arith.truncf %18 : vector<16x128xf32> to vector<16x128xbf16>
    %c0_14 = arith.constant 0 : index
    %c0_15 = arith.constant 0 : index
    %c0_16 = arith.constant 0 : index
    %c0_17 = arith.constant 0 : index
    %20 = vector.load %arg6[%c0_14, %c0_15, %c0_16, %c0_17] : memref<1x1x16x128xbf16, #tpu.memory_space<vmem>>, vector<1x1x16x128xbf16>
    %21 = vector.shape_cast %20 : vector<1x1x16x128xbf16> to vector<16x128xbf16>
    %22 = vector.shape_cast %19 : vector<16x128xbf16> to vector<1x1x16x128xbf16>
    tpu.vector_store %arg6[%c0_14, %c0_15, %c0_16, %c0_17], %22 {strides = array<i32>} : memref<1x1x16x128xbf16, #tpu.memory_space<vmem>>, vector<1x1x16x128xbf16>,
    return
  }
  func.func @transform_0(%arg0: i32, %arg1: i32, %arg2: i32) -> (i32, i32, i32, i32) {
    %c0_i32 = arith.constant 0 : i32
    %c0_i32_0 = arith.constant 0 : i32
    %c0_i32_1 = arith.constant 0 : i32
    return %arg0, %arg1, %c0_i32, %c0_i32_0 : i32, i32, i32, i32
  }
  func.func @transform_1(%arg0: i32, %arg1: i32, %arg2: i32) -> (i32, i32, i32) {
    %c0_i32 = arith.constant 0 : i32
    %c0_i32_0 = arith.constant 0 : i32
    %c0_i32_1 = arith.constant 0 : i32
    return %c0_i32, %c0_i32_0, %arg2 : i32, i32, i32
  }
  func.func @transform_2(%arg0: i32, %arg1: i32, %arg2: i32) -> (i32, i32) {
    %c0_i32 = arith.constant 0 : i32
    %c0_i32_0 = arith.constant 0 : i32
    return %c0_i32, %arg2 : i32, i32
  }
  func.func @transform_3(%arg0: i32, %arg1: i32, %arg2: i32) -> (i32, i32, i32, i32) {
    %c0_i32 = arith.constant 0 : i32
    %c0_i32_0 = arith.constant 0 : i32
    return %arg0, %arg1, %c0_i32, %arg2 : i32, i32, i32, i32
  }
}

module attributes {stable_mosaic.version = 11 : i64} {
  func.func @_conv_kernel(%arg0: i32, %arg1: i32, %arg2: i32, %arg3: memref<1x1x24x3xbf16, #tpu.memory_space<vmem>>, %arg4: memref<7x3x128xbf16, #tpu.memory_space<vmem>>, %arg5: memref<1x128xf32, #tpu.memory_space<vmem>>, %arg6: memref<1x1x16x128xbf16, #tpu.memory_space<vmem>>) attributes {dimension_semantics = [#tpu.dimension_semantics<parallel>, #tpu.dimension_semantics<parallel>, #tpu.dimension_semantics<parallel>], iteration_bounds = array<i64: 2, 1, 1>, scalar_prefetch = 0 : i64, scratch_operands = 0 : i64, tpu.core_type = #tpu.core_type<tc>, window_params = [{transform_indices = @transform_0, window_bounds = array<i64: 1, 1, 24, 3>}, {transform_indices = @transform_1, window_bounds = array<i64: 7, 3, 128>}, {transform_indices = @transform_2, window_bounds = array<i64: 1, 128>}, {transform_indices = @transform_3, window_bounds = array<i64: 1, 1, 16, 128>}]} {
    %c0 = arith.constant 0 : index
    %c0_0 = arith.constant 0 : index
    %c0_1 = arith.constant 0 : index
    %c0_2 = arith.constant 0 : index
    %0 = vector.load %arg3[%c0, %c0_0, %c0_1, %c0_2] : memref<1x1x24x3xbf16, #tpu.memory_space<vmem>>, vector<1x1x24x3xbf16>
    %1 = vector.shape_cast %0 : vector<1x1x24x3xbf16> to vector<24x3xbf16>
    %c0_3 = arith.constant 0 : index
    %c0_4 = arith.constant 0 : index
    %c0_5 = arith.constant 0 : index
    %2 = vector.load %arg4[%c0_3, %c0_4, %c0_5] : memref<7x3x128xbf16, #tpu.memory_space<vmem>>, vector<1x3x128xbf16>
    %3 = vector.shape_cast %2 : vector<1x3x128xbf16> to vector<3x128xbf16>
    %cst = arith.constant dense<0.000000e+00> : vector<24x128xf32>
    %4 = tpu.matmul %1, %3, %cst {dimension_numbers = #tpu.dot_dimension_numbers<[1], [0], [0], [1], [0, 0, 1, 1], [], []>} : vector<24x3xbf16>, vector<3x128xbf16>, vector<24x128xf32> -> vector<24x128xf32>
    %c1 = arith.constant 1 : index
    %c0_6 = arith.constant 0 : index
    %c0_7 = arith.constant 0 : index
    %5 = vector.load %arg4[%c1, %c0_6, %c0_7] : memref<7x3x128xbf16, #tpu.memory_space<vmem>>, vector<1x3x128xbf16>
    %6 = vector.shape_cast %5 : vector<1x3x128xbf16> to vector<3x128xbf16>
    %cst_8 = arith.constant dense<0.000000e+00> : vector<24x128xf32>
    %7 = tpu.matmul %1, %6, %cst_8 {dimension_numbers = #tpu.dot_dimension_numbers<[1], [0], [0], [1], [0, 0, 1, 1], [], []>} : vector<24x3xbf16>, vector<3x128xbf16>, vector<24x128xf32> -> vector<24x128xf32>
    %c23_i32 = arith.constant 23 : i32
    %8 = tpu.dynamic_rotate %7 by %c23_i32 dim 0 : vector<24x128xf32>, i32 -> vector<24x128xf32>
    %9 = arith.addf %4, %8 : vector<24x128xf32>
    %c2 = arith.constant 2 : index
    %c0_9 = arith.constant 0 : index
    %c0_10 = arith.constant 0 : index
    %10 = vector.load %arg4[%c2, %c0_9, %c0_10] : memref<7x3x128xbf16, #tpu.memory_space<vmem>>, vector<1x3x128xbf16>
    %11 = vector.shape_cast %10 : vector<1x3x128xbf16> to vector<3x128xbf16>
    %cst_11 = arith.constant dense<0.000000e+00> : vector<24x128xf32>
    %12 = tpu.matmul %1, %11, %cst_11 {dimension_numbers = #tpu.dot_dimension_numbers<[1], [0], [0], [1], [0, 0, 1, 1], [], []>} : vector<24x3xbf16>, vector<3x128xbf16>, vector<24x128xf32> -> vector<24x128xf32>
    %c22_i32 = arith.constant 22 : i32
    %13 = tpu.dynamic_rotate %12 by %c22_i32 dim 0 : vector<24x128xf32>, i32 -> vector<24x128xf32>
    %14 = arith.addf %9, %13 : vector<24x128xf32>
    %c3 = arith.constant 3 : index
    %c0_12 = arith.constant 0 : index
    %c0_13 = arith.constant 0 : index
    %15 = vector.load %arg4[%c3, %c0_12, %c0_13] : memref<7x3x128xbf16, #tpu.memory_space<vmem>>, vector<1x3x128xbf16>
    %16 = vector.shape_cast %15 : vector<1x3x128xbf16> to vector<3x128xbf16>
    %cst_14 = arith.constant dense<0.000000e+00> : vector<24x128xf32>
    %17 = tpu.matmul %1, %16, %cst_14 {dimension_numbers = #tpu.dot_dimension_numbers<[1], [0], [0], [1], [0, 0, 1, 1], [], []>} : vector<24x3xbf16>, vector<3x128xbf16>, vector<24x128xf32> -> vector<24x128xf32>
    %c21_i32 = arith.constant 21 : i32
    %18 = tpu.dynamic_rotate %17 by %c21_i32 dim 0 : vector<24x128xf32>, i32 -> vector<24x128xf32>
    %19 = arith.addf %14, %18 : vector<24x128xf32>
    %c4 = arith.constant 4 : index
    %c0_15 = arith.constant 0 : index
    %c0_16 = arith.constant 0 : index
    %20 = vector.load %arg4[%c4, %c0_15, %c0_16] : memref<7x3x128xbf16, #tpu.memory_space<vmem>>, vector<1x3x128xbf16>
    %21 = vector.shape_cast %20 : vector<1x3x128xbf16> to vector<3x128xbf16>
    %cst_17 = arith.constant dense<0.000000e+00> : vector<24x128xf32>
    %22 = tpu.matmul %1, %21, %cst_17 {dimension_numbers = #tpu.dot_dimension_numbers<[1], [0], [0], [1], [0, 0, 1, 1], [], []>} : vector<24x3xbf16>, vector<3x128xbf16>, vector<24x128xf32> -> vector<24x128xf32>
    %c20_i32 = arith.constant 20 : i32
    %23 = tpu.dynamic_rotate %22 by %c20_i32 dim 0 : vector<24x128xf32>, i32 -> vector<24x128xf32>
    %24 = arith.addf %19, %23 : vector<24x128xf32>
    %c5 = arith.constant 5 : index
    %c0_18 = arith.constant 0 : index
    %c0_19 = arith.constant 0 : index
    %25 = vector.load %arg4[%c5, %c0_18, %c0_19] : memref<7x3x128xbf16, #tpu.memory_space<vmem>>, vector<1x3x128xbf16>
    %26 = vector.shape_cast %25 : vector<1x3x128xbf16> to vector<3x128xbf16>
    %cst_20 = arith.constant dense<0.000000e+00> : vector<24x128xf32>
    %27 = tpu.matmul %1, %26, %cst_20 {dimension_numbers = #tpu.dot_dimension_numbers<[1], [0], [0], [1], [0, 0, 1, 1], [], []>} : vector<24x3xbf16>, vector<3x128xbf16>, vector<24x128xf32> -> vector<24x128xf32>
    %c19_i32 = arith.constant 19 : i32
    %28 = tpu.dynamic_rotate %27 by %c19_i32 dim 0 : vector<24x128xf32>, i32 -> vector<24x128xf32>
    %29 = arith.addf %24, %28 : vector<24x128xf32>
    %c6 = arith.constant 6 : index
    %c0_21 = arith.constant 0 : index
    %c0_22 = arith.constant 0 : index
    %30 = vector.load %arg4[%c6, %c0_21, %c0_22] : memref<7x3x128xbf16, #tpu.memory_space<vmem>>, vector<1x3x128xbf16>
    %31 = vector.shape_cast %30 : vector<1x3x128xbf16> to vector<3x128xbf16>
    %cst_23 = arith.constant dense<0.000000e+00> : vector<24x128xf32>
    %32 = tpu.matmul %1, %31, %cst_23 {dimension_numbers = #tpu.dot_dimension_numbers<[1], [0], [0], [1], [0, 0, 1, 1], [], []>} : vector<24x3xbf16>, vector<3x128xbf16>, vector<24x128xf32> -> vector<24x128xf32>
    %c18_i32 = arith.constant 18 : i32
    %33 = tpu.dynamic_rotate %32 by %c18_i32 dim 0 : vector<24x128xf32>, i32 -> vector<24x128xf32>
    %34 = arith.addf %29, %33 : vector<24x128xf32>
    %35 = vector.extract_strided_slice %34 {offsets = [0, 0], sizes = [16, 128], strides = [1, 1]} : vector<24x128xf32> to vector<16x128xf32>
    %c0_24 = arith.constant 0 : index
    %c0_25 = arith.constant 0 : index
    %36 = vector.load %arg5[%c0_24, %c0_25] : memref<1x128xf32, #tpu.memory_space<vmem>>, vector<1x128xf32>
    %37 = vector.broadcast %36 : vector<1x128xf32> to vector<16x128xf32>
    %38 = arith.addf %35, %37 : vector<16x128xf32>
    %39 = arith.truncf %38 : vector<16x128xf32> to vector<16x128xbf16>
    %c0_26 = arith.constant 0 : index
    %c0_27 = arith.constant 0 : index
    %c0_28 = arith.constant 0 : index
    %c0_29 = arith.constant 0 : index
    %40 = vector.load %arg6[%c0_26, %c0_27, %c0_28, %c0_29] : memref<1x1x16x128xbf16, #tpu.memory_space<vmem>>, vector<1x1x16x128xbf16>
    %41 = vector.shape_cast %40 : vector<1x1x16x128xbf16> to vector<16x128xbf16>
    %42 = vector.shape_cast %39 : vector<16x128xbf16> to vector<1x1x16x128xbf16>
    tpu.vector_store %arg6[%c0_26, %c0_27, %c0_28, %c0_29], %42 {strides = array<i32>} : memref<1x1x16x128xbf16, #tpu.memory_space<vmem>>, vector<1x1x16x128xbf16>,
    return
  }
  func.func @transform_0(%arg0: i32, %arg1: i32, %arg2: i32) -> (i32, i32, i32, i32) {
    %c0_i32 = arith.constant 0 : i32
    %c0_i32_0 = arith.constant 0 : i32
    %c0_i32_1 = arith.constant 0 : i32
    return %arg0, %arg1, %c0_i32, %c0_i32_0 : i32, i32, i32, i32
  }
  func.func @transform_1(%arg0: i32, %arg1: i32, %arg2: i32) -> (i32, i32, i32) {
    %c0_i32 = arith.constant 0 : i32
    %c0_i32_0 = arith.constant 0 : i32
    %c0_i32_1 = arith.constant 0 : i32
    return %c0_i32, %c0_i32_0, %arg2 : i32, i32, i32
  }
  func.func @transform_2(%arg0: i32, %arg1: i32, %arg2: i32) -> (i32, i32) {
    %c0_i32 = arith.constant 0 : i32
    %c0_i32_0 = arith.constant 0 : i32
    return %c0_i32, %arg2 : i32, i32
  }
  func.func @transform_3(%arg0: i32, %arg1: i32, %arg2: i32) -> (i32, i32, i32, i32) {
    %c0_i32 = arith.constant 0 : i32
    %c0_i32_0 = arith.constant 0 : i32
    return %arg0, %arg1, %c0_i32, %arg2 : i32, i32, i32, i32
  }
}

module attributes {stable_mosaic.version = 11 : i64} {
  func.func @_gn_kernel(%arg0: i32, %arg1: memref<1x16x8xbf16, #tpu.memory_space<vmem>>, %arg2: memref<1x8xf32, #tpu.memory_space<vmem>>, %arg3: memref<1x8xf32, #tpu.memory_space<vmem>>, %arg4: memref<1x2x8xf32, #tpu.memory_space<vmem>>, %arg5: memref<1x16x8xbf16, #tpu.memory_space<vmem>>) attributes {dimension_semantics = [#tpu.dimension_semantics<parallel>], iteration_bounds = array<i64: 2>, scalar_prefetch = 0 : i64, scratch_operands = 0 : i64, tpu.core_type = #tpu.core_type<tc>, window_params = [{transform_indices = @transform_0, window_bounds = array<i64: 1, 16, 8>}, {pipeline_mode = #tpu.pipeline_mode<synchronous>, transform_indices = @transform_1, window_bounds = array<i64: 1, 8>}, {pipeline_mode = #tpu.pipeline_mode<synchronous>, transform_indices = @transform_2, window_bounds = array<i64: 1, 8>}, {transform_indices = @transform_3, window_bounds = array<i64: 1, 2, 8>}, {transform_indices = @transform_4, window_bounds = array<i64: 1, 16, 8>}]} {
    %c0 = arith.constant 0 : index
    %c0_0 = arith.constant 0 : index
    %c0_1 = arith.constant 0 : index
    %0 = vector.load %arg1[%c0, %c0_0, %c0_1] : memref<1x16x8xbf16, #tpu.memory_space<vmem>>, vector<1x16x8xbf16>
    %1 = vector.shape_cast %0 : vector<1x16x8xbf16> to vector<16x8xbf16>
    %2 = arith.extf %1 : vector<16x8xbf16> to vector<16x8xf32>
    %cst = arith.constant dense<0.000000e+00> : vector<8xf32>
    %3 = vector.multi_reduction <add>, %2, %cst [0] : vector<16x8xf32> to vector<8xf32>
    %4 = vector.shape_cast %3 : vector<8xf32> to vector<1x8xf32>
    %5 = vector.extract_strided_slice %4 {offsets = [0, 0], sizes = [1, 2], strides = [1, 1]} : vector<1x8xf32> to vector<1x2xf32>
    %cst_2 = arith.constant dense<0.000000e+00> : vector<1xf32>
    %6 = vector.multi_reduction <add>, %5, %cst_2 [1] : vector<1x2xf32> to vector<1xf32>
    %7 = vector.shape_cast %6 : vector<1xf32> to vector<1x1xf32>
    %cst_3 = arith.constant 3.125000e-02 : f32
    %8 = vector.broadcast %cst_3 : f32 to vector<1x1xf32>
    %9 = arith.mulf %7, %8 : vector<1x1xf32>
    %10 = vector.shape_cast %9 : vector<1x1xf32> to vector<1x1xf32>
    %11 = vector.broadcast %10 : vector<1x1xf32> to vector<1x2xf32>
    %12 = vector.extract_strided_slice %4 {offsets = [0, 2], sizes = [1, 2], strides = [1, 1]} : vector<1x8xf32> to vector<1x2xf32>
    %cst_4 = arith.constant dense<0.000000e+00> : vector<1xf32>
    %13 = vector.multi_reduction <add>, %12, %cst_4 [1] : vector<1x2xf32> to vector<1xf32>
    %14 = vector.shape_cast %13 : vector<1xf32> to vector<1x1xf32>
    %cst_5 = arith.constant 3.125000e-02 : f32
    %15 = vector.broadcast %cst_5 : f32 to vector<1x1xf32>
    %16 = arith.mulf %14, %15 : vector<1x1xf32>
    %17 = vector.shape_cast %16 : vector<1x1xf32> to vector<1x1xf32>
    %18 = vector.broadcast %17 : vector<1x1xf32> to vector<1x2xf32>
    %19 = vector.extract_strided_slice %4 {offsets = [0, 4], sizes = [1, 2], strides = [1, 1]} : vector<1x8xf32> to vector<1x2xf32>
    %cst_6 = arith.constant dense<0.000000e+00> : vector<1xf32>
    %20 = vector.multi_reduction <add>, %19, %cst_6 [1] : vector<1x2xf32> to vector<1xf32>
    %21 = vector.shape_cast %20 : vector<1xf32> to vector<1x1xf32>
    %cst_7 = arith.constant 3.125000e-02 : f32
    %22 = vector.broadcast %cst_7 : f32 to vector<1x1xf32>
    %23 = arith.mulf %21, %22 : vector<1x1xf32>
    %24 = vector.shape_cast %23 : vector<1x1xf32> to vector<1x1xf32>
    %25 = vector.broadcast %24 : vector<1x1xf32> to vector<1x2xf32>
    %26 = vector.extract_strided_slice %4 {offsets = [0, 6], sizes = [1, 2], strides = [1, 1]} : vector<1x8xf32> to vector<1x2xf32>
    %cst_8 = arith.constant dense<0.000000e+00> : vector<1xf32>
    %27 = vector.multi_reduction <add>, %26, %cst_8 [1] : vector<1x2xf32> to vector<1xf32>
    %28 = vector.shape_cast %27 : vector<1xf32> to vector<1x1xf32>
    %cst_9 = arith.constant 3.125000e-02 : f32
    %29 = vector.broadcast %cst_9 : f32 to vector<1x1xf32>
    %30 = arith.mulf %28, %29 : vector<1x1xf32>
    %31 = vector.shape_cast %30 : vector<1x1xf32> to vector<1x1xf32>
    %32 = vector.broadcast %31 : vector<1x1xf32> to vector<1x2xf32>
    %33 = tpu.concatenate %11, %18, %25, %32 in 1 : vector<1x2xf32>, vector<1x2xf32>, vector<1x2xf32>, vector<1x2xf32> -> vector<1x8xf32>
    %34 = vector.broadcast %33 : vector<1x8xf32> to vector<16x8xf32>
    %35 = arith.subf %2, %34 : vector<16x8xf32>
    %36 = arith.mulf %35, %35 : vector<16x8xf32>
    %cst_10 = arith.constant dense<0.000000e+00> : vector<8xf32>
    %37 = vector.multi_reduction <add>, %36, %cst_10 [0] : vector<16x8xf32> to vector<8xf32>
    %38 = vector.shape_cast %37 : vector<8xf32> to vector<1x8xf32>
    %39 = vector.extract_strided_slice %38 {offsets = [0, 0], sizes = [1, 2], strides = [1, 1]} : vector<1x8xf32> to vector<1x2xf32>
    %cst_11 = arith.constant dense<0.000000e+00> : vector<1xf32>
    %40 = vector.multi_reduction <add>, %39, %cst_11 [1] : vector<1x2xf32> to vector<1xf32>
    %41 = vector.shape_cast %40 : vector<1xf32> to vector<1x1xf32>
    %cst_12 = arith.constant 3.125000e-02 : f32
    %42 = vector.broadcast %cst_12 : f32 to vector<1x1xf32>
    %43 = arith.mulf %41, %42 : vector<1x1xf32>
    %44 = vector.shape_cast %43 : vector<1x1xf32> to vector<1x1xf32>
    %45 = vector.broadcast %44 : vector<1x1xf32> to vector<1x2xf32>
    %46 = vector.extract_strided_slice %38 {offsets = [0, 2], sizes = [1, 2], strides = [1, 1]} : vector<1x8xf32> to vector<1x2xf32>
    %cst_13 = arith.constant dense<0.000000e+00> : vector<1xf32>
    %47 = vector.multi_reduction <add>, %46, %cst_13 [1] : vector<1x2xf32> to vector<1xf32>
    %48 = vector.shape_cast %47 : vector<1xf32> to vector<1x1xf32>
    %cst_14 = arith.constant 3.125000e-02 : f32
    %49 = vector.broadcast %cst_14 : f32 to vector<1x1xf32>
    %50 = arith.mulf %48, %49 : vector<1x1xf32>
    %51 = vector.shape_cast %50 : vector<1x1xf32> to vector<1x1xf32>
    %52 = vector.broadcast %51 : vector<1x1xf32> to vector<1x2xf32>
    %53 = vector.extract_strided_slice %38 {offsets = [0, 4], sizes = [1, 2], strides = [1, 1]} : vector<1x8xf32> to vector<1x2xf32>
    %cst_15 = arith.constant dense<0.000000e+00> : vector<1xf32>
    %54 = vector.multi_reduction <add>, %53, %cst_15 [1] : vector<1x2xf32> to vector<1xf32>
    %55 = vector.shape_cast %54 : vector<1xf32> to vector<1x1xf32>
    %cst_16 = arith.constant 3.125000e-02 : f32
    %56 = vector.broadcast %cst_16 : f32 to vector<1x1xf32>
    %57 = arith.mulf %55, %56 : vector<1x1xf32>
    %58 = vector.shape_cast %57 : vector<1x1xf32> to vector<1x1xf32>
    %59 = vector.broadcast %58 : vector<1x1xf32> to vector<1x2xf32>
    %60 = vector.extract_strided_slice %38 {offsets = [0, 6], sizes = [1, 2], strides = [1, 1]} : vector<1x8xf32> to vector<1x2xf32>
    %cst_17 = arith.constant dense<0.000000e+00> : vector<1xf32>
    %61 = vector.multi_reduction <add>, %60, %cst_17 [1] : vector<1x2xf32> to vector<1xf32>
    %62 = vector.shape_cast %61 : vector<1xf32> to vector<1x1xf32>
    %cst_18 = arith.constant 3.125000e-02 : f32
    %63 = vector.broadcast %cst_18 : f32 to vector<1x1xf32>
    %64 = arith.mulf %62, %63 : vector<1x1xf32>
    %65 = vector.shape_cast %64 : vector<1x1xf32> to vector<1x1xf32>
    %66 = vector.broadcast %65 : vector<1x1xf32> to vector<1x2xf32>
    %67 = tpu.concatenate %45, %52, %59, %66 in 1 : vector<1x2xf32>, vector<1x2xf32>, vector<1x2xf32>, vector<1x2xf32> -> vector<1x8xf32>
    %cst_19 = arith.constant 9.99999974E-6 : f32
    %68 = vector.broadcast %cst_19 : f32 to vector<1x8xf32>
    %69 = arith.addf %67, %68 : vector<1x8xf32>
    %70 = math.rsqrt %69 : vector<1x8xf32>
    %71 = vector.broadcast %70 : vector<1x8xf32> to vector<16x8xf32>
    %72 = arith.mulf %35, %71 : vector<16x8xf32>
    %c0_20 = arith.constant 0 : index
    %c0_21 = arith.constant 0 : index
    %73 = vector.load %arg2[%c0_20, %c0_21] : memref<1x8xf32, #tpu.memory_space<vmem>>, vector<1x8xf32>
    %74 = vector.broadcast %73 : vector<1x8xf32> to vector<16x8xf32>
    %75 = arith.mulf %72, %74 : vector<16x8xf32>
    %c0_22 = arith.constant 0 : index
    %c0_23 = arith.constant 0 : index
    %76 = vector.load %arg3[%c0_22, %c0_23] : memref<1x8xf32, #tpu.memory_space<vmem>>, vector<1x8xf32>
    %77 = vector.broadcast %76 : vector<1x8xf32> to vector<16x8xf32>
    %78 = arith.addf %75, %77 : vector<16x8xf32>
    %c0_24 = arith.constant 0 : index
    %c0_25 = arith.constant 0 : index
    %c0_26 = arith.constant 0 : index
    %79 = vector.load %arg4[%c0_24, %c0_25, %c0_26] : memref<1x2x8xf32, #tpu.memory_space<vmem>>, vector<1x2x8xf32>
    %80 = vector.shape_cast %79 : vector<1x2x8xf32> to vector<2x8xf32>
    %81 = vector.extract_strided_slice %80 {offsets = [0, 0], sizes = [1, 8], strides = [1, 1]} : vector<2x8xf32> to vector<1x8xf32>
    %cst_27 = arith.constant 1.000000e+00 : f32
    %82 = vector.broadcast %cst_27 : f32 to vector<1x8xf32>
    %83 = arith.addf %81, %82 : vector<1x8xf32>
    %84 = vector.broadcast %83 : vector<1x8xf32> to vector<16x8xf32>
    %85 = arith.mulf %78, %84 : vector<16x8xf32>
    %86 = vector.extract_strided_slice %80 {offsets = [1, 0], sizes = [1, 8], strides = [1, 1]} : vector<2x8xf32> to vector<1x8xf32>
    %87 = vector.broadcast %86 : vector<1x8xf32> to vector<16x8xf32>
    %88 = arith.addf %85, %87 : vector<16x8xf32>
    %89 = arith.negf %88 : vector<16x8xf32>
    %90 = math.exp %89 : vector<16x8xf32>
    %cst_28 = arith.constant 1.000000e+00 : f32
    %91 = vector.broadcast %cst_28 : f32 to vector<16x8xf32>
    %92 = arith.addf %91, %90 : vector<16x8xf32>
    %93 = arith.divf %91, %92 : vector<16x8xf32>
    %94 = arith.mulf %88, %93 : vector<16x8xf32>
    %95 = arith.truncf %94 : vector<16x8xf32> to vector<16x8xbf16>
    %c0_29 = arith.constant 0 : index
    %c0_30 = arith.constant 0 : index
    %c0_31 = arith.constant 0 : index
    %96 = vector.load %arg5[%c0_29, %c0_30, %c0_31] : memref<1x16x8xbf16, #tpu.memory_space<vmem>>, vector<1x16x8xbf16>
    %97 = vector.shape_cast %96 : vector<1x16x8xbf16> to vector<16x8xbf16>
    %98 = vector.shape_cast %95 : vector<16x8xbf16> to vector<1x16x8xbf16>
    tpu.vector_store %arg5[%c0_29, %c0_30, %c0_31], %98 {strides = array<i32>} : memref<1x16x8xbf16, #tpu.memory_space<vmem>>, vector<1x16x8xbf16>,
    return
  }
  func.func @transform_0(%arg0: i32) -> (i32, i32, i32) {
    %c0_i32 = arith.constant 0 : i32
    %c0_i32_0 = arith.constant 0 : i32
    %c0_i32_1 = arith.constant 0 : i32
    return %arg0, %c0_i32, %c0_i32_0 : i32, i32, i32
  }
  func.func @transform_1(%arg0: i32) -> (i32, i32) {
    %c0_i32 = arith.constant 0 : i32
    %c0_i32_0 = arith.constant 0 : i32
    %c0_i32_1 = arith.constant 0 : i32
    return %c0_i32, %c0_i32_0 : i32, i32
  }
  func.func @transform_2(%arg0: i32) -> (i32, i32) {
    %c0_i32 = arith.constant 0 : i32
    %c0_i32_0 = arith.constant 0 : i32
    %c0_i32_1 = arith.constant 0 : i32
    return %c0_i32, %c0_i32_0 : i32, i32
  }
  func.func @transform_3(%arg0: i32) -> (i32, i32, i32) {
    %c0_i32 = arith.constant 0 : i32
    %c0_i32_0 = arith.constant 0 : i32
    %c0_i32_1 = arith.constant 0 : i32
    return %arg0, %c0_i32, %c0_i32_0 : i32, i32, i32
  }
  func.func @transform_4(%arg0: i32) -> (i32, i32, i32) {
    %c0_i32 = arith.constant 0 : i32
    %c0_i32_0 = arith.constant 0 : i32
    %c0_i32_1 = arith.constant 0 : i32
    return %arg0, %c0_i32, %c0_i32_0 : i32, i32, i32
  }
}

module attributes {stable_mosaic.version = 11 : i64} {
  func.func @_attn_res_kernel(%arg0: i32, %arg1: memref<1x16x8xbf16, #tpu.memory_space<vmem>>, %arg2: memref<1x8xf32, #tpu.memory_space<vmem>>, %arg3: memref<8x384xbf16, #tpu.memory_space<vmem>>, %arg4: memref<128x8xbf16, #tpu.memory_space<vmem>>, %arg5: memref<1x8xf32, #tpu.memory_space<vmem>>, %arg6: memref<1x8xf32, #tpu.memory_space<vmem>>, %arg7: memref<1x16x8xbf16, #tpu.memory_space<vmem>>) attributes {dimension_semantics = [#tpu.dimension_semantics<parallel>], iteration_bounds = array<i64: 2>, scalar_prefetch = 0 : i64, scratch_operands = 0 : i64, tpu.core_type = #tpu.core_type<tc>, window_params = [{transform_indices = @transform_0, window_bounds = array<i64: 1, 16, 8>}, {pipeline_mode = #tpu.pipeline_mode<synchronous>, transform_indices = @transform_1, window_bounds = array<i64: 1, 8>}, {pipeline_mode = #tpu.pipeline_mode<synchronous>, transform_indices = @transform_2, window_bounds = array<i64: 8, 384>}, {pipeline_mode = #tpu.pipeline_mode<synchronous>, transform_indices = @transform_3, window_bounds = array<i64: 128, 8>}, {pipeline_mode = #tpu.pipeline_mode<synchronous>, transform_indices = @transform_4, window_bounds = array<i64: 1, 8>}, {pipeline_mode = #tpu.pipeline_mode<synchronous>, transform_indices = @transform_5, window_bounds = array<i64: 1, 8>}, {transform_indices = @transform_6, window_bounds = array<i64: 1, 16, 8>}]} {
    %c0 = arith.constant 0 : index
    %c0_0 = arith.constant 0 : index
    %c0_1 = arith.constant 0 : index
    %0 = vector.load %arg1[%c0, %c0_0, %c0_1] : memref<1x16x8xbf16, #tpu.memory_space<vmem>>, vector<1x16x8xbf16>
    %1 = vector.shape_cast %0 : vector<1x16x8xbf16> to vector<16x8xbf16>
    %2 = arith.extf %1 : vector<16x8xbf16> to vector<16x8xf32>
    %cst = arith.constant dense<0.000000e+00> : vector<16xf32>
    %3 = vector.multi_reduction <add>, %2, %cst [1] : vector<16x8xf32> to vector<16xf32>
    %4 = vector.shape_cast %3 : vector<16xf32> to vector<16x1xf32>
    %cst_2 = arith.constant 8.000000e+00 : f32
    %5 = vector.broadcast %cst_2 : f32 to vector<16x1xf32>
    %6 = arith.divf %4, %5 : vector<16x1xf32>
    %7 = vector.broadcast %6 : vector<16x1xf32> to vector<16x8xf32>
    %8 = arith.subf %2, %7 : vector<16x8xf32>
    %9 = arith.mulf %8, %8 : vector<16x8xf32>
    %cst_3 = arith.constant dense<0.000000e+00> : vector<16xf32>
    %10 = vector.multi_reduction <add>, %9, %cst_3 [1] : vector<16x8xf32> to vector<16xf32>
    %11 = vector.shape_cast %10 : vector<16xf32> to vector<16x1xf32>
    %cst_4 = arith.constant 8.000000e+00 : f32
    %12 = vector.broadcast %cst_4 : f32 to vector<16x1xf32>
    %13 = arith.divf %11, %12 : vector<16x1xf32>
    %cst_5 = arith.constant 9.99999974E-6 : f32
    %14 = vector.broadcast %cst_5 : f32 to vector<16x1xf32>
    %15 = arith.addf %13, %14 : vector<16x1xf32>
    %16 = math.rsqrt %15 : vector<16x1xf32>
    %17 = vector.broadcast %16 : vector<16x1xf32> to vector<16x8xf32>
    %18 = arith.mulf %8, %17 : vector<16x8xf32>
    %c0_6 = arith.constant 0 : index
    %c0_7 = arith.constant 0 : index
    %19 = vector.load %arg2[%c0_6, %c0_7] : memref<1x8xf32, #tpu.memory_space<vmem>>, vector<1x8xf32>
    %20 = vector.broadcast %19 : vector<1x8xf32> to vector<16x8xf32>
    %21 = arith.mulf %18, %20 : vector<16x8xf32>
    %22 = arith.truncf %21 : vector<16x8xf32> to vector<16x8xbf16>
    %c0_8 = arith.constant 0 : index
    %c0_9 = arith.constant 0 : index
    %23 = vector.load %arg3[%c0_8, %c0_9] : memref<8x384xbf16, #tpu.memory_space<vmem>>, vector<8x384xbf16>
    %cst_10 = arith.constant dense<0.000000e+00> : vector<16x384xf32>
    %24 = tpu.matmul %22, %23, %cst_10 {dimension_numbers = #tpu.dot_dimension_numbers<[1], [0], [0], [1], [0, 0, 1, 1], [], []>} : vector<16x8xbf16>, vector<8x384xbf16>, vector<16x384xf32> -> vector<16x384xf32>
    %25 = vector.extract_strided_slice %24 {offsets = [0, 0], sizes = [16, 32], strides = [1, 1]} : vector<16x384xf32> to vector<16x32xf32>
    %26 = vector.extract_strided_slice %24 {offsets = [0, 128], sizes = [16, 32], strides = [1, 1]} : vector<16x384xf32> to vector<16x32xf32>
    %27 = vector.extract_strided_slice %24 {offsets = [0, 256], sizes = [16, 32], strides = [1, 1]} : vector<16x384xf32> to vector<16x32xf32>
    %cst_11 = arith.constant dense<0xFF800000> : vector<16xf32>
    %28 = vector.multi_reduction <maximumf>, %25, %cst_11 [1] : vector<16x32xf32> to vector<16xf32>
    %29 = vector.shape_cast %28 : vector<16xf32> to vector<16x1xf32>
    %30 = vector.broadcast %29 : vector<16x1xf32> to vector<16x32xf32>
    %31 = arith.subf %25, %30 : vector<16x32xf32>
    %32 = math.exp %31 : vector<16x32xf32>
    %cst_12 = arith.constant dense<0.000000e+00> : vector<16xf32>
    %33 = vector.multi_reduction <add>, %32, %cst_12 [1] : vector<16x32xf32> to vector<16xf32>
    %34 = vector.shape_cast %33 : vector<16xf32> to vector<16x1xf32>
    %35 = vector.broadcast %34 : vector<16x1xf32> to vector<16x32xf32>
    %36 = arith.divf %32, %35 : vector<16x32xf32>
    %cst_13 = arith.constant 0.176776692 : f32
    %37 = vector.broadcast %cst_13 : f32 to vector<16x32xf32>
    %38 = arith.mulf %36, %37 : vector<16x32xf32>
    %cst_14 = arith.constant dense<0xFF800000> : vector<32xf32>
    %39 = vector.multi_reduction <maximumf>, %26, %cst_14 [0] : vector<16x32xf32> to vector<32xf32>
    %40 = vector.shape_cast %39 : vector<32xf32> to vector<1x32xf32>
    %41 = vector.broadcast %40 : vector<1x32xf32> to vector<16x32xf32>
    %42 = arith.subf %26, %41 : vector<16x32xf32>
    %43 = math.exp %42 : vector<16x32xf32>
    %cst_15 = arith.constant dense<0.000000e+00> : vector<32xf32>
    %44 = vector.multi_reduction <add>, %43, %cst_15 [0] : vector<16x32xf32> to vector<32xf32>
    %45 = vector.shape_cast %44 : vector<32xf32> to vector<1x32xf32>
    %46 = vector.broadcast %45 : vector<1x32xf32> to vector<16x32xf32>
    %47 = arith.divf %43, %46 : vector<16x32xf32>
    %48 = arith.truncf %47 : vector<16x32xf32> to vector<16x32xbf16>
    %49 = arith.truncf %27 : vector<16x32xf32> to vector<16x32xbf16>
    %cst_16 = arith.constant dense<0.000000e+00> : vector<32x32xf32>
    %50 = tpu.matmul %48, %49, %cst_16 {dimension_numbers = #tpu.dot_dimension_numbers<[0], [0], [1], [1], [0, 1, 1, 1], [], []>} : vector<16x32xbf16>, vector<16x32xbf16>, vector<32x32xf32> -> vector<32x32xf32>
    %51 = arith.truncf %38 : vector<16x32xf32> to vector<16x32xbf16>
    %52 = arith.truncf %50 : vector<32x32xf32> to vector<32x32xbf16>
    %cst_17 = arith.constant dense<0.000000e+00> : vector<16x32xf32>
    %53 = tpu.matmul %51, %52, %cst_17 {dimension_numbers = #tpu.dot_dimension_numbers<[1], [0], [0], [1], [0, 0, 1, 1], [], []>} : vector<16x32xbf16>, vector<32x32xbf16>, vector<16x32xf32> -> vector<16x32xf32>
    %54 = vector.extract_strided_slice %24 {offsets = [0, 32], sizes = [16, 32], strides = [1, 1]} : vector<16x384xf32> to vector<16x32xf32>
    %55 = vector.extract_strided_slice %24 {offsets = [0, 160], sizes = [16, 32], strides = [1, 1]} : vector<16x384xf32> to vector<16x32xf32>
    %56 = vector.extract_strided_slice %24 {offsets = [0, 288], sizes = [16, 32], strides = [1, 1]} : vector<16x384xf32> to vector<16x32xf32>
    %cst_18 = arith.constant dense<0xFF800000> : vector<16xf32>
    %57 = vector.multi_reduction <maximumf>, %54, %cst_18 [1] : vector<16x32xf32> to vector<16xf32>
    %58 = vector.shape_cast %57 : vector<16xf32> to vector<16x1xf32>
    %59 = vector.broadcast %58 : vector<16x1xf32> to vector<16x32xf32>
    %60 = arith.subf %54, %59 : vector<16x32xf32>
    %61 = math.exp %60 : vector<16x32xf32>
    %cst_19 = arith.constant dense<0.000000e+00> : vector<16xf32>
    %62 = vector.multi_reduction <add>, %61, %cst_19 [1] : vector<16x32xf32> to vector<16xf32>
    %63 = vector.shape_cast %62 : vector<16xf32> to vector<16x1xf32>
    %64 = vector.broadcast %63 : vector<16x1xf32> to vector<16x32xf32>
    %65 = arith.divf %61, %64 : vector<16x32xf32>
    %cst_20 = arith.constant 0.176776692 : f32
    %66 = vector.broadcast %cst_20 : f32 to vector<16x32xf32>
    %67 = arith.mulf %65, %66 : vector<16x32xf32>
    %cst_21 = arith.constant dense<0xFF800000> : vector<32xf32>
    %68 = vector.multi_reduction <maximumf>, %55, %cst_21 [0] : vector<16x32xf32> to vector<32xf32>
    %69 = vector.shape_cast %68 : vector<32xf32> to vector<1x32xf32>
    %70 = vector.broadcast %69 : vector<1x32xf32> to vector<16x32xf32>
    %71 = arith.subf %55, %70 : vector<16x32xf32>
    %72 = math.exp %71 : vector<16x32xf32>
    %cst_22 = arith.constant dense<0.000000e+00> : vector<32xf32>
    %73 = vector.multi_reduction <add>, %72, %cst_22 [0] : vector<16x32xf32> to vector<32xf32>
    %74 = vector.shape_cast %73 : vector<32xf32> to vector<1x32xf32>
    %75 = vector.broadcast %74 : vector<1x32xf32> to vector<16x32xf32>
    %76 = arith.divf %72, %75 : vector<16x32xf32>
    %77 = arith.truncf %76 : vector<16x32xf32> to vector<16x32xbf16>
    %78 = arith.truncf %56 : vector<16x32xf32> to vector<16x32xbf16>
    %cst_23 = arith.constant dense<0.000000e+00> : vector<32x32xf32>
    %79 = tpu.matmul %77, %78, %cst_23 {dimension_numbers = #tpu.dot_dimension_numbers<[0], [0], [1], [1], [0, 1, 1, 1], [], []>} : vector<16x32xbf16>, vector<16x32xbf16>, vector<32x32xf32> -> vector<32x32xf32>
    %80 = arith.truncf %67 : vector<16x32xf32> to vector<16x32xbf16>
    %81 = arith.truncf %79 : vector<32x32xf32> to vector<32x32xbf16>
    %cst_24 = arith.constant dense<0.000000e+00> : vector<16x32xf32>
    %82 = tpu.matmul %80, %81, %cst_24 {dimension_numbers = #tpu.dot_dimension_numbers<[1], [0], [0], [1], [0, 0, 1, 1], [], []>} : vector<16x32xbf16>, vector<32x32xbf16>, vector<16x32xf32> -> vector<16x32xf32>
    %83 = vector.extract_strided_slice %24 {offsets = [0, 64], sizes = [16, 32], strides = [1, 1]} : vector<16x384xf32> to vector<16x32xf32>
    %84 = vector.extract_strided_slice %24 {offsets = [0, 192], sizes = [16, 32], strides = [1, 1]} : vector<16x384xf32> to vector<16x32xf32>
    %85 = vector.extract_strided_slice %24 {offsets = [0, 320], sizes = [16, 32], strides = [1, 1]} : vector<16x384xf32> to vector<16x32xf32>
    %cst_25 = arith.constant dense<0xFF800000> : vector<16xf32>
    %86 = vector.multi_reduction <maximumf>, %83, %cst_25 [1] : vector<16x32xf32> to vector<16xf32>
    %87 = vector.shape_cast %86 : vector<16xf32> to vector<16x1xf32>
    %88 = vector.broadcast %87 : vector<16x1xf32> to vector<16x32xf32>
    %89 = arith.subf %83, %88 : vector<16x32xf32>
    %90 = math.exp %89 : vector<16x32xf32>
    %cst_26 = arith.constant dense<0.000000e+00> : vector<16xf32>
    %91 = vector.multi_reduction <add>, %90, %cst_26 [1] : vector<16x32xf32> to vector<16xf32>
    %92 = vector.shape_cast %91 : vector<16xf32> to vector<16x1xf32>
    %93 = vector.broadcast %92 : vector<16x1xf32> to vector<16x32xf32>
    %94 = arith.divf %90, %93 : vector<16x32xf32>
    %cst_27 = arith.constant 0.176776692 : f32
    %95 = vector.broadcast %cst_27 : f32 to vector<16x32xf32>
    %96 = arith.mulf %94, %95 : vector<16x32xf32>
    %cst_28 = arith.constant dense<0xFF800000> : vector<32xf32>
    %97 = vector.multi_reduction <maximumf>, %84, %cst_28 [0] : vector<16x32xf32> to vector<32xf32>
    %98 = vector.shape_cast %97 : vector<32xf32> to vector<1x32xf32>
    %99 = vector.broadcast %98 : vector<1x32xf32> to vector<16x32xf32>
    %100 = arith.subf %84, %99 : vector<16x32xf32>
    %101 = math.exp %100 : vector<16x32xf32>
    %cst_29 = arith.constant dense<0.000000e+00> : vector<32xf32>
    %102 = vector.multi_reduction <add>, %101, %cst_29 [0] : vector<16x32xf32> to vector<32xf32>
    %103 = vector.shape_cast %102 : vector<32xf32> to vector<1x32xf32>
    %104 = vector.broadcast %103 : vector<1x32xf32> to vector<16x32xf32>
    %105 = arith.divf %101, %104 : vector<16x32xf32>
    %106 = arith.truncf %105 : vector<16x32xf32> to vector<16x32xbf16>
    %107 = arith.truncf %85 : vector<16x32xf32> to vector<16x32xbf16>
    %cst_30 = arith.constant dense<0.000000e+00> : vector<32x32xf32>
    %108 = tpu.matmul %106, %107, %cst_30 {dimension_numbers = #tpu.dot_dimension_numbers<[0], [0], [1], [1], [0, 1, 1, 1], [], []>} : vector<16x32xbf16>, vector<16x32xbf16>, vector<32x32xf32> -> vector<32x32xf32>
    %109 = arith.truncf %96 : vector<16x32xf32> to vector<16x32xbf16>
    %110 = arith.truncf %108 : vector<32x32xf32> to vector<32x32xbf16>
    %cst_31 = arith.constant dense<0.000000e+00> : vector<16x32xf32>
    %111 = tpu.matmul %109, %110, %cst_31 {dimension_numbers = #tpu.dot_dimension_numbers<[1], [0], [0], [1], [0, 0, 1, 1], [], []>} : vector<16x32xbf16>, vector<32x32xbf16>, vector<16x32xf32> -> vector<16x32xf32>
    %112 = vector.extract_strided_slice %24 {offsets = [0, 96], sizes = [16, 32], strides = [1, 1]} : vector<16x384xf32> to vector<16x32xf32>
    %113 = vector.extract_strided_slice %24 {offsets = [0, 224], sizes = [16, 32], strides = [1, 1]} : vector<16x384xf32> to vector<16x32xf32>
    %114 = vector.extract_strided_slice %24 {offsets = [0, 352], sizes = [16, 32], strides = [1, 1]} : vector<16x384xf32> to vector<16x32xf32>
    %cst_32 = arith.constant dense<0xFF800000> : vector<16xf32>
    %115 = vector.multi_reduction <maximumf>, %112, %cst_32 [1] : vector<16x32xf32> to vector<16xf32>
    %116 = vector.shape_cast %115 : vector<16xf32> to vector<16x1xf32>
    %117 = vector.broadcast %116 : vector<16x1xf32> to vector<16x32xf32>
    %118 = arith.subf %112, %117 : vector<16x32xf32>
    %119 = math.exp %118 : vector<16x32xf32>
    %cst_33 = arith.constant dense<0.000000e+00> : vector<16xf32>
    %120 = vector.multi_reduction <add>, %119, %cst_33 [1] : vector<16x32xf32> to vector<16xf32>
    %121 = vector.shape_cast %120 : vector<16xf32> to vector<16x1xf32>
    %122 = vector.broadcast %121 : vector<16x1xf32> to vector<16x32xf32>
    %123 = arith.divf %119, %122 : vector<16x32xf32>
    %cst_34 = arith.constant 0.176776692 : f32
    %124 = vector.broadcast %cst_34 : f32 to vector<16x32xf32>
    %125 = arith.mulf %123, %124 : vector<16x32xf32>
    %cst_35 = arith.constant dense<0xFF800000> : vector<32xf32>
    %126 = vector.multi_reduction <maximumf>, %113, %cst_35 [0] : vector<16x32xf32> to vector<32xf32>
    %127 = vector.shape_cast %126 : vector<32xf32> to vector<1x32xf32>
    %128 = vector.broadcast %127 : vector<1x32xf32> to vector<16x32xf32>
    %129 = arith.subf %113, %128 : vector<16x32xf32>
    %130 = math.exp %129 : vector<16x32xf32>
    %cst_36 = arith.constant dense<0.000000e+00> : vector<32xf32>
    %131 = vector.multi_reduction <add>, %130, %cst_36 [0] : vector<16x32xf32> to vector<32xf32>
    %132 = vector.shape_cast %131 : vector<32xf32> to vector<1x32xf32>
    %133 = vector.broadcast %132 : vector<1x32xf32> to vector<16x32xf32>
    %134 = arith.divf %130, %133 : vector<16x32xf32>
    %135 = arith.truncf %134 : vector<16x32xf32> to vector<16x32xbf16>
    %136 = arith.truncf %114 : vector<16x32xf32> to vector<16x32xbf16>
    %cst_37 = arith.constant dense<0.000000e+00> : vector<32x32xf32>
    %137 = tpu.matmul %135, %136, %cst_37 {dimension_numbers = #tpu.dot_dimension_numbers<[0], [0], [1], [1], [0, 1, 1, 1], [], []>} : vector<16x32xbf16>, vector<16x32xbf16>, vector<32x32xf32> -> vector<32x32xf32>
    %138 = arith.truncf %125 : vector<16x32xf32> to vector<16x32xbf16>
    %139 = arith.truncf %137 : vector<32x32xf32> to vector<32x32xbf16>
    %cst_38 = arith.constant dense<0.000000e+00> : vector<16x32xf32>
    %140 = tpu.matmul %138, %139, %cst_38 {dimension_numbers = #tpu.dot_dimension_numbers<[1], [0], [0], [1], [0, 0, 1, 1], [], []>} : vector<16x32xbf16>, vector<32x32xbf16>, vector<16x32xf32> -> vector<16x32xf32>
    %141 = tpu.concatenate %53, %82, %111, %140 in 1 : vector<16x32xf32>, vector<16x32xf32>, vector<16x32xf32>, vector<16x32xf32> -> vector<16x128xf32>
    %142 = arith.truncf %141 : vector<16x128xf32> to vector<16x128xbf16>
    %c0_39 = arith.constant 0 : index
    %c0_40 = arith.constant 0 : index
    %143 = vector.load %arg4[%c0_39, %c0_40] : memref<128x8xbf16, #tpu.memory_space<vmem>>, vector<128x8xbf16>
    %cst_41 = arith.constant dense<0.000000e+00> : vector<16x8xf32>
    %144 = tpu.matmul %142, %143, %cst_41 {dimension_numbers = #tpu.dot_dimension_numbers<[1], [0], [0], [1], [0, 0, 1, 1], [], []>} : vector<16x128xbf16>, vector<128x8xbf16>, vector<16x8xf32> -> vector<16x8xf32>
    %c0_42 = arith.constant 0 : index
    %c0_43 = arith.constant 0 : index
    %145 = vector.load %arg5[%c0_42, %c0_43] : memref<1x8xf32, #tpu.memory_space<vmem>>, vector<1x8xf32>
    %146 = vector.broadcast %145 : vector<1x8xf32> to vector<16x8xf32>
    %147 = arith.addf %144, %146 : vector<16x8xf32>
    %cst_44 = arith.constant dense<0.000000e+00> : vector<16xf32>
    %148 = vector.multi_reduction <add>, %147, %cst_44 [1] : vector<16x8xf32> to vector<16xf32>
    %149 = vector.shape_cast %148 : vector<16xf32> to vector<16x1xf32>
    %cst_45 = arith.constant 8.000000e+00 : f32
    %150 = vector.broadcast %cst_45 : f32 to vector<16x1xf32>
    %151 = arith.divf %149, %150 : vector<16x1xf32>
    %152 = vector.broadcast %151 : vector<16x1xf32> to vector<16x8xf32>
    %153 = arith.subf %147, %152 : vector<16x8xf32>
    %154 = arith.mulf %153, %153 : vector<16x8xf32>
    %cst_46 = arith.constant dense<0.000000e+00> : vector<16xf32>
    %155 = vector.multi_reduction <add>, %154, %cst_46 [1] : vector<16x8xf32> to vector<16xf32>
    %156 = vector.shape_cast %155 : vector<16xf32> to vector<16x1xf32>
    %cst_47 = arith.constant 8.000000e+00 : f32
    %157 = vector.broadcast %cst_47 : f32 to vector<16x1xf32>
    %158 = arith.divf %156, %157 : vector<16x1xf32>
    %cst_48 = arith.constant 9.99999974E-6 : f32
    %159 = vector.broadcast %cst_48 : f32 to vector<16x1xf32>
    %160 = arith.addf %158, %159 : vector<16x1xf32>
    %161 = math.rsqrt %160 : vector<16x1xf32>
    %162 = vector.broadcast %161 : vector<16x1xf32> to vector<16x8xf32>
    %163 = arith.mulf %153, %162 : vector<16x8xf32>
    %c0_49 = arith.constant 0 : index
    %c0_50 = arith.constant 0 : index
    %164 = vector.load %arg6[%c0_49, %c0_50] : memref<1x8xf32, #tpu.memory_space<vmem>>, vector<1x8xf32>
    %165 = vector.broadcast %164 : vector<1x8xf32> to vector<16x8xf32>
    %166 = arith.mulf %163, %165 : vector<16x8xf32>
    %167 = arith.addf %166, %2 : vector<16x8xf32>
    %168 = arith.truncf %167 : vector<16x8xf32> to vector<16x8xbf16>
    %c0_51 = arith.constant 0 : index
    %c0_52 = arith.constant 0 : index
    %c0_53 = arith.constant 0 : index
    %169 = vector.load %arg7[%c0_51, %c0_52, %c0_53] : memref<1x16x8xbf16, #tpu.memory_space<vmem>>, vector<1x16x8xbf16>
    %170 = vector.shape_cast %169 : vector<1x16x8xbf16> to vector<16x8xbf16>
    %171 = vector.shape_cast %168 : vector<16x8xbf16> to vector<1x16x8xbf16>
    tpu.vector_store %arg7[%c0_51, %c0_52, %c0_53], %171 {strides = array<i32>} : memref<1x16x8xbf16, #tpu.memory_space<vmem>>, vector<1x16x8xbf16>,
    return
  }
  func.func @transform_0(%arg0: i32) -> (i32, i32, i32) {
    %c0_i32 = arith.constant 0 : i32
    %c0_i32_0 = arith.constant 0 : i32
    %c0_i32_1 = arith.constant 0 : i32
    return %arg0, %c0_i32, %c0_i32_0 : i32, i32, i32
  }
  func.func @transform_1(%arg0: i32) -> (i32, i32) {
    %c0_i32 = arith.constant 0 : i32
    %c0_i32_0 = arith.constant 0 : i32
    %c0_i32_1 = arith.constant 0 : i32
    return %c0_i32, %c0_i32_0 : i32, i32
  }
  func.func @transform_2(%arg0: i32) -> (i32, i32) {
    %c0_i32 = arith.constant 0 : i32
    %c0_i32_0 = arith.constant 0 : i32
    %c0_i32_1 = arith.constant 0 : i32
    return %c0_i32, %c0_i32_0 : i32, i32
  }
  func.func @transform_3(%arg0: i32) -> (i32, i32) {
    %c0_i32 = arith.constant 0 : i32
    %c0_i32_0 = arith.constant 0 : i32
    %c0_i32_1 = arith.constant 0 : i32
    return %c0_i32, %c0_i32_0 : i32, i32
  }
  func.func @transform_4(%arg0: i32) -> (i32, i32) {
    %c0_i32 = arith.constant 0 : i32
    %c0_i32_0 = arith.constant 0 : i32
    %c0_i32_1 = arith.constant 0 : i32
    return %c0_i32, %c0_i32_0 : i32, i32
  }
  func.func @transform_5(%arg0: i32) -> (i32, i32) {
    %c0_i32 = arith.constant 0 : i32
    %c0_i32_0 = arith.constant 0 : i32
    %c0_i32_1 = arith.constant 0 : i32
    return %c0_i32, %c0_i32_0 : i32, i32
  }
  func.func @transform_6(%arg0: i32) -> (i32, i32, i32) {
    %c0_i32 = arith.constant 0 : i32
    %c0_i32_0 = arith.constant 0 : i32
    %c0_i32_1 = arith.constant 0 : i32
    return %arg0, %c0_i32, %c0_i32_0 : i32, i32, i32
  }
}

module attributes {stable_mosaic.version = 11 : i64} {
  func.func @_conv_kernel(%arg0: i32, %arg1: i32, %arg2: i32, %arg3: memref<1x1x16x16xbf16, #tpu.memory_space<vmem>>, %arg4: memref<2x16x128xbf16, #tpu.memory_space<vmem>>, %arg5: memref<1x128xf32, #tpu.memory_space<vmem>>, %arg6: memref<1x1x8x128xbf16, #tpu.memory_space<vmem>>) attributes {dimension_semantics = [#tpu.dimension_semantics<parallel>, #tpu.dimension_semantics<parallel>, #tpu.dimension_semantics<parallel>], iteration_bounds = array<i64: 2, 1, 1>, scalar_prefetch = 0 : i64, scratch_operands = 0 : i64, tpu.core_type = #tpu.core_type<tc>, window_params = [{transform_indices = @transform_0, window_bounds = array<i64: 1, 1, 16, 16>}, {transform_indices = @transform_1, window_bounds = array<i64: 2, 16, 128>}, {transform_indices = @transform_2, window_bounds = array<i64: 1, 128>}, {transform_indices = @transform_3, window_bounds = array<i64: 1, 1, 8, 128>}]} {
    %c0 = arith.constant 0 : index
    %c0_0 = arith.constant 0 : index
    %c0_1 = arith.constant 0 : index
    %c0_2 = arith.constant 0 : index
    %0 = vector.load %arg3[%c0, %c0_0, %c0_1, %c0_2] : memref<1x1x16x16xbf16, #tpu.memory_space<vmem>>, vector<1x1x16x16xbf16>
    %1 = vector.shape_cast %0 : vector<1x1x16x16xbf16> to vector<16x16xbf16>
    %c0_3 = arith.constant 0 : index
    %c0_4 = arith.constant 0 : index
    %c0_5 = arith.constant 0 : index
    %2 = vector.load %arg4[%c0_3, %c0_4, %c0_5] : memref<2x16x128xbf16, #tpu.memory_space<vmem>>, vector<1x16x128xbf16>
    %3 = vector.shape_cast %2 : vector<1x16x128xbf16> to vector<16x128xbf16>
    %cst = arith.constant dense<0.000000e+00> : vector<16x128xf32>
    %4 = tpu.matmul %1, %3, %cst {dimension_numbers = #tpu.dot_dimension_numbers<[1], [0], [0], [1], [0, 0, 1, 1], [], []>} : vector<16x16xbf16>, vector<16x128xbf16>, vector<16x128xf32> -> vector<16x128xf32>
    %c1 = arith.constant 1 : index
    %c0_6 = arith.constant 0 : index
    %c0_7 = arith.constant 0 : index
    %5 = vector.load %arg4[%c1, %c0_6, %c0_7] : memref<2x16x128xbf16, #tpu.memory_space<vmem>>, vector<1x16x128xbf16>
    %6 = vector.shape_cast %5 : vector<1x16x128xbf16> to vector<16x128xbf16>
    %cst_8 = arith.constant dense<0.000000e+00> : vector<16x128xf32>
    %7 = tpu.matmul %1, %6, %cst_8 {dimension_numbers = #tpu.dot_dimension_numbers<[1], [0], [0], [1], [0, 0, 1, 1], [], []>} : vector<16x16xbf16>, vector<16x128xbf16>, vector<16x128xf32> -> vector<16x128xf32>
    %c15_i32 = arith.constant 15 : i32
    %8 = tpu.dynamic_rotate %7 by %c15_i32 dim 0 : vector<16x128xf32>, i32 -> vector<16x128xf32>
    %9 = arith.addf %4, %8 : vector<16x128xf32>
    %10 = vector.extract_strided_slice %9 {offsets = [0, 0], sizes = [8, 128], strides = [1, 1]} : vector<16x128xf32> to vector<8x128xf32>
    %c0_9 = arith.constant 0 : index
    %c0_10 = arith.constant 0 : index
    %11 = vector.load %arg5[%c0_9, %c0_10] : memref<1x128xf32, #tpu.memory_space<vmem>>, vector<1x128xf32>
    %12 = vector.broadcast %11 : vector<1x128xf32> to vector<8x128xf32>
    %13 = arith.addf %10, %12 : vector<8x128xf32>
    %14 = arith.truncf %13 : vector<8x128xf32> to vector<8x128xbf16>
    %c0_11 = arith.constant 0 : index
    %c0_12 = arith.constant 0 : index
    %c0_13 = arith.constant 0 : index
    %c0_14 = arith.constant 0 : index
    %15 = vector.load %arg6[%c0_11, %c0_12, %c0_13, %c0_14] : memref<1x1x8x128xbf16, #tpu.memory_space<vmem>>, vector<1x1x8x128xbf16>
    %16 = vector.shape_cast %15 : vector<1x1x8x128xbf16> to vector<8x128xbf16>
    %17 = vector.shape_cast %14 : vector<8x128xbf16> to vector<1x1x8x128xbf16>
    tpu.vector_store %arg6[%c0_11, %c0_12, %c0_13, %c0_14], %17 {strides = array<i32>} : memref<1x1x8x128xbf16, #tpu.memory_space<vmem>>, vector<1x1x8x128xbf16>,
    return
  }
  func.func @transform_0(%arg0: i32, %arg1: i32, %arg2: i32) -> (i32, i32, i32, i32) {
    %c0_i32 = arith.constant 0 : i32
    %c0_i32_0 = arith.constant 0 : i32
    %c0_i32_1 = arith.constant 0 : i32
    return %arg0, %arg1, %c0_i32, %c0_i32_0 : i32, i32, i32, i32
  }
  func.func @transform_1(%arg0: i32, %arg1: i32, %arg2: i32) -> (i32, i32, i32) {
    %c0_i32 = arith.constant 0 : i32
    %c0_i32_0 = arith.constant 0 : i32
    %c0_i32_1 = arith.constant 0 : i32
    return %c0_i32, %c0_i32_0, %arg2 : i32, i32, i32
  }
  func.func @transform_2(%arg0: i32, %arg1: i32, %arg2: i32) -> (i32, i32) {
    %c0_i32 = arith.constant 0 : i32
    %c0_i32_0 = arith.constant 0 : i32
    return %c0_i32, %arg2 : i32, i32
  }
  func.func @transform_3(%arg0: i32, %arg1: i32, %arg2: i32) -> (i32, i32, i32, i32) {
    %c0_i32 = arith.constant 0 : i32
    %c0_i32_0 = arith.constant 0 : i32
    return %arg0, %arg1, %c0_i32, %arg2 : i32, i32, i32, i32
  }
}

module attributes {stable_mosaic.version = 11 : i64} {
  func.func @_conv_kernel(%arg0: i32, %arg1: i32, %arg2: i32, %arg3: memref<1x1x16x8xbf16, #tpu.memory_space<vmem>>, %arg4: memref<3x8x128xbf16, #tpu.memory_space<vmem>>, %arg5: memref<1x128xf32, #tpu.memory_space<vmem>>, %arg6: memref<1x1x8x128xbf16, #tpu.memory_space<vmem>>) attributes {dimension_semantics = [#tpu.dimension_semantics<parallel>, #tpu.dimension_semantics<parallel>, #tpu.dimension_semantics<parallel>], iteration_bounds = array<i64: 2, 1, 1>, scalar_prefetch = 0 : i64, scratch_operands = 0 : i64, tpu.core_type = #tpu.core_type<tc>, window_params = [{transform_indices = @transform_0, window_bounds = array<i64: 1, 1, 16, 8>}, {transform_indices = @transform_1, window_bounds = array<i64: 3, 8, 128>}, {transform_indices = @transform_2, window_bounds = array<i64: 1, 128>}, {transform_indices = @transform_3, window_bounds = array<i64: 1, 1, 8, 128>}]} {
    %c0 = arith.constant 0 : index
    %c0_0 = arith.constant 0 : index
    %c0_1 = arith.constant 0 : index
    %c0_2 = arith.constant 0 : index
    %0 = vector.load %arg3[%c0, %c0_0, %c0_1, %c0_2] : memref<1x1x16x8xbf16, #tpu.memory_space<vmem>>, vector<1x1x16x8xbf16>
    %1 = vector.shape_cast %0 : vector<1x1x16x8xbf16> to vector<16x8xbf16>
    %c0_3 = arith.constant 0 : index
    %c0_4 = arith.constant 0 : index
    %c0_5 = arith.constant 0 : index
    %2 = vector.load %arg4[%c0_3, %c0_4, %c0_5] : memref<3x8x128xbf16, #tpu.memory_space<vmem>>, vector<1x8x128xbf16>
    %3 = vector.shape_cast %2 : vector<1x8x128xbf16> to vector<8x128xbf16>
    %cst = arith.constant dense<0.000000e+00> : vector<16x128xf32>
    %4 = tpu.matmul %1, %3, %cst {dimension_numbers = #tpu.dot_dimension_numbers<[1], [0], [0], [1], [0, 0, 1, 1], [], []>} : vector<16x8xbf16>, vector<8x128xbf16>, vector<16x128xf32> -> vector<16x128xf32>
    %c1 = arith.constant 1 : index
    %c0_6 = arith.constant 0 : index
    %c0_7 = arith.constant 0 : index
    %5 = vector.load %arg4[%c1, %c0_6, %c0_7] : memref<3x8x128xbf16, #tpu.memory_space<vmem>>, vector<1x8x128xbf16>
    %6 = vector.shape_cast %5 : vector<1x8x128xbf16> to vector<8x128xbf16>
    %cst_8 = arith.constant dense<0.000000e+00> : vector<16x128xf32>
    %7 = tpu.matmul %1, %6, %cst_8 {dimension_numbers = #tpu.dot_dimension_numbers<[1], [0], [0], [1], [0, 0, 1, 1], [], []>} : vector<16x8xbf16>, vector<8x128xbf16>, vector<16x128xf32> -> vector<16x128xf32>
    %c15_i32 = arith.constant 15 : i32
    %8 = tpu.dynamic_rotate %7 by %c15_i32 dim 0 : vector<16x128xf32>, i32 -> vector<16x128xf32>
    %9 = arith.addf %4, %8 : vector<16x128xf32>
    %c2 = arith.constant 2 : index
    %c0_9 = arith.constant 0 : index
    %c0_10 = arith.constant 0 : index
    %10 = vector.load %arg4[%c2, %c0_9, %c0_10] : memref<3x8x128xbf16, #tpu.memory_space<vmem>>, vector<1x8x128xbf16>
    %11 = vector.shape_cast %10 : vector<1x8x128xbf16> to vector<8x128xbf16>
    %cst_11 = arith.constant dense<0.000000e+00> : vector<16x128xf32>
    %12 = tpu.matmul %1, %11, %cst_11 {dimension_numbers = #tpu.dot_dimension_numbers<[1], [0], [0], [1], [0, 0, 1, 1], [], []>} : vector<16x8xbf16>, vector<8x128xbf16>, vector<16x128xf32> -> vector<16x128xf32>
    %c14_i32 = arith.constant 14 : i32
    %13 = tpu.dynamic_rotate %12 by %c14_i32 dim 0 : vector<16x128xf32>, i32 -> vector<16x128xf32>
    %14 = arith.addf %9, %13 : vector<16x128xf32>
    %15 = vector.extract_strided_slice %14 {offsets = [0, 0], sizes = [8, 128], strides = [1, 1]} : vector<16x128xf32> to vector<8x128xf32>
    %c0_12 = arith.constant 0 : index
    %c0_13 = arith.constant 0 : index
    %16 = vector.load %arg5[%c0_12, %c0_13] : memref<1x128xf32, #tpu.memory_space<vmem>>, vector<1x128xf32>
    %17 = vector.broadcast %16 : vector<1x128xf32> to vector<8x128xf32>
    %18 = arith.addf %15, %17 : vector<8x128xf32>
    %19 = arith.truncf %18 : vector<8x128xf32> to vector<8x128xbf16>
    %c0_14 = arith.constant 0 : index
    %c0_15 = arith.constant 0 : index
    %c0_16 = arith.constant 0 : index
    %c0_17 = arith.constant 0 : index
    %20 = vector.load %arg6[%c0_14, %c0_15, %c0_16, %c0_17] : memref<1x1x8x128xbf16, #tpu.memory_space<vmem>>, vector<1x1x8x128xbf16>
    %21 = vector.shape_cast %20 : vector<1x1x8x128xbf16> to vector<8x128xbf16>
    %22 = vector.shape_cast %19 : vector<8x128xbf16> to vector<1x1x8x128xbf16>
    tpu.vector_store %arg6[%c0_14, %c0_15, %c0_16, %c0_17], %22 {strides = array<i32>} : memref<1x1x8x128xbf16, #tpu.memory_space<vmem>>, vector<1x1x8x128xbf16>,
    return
  }
  func.func @transform_0(%arg0: i32, %arg1: i32, %arg2: i32) -> (i32, i32, i32, i32) {
    %c0_i32 = arith.constant 0 : i32
    %c0_i32_0 = arith.constant 0 : i32
    %c0_i32_1 = arith.constant 0 : i32
    return %arg0, %arg1, %c0_i32, %c0_i32_0 : i32, i32, i32, i32
  }
  func.func @transform_1(%arg0: i32, %arg1: i32, %arg2: i32) -> (i32, i32, i32) {
    %c0_i32 = arith.constant 0 : i32
    %c0_i32_0 = arith.constant 0 : i32
    %c0_i32_1 = arith.constant 0 : i32
    return %c0_i32, %c0_i32_0, %arg2 : i32, i32, i32
  }
  func.func @transform_2(%arg0: i32, %arg1: i32, %arg2: i32) -> (i32, i32) {
    %c0_i32 = arith.constant 0 : i32
    %c0_i32_0 = arith.constant 0 : i32
    return %c0_i32, %arg2 : i32, i32
  }
  func.func @transform_3(%arg0: i32, %arg1: i32, %arg2: i32) -> (i32, i32, i32, i32) {
    %c0_i32 = arith.constant 0 : i32
    %c0_i32_0 = arith.constant 0 : i32
    return %arg0, %arg1, %c0_i32, %arg2 : i32, i32, i32, i32
  }
}

module attributes {stable_mosaic.version = 11 : i64} {
  func.func @_gn_kernel(%arg0: i32, %arg1: memref<1x8x8xbf16, #tpu.memory_space<vmem>>, %arg2: memref<1x8xf32, #tpu.memory_space<vmem>>, %arg3: memref<1x8xf32, #tpu.memory_space<vmem>>, %arg4: memref<1x2x8xf32, #tpu.memory_space<vmem>>, %arg5: memref<1x8x8xbf16, #tpu.memory_space<vmem>>) attributes {dimension_semantics = [#tpu.dimension_semantics<parallel>], iteration_bounds = array<i64: 2>, scalar_prefetch = 0 : i64, scratch_operands = 0 : i64, tpu.core_type = #tpu.core_type<tc>, window_params = [{transform_indices = @transform_0, window_bounds = array<i64: 1, 8, 8>}, {pipeline_mode = #tpu.pipeline_mode<synchronous>, transform_indices = @transform_1, window_bounds = array<i64: 1, 8>}, {pipeline_mode = #tpu.pipeline_mode<synchronous>, transform_indices = @transform_2, window_bounds = array<i64: 1, 8>}, {transform_indices = @transform_3, window_bounds = array<i64: 1, 2, 8>}, {transform_indices = @transform_4, window_bounds = array<i64: 1, 8, 8>}]} {
    %c0 = arith.constant 0 : index
    %c0_0 = arith.constant 0 : index
    %c0_1 = arith.constant 0 : index
    %0 = vector.load %arg1[%c0, %c0_0, %c0_1] : memref<1x8x8xbf16, #tpu.memory_space<vmem>>, vector<1x8x8xbf16>
    %1 = vector.shape_cast %0 : vector<1x8x8xbf16> to vector<8x8xbf16>
    %2 = arith.extf %1 : vector<8x8xbf16> to vector<8x8xf32>
    %cst = arith.constant dense<0.000000e+00> : vector<8xf32>
    %3 = vector.multi_reduction <add>, %2, %cst [0] : vector<8x8xf32> to vector<8xf32>
    %4 = vector.shape_cast %3 : vector<8xf32> to vector<1x8xf32>
    %5 = vector.extract_strided_slice %4 {offsets = [0, 0], sizes = [1, 2], strides = [1, 1]} : vector<1x8xf32> to vector<1x2xf32>
    %cst_2 = arith.constant dense<0.000000e+00> : vector<1xf32>
    %6 = vector.multi_reduction <add>, %5, %cst_2 [1] : vector<1x2xf32> to vector<1xf32>
    %7 = vector.shape_cast %6 : vector<1xf32> to vector<1x1xf32>
    %cst_3 = arith.constant 6.250000e-02 : f32
    %8 = vector.broadcast %cst_3 : f32 to vector<1x1xf32>
    %9 = arith.mulf %7, %8 : vector<1x1xf32>
    %10 = vector.shape_cast %9 : vector<1x1xf32> to vector<1x1xf32>
    %11 = vector.broadcast %10 : vector<1x1xf32> to vector<1x2xf32>
    %12 = vector.extract_strided_slice %4 {offsets = [0, 2], sizes = [1, 2], strides = [1, 1]} : vector<1x8xf32> to vector<1x2xf32>
    %cst_4 = arith.constant dense<0.000000e+00> : vector<1xf32>
    %13 = vector.multi_reduction <add>, %12, %cst_4 [1] : vector<1x2xf32> to vector<1xf32>
    %14 = vector.shape_cast %13 : vector<1xf32> to vector<1x1xf32>
    %cst_5 = arith.constant 6.250000e-02 : f32
    %15 = vector.broadcast %cst_5 : f32 to vector<1x1xf32>
    %16 = arith.mulf %14, %15 : vector<1x1xf32>
    %17 = vector.shape_cast %16 : vector<1x1xf32> to vector<1x1xf32>
    %18 = vector.broadcast %17 : vector<1x1xf32> to vector<1x2xf32>
    %19 = vector.extract_strided_slice %4 {offsets = [0, 4], sizes = [1, 2], strides = [1, 1]} : vector<1x8xf32> to vector<1x2xf32>
    %cst_6 = arith.constant dense<0.000000e+00> : vector<1xf32>
    %20 = vector.multi_reduction <add>, %19, %cst_6 [1] : vector<1x2xf32> to vector<1xf32>
    %21 = vector.shape_cast %20 : vector<1xf32> to vector<1x1xf32>
    %cst_7 = arith.constant 6.250000e-02 : f32
    %22 = vector.broadcast %cst_7 : f32 to vector<1x1xf32>
    %23 = arith.mulf %21, %22 : vector<1x1xf32>
    %24 = vector.shape_cast %23 : vector<1x1xf32> to vector<1x1xf32>
    %25 = vector.broadcast %24 : vector<1x1xf32> to vector<1x2xf32>
    %26 = vector.extract_strided_slice %4 {offsets = [0, 6], sizes = [1, 2], strides = [1, 1]} : vector<1x8xf32> to vector<1x2xf32>
    %cst_8 = arith.constant dense<0.000000e+00> : vector<1xf32>
    %27 = vector.multi_reduction <add>, %26, %cst_8 [1] : vector<1x2xf32> to vector<1xf32>
    %28 = vector.shape_cast %27 : vector<1xf32> to vector<1x1xf32>
    %cst_9 = arith.constant 6.250000e-02 : f32
    %29 = vector.broadcast %cst_9 : f32 to vector<1x1xf32>
    %30 = arith.mulf %28, %29 : vector<1x1xf32>
    %31 = vector.shape_cast %30 : vector<1x1xf32> to vector<1x1xf32>
    %32 = vector.broadcast %31 : vector<1x1xf32> to vector<1x2xf32>
    %33 = tpu.concatenate %11, %18, %25, %32 in 1 : vector<1x2xf32>, vector<1x2xf32>, vector<1x2xf32>, vector<1x2xf32> -> vector<1x8xf32>
    %34 = vector.broadcast %33 : vector<1x8xf32> to vector<8x8xf32>
    %35 = arith.subf %2, %34 : vector<8x8xf32>
    %36 = arith.mulf %35, %35 : vector<8x8xf32>
    %cst_10 = arith.constant dense<0.000000e+00> : vector<8xf32>
    %37 = vector.multi_reduction <add>, %36, %cst_10 [0] : vector<8x8xf32> to vector<8xf32>
    %38 = vector.shape_cast %37 : vector<8xf32> to vector<1x8xf32>
    %39 = vector.extract_strided_slice %38 {offsets = [0, 0], sizes = [1, 2], strides = [1, 1]} : vector<1x8xf32> to vector<1x2xf32>
    %cst_11 = arith.constant dense<0.000000e+00> : vector<1xf32>
    %40 = vector.multi_reduction <add>, %39, %cst_11 [1] : vector<1x2xf32> to vector<1xf32>
    %41 = vector.shape_cast %40 : vector<1xf32> to vector<1x1xf32>
    %cst_12 = arith.constant 6.250000e-02 : f32
    %42 = vector.broadcast %cst_12 : f32 to vector<1x1xf32>
    %43 = arith.mulf %41, %42 : vector<1x1xf32>
    %44 = vector.shape_cast %43 : vector<1x1xf32> to vector<1x1xf32>
    %45 = vector.broadcast %44 : vector<1x1xf32> to vector<1x2xf32>
    %46 = vector.extract_strided_slice %38 {offsets = [0, 2], sizes = [1, 2], strides = [1, 1]} : vector<1x8xf32> to vector<1x2xf32>
    %cst_13 = arith.constant dense<0.000000e+00> : vector<1xf32>
    %47 = vector.multi_reduction <add>, %46, %cst_13 [1] : vector<1x2xf32> to vector<1xf32>
    %48 = vector.shape_cast %47 : vector<1xf32> to vector<1x1xf32>
    %cst_14 = arith.constant 6.250000e-02 : f32
    %49 = vector.broadcast %cst_14 : f32 to vector<1x1xf32>
    %50 = arith.mulf %48, %49 : vector<1x1xf32>
    %51 = vector.shape_cast %50 : vector<1x1xf32> to vector<1x1xf32>
    %52 = vector.broadcast %51 : vector<1x1xf32> to vector<1x2xf32>
    %53 = vector.extract_strided_slice %38 {offsets = [0, 4], sizes = [1, 2], strides = [1, 1]} : vector<1x8xf32> to vector<1x2xf32>
    %cst_15 = arith.constant dense<0.000000e+00> : vector<1xf32>
    %54 = vector.multi_reduction <add>, %53, %cst_15 [1] : vector<1x2xf32> to vector<1xf32>
    %55 = vector.shape_cast %54 : vector<1xf32> to vector<1x1xf32>
    %cst_16 = arith.constant 6.250000e-02 : f32
    %56 = vector.broadcast %cst_16 : f32 to vector<1x1xf32>
    %57 = arith.mulf %55, %56 : vector<1x1xf32>
    %58 = vector.shape_cast %57 : vector<1x1xf32> to vector<1x1xf32>
    %59 = vector.broadcast %58 : vector<1x1xf32> to vector<1x2xf32>
    %60 = vector.extract_strided_slice %38 {offsets = [0, 6], sizes = [1, 2], strides = [1, 1]} : vector<1x8xf32> to vector<1x2xf32>
    %cst_17 = arith.constant dense<0.000000e+00> : vector<1xf32>
    %61 = vector.multi_reduction <add>, %60, %cst_17 [1] : vector<1x2xf32> to vector<1xf32>
    %62 = vector.shape_cast %61 : vector<1xf32> to vector<1x1xf32>
    %cst_18 = arith.constant 6.250000e-02 : f32
    %63 = vector.broadcast %cst_18 : f32 to vector<1x1xf32>
    %64 = arith.mulf %62, %63 : vector<1x1xf32>
    %65 = vector.shape_cast %64 : vector<1x1xf32> to vector<1x1xf32>
    %66 = vector.broadcast %65 : vector<1x1xf32> to vector<1x2xf32>
    %67 = tpu.concatenate %45, %52, %59, %66 in 1 : vector<1x2xf32>, vector<1x2xf32>, vector<1x2xf32>, vector<1x2xf32> -> vector<1x8xf32>
    %cst_19 = arith.constant 9.99999974E-6 : f32
    %68 = vector.broadcast %cst_19 : f32 to vector<1x8xf32>
    %69 = arith.addf %67, %68 : vector<1x8xf32>
    %70 = math.rsqrt %69 : vector<1x8xf32>
    %71 = vector.broadcast %70 : vector<1x8xf32> to vector<8x8xf32>
    %72 = arith.mulf %35, %71 : vector<8x8xf32>
    %c0_20 = arith.constant 0 : index
    %c0_21 = arith.constant 0 : index
    %73 = vector.load %arg2[%c0_20, %c0_21] : memref<1x8xf32, #tpu.memory_space<vmem>>, vector<1x8xf32>
    %74 = vector.broadcast %73 : vector<1x8xf32> to vector<8x8xf32>
    %75 = arith.mulf %72, %74 : vector<8x8xf32>
    %c0_22 = arith.constant 0 : index
    %c0_23 = arith.constant 0 : index
    %76 = vector.load %arg3[%c0_22, %c0_23] : memref<1x8xf32, #tpu.memory_space<vmem>>, vector<1x8xf32>
    %77 = vector.broadcast %76 : vector<1x8xf32> to vector<8x8xf32>
    %78 = arith.addf %75, %77 : vector<8x8xf32>
    %c0_24 = arith.constant 0 : index
    %c0_25 = arith.constant 0 : index
    %c0_26 = arith.constant 0 : index
    %79 = vector.load %arg4[%c0_24, %c0_25, %c0_26] : memref<1x2x8xf32, #tpu.memory_space<vmem>>, vector<1x2x8xf32>
    %80 = vector.shape_cast %79 : vector<1x2x8xf32> to vector<2x8xf32>
    %81 = vector.extract_strided_slice %80 {offsets = [0, 0], sizes = [1, 8], strides = [1, 1]} : vector<2x8xf32> to vector<1x8xf32>
    %cst_27 = arith.constant 1.000000e+00 : f32
    %82 = vector.broadcast %cst_27 : f32 to vector<1x8xf32>
    %83 = arith.addf %81, %82 : vector<1x8xf32>
    %84 = vector.broadcast %83 : vector<1x8xf32> to vector<8x8xf32>
    %85 = arith.mulf %78, %84 : vector<8x8xf32>
    %86 = vector.extract_strided_slice %80 {offsets = [1, 0], sizes = [1, 8], strides = [1, 1]} : vector<2x8xf32> to vector<1x8xf32>
    %87 = vector.broadcast %86 : vector<1x8xf32> to vector<8x8xf32>
    %88 = arith.addf %85, %87 : vector<8x8xf32>
    %89 = arith.negf %88 : vector<8x8xf32>
    %90 = math.exp %89 : vector<8x8xf32>
    %cst_28 = arith.constant 1.000000e+00 : f32
    %91 = vector.broadcast %cst_28 : f32 to vector<8x8xf32>
    %92 = arith.addf %91, %90 : vector<8x8xf32>
    %93 = arith.divf %91, %92 : vector<8x8xf32>
    %94 = arith.mulf %88, %93 : vector<8x8xf32>
    %95 = arith.truncf %94 : vector<8x8xf32> to vector<8x8xbf16>
    %c0_29 = arith.constant 0 : index
    %c0_30 = arith.constant 0 : index
    %c0_31 = arith.constant 0 : index
    %96 = vector.load %arg5[%c0_29, %c0_30, %c0_31] : memref<1x8x8xbf16, #tpu.memory_space<vmem>>, vector<1x8x8xbf16>
    %97 = vector.shape_cast %96 : vector<1x8x8xbf16> to vector<8x8xbf16>
    %98 = vector.shape_cast %95 : vector<8x8xbf16> to vector<1x8x8xbf16>
    tpu.vector_store %arg5[%c0_29, %c0_30, %c0_31], %98 {strides = array<i32>} : memref<1x8x8xbf16, #tpu.memory_space<vmem>>, vector<1x8x8xbf16>,
    return
  }
  func.func @transform_0(%arg0: i32) -> (i32, i32, i32) {
    %c0_i32 = arith.constant 0 : i32
    %c0_i32_0 = arith.constant 0 : i32
    %c0_i32_1 = arith.constant 0 : i32
    return %arg0, %c0_i32, %c0_i32_0 : i32, i32, i32
  }
  func.func @transform_1(%arg0: i32) -> (i32, i32) {
    %c0_i32 = arith.constant 0 : i32
    %c0_i32_0 = arith.constant 0 : i32
    %c0_i32_1 = arith.constant 0 : i32
    return %c0_i32, %c0_i32_0 : i32, i32
  }
  func.func @transform_2(%arg0: i32) -> (i32, i32) {
    %c0_i32 = arith.constant 0 : i32
    %c0_i32_0 = arith.constant 0 : i32
    %c0_i32_1 = arith.constant 0 : i32
    return %c0_i32, %c0_i32_0 : i32, i32
  }
  func.func @transform_3(%arg0: i32) -> (i32, i32, i32) {
    %c0_i32 = arith.constant 0 : i32
    %c0_i32_0 = arith.constant 0 : i32
    %c0_i32_1 = arith.constant 0 : i32
    return %arg0, %c0_i32, %c0_i32_0 : i32, i32, i32
  }
  func.func @transform_4(%arg0: i32) -> (i32, i32, i32) {
    %c0_i32 = arith.constant 0 : i32
    %c0_i32_0 = arith.constant 0 : i32
    %c0_i32_1 = arith.constant 0 : i32
    return %arg0, %c0_i32, %c0_i32_0 : i32, i32, i32
  }
}

module attributes {stable_mosaic.version = 11 : i64} {
  func.func @_attn_res_kernel(%arg0: i32, %arg1: memref<1x8x8xbf16, #tpu.memory_space<vmem>>, %arg2: memref<1x8xf32, #tpu.memory_space<vmem>>, %arg3: memref<8x384xbf16, #tpu.memory_space<vmem>>, %arg4: memref<128x8xbf16, #tpu.memory_space<vmem>>, %arg5: memref<1x8xf32, #tpu.memory_space<vmem>>, %arg6: memref<1x8xf32, #tpu.memory_space<vmem>>, %arg7: memref<1x8x8xbf16, #tpu.memory_space<vmem>>) attributes {dimension_semantics = [#tpu.dimension_semantics<parallel>], iteration_bounds = array<i64: 2>, scalar_prefetch = 0 : i64, scratch_operands = 0 : i64, tpu.core_type = #tpu.core_type<tc>, window_params = [{transform_indices = @transform_0, window_bounds = array<i64: 1, 8, 8>}, {pipeline_mode = #tpu.pipeline_mode<synchronous>, transform_indices = @transform_1, window_bounds = array<i64: 1, 8>}, {pipeline_mode = #tpu.pipeline_mode<synchronous>, transform_indices = @transform_2, window_bounds = array<i64: 8, 384>}, {pipeline_mode = #tpu.pipeline_mode<synchronous>, transform_indices = @transform_3, window_bounds = array<i64: 128, 8>}, {pipeline_mode = #tpu.pipeline_mode<synchronous>, transform_indices = @transform_4, window_bounds = array<i64: 1, 8>}, {pipeline_mode = #tpu.pipeline_mode<synchronous>, transform_indices = @transform_5, window_bounds = array<i64: 1, 8>}, {transform_indices = @transform_6, window_bounds = array<i64: 1, 8, 8>}]} {
    %c0 = arith.constant 0 : index
    %c0_0 = arith.constant 0 : index
    %c0_1 = arith.constant 0 : index
    %0 = vector.load %arg1[%c0, %c0_0, %c0_1] : memref<1x8x8xbf16, #tpu.memory_space<vmem>>, vector<1x8x8xbf16>
    %1 = vector.shape_cast %0 : vector<1x8x8xbf16> to vector<8x8xbf16>
    %2 = arith.extf %1 : vector<8x8xbf16> to vector<8x8xf32>
    %cst = arith.constant dense<0.000000e+00> : vector<8xf32>
    %3 = vector.multi_reduction <add>, %2, %cst [1] : vector<8x8xf32> to vector<8xf32>
    %4 = vector.shape_cast %3 : vector<8xf32> to vector<8x1xf32>
    %cst_2 = arith.constant 8.000000e+00 : f32
    %5 = vector.broadcast %cst_2 : f32 to vector<8x1xf32>
    %6 = arith.divf %4, %5 : vector<8x1xf32>
    %7 = vector.broadcast %6 : vector<8x1xf32> to vector<8x8xf32>
    %8 = arith.subf %2, %7 : vector<8x8xf32>
    %9 = arith.mulf %8, %8 : vector<8x8xf32>
    %cst_3 = arith.constant dense<0.000000e+00> : vector<8xf32>
    %10 = vector.multi_reduction <add>, %9, %cst_3 [1] : vector<8x8xf32> to vector<8xf32>
    %11 = vector.shape_cast %10 : vector<8xf32> to vector<8x1xf32>
    %cst_4 = arith.constant 8.000000e+00 : f32
    %12 = vector.broadcast %cst_4 : f32 to vector<8x1xf32>
    %13 = arith.divf %11, %12 : vector<8x1xf32>
    %cst_5 = arith.constant 9.99999974E-6 : f32
    %14 = vector.broadcast %cst_5 : f32 to vector<8x1xf32>
    %15 = arith.addf %13, %14 : vector<8x1xf32>
    %16 = math.rsqrt %15 : vector<8x1xf32>
    %17 = vector.broadcast %16 : vector<8x1xf32> to vector<8x8xf32>
    %18 = arith.mulf %8, %17 : vector<8x8xf32>
    %c0_6 = arith.constant 0 : index
    %c0_7 = arith.constant 0 : index
    %19 = vector.load %arg2[%c0_6, %c0_7] : memref<1x8xf32, #tpu.memory_space<vmem>>, vector<1x8xf32>
    %20 = vector.broadcast %19 : vector<1x8xf32> to vector<8x8xf32>
    %21 = arith.mulf %18, %20 : vector<8x8xf32>
    %22 = arith.truncf %21 : vector<8x8xf32> to vector<8x8xbf16>
    %c0_8 = arith.constant 0 : index
    %c0_9 = arith.constant 0 : index
    %23 = vector.load %arg3[%c0_8, %c0_9] : memref<8x384xbf16, #tpu.memory_space<vmem>>, vector<8x384xbf16>
    %cst_10 = arith.constant dense<0.000000e+00> : vector<8x384xf32>
    %24 = tpu.matmul %22, %23, %cst_10 {dimension_numbers = #tpu.dot_dimension_numbers<[1], [0], [0], [1], [0, 0, 1, 1], [], []>} : vector<8x8xbf16>, vector<8x384xbf16>, vector<8x384xf32> -> vector<8x384xf32>
    %25 = vector.extract_strided_slice %24 {offsets = [0, 0], sizes = [8, 32], strides = [1, 1]} : vector<8x384xf32> to vector<8x32xf32>
    %26 = vector.extract_strided_slice %24 {offsets = [0, 128], sizes = [8, 32], strides = [1, 1]} : vector<8x384xf32> to vector<8x32xf32>
    %27 = vector.extract_strided_slice %24 {offsets = [0, 256], sizes = [8, 32], strides = [1, 1]} : vector<8x384xf32> to vector<8x32xf32>
    %cst_11 = arith.constant dense<0xFF800000> : vector<8xf32>
    %28 = vector.multi_reduction <maximumf>, %25, %cst_11 [1] : vector<8x32xf32> to vector<8xf32>
    %29 = vector.shape_cast %28 : vector<8xf32> to vector<8x1xf32>
    %30 = vector.broadcast %29 : vector<8x1xf32> to vector<8x32xf32>
    %31 = arith.subf %25, %30 : vector<8x32xf32>
    %32 = math.exp %31 : vector<8x32xf32>
    %cst_12 = arith.constant dense<0.000000e+00> : vector<8xf32>
    %33 = vector.multi_reduction <add>, %32, %cst_12 [1] : vector<8x32xf32> to vector<8xf32>
    %34 = vector.shape_cast %33 : vector<8xf32> to vector<8x1xf32>
    %35 = vector.broadcast %34 : vector<8x1xf32> to vector<8x32xf32>
    %36 = arith.divf %32, %35 : vector<8x32xf32>
    %cst_13 = arith.constant 0.176776692 : f32
    %37 = vector.broadcast %cst_13 : f32 to vector<8x32xf32>
    %38 = arith.mulf %36, %37 : vector<8x32xf32>
    %cst_14 = arith.constant dense<0xFF800000> : vector<32xf32>
    %39 = vector.multi_reduction <maximumf>, %26, %cst_14 [0] : vector<8x32xf32> to vector<32xf32>
    %40 = vector.shape_cast %39 : vector<32xf32> to vector<1x32xf32>
    %41 = vector.broadcast %40 : vector<1x32xf32> to vector<8x32xf32>
    %42 = arith.subf %26, %41 : vector<8x32xf32>
    %43 = math.exp %42 : vector<8x32xf32>
    %cst_15 = arith.constant dense<0.000000e+00> : vector<32xf32>
    %44 = vector.multi_reduction <add>, %43, %cst_15 [0] : vector<8x32xf32> to vector<32xf32>
    %45 = vector.shape_cast %44 : vector<32xf32> to vector<1x32xf32>
    %46 = vector.broadcast %45 : vector<1x32xf32> to vector<8x32xf32>
    %47 = arith.divf %43, %46 : vector<8x32xf32>
    %48 = arith.truncf %47 : vector<8x32xf32> to vector<8x32xbf16>
    %49 = arith.truncf %27 : vector<8x32xf32> to vector<8x32xbf16>
    %cst_16 = arith.constant dense<0.000000e+00> : vector<32x32xf32>
    %50 = tpu.matmul %48, %49, %cst_16 {dimension_numbers = #tpu.dot_dimension_numbers<[0], [0], [1], [1], [0, 1, 1, 1], [], []>} : vector<8x32xbf16>, vector<8x32xbf16>, vector<32x32xf32> -> vector<32x32xf32>
    %51 = arith.truncf %38 : vector<8x32xf32> to vector<8x32xbf16>
    %52 = arith.truncf %50 : vector<32x32xf32> to vector<32x32xbf16>
    %cst_17 = arith.constant dense<0.000000e+00> : vector<8x32xf32>
    %53 = tpu.matmul %51, %52, %cst_17 {dimension_numbers = #tpu.dot_dimension_numbers<[1], [0], [0], [1], [0, 0, 1, 1], [], []>} : vector<8x32xbf16>, vector<32x32xbf16>, vector<8x32xf32> -> vector<8x32xf32>
    %54 = vector.extract_strided_slice %24 {offsets = [0, 32], sizes = [8, 32], strides = [1, 1]} : vector<8x384xf32> to vector<8x32xf32>
    %55 = vector.extract_strided_slice %24 {offsets = [0, 160], sizes = [8, 32], strides = [1, 1]} : vector<8x384xf32> to vector<8x32xf32>
    %56 = vector.extract_strided_slice %24 {offsets = [0, 288], sizes = [8, 32], strides = [1, 1]} : vector<8x384xf32> to vector<8x32xf32>
    %cst_18 = arith.constant dense<0xFF800000> : vector<8xf32>
    %57 = vector.multi_reduction <maximumf>, %54, %cst_18 [1] : vector<8x32xf32> to vector<8xf32>
    %58 = vector.shape_cast %57 : vector<8xf32> to vector<8x1xf32>
    %59 = vector.broadcast %58 : vector<8x1xf32> to vector<8x32xf32>
    %60 = arith.subf %54, %59 : vector<8x32xf32>
    %61 = math.exp %60 : vector<8x32xf32>
    %cst_19 = arith.constant dense<0.000000e+00> : vector<8xf32>
    %62 = vector.multi_reduction <add>, %61, %cst_19 [1] : vector<8x32xf32> to vector<8xf32>
    %63 = vector.shape_cast %62 : vector<8xf32> to vector<8x1xf32>
    %64 = vector.broadcast %63 : vector<8x1xf32> to vector<8x32xf32>
    %65 = arith.divf %61, %64 : vector<8x32xf32>
    %cst_20 = arith.constant 0.176776692 : f32
    %66 = vector.broadcast %cst_20 : f32 to vector<8x32xf32>
    %67 = arith.mulf %65, %66 : vector<8x32xf32>
    %cst_21 = arith.constant dense<0xFF800000> : vector<32xf32>
    %68 = vector.multi_reduction <maximumf>, %55, %cst_21 [0] : vector<8x32xf32> to vector<32xf32>
    %69 = vector.shape_cast %68 : vector<32xf32> to vector<1x32xf32>
    %70 = vector.broadcast %69 : vector<1x32xf32> to vector<8x32xf32>
    %71 = arith.subf %55, %70 : vector<8x32xf32>
    %72 = math.exp %71 : vector<8x32xf32>
    %cst_22 = arith.constant dense<0.000000e+00> : vector<32xf32>
    %73 = vector.multi_reduction <add>, %72, %cst_22 [0] : vector<8x32xf32> to vector<32xf32>
    %74 = vector.shape_cast %73 : vector<32xf32> to vector<1x32xf32>
    %75 = vector.broadcast %74 : vector<1x32xf32> to vector<8x32xf32>
    %76 = arith.divf %72, %75 : vector<8x32xf32>
    %77 = arith.truncf %76 : vector<8x32xf32> to vector<8x32xbf16>
    %78 = arith.truncf %56 : vector<8x32xf32> to vector<8x32xbf16>
    %cst_23 = arith.constant dense<0.000000e+00> : vector<32x32xf32>
    %79 = tpu.matmul %77, %78, %cst_23 {dimension_numbers = #tpu.dot_dimension_numbers<[0], [0], [1], [1], [0, 1, 1, 1], [], []>} : vector<8x32xbf16>, vector<8x32xbf16>, vector<32x32xf32> -> vector<32x32xf32>
    %80 = arith.truncf %67 : vector<8x32xf32> to vector<8x32xbf16>
    %81 = arith.truncf %79 : vector<32x32xf32> to vector<32x32xbf16>
    %cst_24 = arith.constant dense<0.000000e+00> : vector<8x32xf32>
    %82 = tpu.matmul %80, %81, %cst_24 {dimension_numbers = #tpu.dot_dimension_numbers<[1], [0], [0], [1], [0, 0, 1, 1], [], []>} : vector<8x32xbf16>, vector<32x32xbf16>, vector<8x32xf32> -> vector<8x32xf32>
    %83 = vector.extract_strided_slice %24 {offsets = [0, 64], sizes = [8, 32], strides = [1, 1]} : vector<8x384xf32> to vector<8x32xf32>
    %84 = vector.extract_strided_slice %24 {offsets = [0, 192], sizes = [8, 32], strides = [1, 1]} : vector<8x384xf32> to vector<8x32xf32>
    %85 = vector.extract_strided_slice %24 {offsets = [0, 320], sizes = [8, 32], strides = [1, 1]} : vector<8x384xf32> to vector<8x32xf32>
    %cst_25 = arith.constant dense<0xFF800000> : vector<8xf32>
    %86 = vector.multi_reduction <maximumf>, %83, %cst_25 [1] : vector<8x32xf32> to vector<8xf32>
    %87 = vector.shape_cast %86 : vector<8xf32> to vector<8x1xf32>
    %88 = vector.broadcast %87 : vector<8x1xf32> to vector<8x32xf32>
    %89 = arith.subf %83, %88 : vector<8x32xf32>
    %90 = math.exp %89 : vector<8x32xf32>
    %cst_26 = arith.constant dense<0.000000e+00> : vector<8xf32>
    %91 = vector.multi_reduction <add>, %90, %cst_26 [1] : vector<8x32xf32> to vector<8xf32>
    %92 = vector.shape_cast %91 : vector<8xf32> to vector<8x1xf32>
    %93 = vector.broadcast %92 : vector<8x1xf32> to vector<8x32xf32>
    %94 = arith.divf %90, %93 : vector<8x32xf32>
    %cst_27 = arith.constant 0.176776692 : f32
    %95 = vector.broadcast %cst_27 : f32 to vector<8x32xf32>
    %96 = arith.mulf %94, %95 : vector<8x32xf32>
    %cst_28 = arith.constant dense<0xFF800000> : vector<32xf32>
    %97 = vector.multi_reduction <maximumf>, %84, %cst_28 [0] : vector<8x32xf32> to vector<32xf32>
    %98 = vector.shape_cast %97 : vector<32xf32> to vector<1x32xf32>
    %99 = vector.broadcast %98 : vector<1x32xf32> to vector<8x32xf32>
    %100 = arith.subf %84, %99 : vector<8x32xf32>
    %101 = math.exp %100 : vector<8x32xf32>
    %cst_29 = arith.constant dense<0.000000e+00> : vector<32xf32>
    %102 = vector.multi_reduction <add>, %101, %cst_29 [0] : vector<8x32xf32> to vector<32xf32>
    %103 = vector.shape_cast %102 : vector<32xf32> to vector<1x32xf32>
    %104 = vector.broadcast %103 : vector<1x32xf32> to vector<8x32xf32>
    %105 = arith.divf %101, %104 : vector<8x32xf32>
    %106 = arith.truncf %105 : vector<8x32xf32> to vector<8x32xbf16>
    %107 = arith.truncf %85 : vector<8x32xf32> to vector<8x32xbf16>
    %cst_30 = arith.constant dense<0.000000e+00> : vector<32x32xf32>
    %108 = tpu.matmul %106, %107, %cst_30 {dimension_numbers = #tpu.dot_dimension_numbers<[0], [0], [1], [1], [0, 1, 1, 1], [], []>} : vector<8x32xbf16>, vector<8x32xbf16>, vector<32x32xf32> -> vector<32x32xf32>
    %109 = arith.truncf %96 : vector<8x32xf32> to vector<8x32xbf16>
    %110 = arith.truncf %108 : vector<32x32xf32> to vector<32x32xbf16>
    %cst_31 = arith.constant dense<0.000000e+00> : vector<8x32xf32>
    %111 = tpu.matmul %109, %110, %cst_31 {dimension_numbers = #tpu.dot_dimension_numbers<[1], [0], [0], [1], [0, 0, 1, 1], [], []>} : vector<8x32xbf16>, vector<32x32xbf16>, vector<8x32xf32> -> vector<8x32xf32>
    %112 = vector.extract_strided_slice %24 {offsets = [0, 96], sizes = [8, 32], strides = [1, 1]} : vector<8x384xf32> to vector<8x32xf32>
    %113 = vector.extract_strided_slice %24 {offsets = [0, 224], sizes = [8, 32], strides = [1, 1]} : vector<8x384xf32> to vector<8x32xf32>
    %114 = vector.extract_strided_slice %24 {offsets = [0, 352], sizes = [8, 32], strides = [1, 1]} : vector<8x384xf32> to vector<8x32xf32>
    %cst_32 = arith.constant dense<0xFF800000> : vector<8xf32>
    %115 = vector.multi_reduction <maximumf>, %112, %cst_32 [1] : vector<8x32xf32> to vector<8xf32>
    %116 = vector.shape_cast %115 : vector<8xf32> to vector<8x1xf32>
    %117 = vector.broadcast %116 : vector<8x1xf32> to vector<8x32xf32>
    %118 = arith.subf %112, %117 : vector<8x32xf32>
    %119 = math.exp %118 : vector<8x32xf32>
    %cst_33 = arith.constant dense<0.000000e+00> : vector<8xf32>
    %120 = vector.multi_reduction <add>, %119, %cst_33 [1] : vector<8x32xf32> to vector<8xf32>
    %121 = vector.shape_cast %120 : vector<8xf32> to vector<8x1xf32>
    %122 = vector.broadcast %121 : vector<8x1xf32> to vector<8x32xf32>
    %123 = arith.divf %119, %122 : vector<8x32xf32>
    %cst_34 = arith.constant 0.176776692 : f32
    %124 = vector.broadcast %cst_34 : f32 to vector<8x32xf32>
    %125 = arith.mulf %123, %124 : vector<8x32xf32>
    %cst_35 = arith.constant dense<0xFF800000> : vector<32xf32>
    %126 = vector.multi_reduction <maximumf>, %113, %cst_35 [0] : vector<8x32xf32> to vector<32xf32>
    %127 = vector.shape_cast %126 : vector<32xf32> to vector<1x32xf32>
    %128 = vector.broadcast %127 : vector<1x32xf32> to vector<8x32xf32>
    %129 = arith.subf %113, %128 : vector<8x32xf32>
    %130 = math.exp %129 : vector<8x32xf32>
    %cst_36 = arith.constant dense<0.000000e+00> : vector<32xf32>
    %131 = vector.multi_reduction <add>, %130, %cst_36 [0] : vector<8x32xf32> to vector<32xf32>
    %132 = vector.shape_cast %131 : vector<32xf32> to vector<1x32xf32>
    %133 = vector.broadcast %132 : vector<1x32xf32> to vector<8x32xf32>
    %134 = arith.divf %130, %133 : vector<8x32xf32>
    %135 = arith.truncf %134 : vector<8x32xf32> to vector<8x32xbf16>
    %136 = arith.truncf %114 : vector<8x32xf32> to vector<8x32xbf16>
    %cst_37 = arith.constant dense<0.000000e+00> : vector<32x32xf32>
    %137 = tpu.matmul %135, %136, %cst_37 {dimension_numbers = #tpu.dot_dimension_numbers<[0], [0], [1], [1], [0, 1, 1, 1], [], []>} : vector<8x32xbf16>, vector<8x32xbf16>, vector<32x32xf32> -> vector<32x32xf32>
    %138 = arith.truncf %125 : vector<8x32xf32> to vector<8x32xbf16>
    %139 = arith.truncf %137 : vector<32x32xf32> to vector<32x32xbf16>
    %cst_38 = arith.constant dense<0.000000e+00> : vector<8x32xf32>
    %140 = tpu.matmul %138, %139, %cst_38 {dimension_numbers = #tpu.dot_dimension_numbers<[1], [0], [0], [1], [0, 0, 1, 1], [], []>} : vector<8x32xbf16>, vector<32x32xbf16>, vector<8x32xf32> -> vector<8x32xf32>
    %141 = tpu.concatenate %53, %82, %111, %140 in 1 : vector<8x32xf32>, vector<8x32xf32>, vector<8x32xf32>, vector<8x32xf32> -> vector<8x128xf32>
    %142 = arith.truncf %141 : vector<8x128xf32> to vector<8x128xbf16>
    %c0_39 = arith.constant 0 : index
    %c0_40 = arith.constant 0 : index
    %143 = vector.load %arg4[%c0_39, %c0_40] : memref<128x8xbf16, #tpu.memory_space<vmem>>, vector<128x8xbf16>
    %cst_41 = arith.constant dense<0.000000e+00> : vector<8x8xf32>
    %144 = tpu.matmul %142, %143, %cst_41 {dimension_numbers = #tpu.dot_dimension_numbers<[1], [0], [0], [1], [0, 0, 1, 1], [], []>} : vector<8x128xbf16>, vector<128x8xbf16>, vector<8x8xf32> -> vector<8x8xf32>
    %c0_42 = arith.constant 0 : index
    %c0_43 = arith.constant 0 : index
    %145 = vector.load %arg5[%c0_42, %c0_43] : memref<1x8xf32, #tpu.memory_space<vmem>>, vector<1x8xf32>
    %146 = vector.broadcast %145 : vector<1x8xf32> to vector<8x8xf32>
    %147 = arith.addf %144, %146 : vector<8x8xf32>
    %cst_44 = arith.constant dense<0.000000e+00> : vector<8xf32>
    %148 = vector.multi_reduction <add>, %147, %cst_44 [1] : vector<8x8xf32> to vector<8xf32>
    %149 = vector.shape_cast %148 : vector<8xf32> to vector<8x1xf32>
    %cst_45 = arith.constant 8.000000e+00 : f32
    %150 = vector.broadcast %cst_45 : f32 to vector<8x1xf32>
    %151 = arith.divf %149, %150 : vector<8x1xf32>
    %152 = vector.broadcast %151 : vector<8x1xf32> to vector<8x8xf32>
    %153 = arith.subf %147, %152 : vector<8x8xf32>
    %154 = arith.mulf %153, %153 : vector<8x8xf32>
    %cst_46 = arith.constant dense<0.000000e+00> : vector<8xf32>
    %155 = vector.multi_reduction <add>, %154, %cst_46 [1] : vector<8x8xf32> to vector<8xf32>
    %156 = vector.shape_cast %155 : vector<8xf32> to vector<8x1xf32>
    %cst_47 = arith.constant 8.000000e+00 : f32
    %157 = vector.broadcast %cst_47 : f32 to vector<8x1xf32>
    %158 = arith.divf %156, %157 : vector<8x1xf32>
    %cst_48 = arith.constant 9.99999974E-6 : f32
    %159 = vector.broadcast %cst_48 : f32 to vector<8x1xf32>
    %160 = arith.addf %158, %159 : vector<8x1xf32>
    %161 = math.rsqrt %160 : vector<8x1xf32>
    %162 = vector.broadcast %161 : vector<8x1xf32> to vector<8x8xf32>
    %163 = arith.mulf %153, %162 : vector<8x8xf32>
    %c0_49 = arith.constant 0 : index
    %c0_50 = arith.constant 0 : index
    %164 = vector.load %arg6[%c0_49, %c0_50] : memref<1x8xf32, #tpu.memory_space<vmem>>, vector<1x8xf32>
    %165 = vector.broadcast %164 : vector<1x8xf32> to vector<8x8xf32>
    %166 = arith.mulf %163, %165 : vector<8x8xf32>
    %167 = arith.addf %166, %2 : vector<8x8xf32>
    %168 = arith.truncf %167 : vector<8x8xf32> to vector<8x8xbf16>
    %c0_51 = arith.constant 0 : index
    %c0_52 = arith.constant 0 : index
    %c0_53 = arith.constant 0 : index
    %169 = vector.load %arg7[%c0_51, %c0_52, %c0_53] : memref<1x8x8xbf16, #tpu.memory_space<vmem>>, vector<1x8x8xbf16>
    %170 = vector.shape_cast %169 : vector<1x8x8xbf16> to vector<8x8xbf16>
    %171 = vector.shape_cast %168 : vector<8x8xbf16> to vector<1x8x8xbf16>
    tpu.vector_store %arg7[%c0_51, %c0_52, %c0_53], %171 {strides = array<i32>} : memref<1x8x8xbf16, #tpu.memory_space<vmem>>, vector<1x8x8xbf16>,
    return
  }
  func.func @transform_0(%arg0: i32) -> (i32, i32, i32) {
    %c0_i32 = arith.constant 0 : i32
    %c0_i32_0 = arith.constant 0 : i32
    %c0_i32_1 = arith.constant 0 : i32
    return %arg0, %c0_i32, %c0_i32_0 : i32, i32, i32
  }
  func.func @transform_1(%arg0: i32) -> (i32, i32) {
    %c0_i32 = arith.constant 0 : i32
    %c0_i32_0 = arith.constant 0 : i32
    %c0_i32_1 = arith.constant 0 : i32
    return %c0_i32, %c0_i32_0 : i32, i32
  }
  func.func @transform_2(%arg0: i32) -> (i32, i32) {
    %c0_i32 = arith.constant 0 : i32
    %c0_i32_0 = arith.constant 0 : i32
    %c0_i32_1 = arith.constant 0 : i32
    return %c0_i32, %c0_i32_0 : i32, i32
  }
  func.func @transform_3(%arg0: i32) -> (i32, i32) {
    %c0_i32 = arith.constant 0 : i32
    %c0_i32_0 = arith.constant 0 : i32
    %c0_i32_1 = arith.constant 0 : i32
    return %c0_i32, %c0_i32_0 : i32, i32
  }
  func.func @transform_4(%arg0: i32) -> (i32, i32) {
    %c0_i32 = arith.constant 0 : i32
    %c0_i32_0 = arith.constant 0 : i32
    %c0_i32_1 = arith.constant 0 : i32
    return %c0_i32, %c0_i32_0 : i32, i32
  }
  func.func @transform_5(%arg0: i32) -> (i32, i32) {
    %c0_i32 = arith.constant 0 : i32
    %c0_i32_0 = arith.constant 0 : i32
    %c0_i32_1 = arith.constant 0 : i32
    return %c0_i32, %c0_i32_0 : i32, i32
  }
  func.func @transform_6(%arg0: i32) -> (i32, i32, i32) {
    %c0_i32 = arith.constant 0 : i32
    %c0_i32_0 = arith.constant 0 : i32
    %c0_i32_1 = arith.constant 0 : i32
    return %arg0, %c0_i32, %c0_i32_0 : i32, i32, i32
  }
}

module attributes {stable_mosaic.version = 11 : i64} {
  func.func @_conv_kernel(%arg0: i32, %arg1: i32, %arg2: i32, %arg3: memref<1x1x16x16xbf16, #tpu.memory_space<vmem>>, %arg4: memref<3x16x128xbf16, #tpu.memory_space<vmem>>, %arg5: memref<1x128xf32, #tpu.memory_space<vmem>>, %arg6: memref<1x1x8x128xbf16, #tpu.memory_space<vmem>>) attributes {dimension_semantics = [#tpu.dimension_semantics<parallel>, #tpu.dimension_semantics<parallel>, #tpu.dimension_semantics<parallel>], iteration_bounds = array<i64: 2, 1, 1>, scalar_prefetch = 0 : i64, scratch_operands = 0 : i64, tpu.core_type = #tpu.core_type<tc>, window_params = [{transform_indices = @transform_0, window_bounds = array<i64: 1, 1, 16, 16>}, {transform_indices = @transform_1, window_bounds = array<i64: 3, 16, 128>}, {transform_indices = @transform_2, window_bounds = array<i64: 1, 128>}, {transform_indices = @transform_3, window_bounds = array<i64: 1, 1, 8, 128>}]} {
    %c0 = arith.constant 0 : index
    %c0_0 = arith.constant 0 : index
    %c0_1 = arith.constant 0 : index
    %c0_2 = arith.constant 0 : index
    %0 = vector.load %arg3[%c0, %c0_0, %c0_1, %c0_2] : memref<1x1x16x16xbf16, #tpu.memory_space<vmem>>, vector<1x1x16x16xbf16>
    %1 = vector.shape_cast %0 : vector<1x1x16x16xbf16> to vector<16x16xbf16>
    %c0_3 = arith.constant 0 : index
    %c0_4 = arith.constant 0 : index
    %c0_5 = arith.constant 0 : index
    %2 = vector.load %arg4[%c0_3, %c0_4, %c0_5] : memref<3x16x128xbf16, #tpu.memory_space<vmem>>, vector<1x16x128xbf16>
    %3 = vector.shape_cast %2 : vector<1x16x128xbf16> to vector<16x128xbf16>
    %cst = arith.constant dense<0.000000e+00> : vector<16x128xf32>
    %4 = tpu.matmul %1, %3, %cst {dimension_numbers = #tpu.dot_dimension_numbers<[1], [0], [0], [1], [0, 0, 1, 1], [], []>} : vector<16x16xbf16>, vector<16x128xbf16>, vector<16x128xf32> -> vector<16x128xf32>
    %c1 = arith.constant 1 : index
    %c0_6 = arith.constant 0 : index
    %c0_7 = arith.constant 0 : index
    %5 = vector.load %arg4[%c1, %c0_6, %c0_7] : memref<3x16x128xbf16, #tpu.memory_space<vmem>>, vector<1x16x128xbf16>
    %6 = vector.shape_cast %5 : vector<1x16x128xbf16> to vector<16x128xbf16>
    %cst_8 = arith.constant dense<0.000000e+00> : vector<16x128xf32>
    %7 = tpu.matmul %1, %6, %cst_8 {dimension_numbers = #tpu.dot_dimension_numbers<[1], [0], [0], [1], [0, 0, 1, 1], [], []>} : vector<16x16xbf16>, vector<16x128xbf16>, vector<16x128xf32> -> vector<16x128xf32>
    %c15_i32 = arith.constant 15 : i32
    %8 = tpu.dynamic_rotate %7 by %c15_i32 dim 0 : vector<16x128xf32>, i32 -> vector<16x128xf32>
    %9 = arith.addf %4, %8 : vector<16x128xf32>
    %c2 = arith.constant 2 : index
    %c0_9 = arith.constant 0 : index
    %c0_10 = arith.constant 0 : index
    %10 = vector.load %arg4[%c2, %c0_9, %c0_10] : memref<3x16x128xbf16, #tpu.memory_space<vmem>>, vector<1x16x128xbf16>
    %11 = vector.shape_cast %10 : vector<1x16x128xbf16> to vector<16x128xbf16>
    %cst_11 = arith.constant dense<0.000000e+00> : vector<16x128xf32>
    %12 = tpu.matmul %1, %11, %cst_11 {dimension_numbers = #tpu.dot_dimension_numbers<[1], [0], [0], [1], [0, 0, 1, 1], [], []>} : vector<16x16xbf16>, vector<16x128xbf16>, vector<16x128xf32> -> vector<16x128xf32>
    %c14_i32 = arith.constant 14 : i32
    %13 = tpu.dynamic_rotate %12 by %c14_i32 dim 0 : vector<16x128xf32>, i32 -> vector<16x128xf32>
    %14 = arith.addf %9, %13 : vector<16x128xf32>
    %15 = vector.extract_strided_slice %14 {offsets = [0, 0], sizes = [8, 128], strides = [1, 1]} : vector<16x128xf32> to vector<8x128xf32>
    %c0_12 = arith.constant 0 : index
    %c0_13 = arith.constant 0 : index
    %16 = vector.load %arg5[%c0_12, %c0_13] : memref<1x128xf32, #tpu.memory_space<vmem>>, vector<1x128xf32>
    %17 = vector.broadcast %16 : vector<1x128xf32> to vector<8x128xf32>
    %18 = arith.addf %15, %17 : vector<8x128xf32>
    %19 = arith.truncf %18 : vector<8x128xf32> to vector<8x128xbf16>
    %c0_14 = arith.constant 0 : index
    %c0_15 = arith.constant 0 : index
    %c0_16 = arith.constant 0 : index
    %c0_17 = arith.constant 0 : index
    %20 = vector.load %arg6[%c0_14, %c0_15, %c0_16, %c0_17] : memref<1x1x8x128xbf16, #tpu.memory_space<vmem>>, vector<1x1x8x128xbf16>
    %21 = vector.shape_cast %20 : vector<1x1x8x128xbf16> to vector<8x128xbf16>
    %22 = vector.shape_cast %19 : vector<8x128xbf16> to vector<1x1x8x128xbf16>
    tpu.vector_store %arg6[%c0_14, %c0_15, %c0_16, %c0_17], %22 {strides = array<i32>} : memref<1x1x8x128xbf16, #tpu.memory_space<vmem>>, vector<1x1x8x128xbf16>,
    return
  }
  func.func @transform_0(%arg0: i32, %arg1: i32, %arg2: i32) -> (i32, i32, i32, i32) {
    %c0_i32 = arith.constant 0 : i32
    %c0_i32_0 = arith.constant 0 : i32
    %c0_i32_1 = arith.constant 0 : i32
    return %arg0, %arg1, %c0_i32, %c0_i32_0 : i32, i32, i32, i32
  }
  func.func @transform_1(%arg0: i32, %arg1: i32, %arg2: i32) -> (i32, i32, i32) {
    %c0_i32 = arith.constant 0 : i32
    %c0_i32_0 = arith.constant 0 : i32
    %c0_i32_1 = arith.constant 0 : i32
    return %c0_i32, %c0_i32_0, %arg2 : i32, i32, i32
  }
  func.func @transform_2(%arg0: i32, %arg1: i32, %arg2: i32) -> (i32, i32) {
    %c0_i32 = arith.constant 0 : i32
    %c0_i32_0 = arith.constant 0 : i32
    return %c0_i32, %arg2 : i32, i32
  }
  func.func @transform_3(%arg0: i32, %arg1: i32, %arg2: i32) -> (i32, i32, i32, i32) {
    %c0_i32 = arith.constant 0 : i32
    %c0_i32_0 = arith.constant 0 : i32
    return %arg0, %arg1, %c0_i32, %arg2 : i32, i32, i32, i32
  }
}

module attributes {stable_mosaic.version = 11 : i64} {
  func.func @_gn_kernel(%arg0: i32, %arg1: memref<1x8x16xbf16, #tpu.memory_space<vmem>>, %arg2: memref<1x16xf32, #tpu.memory_space<vmem>>, %arg3: memref<1x16xf32, #tpu.memory_space<vmem>>, %arg4: memref<1x2x16xf32, #tpu.memory_space<vmem>>, %arg5: memref<1x8x16xbf16, #tpu.memory_space<vmem>>) attributes {dimension_semantics = [#tpu.dimension_semantics<parallel>], iteration_bounds = array<i64: 2>, scalar_prefetch = 0 : i64, scratch_operands = 0 : i64, tpu.core_type = #tpu.core_type<tc>, window_params = [{transform_indices = @transform_0, window_bounds = array<i64: 1, 8, 16>}, {pipeline_mode = #tpu.pipeline_mode<synchronous>, transform_indices = @transform_1, window_bounds = array<i64: 1, 16>}, {pipeline_mode = #tpu.pipeline_mode<synchronous>, transform_indices = @transform_2, window_bounds = array<i64: 1, 16>}, {transform_indices = @transform_3, window_bounds = array<i64: 1, 2, 16>}, {transform_indices = @transform_4, window_bounds = array<i64: 1, 8, 16>}]} {
    %c0 = arith.constant 0 : index
    %c0_0 = arith.constant 0 : index
    %c0_1 = arith.constant 0 : index
    %0 = vector.load %arg1[%c0, %c0_0, %c0_1] : memref<1x8x16xbf16, #tpu.memory_space<vmem>>, vector<1x8x16xbf16>
    %1 = vector.shape_cast %0 : vector<1x8x16xbf16> to vector<8x16xbf16>
    %2 = arith.extf %1 : vector<8x16xbf16> to vector<8x16xf32>
    %cst = arith.constant dense<0.000000e+00> : vector<16xf32>
    %3 = vector.multi_reduction <add>, %2, %cst [0] : vector<8x16xf32> to vector<16xf32>
    %4 = vector.shape_cast %3 : vector<16xf32> to vector<1x16xf32>
    %5 = vector.extract_strided_slice %4 {offsets = [0, 0], sizes = [1, 4], strides = [1, 1]} : vector<1x16xf32> to vector<1x4xf32>
    %cst_2 = arith.constant dense<0.000000e+00> : vector<1xf32>
    %6 = vector.multi_reduction <add>, %5, %cst_2 [1] : vector<1x4xf32> to vector<1xf32>
    %7 = vector.shape_cast %6 : vector<1xf32> to vector<1x1xf32>
    %cst_3 = arith.constant 3.125000e-02 : f32
    %8 = vector.broadcast %cst_3 : f32 to vector<1x1xf32>
    %9 = arith.mulf %7, %8 : vector<1x1xf32>
    %10 = vector.shape_cast %9 : vector<1x1xf32> to vector<1x1xf32>
    %11 = vector.broadcast %10 : vector<1x1xf32> to vector<1x4xf32>
    %12 = vector.extract_strided_slice %4 {offsets = [0, 4], sizes = [1, 4], strides = [1, 1]} : vector<1x16xf32> to vector<1x4xf32>
    %cst_4 = arith.constant dense<0.000000e+00> : vector<1xf32>
    %13 = vector.multi_reduction <add>, %12, %cst_4 [1] : vector<1x4xf32> to vector<1xf32>
    %14 = vector.shape_cast %13 : vector<1xf32> to vector<1x1xf32>
    %cst_5 = arith.constant 3.125000e-02 : f32
    %15 = vector.broadcast %cst_5 : f32 to vector<1x1xf32>
    %16 = arith.mulf %14, %15 : vector<1x1xf32>
    %17 = vector.shape_cast %16 : vector<1x1xf32> to vector<1x1xf32>
    %18 = vector.broadcast %17 : vector<1x1xf32> to vector<1x4xf32>
    %19 = vector.extract_strided_slice %4 {offsets = [0, 8], sizes = [1, 4], strides = [1, 1]} : vector<1x16xf32> to vector<1x4xf32>
    %cst_6 = arith.constant dense<0.000000e+00> : vector<1xf32>
    %20 = vector.multi_reduction <add>, %19, %cst_6 [1] : vector<1x4xf32> to vector<1xf32>
    %21 = vector.shape_cast %20 : vector<1xf32> to vector<1x1xf32>
    %cst_7 = arith.constant 3.125000e-02 : f32
    %22 = vector.broadcast %cst_7 : f32 to vector<1x1xf32>
    %23 = arith.mulf %21, %22 : vector<1x1xf32>
    %24 = vector.shape_cast %23 : vector<1x1xf32> to vector<1x1xf32>
    %25 = vector.broadcast %24 : vector<1x1xf32> to vector<1x4xf32>
    %26 = vector.extract_strided_slice %4 {offsets = [0, 12], sizes = [1, 4], strides = [1, 1]} : vector<1x16xf32> to vector<1x4xf32>
    %cst_8 = arith.constant dense<0.000000e+00> : vector<1xf32>
    %27 = vector.multi_reduction <add>, %26, %cst_8 [1] : vector<1x4xf32> to vector<1xf32>
    %28 = vector.shape_cast %27 : vector<1xf32> to vector<1x1xf32>
    %cst_9 = arith.constant 3.125000e-02 : f32
    %29 = vector.broadcast %cst_9 : f32 to vector<1x1xf32>
    %30 = arith.mulf %28, %29 : vector<1x1xf32>
    %31 = vector.shape_cast %30 : vector<1x1xf32> to vector<1x1xf32>
    %32 = vector.broadcast %31 : vector<1x1xf32> to vector<1x4xf32>
    %33 = tpu.concatenate %11, %18, %25, %32 in 1 : vector<1x4xf32>, vector<1x4xf32>, vector<1x4xf32>, vector<1x4xf32> -> vector<1x16xf32>
    %34 = vector.broadcast %33 : vector<1x16xf32> to vector<8x16xf32>
    %35 = arith.subf %2, %34 : vector<8x16xf32>
    %36 = arith.mulf %35, %35 : vector<8x16xf32>
    %cst_10 = arith.constant dense<0.000000e+00> : vector<16xf32>
    %37 = vector.multi_reduction <add>, %36, %cst_10 [0] : vector<8x16xf32> to vector<16xf32>
    %38 = vector.shape_cast %37 : vector<16xf32> to vector<1x16xf32>
    %39 = vector.extract_strided_slice %38 {offsets = [0, 0], sizes = [1, 4], strides = [1, 1]} : vector<1x16xf32> to vector<1x4xf32>
    %cst_11 = arith.constant dense<0.000000e+00> : vector<1xf32>
    %40 = vector.multi_reduction <add>, %39, %cst_11 [1] : vector<1x4xf32> to vector<1xf32>
    %41 = vector.shape_cast %40 : vector<1xf32> to vector<1x1xf32>
    %cst_12 = arith.constant 3.125000e-02 : f32
    %42 = vector.broadcast %cst_12 : f32 to vector<1x1xf32>
    %43 = arith.mulf %41, %42 : vector<1x1xf32>
    %44 = vector.shape_cast %43 : vector<1x1xf32> to vector<1x1xf32>
    %45 = vector.broadcast %44 : vector<1x1xf32> to vector<1x4xf32>
    %46 = vector.extract_strided_slice %38 {offsets = [0, 4], sizes = [1, 4], strides = [1, 1]} : vector<1x16xf32> to vector<1x4xf32>
    %cst_13 = arith.constant dense<0.000000e+00> : vector<1xf32>
    %47 = vector.multi_reduction <add>, %46, %cst_13 [1] : vector<1x4xf32> to vector<1xf32>
    %48 = vector.shape_cast %47 : vector<1xf32> to vector<1x1xf32>
    %cst_14 = arith.constant 3.125000e-02 : f32
    %49 = vector.broadcast %cst_14 : f32 to vector<1x1xf32>
    %50 = arith.mulf %48, %49 : vector<1x1xf32>
    %51 = vector.shape_cast %50 : vector<1x1xf32> to vector<1x1xf32>
    %52 = vector.broadcast %51 : vector<1x1xf32> to vector<1x4xf32>
    %53 = vector.extract_strided_slice %38 {offsets = [0, 8], sizes = [1, 4], strides = [1, 1]} : vector<1x16xf32> to vector<1x4xf32>
    %cst_15 = arith.constant dense<0.000000e+00> : vector<1xf32>
    %54 = vector.multi_reduction <add>, %53, %cst_15 [1] : vector<1x4xf32> to vector<1xf32>
    %55 = vector.shape_cast %54 : vector<1xf32> to vector<1x1xf32>
    %cst_16 = arith.constant 3.125000e-02 : f32
    %56 = vector.broadcast %cst_16 : f32 to vector<1x1xf32>
    %57 = arith.mulf %55, %56 : vector<1x1xf32>
    %58 = vector.shape_cast %57 : vector<1x1xf32> to vector<1x1xf32>
    %59 = vector.broadcast %58 : vector<1x1xf32> to vector<1x4xf32>
    %60 = vector.extract_strided_slice %38 {offsets = [0, 12], sizes = [1, 4], strides = [1, 1]} : vector<1x16xf32> to vector<1x4xf32>
    %cst_17 = arith.constant dense<0.000000e+00> : vector<1xf32>
    %61 = vector.multi_reduction <add>, %60, %cst_17 [1] : vector<1x4xf32> to vector<1xf32>
    %62 = vector.shape_cast %61 : vector<1xf32> to vector<1x1xf32>
    %cst_18 = arith.constant 3.125000e-02 : f32
    %63 = vector.broadcast %cst_18 : f32 to vector<1x1xf32>
    %64 = arith.mulf %62, %63 : vector<1x1xf32>
    %65 = vector.shape_cast %64 : vector<1x1xf32> to vector<1x1xf32>
    %66 = vector.broadcast %65 : vector<1x1xf32> to vector<1x4xf32>
    %67 = tpu.concatenate %45, %52, %59, %66 in 1 : vector<1x4xf32>, vector<1x4xf32>, vector<1x4xf32>, vector<1x4xf32> -> vector<1x16xf32>
    %cst_19 = arith.constant 9.99999974E-6 : f32
    %68 = vector.broadcast %cst_19 : f32 to vector<1x16xf32>
    %69 = arith.addf %67, %68 : vector<1x16xf32>
    %70 = math.rsqrt %69 : vector<1x16xf32>
    %71 = vector.broadcast %70 : vector<1x16xf32> to vector<8x16xf32>
    %72 = arith.mulf %35, %71 : vector<8x16xf32>
    %c0_20 = arith.constant 0 : index
    %c0_21 = arith.constant 0 : index
    %73 = vector.load %arg2[%c0_20, %c0_21] : memref<1x16xf32, #tpu.memory_space<vmem>>, vector<1x16xf32>
    %74 = vector.broadcast %73 : vector<1x16xf32> to vector<8x16xf32>
    %75 = arith.mulf %72, %74 : vector<8x16xf32>
    %c0_22 = arith.constant 0 : index
    %c0_23 = arith.constant 0 : index
    %76 = vector.load %arg3[%c0_22, %c0_23] : memref<1x16xf32, #tpu.memory_space<vmem>>, vector<1x16xf32>
    %77 = vector.broadcast %76 : vector<1x16xf32> to vector<8x16xf32>
    %78 = arith.addf %75, %77 : vector<8x16xf32>
    %c0_24 = arith.constant 0 : index
    %c0_25 = arith.constant 0 : index
    %c0_26 = arith.constant 0 : index
    %79 = vector.load %arg4[%c0_24, %c0_25, %c0_26] : memref<1x2x16xf32, #tpu.memory_space<vmem>>, vector<1x2x16xf32>
    %80 = vector.shape_cast %79 : vector<1x2x16xf32> to vector<2x16xf32>
    %81 = vector.extract_strided_slice %80 {offsets = [0, 0], sizes = [1, 16], strides = [1, 1]} : vector<2x16xf32> to vector<1x16xf32>
    %cst_27 = arith.constant 1.000000e+00 : f32
    %82 = vector.broadcast %cst_27 : f32 to vector<1x16xf32>
    %83 = arith.addf %81, %82 : vector<1x16xf32>
    %84 = vector.broadcast %83 : vector<1x16xf32> to vector<8x16xf32>
    %85 = arith.mulf %78, %84 : vector<8x16xf32>
    %86 = vector.extract_strided_slice %80 {offsets = [1, 0], sizes = [1, 16], strides = [1, 1]} : vector<2x16xf32> to vector<1x16xf32>
    %87 = vector.broadcast %86 : vector<1x16xf32> to vector<8x16xf32>
    %88 = arith.addf %85, %87 : vector<8x16xf32>
    %89 = arith.negf %88 : vector<8x16xf32>
    %90 = math.exp %89 : vector<8x16xf32>
    %cst_28 = arith.constant 1.000000e+00 : f32
    %91 = vector.broadcast %cst_28 : f32 to vector<8x16xf32>
    %92 = arith.addf %91, %90 : vector<8x16xf32>
    %93 = arith.divf %91, %92 : vector<8x16xf32>
    %94 = arith.mulf %88, %93 : vector<8x16xf32>
    %95 = arith.truncf %94 : vector<8x16xf32> to vector<8x16xbf16>
    %c0_29 = arith.constant 0 : index
    %c0_30 = arith.constant 0 : index
    %c0_31 = arith.constant 0 : index
    %96 = vector.load %arg5[%c0_29, %c0_30, %c0_31] : memref<1x8x16xbf16, #tpu.memory_space<vmem>>, vector<1x8x16xbf16>
    %97 = vector.shape_cast %96 : vector<1x8x16xbf16> to vector<8x16xbf16>
    %98 = vector.shape_cast %95 : vector<8x16xbf16> to vector<1x8x16xbf16>
    tpu.vector_store %arg5[%c0_29, %c0_30, %c0_31], %98 {strides = array<i32>} : memref<1x8x16xbf16, #tpu.memory_space<vmem>>, vector<1x8x16xbf16>,
    return
  }
  func.func @transform_0(%arg0: i32) -> (i32, i32, i32) {
    %c0_i32 = arith.constant 0 : i32
    %c0_i32_0 = arith.constant 0 : i32
    %c0_i32_1 = arith.constant 0 : i32
    return %arg0, %c0_i32, %c0_i32_0 : i32, i32, i32
  }
  func.func @transform_1(%arg0: i32) -> (i32, i32) {
    %c0_i32 = arith.constant 0 : i32
    %c0_i32_0 = arith.constant 0 : i32
    %c0_i32_1 = arith.constant 0 : i32
    return %c0_i32, %c0_i32_0 : i32, i32
  }
  func.func @transform_2(%arg0: i32) -> (i32, i32) {
    %c0_i32 = arith.constant 0 : i32
    %c0_i32_0 = arith.constant 0 : i32
    %c0_i32_1 = arith.constant 0 : i32
    return %c0_i32, %c0_i32_0 : i32, i32
  }
  func.func @transform_3(%arg0: i32) -> (i32, i32, i32) {
    %c0_i32 = arith.constant 0 : i32
    %c0_i32_0 = arith.constant 0 : i32
    %c0_i32_1 = arith.constant 0 : i32
    return %arg0, %c0_i32, %c0_i32_0 : i32, i32, i32
  }
  func.func @transform_4(%arg0: i32) -> (i32, i32, i32) {
    %c0_i32 = arith.constant 0 : i32
    %c0_i32_0 = arith.constant 0 : i32
    %c0_i32_1 = arith.constant 0 : i32
    return %arg0, %c0_i32, %c0_i32_0 : i32, i32, i32
  }
}

module attributes {stable_mosaic.version = 11 : i64} {
  func.func @_attn_res_kernel(%arg0: i32, %arg1: memref<1x8x16xbf16, #tpu.memory_space<vmem>>, %arg2: memref<1x16xf32, #tpu.memory_space<vmem>>, %arg3: memref<16x384xbf16, #tpu.memory_space<vmem>>, %arg4: memref<128x16xbf16, #tpu.memory_space<vmem>>, %arg5: memref<1x16xf32, #tpu.memory_space<vmem>>, %arg6: memref<1x16xf32, #tpu.memory_space<vmem>>, %arg7: memref<1x8x16xbf16, #tpu.memory_space<vmem>>) attributes {dimension_semantics = [#tpu.dimension_semantics<parallel>], iteration_bounds = array<i64: 2>, scalar_prefetch = 0 : i64, scratch_operands = 0 : i64, tpu.core_type = #tpu.core_type<tc>, window_params = [{transform_indices = @transform_0, window_bounds = array<i64: 1, 8, 16>}, {pipeline_mode = #tpu.pipeline_mode<synchronous>, transform_indices = @transform_1, window_bounds = array<i64: 1, 16>}, {pipeline_mode = #tpu.pipeline_mode<synchronous>, transform_indices = @transform_2, window_bounds = array<i64: 16, 384>}, {pipeline_mode = #tpu.pipeline_mode<synchronous>, transform_indices = @transform_3, window_bounds = array<i64: 128, 16>}, {pipeline_mode = #tpu.pipeline_mode<synchronous>, transform_indices = @transform_4, window_bounds = array<i64: 1, 16>}, {pipeline_mode = #tpu.pipeline_mode<synchronous>, transform_indices = @transform_5, window_bounds = array<i64: 1, 16>}, {transform_indices = @transform_6, window_bounds = array<i64: 1, 8, 16>}]} {
    %c0 = arith.constant 0 : index
    %c0_0 = arith.constant 0 : index
    %c0_1 = arith.constant 0 : index
    %0 = vector.load %arg1[%c0, %c0_0, %c0_1] : memref<1x8x16xbf16, #tpu.memory_space<vmem>>, vector<1x8x16xbf16>
    %1 = vector.shape_cast %0 : vector<1x8x16xbf16> to vector<8x16xbf16>
    %2 = arith.extf %1 : vector<8x16xbf16> to vector<8x16xf32>
    %cst = arith.constant dense<0.000000e+00> : vector<8xf32>
    %3 = vector.multi_reduction <add>, %2, %cst [1] : vector<8x16xf32> to vector<8xf32>
    %4 = vector.shape_cast %3 : vector<8xf32> to vector<8x1xf32>
    %cst_2 = arith.constant 1.600000e+01 : f32
    %5 = vector.broadcast %cst_2 : f32 to vector<8x1xf32>
    %6 = arith.divf %4, %5 : vector<8x1xf32>
    %7 = vector.broadcast %6 : vector<8x1xf32> to vector<8x16xf32>
    %8 = arith.subf %2, %7 : vector<8x16xf32>
    %9 = arith.mulf %8, %8 : vector<8x16xf32>
    %cst_3 = arith.constant dense<0.000000e+00> : vector<8xf32>
    %10 = vector.multi_reduction <add>, %9, %cst_3 [1] : vector<8x16xf32> to vector<8xf32>
    %11 = vector.shape_cast %10 : vector<8xf32> to vector<8x1xf32>
    %cst_4 = arith.constant 1.600000e+01 : f32
    %12 = vector.broadcast %cst_4 : f32 to vector<8x1xf32>
    %13 = arith.divf %11, %12 : vector<8x1xf32>
    %cst_5 = arith.constant 9.99999974E-6 : f32
    %14 = vector.broadcast %cst_5 : f32 to vector<8x1xf32>
    %15 = arith.addf %13, %14 : vector<8x1xf32>
    %16 = math.rsqrt %15 : vector<8x1xf32>
    %17 = vector.broadcast %16 : vector<8x1xf32> to vector<8x16xf32>
    %18 = arith.mulf %8, %17 : vector<8x16xf32>
    %c0_6 = arith.constant 0 : index
    %c0_7 = arith.constant 0 : index
    %19 = vector.load %arg2[%c0_6, %c0_7] : memref<1x16xf32, #tpu.memory_space<vmem>>, vector<1x16xf32>
    %20 = vector.broadcast %19 : vector<1x16xf32> to vector<8x16xf32>
    %21 = arith.mulf %18, %20 : vector<8x16xf32>
    %22 = arith.truncf %21 : vector<8x16xf32> to vector<8x16xbf16>
    %c0_8 = arith.constant 0 : index
    %c0_9 = arith.constant 0 : index
    %23 = vector.load %arg3[%c0_8, %c0_9] : memref<16x384xbf16, #tpu.memory_space<vmem>>, vector<16x384xbf16>
    %cst_10 = arith.constant dense<0.000000e+00> : vector<8x384xf32>
    %24 = tpu.matmul %22, %23, %cst_10 {dimension_numbers = #tpu.dot_dimension_numbers<[1], [0], [0], [1], [0, 0, 1, 1], [], []>} : vector<8x16xbf16>, vector<16x384xbf16>, vector<8x384xf32> -> vector<8x384xf32>
    %25 = vector.extract_strided_slice %24 {offsets = [0, 0], sizes = [8, 32], strides = [1, 1]} : vector<8x384xf32> to vector<8x32xf32>
    %26 = vector.extract_strided_slice %24 {offsets = [0, 128], sizes = [8, 32], strides = [1, 1]} : vector<8x384xf32> to vector<8x32xf32>
    %27 = vector.extract_strided_slice %24 {offsets = [0, 256], sizes = [8, 32], strides = [1, 1]} : vector<8x384xf32> to vector<8x32xf32>
    %28 = arith.truncf %25 : vector<8x32xf32> to vector<8x32xbf16>
    %29 = arith.truncf %26 : vector<8x32xf32> to vector<8x32xbf16>
    %cst_11 = arith.constant dense<0.000000e+00> : vector<8x8xf32>
    %30 = tpu.matmul %28, %29, %cst_11 {dimension_numbers = #tpu.dot_dimension_numbers<[1], [1], [0], [0], [0, 0, 1, 0], [], []>} : vector<8x32xbf16>, vector<8x32xbf16>, vector<8x8xf32> -> vector<8x8xf32>
    %cst_12 = arith.constant 0.176776692 : f32
    %31 = vector.broadcast %cst_12 : f32 to vector<8x8xf32>
    %32 = arith.mulf %30, %31 : vector<8x8xf32>
    %cst_13 = arith.constant dense<0xFF800000> : vector<8xf32>
    %33 = vector.multi_reduction <maximumf>, %32, %cst_13 [1] : vector<8x8xf32> to vector<8xf32>
    %34 = vector.shape_cast %33 : vector<8xf32> to vector<8x1xf32>
    %35 = vector.broadcast %34 : vector<8x1xf32> to vector<8x8xf32>
    %36 = arith.subf %32, %35 : vector<8x8xf32>
    %37 = math.exp %36 : vector<8x8xf32>
    %cst_14 = arith.constant dense<0.000000e+00> : vector<8xf32>
    %38 = vector.multi_reduction <add>, %37, %cst_14 [1] : vector<8x8xf32> to vector<8xf32>
    %39 = vector.shape_cast %38 : vector<8xf32> to vector<8x1xf32>
    %40 = vector.broadcast %39 : vector<8x1xf32> to vector<8x8xf32>
    %41 = arith.divf %37, %40 : vector<8x8xf32>
    %42 = arith.truncf %41 : vector<8x8xf32> to vector<8x8xbf16>
    %43 = arith.truncf %27 : vector<8x32xf32> to vector<8x32xbf16>
    %cst_15 = arith.constant dense<0.000000e+00> : vector<8x32xf32>
    %44 = tpu.matmul %42, %43, %cst_15 {dimension_numbers = #tpu.dot_dimension_numbers<[1], [0], [0], [1], [0, 0, 1, 1], [], []>} : vector<8x8xbf16>, vector<8x32xbf16>, vector<8x32xf32> -> vector<8x32xf32>
    %45 = vector.extract_strided_slice %24 {offsets = [0, 32], sizes = [8, 32], strides = [1, 1]} : vector<8x384xf32> to vector<8x32xf32>
    %46 = vector.extract_strided_slice %24 {offsets = [0, 160], sizes = [8, 32], strides = [1, 1]} : vector<8x384xf32> to vector<8x32xf32>
    %47 = vector.extract_strided_slice %24 {offsets = [0, 288], sizes = [8, 32], strides = [1, 1]} : vector<8x384xf32> to vector<8x32xf32>
    %48 = arith.truncf %45 : vector<8x32xf32> to vector<8x32xbf16>
    %49 = arith.truncf %46 : vector<8x32xf32> to vector<8x32xbf16>
    %cst_16 = arith.constant dense<0.000000e+00> : vector<8x8xf32>
    %50 = tpu.matmul %48, %49, %cst_16 {dimension_numbers = #tpu.dot_dimension_numbers<[1], [1], [0], [0], [0, 0, 1, 0], [], []>} : vector<8x32xbf16>, vector<8x32xbf16>, vector<8x8xf32> -> vector<8x8xf32>
    %cst_17 = arith.constant 0.176776692 : f32
    %51 = vector.broadcast %cst_17 : f32 to vector<8x8xf32>
    %52 = arith.mulf %50, %51 : vector<8x8xf32>
    %cst_18 = arith.constant dense<0xFF800000> : vector<8xf32>
    %53 = vector.multi_reduction <maximumf>, %52, %cst_18 [1] : vector<8x8xf32> to vector<8xf32>
    %54 = vector.shape_cast %53 : vector<8xf32> to vector<8x1xf32>
    %55 = vector.broadcast %54 : vector<8x1xf32> to vector<8x8xf32>
    %56 = arith.subf %52, %55 : vector<8x8xf32>
    %57 = math.exp %56 : vector<8x8xf32>
    %cst_19 = arith.constant dense<0.000000e+00> : vector<8xf32>
    %58 = vector.multi_reduction <add>, %57, %cst_19 [1] : vector<8x8xf32> to vector<8xf32>
    %59 = vector.shape_cast %58 : vector<8xf32> to vector<8x1xf32>
    %60 = vector.broadcast %59 : vector<8x1xf32> to vector<8x8xf32>
    %61 = arith.divf %57, %60 : vector<8x8xf32>
    %62 = arith.truncf %61 : vector<8x8xf32> to vector<8x8xbf16>
    %63 = arith.truncf %47 : vector<8x32xf32> to vector<8x32xbf16>
    %cst_20 = arith.constant dense<0.000000e+00> : vector<8x32xf32>
    %64 = tpu.matmul %62, %63, %cst_20 {dimension_numbers = #tpu.dot_dimension_numbers<[1], [0], [0], [1], [0, 0, 1, 1], [], []>} : vector<8x8xbf16>, vector<8x32xbf16>, vector<8x32xf32> -> vector<8x32xf32>
    %65 = vector.extract_strided_slice %24 {offsets = [0, 64], sizes = [8, 32], strides = [1, 1]} : vector<8x384xf32> to vector<8x32xf32>
    %66 = vector.extract_strided_slice %24 {offsets = [0, 192], sizes = [8, 32], strides = [1, 1]} : vector<8x384xf32> to vector<8x32xf32>
    %67 = vector.extract_strided_slice %24 {offsets = [0, 320], sizes = [8, 32], strides = [1, 1]} : vector<8x384xf32> to vector<8x32xf32>
    %68 = arith.truncf %65 : vector<8x32xf32> to vector<8x32xbf16>
    %69 = arith.truncf %66 : vector<8x32xf32> to vector<8x32xbf16>
    %cst_21 = arith.constant dense<0.000000e+00> : vector<8x8xf32>
    %70 = tpu.matmul %68, %69, %cst_21 {dimension_numbers = #tpu.dot_dimension_numbers<[1], [1], [0], [0], [0, 0, 1, 0], [], []>} : vector<8x32xbf16>, vector<8x32xbf16>, vector<8x8xf32> -> vector<8x8xf32>
    %cst_22 = arith.constant 0.176776692 : f32
    %71 = vector.broadcast %cst_22 : f32 to vector<8x8xf32>
    %72 = arith.mulf %70, %71 : vector<8x8xf32>
    %cst_23 = arith.constant dense<0xFF800000> : vector<8xf32>
    %73 = vector.multi_reduction <maximumf>, %72, %cst_23 [1] : vector<8x8xf32> to vector<8xf32>
    %74 = vector.shape_cast %73 : vector<8xf32> to vector<8x1xf32>
    %75 = vector.broadcast %74 : vector<8x1xf32> to vector<8x8xf32>
    %76 = arith.subf %72, %75 : vector<8x8xf32>
    %77 = math.exp %76 : vector<8x8xf32>
    %cst_24 = arith.constant dense<0.000000e+00> : vector<8xf32>
    %78 = vector.multi_reduction <add>, %77, %cst_24 [1] : vector<8x8xf32> to vector<8xf32>
    %79 = vector.shape_cast %78 : vector<8xf32> to vector<8x1xf32>
    %80 = vector.broadcast %79 : vector<8x1xf32> to vector<8x8xf32>
    %81 = arith.divf %77, %80 : vector<8x8xf32>
    %82 = arith.truncf %81 : vector<8x8xf32> to vector<8x8xbf16>
    %83 = arith.truncf %67 : vector<8x32xf32> to vector<8x32xbf16>
    %cst_25 = arith.constant dense<0.000000e+00> : vector<8x32xf32>
    %84 = tpu.matmul %82, %83, %cst_25 {dimension_numbers = #tpu.dot_dimension_numbers<[1], [0], [0], [1], [0, 0, 1, 1], [], []>} : vector<8x8xbf16>, vector<8x32xbf16>, vector<8x32xf32> -> vector<8x32xf32>
    %85 = vector.extract_strided_slice %24 {offsets = [0, 96], sizes = [8, 32], strides = [1, 1]} : vector<8x384xf32> to vector<8x32xf32>
    %86 = vector.extract_strided_slice %24 {offsets = [0, 224], sizes = [8, 32], strides = [1, 1]} : vector<8x384xf32> to vector<8x32xf32>
    %87 = vector.extract_strided_slice %24 {offsets = [0, 352], sizes = [8, 32], strides = [1, 1]} : vector<8x384xf32> to vector<8x32xf32>
    %88 = arith.truncf %85 : vector<8x32xf32> to vector<8x32xbf16>
    %89 = arith.truncf %86 : vector<8x32xf32> to vector<8x32xbf16>
    %cst_26 = arith.constant dense<0.000000e+00> : vector<8x8xf32>
    %90 = tpu.matmul %88, %89, %cst_26 {dimension_numbers = #tpu.dot_dimension_numbers<[1], [1], [0], [0], [0, 0, 1, 0], [], []>} : vector<8x32xbf16>, vector<8x32xbf16>, vector<8x8xf32> -> vector<8x8xf32>
    %cst_27 = arith.constant 0.176776692 : f32
    %91 = vector.broadcast %cst_27 : f32 to vector<8x8xf32>
    %92 = arith.mulf %90, %91 : vector<8x8xf32>
    %cst_28 = arith.constant dense<0xFF800000> : vector<8xf32>
    %93 = vector.multi_reduction <maximumf>, %92, %cst_28 [1] : vector<8x8xf32> to vector<8xf32>
    %94 = vector.shape_cast %93 : vector<8xf32> to vector<8x1xf32>
    %95 = vector.broadcast %94 : vector<8x1xf32> to vector<8x8xf32>
    %96 = arith.subf %92, %95 : vector<8x8xf32>
    %97 = math.exp %96 : vector<8x8xf32>
    %cst_29 = arith.constant dense<0.000000e+00> : vector<8xf32>
    %98 = vector.multi_reduction <add>, %97, %cst_29 [1] : vector<8x8xf32> to vector<8xf32>
    %99 = vector.shape_cast %98 : vector<8xf32> to vector<8x1xf32>
    %100 = vector.broadcast %99 : vector<8x1xf32> to vector<8x8xf32>
    %101 = arith.divf %97, %100 : vector<8x8xf32>
    %102 = arith.truncf %101 : vector<8x8xf32> to vector<8x8xbf16>
    %103 = arith.truncf %87 : vector<8x32xf32> to vector<8x32xbf16>
    %cst_30 = arith.constant dense<0.000000e+00> : vector<8x32xf32>
    %104 = tpu.matmul %102, %103, %cst_30 {dimension_numbers = #tpu.dot_dimension_numbers<[1], [0], [0], [1], [0, 0, 1, 1], [], []>} : vector<8x8xbf16>, vector<8x32xbf16>, vector<8x32xf32> -> vector<8x32xf32>
    %105 = tpu.concatenate %44, %64, %84, %104 in 1 : vector<8x32xf32>, vector<8x32xf32>, vector<8x32xf32>, vector<8x32xf32> -> vector<8x128xf32>
    %106 = arith.truncf %105 : vector<8x128xf32> to vector<8x128xbf16>
    %c0_31 = arith.constant 0 : index
    %c0_32 = arith.constant 0 : index
    %107 = vector.load %arg4[%c0_31, %c0_32] : memref<128x16xbf16, #tpu.memory_space<vmem>>, vector<128x16xbf16>
    %cst_33 = arith.constant dense<0.000000e+00> : vector<8x16xf32>
    %108 = tpu.matmul %106, %107, %cst_33 {dimension_numbers = #tpu.dot_dimension_numbers<[1], [0], [0], [1], [0, 0, 1, 1], [], []>} : vector<8x128xbf16>, vector<128x16xbf16>, vector<8x16xf32> -> vector<8x16xf32>
    %c0_34 = arith.constant 0 : index
    %c0_35 = arith.constant 0 : index
    %109 = vector.load %arg5[%c0_34, %c0_35] : memref<1x16xf32, #tpu.memory_space<vmem>>, vector<1x16xf32>
    %110 = vector.broadcast %109 : vector<1x16xf32> to vector<8x16xf32>
    %111 = arith.addf %108, %110 : vector<8x16xf32>
    %112 = arith.addf %111, %2 : vector<8x16xf32>
    %113 = arith.truncf %112 : vector<8x16xf32> to vector<8x16xbf16>
    %c0_36 = arith.constant 0 : index
    %c0_37 = arith.constant 0 : index
    %c0_38 = arith.constant 0 : index
    %114 = vector.load %arg7[%c0_36, %c0_37, %c0_38] : memref<1x8x16xbf16, #tpu.memory_space<vmem>>, vector<1x8x16xbf16>
    %115 = vector.shape_cast %114 : vector<1x8x16xbf16> to vector<8x16xbf16>
    %116 = vector.shape_cast %113 : vector<8x16xbf16> to vector<1x8x16xbf16>
    tpu.vector_store %arg7[%c0_36, %c0_37, %c0_38], %116 {strides = array<i32>} : memref<1x8x16xbf16, #tpu.memory_space<vmem>>, vector<1x8x16xbf16>,
    return
  }
  func.func @transform_0(%arg0: i32) -> (i32, i32, i32) {
    %c0_i32 = arith.constant 0 : i32
    %c0_i32_0 = arith.constant 0 : i32
    %c0_i32_1 = arith.constant 0 : i32
    return %arg0, %c0_i32, %c0_i32_0 : i32, i32, i32
  }
  func.func @transform_1(%arg0: i32) -> (i32, i32) {
    %c0_i32 = arith.constant 0 : i32
    %c0_i32_0 = arith.constant 0 : i32
    %c0_i32_1 = arith.constant 0 : i32
    return %c0_i32, %c0_i32_0 : i32, i32
  }
  func.func @transform_2(%arg0: i32) -> (i32, i32) {
    %c0_i32 = arith.constant 0 : i32
    %c0_i32_0 = arith.constant 0 : i32
    %c0_i32_1 = arith.constant 0 : i32
    return %c0_i32, %c0_i32_0 : i32, i32
  }
  func.func @transform_3(%arg0: i32) -> (i32, i32) {
    %c0_i32 = arith.constant 0 : i32
    %c0_i32_0 = arith.constant 0 : i32
    %c0_i32_1 = arith.constant 0 : i32
    return %c0_i32, %c0_i32_0 : i32, i32
  }
  func.func @transform_4(%arg0: i32) -> (i32, i32) {
    %c0_i32 = arith.constant 0 : i32
    %c0_i32_0 = arith.constant 0 : i32
    %c0_i32_1 = arith.constant 0 : i32
    return %c0_i32, %c0_i32_0 : i32, i32
  }
  func.func @transform_5(%arg0: i32) -> (i32, i32) {
    %c0_i32 = arith.constant 0 : i32
    %c0_i32_0 = arith.constant 0 : i32
    %c0_i32_1 = arith.constant 0 : i32
    return %c0_i32, %c0_i32_0 : i32, i32
  }
  func.func @transform_6(%arg0: i32) -> (i32, i32, i32) {
    %c0_i32 = arith.constant 0 : i32
    %c0_i32_0 = arith.constant 0 : i32
    %c0_i32_1 = arith.constant 0 : i32
    return %arg0, %c0_i32, %c0_i32_0 : i32, i32, i32
  }
}

module attributes {stable_mosaic.version = 11 : i64} {
  func.func @_conv_kernel(%arg0: i32, %arg1: i32, %arg2: i32, %arg3: memref<1x1x8x24xbf16, #tpu.memory_space<vmem>>, %arg4: memref<1x24x128xbf16, #tpu.memory_space<vmem>>, %arg5: memref<1x128xf32, #tpu.memory_space<vmem>>, %arg6: memref<1x1x8x128xbf16, #tpu.memory_space<vmem>>) attributes {dimension_semantics = [#tpu.dimension_semantics<parallel>, #tpu.dimension_semantics<parallel>, #tpu.dimension_semantics<parallel>], iteration_bounds = array<i64: 2, 1, 1>, scalar_prefetch = 0 : i64, scratch_operands = 0 : i64, tpu.core_type = #tpu.core_type<tc>, window_params = [{transform_indices = @transform_0, window_bounds = array<i64: 1, 1, 8, 24>}, {transform_indices = @transform_1, window_bounds = array<i64: 1, 24, 128>}, {transform_indices = @transform_2, window_bounds = array<i64: 1, 128>}, {transform_indices = @transform_3, window_bounds = array<i64: 1, 1, 8, 128>}]} {
    %c0 = arith.constant 0 : index
    %c0_0 = arith.constant 0 : index
    %c0_1 = arith.constant 0 : index
    %c0_2 = arith.constant 0 : index
    %0 = vector.load %arg3[%c0, %c0_0, %c0_1, %c0_2] : memref<1x1x8x24xbf16, #tpu.memory_space<vmem>>, vector<1x1x8x24xbf16>
    %1 = vector.shape_cast %0 : vector<1x1x8x24xbf16> to vector<8x24xbf16>
    %c0_3 = arith.constant 0 : index
    %c0_4 = arith.constant 0 : index
    %c0_5 = arith.constant 0 : index
    %2 = vector.load %arg4[%c0_3, %c0_4, %c0_5] : memref<1x24x128xbf16, #tpu.memory_space<vmem>>, vector<1x24x128xbf16>
    %3 = vector.shape_cast %2 : vector<1x24x128xbf16> to vector<24x128xbf16>
    %cst = arith.constant dense<0.000000e+00> : vector<8x128xf32>
    %4 = tpu.matmul %1, %3, %cst {dimension_numbers = #tpu.dot_dimension_numbers<[1], [0], [0], [1], [0, 0, 1, 1], [], []>} : vector<8x24xbf16>, vector<24x128xbf16>, vector<8x128xf32> -> vector<8x128xf32>
    %c0_6 = arith.constant 0 : index
    %c0_7 = arith.constant 0 : index
    %5 = vector.load %arg5[%c0_6, %c0_7] : memref<1x128xf32, #tpu.memory_space<vmem>>, vector<1x128xf32>
    %6 = vector.broadcast %5 : vector<1x128xf32> to vector<8x128xf32>
    %7 = arith.addf %4, %6 : vector<8x128xf32>
    %8 = arith.truncf %7 : vector<8x128xf32> to vector<8x128xbf16>
    %c0_8 = arith.constant 0 : index
    %c0_9 = arith.constant 0 : index
    %c0_10 = arith.constant 0 : index
    %c0_11 = arith.constant 0 : index
    %9 = vector.load %arg6[%c0_8, %c0_9, %c0_10, %c0_11] : memref<1x1x8x128xbf16, #tpu.memory_space<vmem>>, vector<1x1x8x128xbf16>
    %10 = vector.shape_cast %9 : vector<1x1x8x128xbf16> to vector<8x128xbf16>
    %11 = vector.shape_cast %8 : vector<8x128xbf16> to vector<1x1x8x128xbf16>
    tpu.vector_store %arg6[%c0_8, %c0_9, %c0_10, %c0_11], %11 {strides = array<i32>} : memref<1x1x8x128xbf16, #tpu.memory_space<vmem>>, vector<1x1x8x128xbf16>,
    return
  }
  func.func @transform_0(%arg0: i32, %arg1: i32, %arg2: i32) -> (i32, i32, i32, i32) {
    %c0_i32 = arith.constant 0 : i32
    %c0_i32_0 = arith.constant 0 : i32
    %c0_i32_1 = arith.constant 0 : i32
    return %arg0, %arg1, %c0_i32, %c0_i32_0 : i32, i32, i32, i32
  }
  func.func @transform_1(%arg0: i32, %arg1: i32, %arg2: i32) -> (i32, i32, i32) {
    %c0_i32 = arith.constant 0 : i32
    %c0_i32_0 = arith.constant 0 : i32
    %c0_i32_1 = arith.constant 0 : i32
    return %c0_i32, %c0_i32_0, %arg2 : i32, i32, i32
  }
  func.func @transform_2(%arg0: i32, %arg1: i32, %arg2: i32) -> (i32, i32) {
    %c0_i32 = arith.constant 0 : i32
    %c0_i32_0 = arith.constant 0 : i32
    return %c0_i32, %arg2 : i32, i32
  }
  func.func @transform_3(%arg0: i32, %arg1: i32, %arg2: i32) -> (i32, i32, i32, i32) {
    %c0_i32 = arith.constant 0 : i32
    %c0_i32_0 = arith.constant 0 : i32
    return %arg0, %arg1, %c0_i32, %arg2 : i32, i32, i32, i32
  }
}

module attributes {stable_mosaic.version = 11 : i64} {
  func.func @_conv_kernel(%arg0: i32, %arg1: i32, %arg2: i32, %arg3: memref<1x1x16x24xbf16, #tpu.memory_space<vmem>>, %arg4: memref<3x24x128xbf16, #tpu.memory_space<vmem>>, %arg5: memref<1x128xf32, #tpu.memory_space<vmem>>, %arg6: memref<1x1x8x128xbf16, #tpu.memory_space<vmem>>) attributes {dimension_semantics = [#tpu.dimension_semantics<parallel>, #tpu.dimension_semantics<parallel>, #tpu.dimension_semantics<parallel>], iteration_bounds = array<i64: 2, 1, 1>, scalar_prefetch = 0 : i64, scratch_operands = 0 : i64, tpu.core_type = #tpu.core_type<tc>, window_params = [{transform_indices = @transform_0, window_bounds = array<i64: 1, 1, 16, 24>}, {transform_indices = @transform_1, window_bounds = array<i64: 3, 24, 128>}, {transform_indices = @transform_2, window_bounds = array<i64: 1, 128>}, {transform_indices = @transform_3, window_bounds = array<i64: 1, 1, 8, 128>}]} {
    %c0 = arith.constant 0 : index
    %c0_0 = arith.constant 0 : index
    %c0_1 = arith.constant 0 : index
    %c0_2 = arith.constant 0 : index
    %0 = vector.load %arg3[%c0, %c0_0, %c0_1, %c0_2] : memref<1x1x16x24xbf16, #tpu.memory_space<vmem>>, vector<1x1x16x24xbf16>
    %1 = vector.shape_cast %0 : vector<1x1x16x24xbf16> to vector<16x24xbf16>
    %c0_3 = arith.constant 0 : index
    %c0_4 = arith.constant 0 : index
    %c0_5 = arith.constant 0 : index
    %2 = vector.load %arg4[%c0_3, %c0_4, %c0_5] : memref<3x24x128xbf16, #tpu.memory_space<vmem>>, vector<1x24x128xbf16>
    %3 = vector.shape_cast %2 : vector<1x24x128xbf16> to vector<24x128xbf16>
    %cst = arith.constant dense<0.000000e+00> : vector<16x128xf32>
    %4 = tpu.matmul %1, %3, %cst {dimension_numbers = #tpu.dot_dimension_numbers<[1], [0], [0], [1], [0, 0, 1, 1], [], []>} : vector<16x24xbf16>, vector<24x128xbf16>, vector<16x128xf32> -> vector<16x128xf32>
    %c1 = arith.constant 1 : index
    %c0_6 = arith.constant 0 : index
    %c0_7 = arith.constant 0 : index
    %5 = vector.load %arg4[%c1, %c0_6, %c0_7] : memref<3x24x128xbf16, #tpu.memory_space<vmem>>, vector<1x24x128xbf16>
    %6 = vector.shape_cast %5 : vector<1x24x128xbf16> to vector<24x128xbf16>
    %cst_8 = arith.constant dense<0.000000e+00> : vector<16x128xf32>
    %7 = tpu.matmul %1, %6, %cst_8 {dimension_numbers = #tpu.dot_dimension_numbers<[1], [0], [0], [1], [0, 0, 1, 1], [], []>} : vector<16x24xbf16>, vector<24x128xbf16>, vector<16x128xf32> -> vector<16x128xf32>
    %c15_i32 = arith.constant 15 : i32
    %8 = tpu.dynamic_rotate %7 by %c15_i32 dim 0 : vector<16x128xf32>, i32 -> vector<16x128xf32>
    %9 = arith.addf %4, %8 : vector<16x128xf32>
    %c2 = arith.constant 2 : index
    %c0_9 = arith.constant 0 : index
    %c0_10 = arith.constant 0 : index
    %10 = vector.load %arg4[%c2, %c0_9, %c0_10] : memref<3x24x128xbf16, #tpu.memory_space<vmem>>, vector<1x24x128xbf16>
    %11 = vector.shape_cast %10 : vector<1x24x128xbf16> to vector<24x128xbf16>
    %cst_11 = arith.constant dense<0.000000e+00> : vector<16x128xf32>
    %12 = tpu.matmul %1, %11, %cst_11 {dimension_numbers = #tpu.dot_dimension_numbers<[1], [0], [0], [1], [0, 0, 1, 1], [], []>} : vector<16x24xbf16>, vector<24x128xbf16>, vector<16x128xf32> -> vector<16x128xf32>
    %c14_i32 = arith.constant 14 : i32
    %13 = tpu.dynamic_rotate %12 by %c14_i32 dim 0 : vector<16x128xf32>, i32 -> vector<16x128xf32>
    %14 = arith.addf %9, %13 : vector<16x128xf32>
    %15 = vector.extract_strided_slice %14 {offsets = [0, 0], sizes = [8, 128], strides = [1, 1]} : vector<16x128xf32> to vector<8x128xf32>
    %c0_12 = arith.constant 0 : index
    %c0_13 = arith.constant 0 : index
    %16 = vector.load %arg5[%c0_12, %c0_13] : memref<1x128xf32, #tpu.memory_space<vmem>>, vector<1x128xf32>
    %17 = vector.broadcast %16 : vector<1x128xf32> to vector<8x128xf32>
    %18 = arith.addf %15, %17 : vector<8x128xf32>
    %19 = arith.truncf %18 : vector<8x128xf32> to vector<8x128xbf16>
    %c0_14 = arith.constant 0 : index
    %c0_15 = arith.constant 0 : index
    %c0_16 = arith.constant 0 : index
    %c0_17 = arith.constant 0 : index
    %20 = vector.load %arg6[%c0_14, %c0_15, %c0_16, %c0_17] : memref<1x1x8x128xbf16, #tpu.memory_space<vmem>>, vector<1x1x8x128xbf16>
    %21 = vector.shape_cast %20 : vector<1x1x8x128xbf16> to vector<8x128xbf16>
    %22 = vector.shape_cast %19 : vector<8x128xbf16> to vector<1x1x8x128xbf16>
    tpu.vector_store %arg6[%c0_14, %c0_15, %c0_16, %c0_17], %22 {strides = array<i32>} : memref<1x1x8x128xbf16, #tpu.memory_space<vmem>>, vector<1x1x8x128xbf16>,
    return
  }
  func.func @transform_0(%arg0: i32, %arg1: i32, %arg2: i32) -> (i32, i32, i32, i32) {
    %c0_i32 = arith.constant 0 : i32
    %c0_i32_0 = arith.constant 0 : i32
    %c0_i32_1 = arith.constant 0 : i32
    return %arg0, %arg1, %c0_i32, %c0_i32_0 : i32, i32, i32, i32
  }
  func.func @transform_1(%arg0: i32, %arg1: i32, %arg2: i32) -> (i32, i32, i32) {
    %c0_i32 = arith.constant 0 : i32
    %c0_i32_0 = arith.constant 0 : i32
    %c0_i32_1 = arith.constant 0 : i32
    return %c0_i32, %c0_i32_0, %arg2 : i32, i32, i32
  }
  func.func @transform_2(%arg0: i32, %arg1: i32, %arg2: i32) -> (i32, i32) {
    %c0_i32 = arith.constant 0 : i32
    %c0_i32_0 = arith.constant 0 : i32
    return %c0_i32, %arg2 : i32, i32
  }
  func.func @transform_3(%arg0: i32, %arg1: i32, %arg2: i32) -> (i32, i32, i32, i32) {
    %c0_i32 = arith.constant 0 : i32
    %c0_i32_0 = arith.constant 0 : i32
    return %arg0, %arg1, %c0_i32, %arg2 : i32, i32, i32, i32
  }
}

module attributes {stable_mosaic.version = 11 : i64} {
  func.func @_attn_res_kernel(%arg0: i32, %arg1: memref<1x8x16xbf16, #tpu.memory_space<vmem>>, %arg2: memref<1x16xf32, #tpu.memory_space<vmem>>, %arg3: memref<16x384xbf16, #tpu.memory_space<vmem>>, %arg4: memref<128x16xbf16, #tpu.memory_space<vmem>>, %arg5: memref<1x16xf32, #tpu.memory_space<vmem>>, %arg6: memref<1x16xf32, #tpu.memory_space<vmem>>, %arg7: memref<1x8x16xbf16, #tpu.memory_space<vmem>>) attributes {dimension_semantics = [#tpu.dimension_semantics<parallel>], iteration_bounds = array<i64: 2>, scalar_prefetch = 0 : i64, scratch_operands = 0 : i64, tpu.core_type = #tpu.core_type<tc>, window_params = [{transform_indices = @transform_0, window_bounds = array<i64: 1, 8, 16>}, {pipeline_mode = #tpu.pipeline_mode<synchronous>, transform_indices = @transform_1, window_bounds = array<i64: 1, 16>}, {pipeline_mode = #tpu.pipeline_mode<synchronous>, transform_indices = @transform_2, window_bounds = array<i64: 16, 384>}, {pipeline_mode = #tpu.pipeline_mode<synchronous>, transform_indices = @transform_3, window_bounds = array<i64: 128, 16>}, {pipeline_mode = #tpu.pipeline_mode<synchronous>, transform_indices = @transform_4, window_bounds = array<i64: 1, 16>}, {pipeline_mode = #tpu.pipeline_mode<synchronous>, transform_indices = @transform_5, window_bounds = array<i64: 1, 16>}, {transform_indices = @transform_6, window_bounds = array<i64: 1, 8, 16>}]} {
    %c0 = arith.constant 0 : index
    %c0_0 = arith.constant 0 : index
    %c0_1 = arith.constant 0 : index
    %0 = vector.load %arg1[%c0, %c0_0, %c0_1] : memref<1x8x16xbf16, #tpu.memory_space<vmem>>, vector<1x8x16xbf16>
    %1 = vector.shape_cast %0 : vector<1x8x16xbf16> to vector<8x16xbf16>
    %2 = arith.extf %1 : vector<8x16xbf16> to vector<8x16xf32>
    %cst = arith.constant dense<0.000000e+00> : vector<8xf32>
    %3 = vector.multi_reduction <add>, %2, %cst [1] : vector<8x16xf32> to vector<8xf32>
    %4 = vector.shape_cast %3 : vector<8xf32> to vector<8x1xf32>
    %cst_2 = arith.constant 1.600000e+01 : f32
    %5 = vector.broadcast %cst_2 : f32 to vector<8x1xf32>
    %6 = arith.divf %4, %5 : vector<8x1xf32>
    %7 = vector.broadcast %6 : vector<8x1xf32> to vector<8x16xf32>
    %8 = arith.subf %2, %7 : vector<8x16xf32>
    %9 = arith.mulf %8, %8 : vector<8x16xf32>
    %cst_3 = arith.constant dense<0.000000e+00> : vector<8xf32>
    %10 = vector.multi_reduction <add>, %9, %cst_3 [1] : vector<8x16xf32> to vector<8xf32>
    %11 = vector.shape_cast %10 : vector<8xf32> to vector<8x1xf32>
    %cst_4 = arith.constant 1.600000e+01 : f32
    %12 = vector.broadcast %cst_4 : f32 to vector<8x1xf32>
    %13 = arith.divf %11, %12 : vector<8x1xf32>
    %cst_5 = arith.constant 9.99999974E-6 : f32
    %14 = vector.broadcast %cst_5 : f32 to vector<8x1xf32>
    %15 = arith.addf %13, %14 : vector<8x1xf32>
    %16 = math.rsqrt %15 : vector<8x1xf32>
    %17 = vector.broadcast %16 : vector<8x1xf32> to vector<8x16xf32>
    %18 = arith.mulf %8, %17 : vector<8x16xf32>
    %c0_6 = arith.constant 0 : index
    %c0_7 = arith.constant 0 : index
    %19 = vector.load %arg2[%c0_6, %c0_7] : memref<1x16xf32, #tpu.memory_space<vmem>>, vector<1x16xf32>
    %20 = vector.broadcast %19 : vector<1x16xf32> to vector<8x16xf32>
    %21 = arith.mulf %18, %20 : vector<8x16xf32>
    %22 = arith.truncf %21 : vector<8x16xf32> to vector<8x16xbf16>
    %c0_8 = arith.constant 0 : index
    %c0_9 = arith.constant 0 : index
    %23 = vector.load %arg3[%c0_8, %c0_9] : memref<16x384xbf16, #tpu.memory_space<vmem>>, vector<16x384xbf16>
    %cst_10 = arith.constant dense<0.000000e+00> : vector<8x384xf32>
    %24 = tpu.matmul %22, %23, %cst_10 {dimension_numbers = #tpu.dot_dimension_numbers<[1], [0], [0], [1], [0, 0, 1, 1], [], []>} : vector<8x16xbf16>, vector<16x384xbf16>, vector<8x384xf32> -> vector<8x384xf32>
    %25 = vector.extract_strided_slice %24 {offsets = [0, 0], sizes = [8, 32], strides = [1, 1]} : vector<8x384xf32> to vector<8x32xf32>
    %26 = vector.extract_strided_slice %24 {offsets = [0, 128], sizes = [8, 32], strides = [1, 1]} : vector<8x384xf32> to vector<8x32xf32>
    %27 = vector.extract_strided_slice %24 {offsets = [0, 256], sizes = [8, 32], strides = [1, 1]} : vector<8x384xf32> to vector<8x32xf32>
    %cst_11 = arith.constant dense<0xFF800000> : vector<8xf32>
    %28 = vector.multi_reduction <maximumf>, %25, %cst_11 [1] : vector<8x32xf32> to vector<8xf32>
    %29 = vector.shape_cast %28 : vector<8xf32> to vector<8x1xf32>
    %30 = vector.broadcast %29 : vector<8x1xf32> to vector<8x32xf32>
    %31 = arith.subf %25, %30 : vector<8x32xf32>
    %32 = math.exp %31 : vector<8x32xf32>
    %cst_12 = arith.constant dense<0.000000e+00> : vector<8xf32>
    %33 = vector.multi_reduction <add>, %32, %cst_12 [1] : vector<8x32xf32> to vector<8xf32>
    %34 = vector.shape_cast %33 : vector<8xf32> to vector<8x1xf32>
    %35 = vector.broadcast %34 : vector<8x1xf32> to vector<8x32xf32>
    %36 = arith.divf %32, %35 : vector<8x32xf32>
    %cst_13 = arith.constant 0.176776692 : f32
    %37 = vector.broadcast %cst_13 : f32 to vector<8x32xf32>
    %38 = arith.mulf %36, %37 : vector<8x32xf32>
    %cst_14 = arith.constant dense<0xFF800000> : vector<32xf32>
    %39 = vector.multi_reduction <maximumf>, %26, %cst_14 [0] : vector<8x32xf32> to vector<32xf32>
    %40 = vector.shape_cast %39 : vector<32xf32> to vector<1x32xf32>
    %41 = vector.broadcast %40 : vector<1x32xf32> to vector<8x32xf32>
    %42 = arith.subf %26, %41 : vector<8x32xf32>
    %43 = math.exp %42 : vector<8x32xf32>
    %cst_15 = arith.constant dense<0.000000e+00> : vector<32xf32>
    %44 = vector.multi_reduction <add>, %43, %cst_15 [0] : vector<8x32xf32> to vector<32xf32>
    %45 = vector.shape_cast %44 : vector<32xf32> to vector<1x32xf32>
    %46 = vector.broadcast %45 : vector<1x32xf32> to vector<8x32xf32>
    %47 = arith.divf %43, %46 : vector<8x32xf32>
    %48 = arith.truncf %47 : vector<8x32xf32> to vector<8x32xbf16>
    %49 = arith.truncf %27 : vector<8x32xf32> to vector<8x32xbf16>
    %cst_16 = arith.constant dense<0.000000e+00> : vector<32x32xf32>
    %50 = tpu.matmul %48, %49, %cst_16 {dimension_numbers = #tpu.dot_dimension_numbers<[0], [0], [1], [1], [0, 1, 1, 1], [], []>} : vector<8x32xbf16>, vector<8x32xbf16>, vector<32x32xf32> -> vector<32x32xf32>
    %51 = arith.truncf %38 : vector<8x32xf32> to vector<8x32xbf16>
    %52 = arith.truncf %50 : vector<32x32xf32> to vector<32x32xbf16>
    %cst_17 = arith.constant dense<0.000000e+00> : vector<8x32xf32>
    %53 = tpu.matmul %51, %52, %cst_17 {dimension_numbers = #tpu.dot_dimension_numbers<[1], [0], [0], [1], [0, 0, 1, 1], [], []>} : vector<8x32xbf16>, vector<32x32xbf16>, vector<8x32xf32> -> vector<8x32xf32>
    %54 = vector.extract_strided_slice %24 {offsets = [0, 32], sizes = [8, 32], strides = [1, 1]} : vector<8x384xf32> to vector<8x32xf32>
    %55 = vector.extract_strided_slice %24 {offsets = [0, 160], sizes = [8, 32], strides = [1, 1]} : vector<8x384xf32> to vector<8x32xf32>
    %56 = vector.extract_strided_slice %24 {offsets = [0, 288], sizes = [8, 32], strides = [1, 1]} : vector<8x384xf32> to vector<8x32xf32>
    %cst_18 = arith.constant dense<0xFF800000> : vector<8xf32>
    %57 = vector.multi_reduction <maximumf>, %54, %cst_18 [1] : vector<8x32xf32> to vector<8xf32>
    %58 = vector.shape_cast %57 : vector<8xf32> to vector<8x1xf32>
    %59 = vector.broadcast %58 : vector<8x1xf32> to vector<8x32xf32>
    %60 = arith.subf %54, %59 : vector<8x32xf32>
    %61 = math.exp %60 : vector<8x32xf32>
    %cst_19 = arith.constant dense<0.000000e+00> : vector<8xf32>
    %62 = vector.multi_reduction <add>, %61, %cst_19 [1] : vector<8x32xf32> to vector<8xf32>
    %63 = vector.shape_cast %62 : vector<8xf32> to vector<8x1xf32>
    %64 = vector.broadcast %63 : vector<8x1xf32> to vector<8x32xf32>
    %65 = arith.divf %61, %64 : vector<8x32xf32>
    %cst_20 = arith.constant 0.176776692 : f32
    %66 = vector.broadcast %cst_20 : f32 to vector<8x32xf32>
    %67 = arith.mulf %65, %66 : vector<8x32xf32>
    %cst_21 = arith.constant dense<0xFF800000> : vector<32xf32>
    %68 = vector.multi_reduction <maximumf>, %55, %cst_21 [0] : vector<8x32xf32> to vector<32xf32>
    %69 = vector.shape_cast %68 : vector<32xf32> to vector<1x32xf32>
    %70 = vector.broadcast %69 : vector<1x32xf32> to vector<8x32xf32>
    %71 = arith.subf %55, %70 : vector<8x32xf32>
    %72 = math.exp %71 : vector<8x32xf32>
    %cst_22 = arith.constant dense<0.000000e+00> : vector<32xf32>
    %73 = vector.multi_reduction <add>, %72, %cst_22 [0] : vector<8x32xf32> to vector<32xf32>
    %74 = vector.shape_cast %73 : vector<32xf32> to vector<1x32xf32>
    %75 = vector.broadcast %74 : vector<1x32xf32> to vector<8x32xf32>
    %76 = arith.divf %72, %75 : vector<8x32xf32>
    %77 = arith.truncf %76 : vector<8x32xf32> to vector<8x32xbf16>
    %78 = arith.truncf %56 : vector<8x32xf32> to vector<8x32xbf16>
    %cst_23 = arith.constant dense<0.000000e+00> : vector<32x32xf32>
    %79 = tpu.matmul %77, %78, %cst_23 {dimension_numbers = #tpu.dot_dimension_numbers<[0], [0], [1], [1], [0, 1, 1, 1], [], []>} : vector<8x32xbf16>, vector<8x32xbf16>, vector<32x32xf32> -> vector<32x32xf32>
    %80 = arith.truncf %67 : vector<8x32xf32> to vector<8x32xbf16>
    %81 = arith.truncf %79 : vector<32x32xf32> to vector<32x32xbf16>
    %cst_24 = arith.constant dense<0.000000e+00> : vector<8x32xf32>
    %82 = tpu.matmul %80, %81, %cst_24 {dimension_numbers = #tpu.dot_dimension_numbers<[1], [0], [0], [1], [0, 0, 1, 1], [], []>} : vector<8x32xbf16>, vector<32x32xbf16>, vector<8x32xf32> -> vector<8x32xf32>
    %83 = vector.extract_strided_slice %24 {offsets = [0, 64], sizes = [8, 32], strides = [1, 1]} : vector<8x384xf32> to vector<8x32xf32>
    %84 = vector.extract_strided_slice %24 {offsets = [0, 192], sizes = [8, 32], strides = [1, 1]} : vector<8x384xf32> to vector<8x32xf32>
    %85 = vector.extract_strided_slice %24 {offsets = [0, 320], sizes = [8, 32], strides = [1, 1]} : vector<8x384xf32> to vector<8x32xf32>
    %cst_25 = arith.constant dense<0xFF800000> : vector<8xf32>
    %86 = vector.multi_reduction <maximumf>, %83, %cst_25 [1] : vector<8x32xf32> to vector<8xf32>
    %87 = vector.shape_cast %86 : vector<8xf32> to vector<8x1xf32>
    %88 = vector.broadcast %87 : vector<8x1xf32> to vector<8x32xf32>
    %89 = arith.subf %83, %88 : vector<8x32xf32>
    %90 = math.exp %89 : vector<8x32xf32>
    %cst_26 = arith.constant dense<0.000000e+00> : vector<8xf32>
    %91 = vector.multi_reduction <add>, %90, %cst_26 [1] : vector<8x32xf32> to vector<8xf32>
    %92 = vector.shape_cast %91 : vector<8xf32> to vector<8x1xf32>
    %93 = vector.broadcast %92 : vector<8x1xf32> to vector<8x32xf32>
    %94 = arith.divf %90, %93 : vector<8x32xf32>
    %cst_27 = arith.constant 0.176776692 : f32
    %95 = vector.broadcast %cst_27 : f32 to vector<8x32xf32>
    %96 = arith.mulf %94, %95 : vector<8x32xf32>
    %cst_28 = arith.constant dense<0xFF800000> : vector<32xf32>
    %97 = vector.multi_reduction <maximumf>, %84, %cst_28 [0] : vector<8x32xf32> to vector<32xf32>
    %98 = vector.shape_cast %97 : vector<32xf32> to vector<1x32xf32>
    %99 = vector.broadcast %98 : vector<1x32xf32> to vector<8x32xf32>
    %100 = arith.subf %84, %99 : vector<8x32xf32>
    %101 = math.exp %100 : vector<8x32xf32>
    %cst_29 = arith.constant dense<0.000000e+00> : vector<32xf32>
    %102 = vector.multi_reduction <add>, %101, %cst_29 [0] : vector<8x32xf32> to vector<32xf32>
    %103 = vector.shape_cast %102 : vector<32xf32> to vector<1x32xf32>
    %104 = vector.broadcast %103 : vector<1x32xf32> to vector<8x32xf32>
    %105 = arith.divf %101, %104 : vector<8x32xf32>
    %106 = arith.truncf %105 : vector<8x32xf32> to vector<8x32xbf16>
    %107 = arith.truncf %85 : vector<8x32xf32> to vector<8x32xbf16>
    %cst_30 = arith.constant dense<0.000000e+00> : vector<32x32xf32>
    %108 = tpu.matmul %106, %107, %cst_30 {dimension_numbers = #tpu.dot_dimension_numbers<[0], [0], [1], [1], [0, 1, 1, 1], [], []>} : vector<8x32xbf16>, vector<8x32xbf16>, vector<32x32xf32> -> vector<32x32xf32>
    %109 = arith.truncf %96 : vector<8x32xf32> to vector<8x32xbf16>
    %110 = arith.truncf %108 : vector<32x32xf32> to vector<32x32xbf16>
    %cst_31 = arith.constant dense<0.000000e+00> : vector<8x32xf32>
    %111 = tpu.matmul %109, %110, %cst_31 {dimension_numbers = #tpu.dot_dimension_numbers<[1], [0], [0], [1], [0, 0, 1, 1], [], []>} : vector<8x32xbf16>, vector<32x32xbf16>, vector<8x32xf32> -> vector<8x32xf32>
    %112 = vector.extract_strided_slice %24 {offsets = [0, 96], sizes = [8, 32], strides = [1, 1]} : vector<8x384xf32> to vector<8x32xf32>
    %113 = vector.extract_strided_slice %24 {offsets = [0, 224], sizes = [8, 32], strides = [1, 1]} : vector<8x384xf32> to vector<8x32xf32>
    %114 = vector.extract_strided_slice %24 {offsets = [0, 352], sizes = [8, 32], strides = [1, 1]} : vector<8x384xf32> to vector<8x32xf32>
    %cst_32 = arith.constant dense<0xFF800000> : vector<8xf32>
    %115 = vector.multi_reduction <maximumf>, %112, %cst_32 [1] : vector<8x32xf32> to vector<8xf32>
    %116 = vector.shape_cast %115 : vector<8xf32> to vector<8x1xf32>
    %117 = vector.broadcast %116 : vector<8x1xf32> to vector<8x32xf32>
    %118 = arith.subf %112, %117 : vector<8x32xf32>
    %119 = math.exp %118 : vector<8x32xf32>
    %cst_33 = arith.constant dense<0.000000e+00> : vector<8xf32>
    %120 = vector.multi_reduction <add>, %119, %cst_33 [1] : vector<8x32xf32> to vector<8xf32>
    %121 = vector.shape_cast %120 : vector<8xf32> to vector<8x1xf32>
    %122 = vector.broadcast %121 : vector<8x1xf32> to vector<8x32xf32>
    %123 = arith.divf %119, %122 : vector<8x32xf32>
    %cst_34 = arith.constant 0.176776692 : f32
    %124 = vector.broadcast %cst_34 : f32 to vector<8x32xf32>
    %125 = arith.mulf %123, %124 : vector<8x32xf32>
    %cst_35 = arith.constant dense<0xFF800000> : vector<32xf32>
    %126 = vector.multi_reduction <maximumf>, %113, %cst_35 [0] : vector<8x32xf32> to vector<32xf32>
    %127 = vector.shape_cast %126 : vector<32xf32> to vector<1x32xf32>
    %128 = vector.broadcast %127 : vector<1x32xf32> to vector<8x32xf32>
    %129 = arith.subf %113, %128 : vector<8x32xf32>
    %130 = math.exp %129 : vector<8x32xf32>
    %cst_36 = arith.constant dense<0.000000e+00> : vector<32xf32>
    %131 = vector.multi_reduction <add>, %130, %cst_36 [0] : vector<8x32xf32> to vector<32xf32>
    %132 = vector.shape_cast %131 : vector<32xf32> to vector<1x32xf32>
    %133 = vector.broadcast %132 : vector<1x32xf32> to vector<8x32xf32>
    %134 = arith.divf %130, %133 : vector<8x32xf32>
    %135 = arith.truncf %134 : vector<8x32xf32> to vector<8x32xbf16>
    %136 = arith.truncf %114 : vector<8x32xf32> to vector<8x32xbf16>
    %cst_37 = arith.constant dense<0.000000e+00> : vector<32x32xf32>
    %137 = tpu.matmul %135, %136, %cst_37 {dimension_numbers = #tpu.dot_dimension_numbers<[0], [0], [1], [1], [0, 1, 1, 1], [], []>} : vector<8x32xbf16>, vector<8x32xbf16>, vector<32x32xf32> -> vector<32x32xf32>
    %138 = arith.truncf %125 : vector<8x32xf32> to vector<8x32xbf16>
    %139 = arith.truncf %137 : vector<32x32xf32> to vector<32x32xbf16>
    %cst_38 = arith.constant dense<0.000000e+00> : vector<8x32xf32>
    %140 = tpu.matmul %138, %139, %cst_38 {dimension_numbers = #tpu.dot_dimension_numbers<[1], [0], [0], [1], [0, 0, 1, 1], [], []>} : vector<8x32xbf16>, vector<32x32xbf16>, vector<8x32xf32> -> vector<8x32xf32>
    %141 = tpu.concatenate %53, %82, %111, %140 in 1 : vector<8x32xf32>, vector<8x32xf32>, vector<8x32xf32>, vector<8x32xf32> -> vector<8x128xf32>
    %142 = arith.truncf %141 : vector<8x128xf32> to vector<8x128xbf16>
    %c0_39 = arith.constant 0 : index
    %c0_40 = arith.constant 0 : index
    %143 = vector.load %arg4[%c0_39, %c0_40] : memref<128x16xbf16, #tpu.memory_space<vmem>>, vector<128x16xbf16>
    %cst_41 = arith.constant dense<0.000000e+00> : vector<8x16xf32>
    %144 = tpu.matmul %142, %143, %cst_41 {dimension_numbers = #tpu.dot_dimension_numbers<[1], [0], [0], [1], [0, 0, 1, 1], [], []>} : vector<8x128xbf16>, vector<128x16xbf16>, vector<8x16xf32> -> vector<8x16xf32>
    %c0_42 = arith.constant 0 : index
    %c0_43 = arith.constant 0 : index
    %145 = vector.load %arg5[%c0_42, %c0_43] : memref<1x16xf32, #tpu.memory_space<vmem>>, vector<1x16xf32>
    %146 = vector.broadcast %145 : vector<1x16xf32> to vector<8x16xf32>
    %147 = arith.addf %144, %146 : vector<8x16xf32>
    %cst_44 = arith.constant dense<0.000000e+00> : vector<8xf32>
    %148 = vector.multi_reduction <add>, %147, %cst_44 [1] : vector<8x16xf32> to vector<8xf32>
    %149 = vector.shape_cast %148 : vector<8xf32> to vector<8x1xf32>
    %cst_45 = arith.constant 1.600000e+01 : f32
    %150 = vector.broadcast %cst_45 : f32 to vector<8x1xf32>
    %151 = arith.divf %149, %150 : vector<8x1xf32>
    %152 = vector.broadcast %151 : vector<8x1xf32> to vector<8x16xf32>
    %153 = arith.subf %147, %152 : vector<8x16xf32>
    %154 = arith.mulf %153, %153 : vector<8x16xf32>
    %cst_46 = arith.constant dense<0.000000e+00> : vector<8xf32>
    %155 = vector.multi_reduction <add>, %154, %cst_46 [1] : vector<8x16xf32> to vector<8xf32>
    %156 = vector.shape_cast %155 : vector<8xf32> to vector<8x1xf32>
    %cst_47 = arith.constant 1.600000e+01 : f32
    %157 = vector.broadcast %cst_47 : f32 to vector<8x1xf32>
    %158 = arith.divf %156, %157 : vector<8x1xf32>
    %cst_48 = arith.constant 9.99999974E-6 : f32
    %159 = vector.broadcast %cst_48 : f32 to vector<8x1xf32>
    %160 = arith.addf %158, %159 : vector<8x1xf32>
    %161 = math.rsqrt %160 : vector<8x1xf32>
    %162 = vector.broadcast %161 : vector<8x1xf32> to vector<8x16xf32>
    %163 = arith.mulf %153, %162 : vector<8x16xf32>
    %c0_49 = arith.constant 0 : index
    %c0_50 = arith.constant 0 : index
    %164 = vector.load %arg6[%c0_49, %c0_50] : memref<1x16xf32, #tpu.memory_space<vmem>>, vector<1x16xf32>
    %165 = vector.broadcast %164 : vector<1x16xf32> to vector<8x16xf32>
    %166 = arith.mulf %163, %165 : vector<8x16xf32>
    %167 = arith.addf %166, %2 : vector<8x16xf32>
    %168 = arith.truncf %167 : vector<8x16xf32> to vector<8x16xbf16>
    %c0_51 = arith.constant 0 : index
    %c0_52 = arith.constant 0 : index
    %c0_53 = arith.constant 0 : index
    %169 = vector.load %arg7[%c0_51, %c0_52, %c0_53] : memref<1x8x16xbf16, #tpu.memory_space<vmem>>, vector<1x8x16xbf16>
    %170 = vector.shape_cast %169 : vector<1x8x16xbf16> to vector<8x16xbf16>
    %171 = vector.shape_cast %168 : vector<8x16xbf16> to vector<1x8x16xbf16>
    tpu.vector_store %arg7[%c0_51, %c0_52, %c0_53], %171 {strides = array<i32>} : memref<1x8x16xbf16, #tpu.memory_space<vmem>>, vector<1x8x16xbf16>,
    return
  }
  func.func @transform_0(%arg0: i32) -> (i32, i32, i32) {
    %c0_i32 = arith.constant 0 : i32
    %c0_i32_0 = arith.constant 0 : i32
    %c0_i32_1 = arith.constant 0 : i32
    return %arg0, %c0_i32, %c0_i32_0 : i32, i32, i32
  }
  func.func @transform_1(%arg0: i32) -> (i32, i32) {
    %c0_i32 = arith.constant 0 : i32
    %c0_i32_0 = arith.constant 0 : i32
    %c0_i32_1 = arith.constant 0 : i32
    return %c0_i32, %c0_i32_0 : i32, i32
  }
  func.func @transform_2(%arg0: i32) -> (i32, i32) {
    %c0_i32 = arith.constant 0 : i32
    %c0_i32_0 = arith.constant 0 : i32
    %c0_i32_1 = arith.constant 0 : i32
    return %c0_i32, %c0_i32_0 : i32, i32
  }
  func.func @transform_3(%arg0: i32) -> (i32, i32) {
    %c0_i32 = arith.constant 0 : i32
    %c0_i32_0 = arith.constant 0 : i32
    %c0_i32_1 = arith.constant 0 : i32
    return %c0_i32, %c0_i32_0 : i32, i32
  }
  func.func @transform_4(%arg0: i32) -> (i32, i32) {
    %c0_i32 = arith.constant 0 : i32
    %c0_i32_0 = arith.constant 0 : i32
    %c0_i32_1 = arith.constant 0 : i32
    return %c0_i32, %c0_i32_0 : i32, i32
  }
  func.func @transform_5(%arg0: i32) -> (i32, i32) {
    %c0_i32 = arith.constant 0 : i32
    %c0_i32_0 = arith.constant 0 : i32
    %c0_i32_1 = arith.constant 0 : i32
    return %c0_i32, %c0_i32_0 : i32, i32
  }
  func.func @transform_6(%arg0: i32) -> (i32, i32, i32) {
    %c0_i32 = arith.constant 0 : i32
    %c0_i32_0 = arith.constant 0 : i32
    %c0_i32_1 = arith.constant 0 : i32
    return %arg0, %c0_i32, %c0_i32_0 : i32, i32, i32
  }
}

module attributes {stable_mosaic.version = 11 : i64} {
  func.func @_conv_kernel(%arg0: i32, %arg1: i32, %arg2: i32, %arg3: memref<1x1x16x16xbf16, #tpu.memory_space<vmem>>, %arg4: memref<1x16x128xbf16, #tpu.memory_space<vmem>>, %arg5: memref<1x128xf32, #tpu.memory_space<vmem>>, %arg6: memref<1x1x16x128xbf16, #tpu.memory_space<vmem>>) attributes {dimension_semantics = [#tpu.dimension_semantics<parallel>, #tpu.dimension_semantics<parallel>, #tpu.dimension_semantics<parallel>], iteration_bounds = array<i64: 2, 1, 1>, scalar_prefetch = 0 : i64, scratch_operands = 0 : i64, tpu.core_type = #tpu.core_type<tc>, window_params = [{transform_indices = @transform_0, window_bounds = array<i64: 1, 1, 16, 16>}, {transform_indices = @transform_1, window_bounds = array<i64: 1, 16, 128>}, {transform_indices = @transform_2, window_bounds = array<i64: 1, 128>}, {transform_indices = @transform_3, window_bounds = array<i64: 1, 1, 16, 128>}]} {
    %c0 = arith.constant 0 : index
    %c0_0 = arith.constant 0 : index
    %c0_1 = arith.constant 0 : index
    %c0_2 = arith.constant 0 : index
    %0 = vector.load %arg3[%c0, %c0_0, %c0_1, %c0_2] : memref<1x1x16x16xbf16, #tpu.memory_space<vmem>>, vector<1x1x16x16xbf16>
    %1 = vector.shape_cast %0 : vector<1x1x16x16xbf16> to vector<16x16xbf16>
    %c0_3 = arith.constant 0 : index
    %c0_4 = arith.constant 0 : index
    %c0_5 = arith.constant 0 : index
    %2 = vector.load %arg4[%c0_3, %c0_4, %c0_5] : memref<1x16x128xbf16, #tpu.memory_space<vmem>>, vector<1x16x128xbf16>
    %3 = vector.shape_cast %2 : vector<1x16x128xbf16> to vector<16x128xbf16>
    %cst = arith.constant dense<0.000000e+00> : vector<16x128xf32>
    %4 = tpu.matmul %1, %3, %cst {dimension_numbers = #tpu.dot_dimension_numbers<[1], [0], [0], [1], [0, 0, 1, 1], [], []>} : vector<16x16xbf16>, vector<16x128xbf16>, vector<16x128xf32> -> vector<16x128xf32>
    %c0_6 = arith.constant 0 : index
    %c0_7 = arith.constant 0 : index
    %5 = vector.load %arg5[%c0_6, %c0_7] : memref<1x128xf32, #tpu.memory_space<vmem>>, vector<1x128xf32>
    %6 = vector.broadcast %5 : vector<1x128xf32> to vector<16x128xf32>
    %7 = arith.addf %4, %6 : vector<16x128xf32>
    %8 = arith.truncf %7 : vector<16x128xf32> to vector<16x128xbf16>
    %c0_8 = arith.constant 0 : index
    %c0_9 = arith.constant 0 : index
    %c0_10 = arith.constant 0 : index
    %c0_11 = arith.constant 0 : index
    %9 = vector.load %arg6[%c0_8, %c0_9, %c0_10, %c0_11] : memref<1x1x16x128xbf16, #tpu.memory_space<vmem>>, vector<1x1x16x128xbf16>
    %10 = vector.shape_cast %9 : vector<1x1x16x128xbf16> to vector<16x128xbf16>
    %11 = vector.shape_cast %8 : vector<16x128xbf16> to vector<1x1x16x128xbf16>
    tpu.vector_store %arg6[%c0_8, %c0_9, %c0_10, %c0_11], %11 {strides = array<i32>} : memref<1x1x16x128xbf16, #tpu.memory_space<vmem>>, vector<1x1x16x128xbf16>,
    return
  }
  func.func @transform_0(%arg0: i32, %arg1: i32, %arg2: i32) -> (i32, i32, i32, i32) {
    %c0_i32 = arith.constant 0 : i32
    %c0_i32_0 = arith.constant 0 : i32
    %c0_i32_1 = arith.constant 0 : i32
    return %arg0, %arg1, %c0_i32, %c0_i32_0 : i32, i32, i32, i32
  }
  func.func @transform_1(%arg0: i32, %arg1: i32, %arg2: i32) -> (i32, i32, i32) {
    %c0_i32 = arith.constant 0 : i32
    %c0_i32_0 = arith.constant 0 : i32
    %c0_i32_1 = arith.constant 0 : i32
    return %c0_i32, %c0_i32_0, %arg2 : i32, i32, i32
  }
  func.func @transform_2(%arg0: i32, %arg1: i32, %arg2: i32) -> (i32, i32) {
    %c0_i32 = arith.constant 0 : i32
    %c0_i32_0 = arith.constant 0 : i32
    return %c0_i32, %arg2 : i32, i32
  }
  func.func @transform_3(%arg0: i32, %arg1: i32, %arg2: i32) -> (i32, i32, i32, i32) {
    %c0_i32 = arith.constant 0 : i32
    %c0_i32_0 = arith.constant 0 : i32
    return %arg0, %arg1, %c0_i32, %arg2 : i32, i32, i32, i32
  }
}

module attributes {stable_mosaic.version = 11 : i64} {
  func.func @_conv_kernel(%arg0: i32, %arg1: i32, %arg2: i32, %arg3: memref<1x1x24x16xbf16, #tpu.memory_space<vmem>>, %arg4: memref<3x16x128xbf16, #tpu.memory_space<vmem>>, %arg5: memref<1x128xf32, #tpu.memory_space<vmem>>, %arg6: memref<1x1x16x128xbf16, #tpu.memory_space<vmem>>) attributes {dimension_semantics = [#tpu.dimension_semantics<parallel>, #tpu.dimension_semantics<parallel>, #tpu.dimension_semantics<parallel>], iteration_bounds = array<i64: 2, 1, 1>, scalar_prefetch = 0 : i64, scratch_operands = 0 : i64, tpu.core_type = #tpu.core_type<tc>, window_params = [{transform_indices = @transform_0, window_bounds = array<i64: 1, 1, 24, 16>}, {transform_indices = @transform_1, window_bounds = array<i64: 3, 16, 128>}, {transform_indices = @transform_2, window_bounds = array<i64: 1, 128>}, {transform_indices = @transform_3, window_bounds = array<i64: 1, 1, 16, 128>}]} {
    %c0 = arith.constant 0 : index
    %c0_0 = arith.constant 0 : index
    %c0_1 = arith.constant 0 : index
    %c0_2 = arith.constant 0 : index
    %0 = vector.load %arg3[%c0, %c0_0, %c0_1, %c0_2] : memref<1x1x24x16xbf16, #tpu.memory_space<vmem>>, vector<1x1x24x16xbf16>
    %1 = vector.shape_cast %0 : vector<1x1x24x16xbf16> to vector<24x16xbf16>
    %c0_3 = arith.constant 0 : index
    %c0_4 = arith.constant 0 : index
    %c0_5 = arith.constant 0 : index
    %2 = vector.load %arg4[%c0_3, %c0_4, %c0_5] : memref<3x16x128xbf16, #tpu.memory_space<vmem>>, vector<1x16x128xbf16>
    %3 = vector.shape_cast %2 : vector<1x16x128xbf16> to vector<16x128xbf16>
    %cst = arith.constant dense<0.000000e+00> : vector<24x128xf32>
    %4 = tpu.matmul %1, %3, %cst {dimension_numbers = #tpu.dot_dimension_numbers<[1], [0], [0], [1], [0, 0, 1, 1], [], []>} : vector<24x16xbf16>, vector<16x128xbf16>, vector<24x128xf32> -> vector<24x128xf32>
    %c1 = arith.constant 1 : index
    %c0_6 = arith.constant 0 : index
    %c0_7 = arith.constant 0 : index
    %5 = vector.load %arg4[%c1, %c0_6, %c0_7] : memref<3x16x128xbf16, #tpu.memory_space<vmem>>, vector<1x16x128xbf16>
    %6 = vector.shape_cast %5 : vector<1x16x128xbf16> to vector<16x128xbf16>
    %cst_8 = arith.constant dense<0.000000e+00> : vector<24x128xf32>
    %7 = tpu.matmul %1, %6, %cst_8 {dimension_numbers = #tpu.dot_dimension_numbers<[1], [0], [0], [1], [0, 0, 1, 1], [], []>} : vector<24x16xbf16>, vector<16x128xbf16>, vector<24x128xf32> -> vector<24x128xf32>
    %c23_i32 = arith.constant 23 : i32
    %8 = tpu.dynamic_rotate %7 by %c23_i32 dim 0 : vector<24x128xf32>, i32 -> vector<24x128xf32>
    %9 = arith.addf %4, %8 : vector<24x128xf32>
    %c2 = arith.constant 2 : index
    %c0_9 = arith.constant 0 : index
    %c0_10 = arith.constant 0 : index
    %10 = vector.load %arg4[%c2, %c0_9, %c0_10] : memref<3x16x128xbf16, #tpu.memory_space<vmem>>, vector<1x16x128xbf16>
    %11 = vector.shape_cast %10 : vector<1x16x128xbf16> to vector<16x128xbf16>
    %cst_11 = arith.constant dense<0.000000e+00> : vector<24x128xf32>
    %12 = tpu.matmul %1, %11, %cst_11 {dimension_numbers = #tpu.dot_dimension_numbers<[1], [0], [0], [1], [0, 0, 1, 1], [], []>} : vector<24x16xbf16>, vector<16x128xbf16>, vector<24x128xf32> -> vector<24x128xf32>
    %c22_i32 = arith.constant 22 : i32
    %13 = tpu.dynamic_rotate %12 by %c22_i32 dim 0 : vector<24x128xf32>, i32 -> vector<24x128xf32>
    %14 = arith.addf %9, %13 : vector<24x128xf32>
    %15 = vector.extract_strided_slice %14 {offsets = [0, 0], sizes = [16, 128], strides = [1, 1]} : vector<24x128xf32> to vector<16x128xf32>
    %c0_12 = arith.constant 0 : index
    %c0_13 = arith.constant 0 : index
    %16 = vector.load %arg5[%c0_12, %c0_13] : memref<1x128xf32, #tpu.memory_space<vmem>>, vector<1x128xf32>
    %17 = vector.broadcast %16 : vector<1x128xf32> to vector<16x128xf32>
    %18 = arith.addf %15, %17 : vector<16x128xf32>
    %19 = arith.truncf %18 : vector<16x128xf32> to vector<16x128xbf16>
    %c0_14 = arith.constant 0 : index
    %c0_15 = arith.constant 0 : index
    %c0_16 = arith.constant 0 : index
    %c0_17 = arith.constant 0 : index
    %20 = vector.load %arg6[%c0_14, %c0_15, %c0_16, %c0_17] : memref<1x1x16x128xbf16, #tpu.memory_space<vmem>>, vector<1x1x16x128xbf16>
    %21 = vector.shape_cast %20 : vector<1x1x16x128xbf16> to vector<16x128xbf16>
    %22 = vector.shape_cast %19 : vector<16x128xbf16> to vector<1x1x16x128xbf16>
    tpu.vector_store %arg6[%c0_14, %c0_15, %c0_16, %c0_17], %22 {strides = array<i32>} : memref<1x1x16x128xbf16, #tpu.memory_space<vmem>>, vector<1x1x16x128xbf16>,
    return
  }
  func.func @transform_0(%arg0: i32, %arg1: i32, %arg2: i32) -> (i32, i32, i32, i32) {
    %c0_i32 = arith.constant 0 : i32
    %c0_i32_0 = arith.constant 0 : i32
    %c0_i32_1 = arith.constant 0 : i32
    return %arg0, %arg1, %c0_i32, %c0_i32_0 : i32, i32, i32, i32
  }
  func.func @transform_1(%arg0: i32, %arg1: i32, %arg2: i32) -> (i32, i32, i32) {
    %c0_i32 = arith.constant 0 : i32
    %c0_i32_0 = arith.constant 0 : i32
    %c0_i32_1 = arith.constant 0 : i32
    return %c0_i32, %c0_i32_0, %arg2 : i32, i32, i32
  }
  func.func @transform_2(%arg0: i32, %arg1: i32, %arg2: i32) -> (i32, i32) {
    %c0_i32 = arith.constant 0 : i32
    %c0_i32_0 = arith.constant 0 : i32
    return %c0_i32, %arg2 : i32, i32
  }
  func.func @transform_3(%arg0: i32, %arg1: i32, %arg2: i32) -> (i32, i32, i32, i32) {
    %c0_i32 = arith.constant 0 : i32
    %c0_i32_0 = arith.constant 0 : i32
    return %arg0, %arg1, %c0_i32, %arg2 : i32, i32, i32, i32
  }
}

module attributes {stable_mosaic.version = 11 : i64} {
  func.func @_conv_kernel(%arg0: i32, %arg1: i32, %arg2: i32, %arg3: memref<1x1x16x8xbf16, #tpu.memory_space<vmem>>, %arg4: memref<1x8x128xbf16, #tpu.memory_space<vmem>>, %arg5: memref<1x128xf32, #tpu.memory_space<vmem>>, %arg6: memref<1x1x16x128xf32, #tpu.memory_space<vmem>>) attributes {dimension_semantics = [#tpu.dimension_semantics<parallel>, #tpu.dimension_semantics<parallel>, #tpu.dimension_semantics<parallel>], iteration_bounds = array<i64: 2, 1, 1>, scalar_prefetch = 0 : i64, scratch_operands = 0 : i64, tpu.core_type = #tpu.core_type<tc>, window_params = [{transform_indices = @transform_0, window_bounds = array<i64: 1, 1, 16, 8>}, {transform_indices = @transform_1, window_bounds = array<i64: 1, 8, 128>}, {transform_indices = @transform_2, window_bounds = array<i64: 1, 128>}, {transform_indices = @transform_3, window_bounds = array<i64: 1, 1, 16, 128>}]} {
    %c0 = arith.constant 0 : index
    %c0_0 = arith.constant 0 : index
    %c0_1 = arith.constant 0 : index
    %c0_2 = arith.constant 0 : index
    %0 = vector.load %arg3[%c0, %c0_0, %c0_1, %c0_2] : memref<1x1x16x8xbf16, #tpu.memory_space<vmem>>, vector<1x1x16x8xbf16>
    %1 = vector.shape_cast %0 : vector<1x1x16x8xbf16> to vector<16x8xbf16>
    %c0_3 = arith.constant 0 : index
    %c0_4 = arith.constant 0 : index
    %c0_5 = arith.constant 0 : index
    %2 = vector.load %arg4[%c0_3, %c0_4, %c0_5] : memref<1x8x128xbf16, #tpu.memory_space<vmem>>, vector<1x8x128xbf16>
    %3 = vector.shape_cast %2 : vector<1x8x128xbf16> to vector<8x128xbf16>
    %cst = arith.constant dense<0.000000e+00> : vector<16x128xf32>
    %4 = tpu.matmul %1, %3, %cst {dimension_numbers = #tpu.dot_dimension_numbers<[1], [0], [0], [1], [0, 0, 1, 1], [], []>} : vector<16x8xbf16>, vector<8x128xbf16>, vector<16x128xf32> -> vector<16x128xf32>
    %c0_6 = arith.constant 0 : index
    %c0_7 = arith.constant 0 : index
    %5 = vector.load %arg5[%c0_6, %c0_7] : memref<1x128xf32, #tpu.memory_space<vmem>>, vector<1x128xf32>
    %6 = vector.broadcast %5 : vector<1x128xf32> to vector<16x128xf32>
    %7 = arith.addf %4, %6 : vector<16x128xf32>
    %c0_8 = arith.constant 0 : index
    %c0_9 = arith.constant 0 : index
    %c0_10 = arith.constant 0 : index
    %c0_11 = arith.constant 0 : index
    %8 = vector.load %arg6[%c0_8, %c0_9, %c0_10, %c0_11] : memref<1x1x16x128xf32, #tpu.memory_space<vmem>>, vector<1x1x16x128xf32>
    %9 = vector.shape_cast %8 : vector<1x1x16x128xf32> to vector<16x128xf32>
    %10 = vector.shape_cast %7 : vector<16x128xf32> to vector<1x1x16x128xf32>
    tpu.vector_store %arg6[%c0_8, %c0_9, %c0_10, %c0_11], %10 {strides = array<i32>} : memref<1x1x16x128xf32, #tpu.memory_space<vmem>>, vector<1x1x16x128xf32>,
    return
  }
  func.func @transform_0(%arg0: i32, %arg1: i32, %arg2: i32) -> (i32, i32, i32, i32) {
    %c0_i32 = arith.constant 0 : i32
    %c0_i32_0 = arith.constant 0 : i32
    %c0_i32_1 = arith.constant 0 : i32
    return %arg0, %arg1, %c0_i32, %c0_i32_0 : i32, i32, i32, i32
  }
  func.func @transform_1(%arg0: i32, %arg1: i32, %arg2: i32) -> (i32, i32, i32) {
    %c0_i32 = arith.constant 0 : i32
    %c0_i32_0 = arith.constant 0 : i32
    %c0_i32_1 = arith.constant 0 : i32
    return %c0_i32, %c0_i32_0, %arg2 : i32, i32, i32
  }
  func.func @transform_2(%arg0: i32, %arg1: i32, %arg2: i32) -> (i32, i32) {
    %c0_i32 = arith.constant 0 : i32
    %c0_i32_0 = arith.constant 0 : i32
    return %c0_i32, %arg2 : i32, i32
  }
  func.func @transform_3(%arg0: i32, %arg1: i32, %arg2: i32) -> (i32, i32, i32, i32) {
    %c0_i32 = arith.constant 0 : i32
    %c0_i32_0 = arith.constant 0 : i32
    return %arg0, %arg1, %c0_i32, %arg2 : i32, i32, i32, i32
  }
}

</mosaic_0001>

<bundles_post_ra>
// kernel: unet_forward.62
= control target key start
LH: loop header
LB: loop body
LE: loop exit
PB: predicated region body
PF: predicated region fallthrough
CT: control target
= control target key end

     0   :  { %s522_s15 = smov 0   ;;  %s584_s0 = inlined_call_operand.vmem [shape: bf16[2,16,8], index: 0, kind: input, shape index: {}]   ;;  %s585_s1 = inlined_call_operand.vmem [shape: f32[1,8], index: 1, kind: input, shape index: {}]   ;;  %s586_s2 = inlined_call_operand.vmem [shape: f32[1,8], index: 2, kind: input, shape index: {}]   ;;  %s587_s3 = inlined_call_operand.vmem [shape: f32[2,2,8], index: 3, kind: input, shape index: {}]   ;;  %s588_s4 = inlined_call_operand.vmem [shape: bf16[2,16,8], index: 4, kind: output, shape index: {}]  }
   0x1 LB: > { %s439_s16 = sadd.s32 4294967295, %s492_s15   ;;  %p443_p0 = scmp.ge.s32.totalorder %s492_s15, 1  ;;  %s492_s15 = sphi %s522_s15, %s14_s15  }
   0x2   : > { %p171_p1 = scmp.lt.s32.totalorder %s492_s15, 3 }
   0x4   : > { %p172_p2 = pnand %p443_p0, %p171_p1 }
   0x5   : > { %p201_p3 = scmp.lt.s32.totalorder (!%p172_p2), %s439_s16, 1  ;;  %s494_s21 = smov (!%p172_p2), 126  }
   0x6   : > { %175 = sbr.rel (%p172_p2) target bundleno = 642 (0x282), region = 36  ;;  %s495_s22 = smov (!%p172_p2), 122  }
   0x7   : > { %s496_s23 = smov (!%p172_p2), 124  }
   0xb   : > { %s590_s16 = smov (!%p201_p3, %s439_s16), 1  ;;  %vm219_vm0 = vcmask 64512   ;;  %vm229_vm1 = vcmask 15360   ;;  %v261_v20 = vlaneseq  ;;  %vm257_vm2 = vcmask 31744  }
   0xc   : > { %s457_s17 = sshll.u32 %s590_s16, 3  ;;  %vm259_vm3 = vcmask 48128   ;;  %s446_s24 = sshll.u32 %s590_s16, 1  ;;  %vm369_vm4 = vcmask 60416  }
   0xd   : > { %s205_s20 = scalar_lea.vmem %s584_s0, %s457_s17  ;;  %v547_v22 = vshrl.u32 %v261_v20, 7  ;;  %s209_s27 = scalar_lea.vmem %s587_s3, %s446_s24 }
   0xe   : > { %v462_v0 = vld [vmem:[%s205_s20] sm:$0xff]   ;;  %s214_s8 = scalar_lea.vmem %s588_s4, %s457_s17 }
   0xf   : > { %v463_v1 = vunpack.c.l.bf16 %v462_v0  ;;  %v464_v2 = vunpack.c.h.bf16 %v462_v0  ;;  %v263_v29 = vsub.s32 0, %v547_v22 }
  0x11   : > { %v220_v3 = vsel %vm219_vm0, %v463_v1, 0.0  ;;  %v221_v4 = vsel %vm219_vm0, %v464_v2, 0.0 }
  0x12   : > { %v222_v5 = vadd.f32 %v221_v4, %v220_v3 }
  0x14   : > { %v223_v6 = vrot.slane %v222_v5, 4 }
  0x16   : > { %v224_v7 = vadd.f32 %v223_v6, %v222_v5  ;;  %v449_v6 = vld [vmem:[%s585_s1] ss:$0 sm:$0xff] }
  0x18   : > { %v225_v8 = vrot.slane %v224_v7, 2 }
  0x1a   : > { %v226_v9 = vadd.f32 %v225_v8, %v224_v7  ;;  %v343_v7 = vsub.s32 1, %v547_v22 }
  0x1c   : > { %v227_v10 = vrot.slane %v226_v9, 1 }
  0x1e   : > { %v228_v11 = vadd.f32 %v227_v10, %v226_v9  ;;  %v450_v10 = vld [vmem:[%s586_s2] ss:$0 sm:$0xff] }
  0x20   : > { %235 = vrot.lane.b32.xlu0 %v228_v11, %s494_s21  ;;  %249 = vrot.lane.b32.xlu1 %v228_v11, %s495_s22  ;;  %v230_v12 = vsel %vm229_vm1, %v228_v11, 0.0 }
  0x24   : > { %242 = vrot.lane.b32.xlu0 %v228_v11, %s496_s23 }
  0x44   : > { %231 = vadd.xlane.f32.xlu1 %v230_v12 }
  0x92   : > { %v236_v13 = vpop.permute.xlu0 %235  ;;  %v250_v14 = vpop.permute.xlu1 %249 }
  0x93   : > { %v238_v15 = vsel %vm229_vm1, %v236_v13, 0.0  ;;  %v252_v16 = vsel %vm229_vm1, %v250_v14, 0.0 }
  0x94   : > { %239 = vadd.xlane.f32.xlu0 %v238_v15  ;;  %253 = vadd.xlane.f32.xlu1 %v252_v16 }
  0x96   : > { %v243_v17 = vpop.permute.xlu0 %242 }
  0x97   : > { %v245_v18 = vsel %vm229_vm1, %v243_v17, 0.0 }
  0x98   : > { %246 = vadd.xlane.f32.xlu0 %v245_v18 }
  0xcd   : > { %v232_v19 = vpop.xlane.xlu1 %231 }
  0xce   : > { %v233_v25 = vmul.f32 0.03125, %v232_v19 }
 0x11d   : > { %v240_v21 = vpop.xlane.xlu0 %239  ;;  %v254_v23 = vpop.xlane.xlu1 %253 }
 0x11e   : > { %v241_v24 = vmul.f32 0.03125, %v240_v21  ;;  %v255_v27 = vmul.f32 0.03125, %v254_v23 }
 0x120   : > { %v256_v30 = vsel %vm229_vm1, %v233_v25, %v241_v24 }
 0x121   : > { %v247_v26 = vpop.xlane.xlu0 %246 }
 0x122   : > { %v248_v28 = vmul.f32 0.03125, %v247_v26 }
 0x124   : > { %v258_v31 = vsel %vm257_vm2, %v256_v30, %v248_v28 }
 0x125   : > { %v260_v32 = vsel %vm259_vm3, %v258_v31, %v255_v27 }
 0x126   : > { %v264_v33 = vrot.slane %v260_v32, %v263_v29 }
 0x128   : > { %v265_v34 = vsub.f32 %v463_v1, %v264_v33  ;;  %v266_v35 = vsub.f32 %v464_v2, %v264_v33  ;;  %v333_v2 = vld [vmem:[%s209_s27] sm:$0x3] }
 0x129   : > { %v334_v4 = vadd.f32 1.0, %v333_v2  ;;  %v344_v14 = vrot.slane %v333_v2, %v343_v7 }
 0x12a   : > { %v267_v36 = vmul.f32 %v265_v34, %v265_v34  ;;  %v268_v37 = vmul.f32 %v266_v35, %v266_v35 }
 0x12b   : > { %v338_v11 = vrot.slane %v334_v4, %v263_v29 }
 0x12c   : > { %v269_v38 = vsel %vm219_vm0, %v267_v36, 0.0  ;;  %v270_v39 = vsel %vm219_vm0, %v268_v37, 0.0 }
 0x12d   : > { %v271_v40 = vadd.f32 %v270_v39, %v269_v38 }
 0x12f   : > { %v272_v41 = vrot.slane %v271_v40, 4 }
 0x131   : > { %v273_v42 = vadd.f32 %v272_v41, %v271_v40 }
 0x133   : > { %v274_v43 = vrot.slane %v273_v42, 2 }
 0x135   : > { %v275_v44 = vadd.f32 %v274_v43, %v273_v42 }
 0x137   : > { %v276_v45 = vrot.slane %v275_v44, 1 }
 0x139   : > { %v277_v46 = vadd.f32 %v276_v45, %v275_v44 }
 0x13b   : > { %290 = vrot.lane.b32.xlu1 %v277_v46, %s496_s23  ;;  %283 = vrot.lane.b32.xlu0 %v277_v46, %s494_s21  ;;  %v278_v47 = vsel %vm229_vm1, %v277_v46, 0.0 }
 0x13f   : > { %297 = vrot.lane.b32.xlu1 %v277_v46, %s495_s22 }
 0x15a   : > { %279 = vadd.xlane.f32.xlu0 %v278_v47 }
 0x1ad   : > { %v291_v48 = vpop.permute.xlu1 %290  ;;  %v284_v49 = vpop.permute.xlu0 %283 }
 0x1ae   : > { %v286_v50 = vsel %vm229_vm1, %v284_v49, 0.0  ;;  %v293_v51 = vsel %vm229_vm1, %v291_v48, 0.0 }
 0x1af   : > { %287 = vadd.xlane.f32.xlu1 %v286_v50  ;;  %294 = vadd.xlane.f32.xlu0 %v293_v51 }
 0x1b1   : > { %v298_v52 = vpop.permute.xlu1 %297 }
 0x1b2   : > { %v300_v53 = vsel %vm229_vm1, %v298_v52, 0.0 }
 0x1b3   : > { %301 = vadd.xlane.f32.xlu0 %v300_v53 }
 0x1e3   : > { %v280_v54 = vpop.xlane.xlu0 %279 }
 0x1e4   : > { %v281_v57 = vmul.f32 0.03125, %v280_v54 }
 0x238   : > { %v288_v55 = vpop.xlane.xlu1 %287  ;;  %v295_v56 = vpop.xlane.xlu0 %294 }
 0x239   : > { %v289_v58 = vmul.f32 0.03125, %v288_v55  ;;  %v296_v59 = vmul.f32 0.03125, %v295_v56 }
 0x23b   : > { %v304_v60 = vsel %vm229_vm1, %v281_v57, %v289_v58 }
 0x23c   : > { %v302_v61 = vpop.xlane.xlu0 %301  ;;  %v305_v63 = vsel %vm257_vm2, %v304_v60, %v296_v59 }
 0x23d   : > { %v303_v62 = vmul.f32 0.03125, %v302_v61 }
 0x23f   : > { %v306_v0 = vsel %vm259_vm3, %v305_v63, %v303_v62 }
 0x240   : > { %v307_v1 = vadd.f32 1e-05, %v306_v0 }
 0x242   : > { %476 = vrsqrt.f32 %v307_v1 }
 0x24f   : > { %v477_v3 = vpop.eup %476 }
 0x250   : > { %v312_v5 = vrot.slane %v477_v3, %v263_v29 }
 0x252   : > { %v313_v8 = vmul.f32 %v312_v5, %v265_v34  ;;  %v314_v9 = vmul.f32 %v312_v5, %v266_v35 }
 0x254   : > { %v322_v12 = vmul.f32 %v449_v6, %v313_v8  ;;  %v323_v13 = vmul.f32 %v449_v6, %v314_v9 }
 0x256   : > { %v331_v15 = vadd.f32 %v450_v10, %v322_v12  ;;  %v332_v16 = vadd.f32 %v450_v10, %v323_v13 }
 0x258   : > { %v339_v17 = vmul.f32 %v338_v11, %v331_v15  ;;  %v340_v18 = vmul.f32 %v338_v11, %v332_v16 }
 0x25a   : > { %v345_v19 = vadd.f32 %v344_v14, %v339_v17  ;;  %v346_v20 = vadd.f32 %v344_v14, %v340_v18 }
 0x25c   : > { %v451_v21 = vmul.f32 -1.442695, %v345_v19  ;;  %v452_v23 = vmul.f32 -1.442695, %v346_v20 }
 0x25e   : > { %478 = vpow2.f32 %v451_v21 }
 0x25f   : > { %480 = vpow2.f32 %v452_v23 }
 0x26b   : > { %v479_v22 = vpop.eup %478 }
 0x26c   : > { %v481_v24 = vpop.eup %480  ;;  %v353_v25 = vadd.f32 1.0, %v479_v22 }
 0x26d   : > { %v354_v26 = vadd.f32 1.0, %v481_v24 }
 0x26e   : > { %482 = vrcp.f32 %v353_v25 }
 0x26f   : > { %484 = vrcp.f32 %v354_v26 }
 0x27b   : > { %v483_v27 = vpop.eup %482 }
 0x27c   : > { %v485_v28 = vpop.eup %484  ;;  %v359_v29 = vmul.f32 %v483_v27, %v345_v19 }
 0x27d   : > { %v360_v30 = vmul.f32 %v485_v28, %v346_v20 }
 0x27e   : > { %v459_v31 = vpack.c.bf16 %v359_v29, %v359_v29 }
 0x27f   : > { %v460_v32 = vpack.c.bf16 %v360_v30, %v360_v30 }
 0x280   : > { %370 = vst.msk [vmem:[%s214_s8] sm:$0xf] %vm369_vm4, %v459_v31 }
 0x281   : > { %371 = vst.msk [vmem:[%s214_s8 + $0x4] sm:$0xf] %vm369_vm4, %v460_v32 }
 0x282 PF: > { %s14_s15 = sadd.s32 1, %s492_s15  }
 0x283   : > { %p11_p4 = scmp.ge.s32.totalorder %s14_s15, 4  }
 0x285   :  { %13 = sbr.rel (!%p11_p4) target bundleno = 1 (0x1), region = 69 }

// kernel: unet_forward.61
= control target key start
LH: loop header
LB: loop body
LE: loop exit
PB: predicated region body
PF: predicated region fallthrough
CT: control target
= control target key end

     0   :  { %s732_s12 = smov 0   ;;  %s734_s13 = smov 0   ;;  %s787_s0 = inlined_call_operand.vmem [shape: bf16[2,1,24,8], index: 0, kind: input, shape index: {}]   ;;  %s788_s1 = inlined_call_operand.vmem [shape: bf16[3,8,128], index: 1, kind: input, shape index: {}]   ;;  %s789_s2 = inlined_call_operand.vmem [shape: f32[1,128], index: 2, kind: input, shape index: {}]   ;;  %s790_s3 = inlined_call_operand.vmem [shape: bf16[2,1,16,128], index: 3, kind: output, shape index: {}]  }
   0x1   :  { %s736_s14 = smov 0  }
   0x2 LB: > { %s32_s15 = sadd.s32 1, %s706_s13  ;;  %p604_p0 = scmp.ge.s32.totalorder %s710_s14, 1  ;;  %s710_s14 = sphi %s736_s14, %s13_s14   ;;  %s706_s13 = sphi %s734_s13, %s792_s13   ;;  %s702_s12 = sphi %s732_s12, %s791_s12  }
   0x3   : > { %p34_p1 = scmp.ge.s32.totalorder %s32_s15, 2  ;;  %p183_p2 = scmp.lt.s32.totalorder %s710_s14, 3 }
   0x5   : > { %s794_s15 = smov (%p34_p1, %s32_s15), 0  ;;  %p184_p3 = pnand %p604_p0, %p183_p2 }
   0x6   : > { %p225_p4 = scmp.lt.s32.totalorder (!%p184_p3), %s702_s12, 1 }
   0x7   : > { %187 = sbr.rel (%p184_p3) target bundleno = 235 (0xeb), region = 32 }
   0xc   : > { %v608_v0 = vld [vmem:[%s788_s1 + $0x4] sm:$0xf]  ;;  %vm275_vm0 = vcmask 1043456   ;;  %v257_v2 = vld [vmem:[%s788_s1] sm:$0xf]  ;;  %s796_s12 = smov (!%p225_p4, %s702_s12), 1  ;;  %v330_v12 = vlaneseq }
   0xd   : > { %658 = vmatprep.subr.msk.bf16.mxu0 %vm275_vm0, %v608_v0  ;;  %v277_v1 = vsel %vm275_vm0, %v608_v0, 0  ;;  %v615_v3 = vld [vmem:[%s788_s1 + $0x8] sm:$0xf]  ;;  %659 = vmatprep.subr.msk.bf16.mxu1 %vm275_vm0, %v257_v2  ;;  %v336_v4 = vsel %vm275_vm0, %v257_v2, 0  ;;  %s661_s22 = smul.u32 12, %s796_s12  ;;  %vm268_vm1 = vcmask 64512  }
   0xe   : > { %641 = vmatpush3.bf16.msra.mxu0 %v277_v1  ;;  %647 = vmatpush3.bf16.msra.mxu1 %v336_v4  ;;  %v388_v7 = vsel %vm275_vm0, %v615_v3, 0  ;;  %v331_v16 = vshrl.u32 %v330_v12, 7  ;;  %v618_v34 = vld [vmem:[%s789_s2] ss:$0 sm:$0xff]  ;;  %s623_s28 = sshll.u32 %s796_s12, 3 }
   0xf   : > { %660 = vmatprep.subr.msk.bf16.mxu0 %vm275_vm0, %v615_v3  ;;  %s233_s25 = scalar_lea.vmem %s787_s0, %s661_s22  ;;  %s252_s4 = scalar_lea.vmem %s790_s3, %s623_s28 }
  0x10   : > { %v686_v5 = vld [vmem:[%s233_s25] sm:$0xff]   ;;  %v687_v6 = vld [vmem:[%s233_s25 + $0x8] ss:$0 sps:$4 sm:$0xff]   ;;  %vm332_vm2 = vcmp.lt.s32.totalorder %v331_v16, 7  ;;  %vm441_vm3 = vcmp.lt.s32.totalorder %v331_v16, 6 }
  0x11   : > { %642 = vmatprep.mubr.msk.bf16.mxu0 %vm268_vm1, %v686_v5  ;;  %648 = vmatprep.mubr.msk.bf16.mxu1 %vm268_vm1, %v686_v5 }
  0x12   : > { %643 = vmatmul.mubr.msk.bf16.vlgmr.msra.gmra.mxu0 %vm268_vm1, %v687_v6  ;;  %649 = vmatmul.mubr.msk.bf16.vlgmr.msra.gmra.mxu1 %vm268_vm1, %v687_v6 }
  0x13   : > { %653 = vmatpush3.bf16.msra.mxu0 %v388_v7  ;;  %654 = vmatprep.mubr.msk.bf16.mxu0 %vm268_vm1, %v686_v5 }
  0x1a   : > { %655 = vmatmul.mubr.msk.bf16.vlgmr.msra.gmra.mxu0 %vm268_vm1, %v687_v6 }
  0xd2   : > { %v644_v8 = vpop.f32.mrf.mxu0  ;;  %v650_v9 = vpop.f32.mrf.mxu1 }
  0xd3   : > { %v329_v20 = vrot.slane %v644_v8, 1 }
  0xd4   : > { %v313_v10 = vpop.f32.mrf.mxu0  ;;  %v372_v11 = vpop.f32.mrf.mxu1 }
  0xd5   : > { %v327_v21 = vrot.slane %v313_v10, 1 }
  0xd6   : > { %v645_v13 = vpop.f32.mrf.mxu0  ;;  %v651_v14 = vpop.f32.mrf.mxu1 }
  0xd8   : > { %v316_v15 = vpop.f32.mrf.mxu0  ;;  %v375_v25 = vpop.f32.mrf.mxu1 }
  0xd9   : > { %v328_v18 = vrot.slane %v316_v15, 1 }
  0xda   : > { %v656_v17 = vpop.f32.mrf.mxu0 }
  0xdb   : > { %v333_v23 = vsel %vm332_vm2, %v328_v18, %v329_v20  ;;  %v334_v24 = vsel %vm332_vm2, %v327_v21, %v328_v18  ;;  %v440_v27 = vrot.slane %v656_v17, 2 }
  0xdc   : > { %v424_v19 = vpop.f32.mrf.mxu0  ;;  %v373_v30 = vadd.f32 %v372_v11, %v334_v24  ;;  %v376_v31 = vadd.f32 %v375_v25, %v333_v23 }
  0xdd   : > { %v438_v28 = vrot.slane %v424_v19, 2 }
  0xde   : > { %v657_v22 = vpop.f32.mrf.mxu0 }
  0xe0   : > { %v427_v26 = vpop.f32.mrf.mxu0 }
  0xe1   : > { %v439_v29 = vrot.slane %v427_v26, 2 }
  0xe3   : > { %v442_v32 = vsel %vm441_vm3, %v439_v29, %v440_v27  ;;  %v443_v33 = vsel %vm441_vm3, %v438_v28, %v439_v29 }
  0xe4   : > { %v444_v35 = vadd.f32 %v443_v33, %v373_v30  ;;  %v445_v36 = vadd.f32 %v442_v32, %v376_v31 }
  0xe6   : > { %v453_v37 = vadd.f32 %v618_v34, %v444_v35  ;;  %v454_v38 = vadd.f32 %v618_v34, %v445_v36 }
  0xe8   : > { %v629_v39 = vpack.c.bf16 %v454_v38, %v453_v37 }
  0xea   : > { %630 = vst [vmem:[%s252_s4] sm:$0xff] %v629_v39  }
  0xeb PF: > { %s13_s14 = sadd.s32 1, %s710_s14   ;;  %s791_s12 = smov %s706_s13 }
  0xec   : > { %p10_p5 = scmp.ge.s32.totalorder %s13_s14, 4   ;;  %s792_s13 = smov %s794_s15 }
  0xee   :  { %12 = sbr.rel (!%p10_p5) target bundleno = 2 (0x2), region = 70 }

// kernel: unet_forward.60
= control target key start
LH: loop header
LB: loop body
LE: loop exit
PB: predicated region body
PF: predicated region fallthrough
CT: control target
= control target key end

     0   :  { %s1026_s12 = smov 0   ;;  %s1028_s13 = smov 0   ;;  %s1109_s0 = inlined_call_operand.vmem [shape: bf16[2,1,24,3], index: 0, kind: input, shape index: {}]   ;;  %s1110_s1 = inlined_call_operand.vmem [shape: bf16[7,3,128], index: 1, kind: input, shape index: {}]   ;;  %s1111_s2 = inlined_call_operand.vmem [shape: f32[1,128], index: 2, kind: input, shape index: {}]   ;;  %s1112_s3 = inlined_call_operand.vmem [shape: bf16[2,1,16,128], index: 3, kind: output, shape index: {}]  }
   0x1   :  { %s1030_s14 = smov 0  }
   0x2 LB: > { %s32_s15 = sadd.s32 1, %s999_s13  ;;  %p851_p0 = scmp.ge.s32.totalorder %s1003_s14, 1  ;;  %s1003_s14 = sphi %s1030_s14, %s13_s14   ;;  %s999_s13 = sphi %s1028_s13, %s1114_s13   ;;  %s995_s12 = sphi %s1026_s12, %s1113_s12  }
   0x3   : > { %p34_p1 = scmp.ge.s32.totalorder %s32_s15, 2  ;;  %p183_p2 = scmp.lt.s32.totalorder %s1003_s14, 3 }
   0x5   : > { %s1116_s15 = smov (%p34_p1, %s32_s15), 0  ;;  %p184_p3 = pnand %p851_p0, %p183_p2 }
   0x6   : > { %p225_p4 = scmp.lt.s32.totalorder (!%p184_p3), %s995_s12, 1 }
   0x7   : > { %187 = sbr.rel (%p184_p3) target bundleno = 254 (0xfe), region = 32 }
   0xc   : > { %v855_v0 = vld [vmem:[%s1110_s1 + $0x2] sm:$0x3]  ;;  %vm275_vm0 = vcmask 1040384   ;;  %vm276_vm1 = vcmask 1041408   ;;  %v1005_v1 = vmov 65535   ;;  %s1118_s12 = smov (!%p225_p4, %s995_s12), 1  ;;  %v333_v26 = vlaneseq }
   0xd   : > { %v277_v2 = vsel %vm275_vm0, 4294967295, %v1005_v1  ;;  %v257_v3 = vld [vmem:[%s1110_s1] sm:$0x3]  ;;  %v862_v4 = vld [vmem:[%s1110_s1 + $0x4] sm:$0x3]  ;;  %s953_s24 = smul.u32 12, %s1118_s12 }
   0xe   : > { %v278_v5 = vsel %vm276_vm1, %v277_v2, 0  ;;  %v865_v6 = vld [vmem:[%s1110_s1 + $0x6] sm:$0x3]  ;;  %vm268_vm2 = vcmask 23552   ;;  %v868_v11 = vld [vmem:[%s1110_s1 + $0x8] sm:$0x3] }
   0xf   : > { %v280_v7 = vand.u32 %v855_v0, %v278_v5  ;;  %v339_v8 = vand.u32 %v278_v5, %v257_v3  ;;  %v391_v9 = vand.u32 %v862_v4, %v278_v5  ;;  %v452_v10 = vand.u32 %v865_v6, %v278_v5  ;;  %s233_s27 = scalar_lea.vmem %s1109_s0, %s953_s24  ;;  %v871_v12 = vld [vmem:[%s1110_s1 + $0xa] sm:$0x3]  ;;  %v874_v17 = vld [vmem:[%s1110_s1 + $0xc] sm:$0x3]  ;;  %s882_s9 = sshll.u32 %s1118_s12, 3 }
  0x10   : > { %v979_v13 = vld [vmem:[%s233_s27] sm:$0xff]   ;;  %v980_v14 = vld [vmem:[%s233_s27 + $0x8] ss:$0 sps:$4 sm:$0xff]   ;;  %v513_v15 = vand.u32 %v868_v11, %v278_v5  ;;  %v574_v16 = vand.u32 %v871_v12, %v278_v5  ;;  %v635_v18 = vand.u32 %v874_v17, %v278_v5  ;;  %v1085_v30 = vshrl.u32 %v333_v26, 7  ;;  %s252_s16 = scalar_lea.vmem %s1112_s3, %s882_s9 }
  0x11   : > { %911 = vmatprep.subr.bf16.mxu0 %v280_v7  ;;  %917 = vmatprep.subr.bf16.mxu1 %v339_v8 }
  0x12   : > { %912 = vmatpush3.bf16.msra.mxu0 %v280_v7  ;;  %918 = vmatpush3.bf16.msra.mxu1 %v339_v8  ;;  %vm335_vm3 = vcmp.lt.s32.totalorder %v1085_v30, 7  ;;  %vm444_vm4 = vcmp.lt.s32.totalorder %v1085_v30, 6  ;;  %vm505_vm5 = vcmp.lt.s32.totalorder %v1085_v30, 5  ;;  %vm566_vm6 = vcmp.lt.s32.totalorder %v1085_v30, 4 }
  0x13   : > { %923 = vmatprep.subr.bf16.mxu0 %v391_v9  ;;  %929 = vmatprep.subr.bf16.mxu1 %v452_v10  ;;  %vm627_vm7 = vcmp.lt.s32.totalorder %v1085_v30, 3  ;;  %vm688_vm8 = vcmp.lt.s32.totalorder %v1085_v30, 2 }
  0x14   : > { %913 = vmatprep.mubr.msk.bf16.mxu0 %vm268_vm2, %v979_v13  ;;  %919 = vmatprep.mubr.msk.bf16.mxu1 %vm268_vm2, %v979_v13 }
  0x15   : > { %914 = vmatmul.mubr.msk.bf16.vlgmr.msra.gmra.mxu0 %vm268_vm2, %v980_v14  ;;  %920 = vmatmul.mubr.msk.bf16.vlgmr.msra.gmra.mxu1 %vm268_vm2, %v980_v14 }
  0x16   : > { %924 = vmatpush3.bf16.msra.mxu0 %v391_v9  ;;  %930 = vmatpush3.bf16.msra.mxu1 %v452_v10 }
  0x17   : > { %925 = vmatprep.mubr.msk.bf16.mxu0 %vm268_vm2, %v979_v13  ;;  %931 = vmatprep.mubr.msk.bf16.mxu1 %vm268_vm2, %v979_v13 }
  0x18   : > { %935 = vmatprep.subr.bf16.mxu0 %v513_v15  ;;  %941 = vmatprep.subr.bf16.mxu1 %v574_v16 }
  0x1d   : > { %926 = vmatmul.mubr.msk.bf16.vlgmr.msra.gmra.mxu0 %vm268_vm2, %v980_v14  ;;  %932 = vmatmul.mubr.msk.bf16.vlgmr.msra.gmra.mxu1 %vm268_vm2, %v980_v14 }
  0x1e   : > { %936 = vmatpush3.bf16.msra.mxu0 %v513_v15  ;;  %942 = vmatpush3.bf16.msra.mxu1 %v574_v16 }
  0x1f   : > { %937 = vmatprep.mubr.msk.bf16.mxu0 %vm268_vm2, %v979_v13  ;;  %943 = vmatprep.mubr.msk.bf16.mxu1 %vm268_vm2, %v979_v13 }
  0x20   : > { %947 = vmatprep.subr.bf16.mxu0 %v635_v18 }
  0x25   : > { %938 = vmatmul.mubr.msk.bf16.vlgmr.msra.gmra.mxu0 %vm268_vm2, %v980_v14  ;;  %944 = vmatmul.mubr.msk.bf16.vlgmr.msra.gmra.mxu1 %vm268_vm2, %v980_v14 }
  0x26   : > { %948 = vmatpush3.bf16.msra.mxu0 %v635_v18  ;;  %949 = vmatprep.mubr.msk.bf16.mxu0 %vm268_vm2, %v979_v13 }
  0x2d   : > { %950 = vmatmul.mubr.msk.bf16.vlgmr.msra.gmra.mxu0 %vm268_vm2, %v980_v14 }
  0xd5   : > { %v915_v19 = vpop.f32.mrf.mxu0  ;;  %v921_v20 = vpop.f32.mrf.mxu1 }
  0xd6   : > { %v332_v38 = vrot.slane %v915_v19, 1 }
  0xd7   : > { %v316_v21 = vpop.f32.mrf.mxu0  ;;  %v375_v22 = vpop.f32.mrf.mxu1 }
  0xd8   : > { %v330_v39 = vrot.slane %v316_v21, 1 }
  0xd9   : > { %v916_v23 = vpop.f32.mrf.mxu0  ;;  %v922_v24 = vpop.f32.mrf.mxu1 }
  0xdb   : > { %v319_v25 = vpop.f32.mrf.mxu0  ;;  %v378_v27 = vpop.f32.mrf.mxu1 }
  0xdc   : > { %v331_v35 = vrot.slane %v319_v25, 1  ;;  %v877_v25 = vld [vmem:[%s1111_s2] ss:$0 sm:$0xff] }
  0xdd   : > { %v927_v28 = vpop.f32.mrf.mxu0  ;;  %v933_v29 = vpop.f32.mrf.mxu1 }
  0xde   : > { %v336_v43 = vsel %vm335_vm3, %v331_v35, %v332_v38  ;;  %v337_v44 = vsel %vm335_vm3, %v330_v39, %v331_v35  ;;  %v443_v45 = vrot.slane %v927_v28, 2  ;;  %v504_v55 = vrot.slane %v933_v29, 3 }
  0xdf   : > { %v427_v31 = vpop.f32.mrf.mxu0  ;;  %v488_v32 = vpop.f32.mrf.mxu1  ;;  %v376_v51 = vadd.f32 %v375_v22, %v337_v44  ;;  %v379_v52 = vadd.f32 %v378_v27, %v336_v43 }
  0xe0   : > { %v441_v46 = vrot.slane %v427_v31, 2  ;;  %v502_v56 = vrot.slane %v488_v32, 3 }
  0xe1   : > { %v928_v33 = vpop.f32.mrf.mxu0  ;;  %v934_v34 = vpop.f32.mrf.mxu1 }
  0xe3   : > { %v430_v36 = vpop.f32.mrf.mxu0  ;;  %v491_v37 = vpop.f32.mrf.mxu1 }
  0xe4   : > { %v442_v40 = vrot.slane %v430_v36, 2  ;;  %v503_v57 = vrot.slane %v491_v37, 3 }
  0xe5   : > { %v939_v41 = vpop.f32.mrf.mxu0  ;;  %v945_v42 = vpop.f32.mrf.mxu1 }
  0xe6   : > { %v445_v49 = vsel %vm444_vm4, %v442_v40, %v443_v45  ;;  %v446_v50 = vsel %vm444_vm4, %v441_v46, %v442_v40  ;;  %v565_v61 = vrot.slane %v939_v41, 4  ;;  %v506_v2 = vsel %vm505_vm5, %v503_v57, %v504_v55 }
  0xe7   : > { %v549_v47 = vpop.f32.mrf.mxu0  ;;  %v610_v48 = vpop.f32.mrf.mxu1  ;;  %v447_v58 = vadd.f32 %v446_v50, %v376_v51  ;;  %v448_v59 = vadd.f32 %v445_v49, %v379_v52  ;;  %v507_v3 = vsel %vm505_vm5, %v502_v56, %v503_v57  ;;  %v626_v8 = vrot.slane %v945_v42, 5 }
  0xe8   : > { %v563_v62 = vrot.slane %v549_v47, 4  ;;  %v624_v11 = vrot.slane %v610_v48, 5 }
  0xe9   : > { %v940_v53 = vpop.f32.mrf.mxu0  ;;  %v946_v54 = vpop.f32.mrf.mxu1  ;;  %v508_v6 = vadd.f32 %v507_v3, %v447_v58  ;;  %v509_v7 = vadd.f32 %v506_v2, %v448_v59 }
  0xeb   : > { %v552_v60 = vpop.f32.mrf.mxu0  ;;  %v613_v0 = vpop.f32.mrf.mxu1 }
  0xec   : > { %v564_v63 = vrot.slane %v552_v60, 4  ;;  %v625_v9 = vrot.slane %v613_v0, 5 }
  0xed   : > { %v951_v1 = vpop.f32.mrf.mxu0 }
  0xee   : > { %v567_v4 = vsel %vm566_vm6, %v564_v63, %v565_v61  ;;  %v568_v5 = vsel %vm566_vm6, %v563_v62, %v564_v63  ;;  %v628_v15 = vsel %vm627_vm7, %v625_v9, %v626_v8  ;;  %v629_v17 = vsel %vm627_vm7, %v624_v11, %v625_v9 }
  0xef   : > { %v671_v10 = vpop.f32.mrf.mxu0  ;;  %v569_v12 = vadd.f32 %v568_v5, %v508_v6  ;;  %v570_v13 = vadd.f32 %v567_v4, %v509_v7  ;;  %v687_v18 = vrot.slane %v951_v1, 6 }
  0xf0   : > { %v685_v19 = vrot.slane %v671_v10, 6 }
  0xf1   : > { %v952_v14 = vpop.f32.mrf.mxu0  ;;  %v630_v21 = vadd.f32 %v629_v17, %v569_v12  ;;  %v631_v22 = vadd.f32 %v628_v15, %v570_v13 }
  0xf3   : > { %v674_v16 = vpop.f32.mrf.mxu0 }
  0xf4   : > { %v686_v20 = vrot.slane %v674_v16, 6 }
  0xf6   : > { %v689_v23 = vsel %vm688_vm8, %v686_v20, %v687_v18  ;;  %v690_v24 = vsel %vm688_vm8, %v685_v19, %v686_v20 }
  0xf7   : > { %v691_v26 = vadd.f32 %v690_v24, %v630_v21  ;;  %v692_v27 = vadd.f32 %v689_v23, %v631_v22 }
  0xf9   : > { %v700_v28 = vadd.f32 %v877_v25, %v691_v26  ;;  %v701_v29 = vadd.f32 %v877_v25, %v692_v27 }
  0xfb   : > { %v888_v30 = vpack.c.bf16 %v701_v29, %v700_v28 }
  0xfd   : > { %889 = vst [vmem:[%s252_s16] sm:$0xff] %v888_v30  }
  0xfe PF: > { %s13_s14 = sadd.s32 1, %s1003_s14   ;;  %s1113_s12 = smov %s999_s13 }
  0xff   : > { %p10_p5 = scmp.ge.s32.totalorder %s13_s14, 4   ;;  %s1114_s13 = smov %s1116_s15 }
 0x101   :  { %12 = sbr.rel (!%p10_p5) target bundleno = 2 (0x2), region = 74 }

// kernel: unet_forward.70
= control target key start
LH: loop header
LB: loop body
LE: loop exit
PB: predicated region body
PF: predicated region fallthrough
CT: control target
= control target key end

     0   :  { %s608_s12 = smov 0   ;;  %s610_s13 = smov 0   ;;  %s650_s0 = inlined_call_operand.vmem [shape: bf16[2,1,16,16], index: 0, kind: input, shape index: {}]   ;;  %s651_s1 = inlined_call_operand.vmem [shape: bf16[2,16,128], index: 1, kind: input, shape index: {}]   ;;  %s652_s2 = inlined_call_operand.vmem [shape: f32[1,128], index: 2, kind: input, shape index: {}]   ;;  %s653_s3 = inlined_call_operand.vmem [shape: bf16[2,1,8,128], index: 3, kind: output, shape index: {}]  }
   0x1   :  { %s612_s14 = smov 0  }
   0x2 LB: > { %s32_s15 = sadd.s32 1, %s580_s13  ;;  %p502_p0 = scmp.ge.s32.totalorder %s584_s14, 1  ;;  %s584_s14 = sphi %s612_s14, %s13_s14   ;;  %s580_s13 = sphi %s610_s13, %s655_s13   ;;  %s576_s12 = sphi %s608_s12, %s654_s12  }
   0x3   : > { %p34_p1 = scmp.ge.s32.totalorder %s32_s15, 2  ;;  %p183_p2 = scmp.lt.s32.totalorder %s584_s14, 3 }
   0x5   : > { %s657_s15 = smov (%p34_p1, %s32_s15), 0  ;;  %p184_p3 = pnand %p502_p0, %p183_p2 }
   0x6   : > { %p223_p4 = scmp.lt.s32.totalorder (!%p184_p3), %s576_s12, 1 }
   0x7   : > { %187 = sbr.rel (%p184_p3) target bundleno = 224 (0xe0), region = 32 }
   0xc   : > { %v559_v0 = vld [vmem:[%s651_s1 + $0x8] sm:$0xff]   ;;  %v586_v1 = vmov 0.0   ;;  %v560_v2 = vld [vmem:[%s651_s1] sm:$0xff]   ;;  %vm587_vm0 = vmmov 0   ;;  %s659_s12 = smov (!%p223_p4, %s576_s12), 1  ;;  %vm268_vm1 = vcmask 130048   ;;  %v315_v4 = vlaneseq }
   0xd   : > { %521 = vmatprep.subr.bf16.mxu0 %v586_v1  ;;  %527 = vmatprep.subr.bf16.mxu1 %v586_v1  ;;  %s516_s20 = sshll.u32 %s659_s12, 3  ;;  %v513_v17 = vld [vmem:[%s652_s2] ss:$0 sm:$0xff]  ;;  %s505_s26 = sshll.u32 %s659_s12, 2 }
   0xe   : > { %522 = vmatpush3.bf16.msra.mxu0 %v559_v0  ;;  %523 = vmatprep.mubr.msk.bf16.mxu0 %vm587_vm0, %v586_v1  ;;  %s231_s23 = scalar_lea.vmem %s650_s0, %s516_s20  ;;  %v316_v7 = vshrl.u32 %v315_v4, 7  ;;  %s248_s29 = scalar_lea.vmem %s653_s3, %s505_s26 }
   0xf   : > { %528 = vmatpush3.bf16.msra.mxu1 %v560_v2  ;;  %529 = vmatprep.mubr.msk.bf16.mxu1 %vm587_vm0, %v586_v1  ;;  %v561_v3 = vld [vmem:[%s231_s23] sm:$0xff]  }
  0x10   : > { %vm317_vm2 = vcmp.lt.s32.totalorder %v316_v7, 7 }
  0x11   : > { %524 = vmatmul.mubr.msk.bf16.vlgmr.msra.gmra.mxu0 %vm268_vm1, %v561_v3 }
  0x12   : > { %530 = vmatmul.mubr.msk.bf16.vlgmr.msra.gmra.mxu1 %vm268_vm1, %v561_v3 }
  0xd1   : > { %v306_v5 = vpop.f32.mrf.mxu0 }
  0xd2   : > { %v359_v6 = vpop.f32.mrf.mxu1  ;;  %v313_v12 = vrot.slane %v306_v5, 1 }
  0xd3   : > { %v525_v8 = vpop.f32.mrf.mxu0 }
  0xd4   : > { %v531_v9 = vpop.f32.mrf.mxu1 }
  0xd5   : > { %v309_v10 = vpop.f32.mrf.mxu0 }
  0xd6   : > { %v362_v11 = vpop.f32.mrf.mxu1  ;;  %v314_v13 = vrot.slane %v309_v10, 1 }
  0xd7   : > { %v526_v14 = vpop.f32.mrf.mxu0 }
  0xd8   : > { %v532_v15 = vpop.f32.mrf.mxu1  ;;  %v318_v16 = vsel %vm317_vm2, %v313_v12, %v314_v13 }
  0xd9   : > { %v360_v18 = vadd.f32 %v359_v6, %v318_v16 }
  0xdb   : > { %v372_v19 = vadd.f32 %v513_v17, %v360_v18 }
  0xdd   : > { %v373_v20 = vpack.c.bf16 %v372_v19, %v372_v19 }
  0xdf   : > { %374 = vst [vmem:[%s248_s29] sm:$0xf] %v373_v20 }
  0xe0 PF: > { %s13_s14 = sadd.s32 1, %s584_s14   ;;  %s654_s12 = smov %s580_s13 }
  0xe1   : > { %p10_p5 = scmp.ge.s32.totalorder %s13_s14, 4   ;;  %s655_s13 = smov %s657_s15 }
  0xe3   :  { %12 = sbr.rel (!%p10_p5) target bundleno = 2 (0x2), region = 69 }

// kernel: unet_forward.71
= control target key start
LH: loop header
LB: loop body
LE: loop exit
PB: predicated region body
PF: predicated region fallthrough
CT: control target
= control target key end

     0   :  { %s657_s12 = smov 0   ;;  %s659_s13 = smov 0   ;;  %s712_s0 = inlined_call_operand.vmem [shape: bf16[2,1,16,8], index: 0, kind: input, shape index: {}]   ;;  %s713_s1 = inlined_call_operand.vmem [shape: bf16[3,8,128], index: 1, kind: input, shape index: {}]   ;;  %s714_s2 = inlined_call_operand.vmem [shape: f32[1,128], index: 2, kind: input, shape index: {}]   ;;  %s715_s3 = inlined_call_operand.vmem [shape: bf16[2,1,8,128], index: 3, kind: output, shape index: {}]  }
   0x1   :  { %s661_s14 = smov 0  }
   0x2 LB: > { %s32_s15 = sadd.s32 1, %s629_s13  ;;  %p546_p0 = scmp.ge.s32.totalorder %s633_s14, 1  ;;  %s633_s14 = sphi %s661_s14, %s13_s14   ;;  %s629_s13 = sphi %s659_s13, %s717_s13   ;;  %s625_s12 = sphi %s657_s12, %s716_s12  }
   0x3   : > { %p34_p1 = scmp.ge.s32.totalorder %s32_s15, 2  ;;  %p183_p2 = scmp.lt.s32.totalorder %s633_s14, 3 }
   0x5   : > { %s719_s15 = smov (%p34_p1, %s32_s15), 0  ;;  %p184_p3 = pnand %p546_p0, %p183_p2 }
   0x6   : > { %p223_p4 = scmp.lt.s32.totalorder (!%p184_p3), %s625_s12, 1 }
   0x7   : > { %187 = sbr.rel (%p184_p3) target bundleno = 232 (0xe8), region = 32 }
   0xc   : > { %v550_v0 = vld [vmem:[%s713_s1 + $0x4] sm:$0xf]  ;;  %vm264_vm0 = vcmask 1043456   ;;  %v635_v1 = vmov 0.0   ;;  %vm636_vm1 = vmmov 0   ;;  %s721_s12 = smov (!%p223_p4, %s625_s12), 1  ;;  %v311_v9 = vlaneseq }
   0xd   : > { %566 = vmatprep.subr.bf16.mxu0 %v635_v1  ;;  %v266_v2 = vsel %vm264_vm0, %v550_v0, 0  ;;  %568 = vmatprep.mubr.msk.bf16.mxu0 %vm636_vm1, %v635_v1  ;;  %v252_v3 = vld [vmem:[%s713_s1] sm:$0xf]  ;;  %v554_v5 = vld [vmem:[%s713_s1 + $0x8] sm:$0xf]  ;;  %s559_s22 = sshll.u32 %s721_s12, 3 }
   0xe   : > { %567 = vmatpush3.bf16.msra.mxu0 %v266_v2  ;;  %572 = vmatprep.subr.bf16.mxu1 %v635_v1  ;;  %v316_v4 = vsel %vm264_vm0, %v252_v3, 0  ;;  %s231_s25 = scalar_lea.vmem %s712_s0, %s559_s22  ;;  %vm260_vm2 = vcmask 64512   ;;  %v361_v7 = vsel %vm264_vm0, %v554_v5, 0  ;;  %v312_v14 = vshrl.u32 %v311_v9, 7  ;;  %v556_v29 = vld [vmem:[%s714_s2] ss:$0 sm:$0xff] }
   0xf   : > { %578 = vmatprep.subr.bf16.mxu0 %v635_v1  ;;  %573 = vmatpush3.bf16.msra.mxu1 %v316_v4  ;;  %v610_v6 = vld [vmem:[%s231_s25] sm:$0xff]   ;;  %s549_s28 = sshll.u32 %s721_s12, 2 }
  0x10   : > { %574 = vmatprep.mubr.msk.bf16.mxu1 %vm636_vm1, %v635_v1  ;;  %vm313_vm3 = vcmp.lt.s32.totalorder %v312_v14, 7  ;;  %vm406_vm4 = vcmp.lt.s32.totalorder %v312_v14, 6  ;;  %s248_s4 = scalar_lea.vmem %s715_s3, %s549_s28 }
  0x11   : > { %569 = vmatmul.mubr.msk.bf16.vlgmr.msra.gmra.mxu0 %vm260_vm2, %v610_v6 }
  0x12   : > { %575 = vmatmul.mubr.msk.bf16.vlgmr.msra.gmra.mxu1 %vm260_vm2, %v610_v6  ;;  %579 = vmatpush3.bf16.msra.mxu0 %v361_v7 }
  0x13   : > { %580 = vmatprep.mubr.msk.bf16.mxu0 %vm636_vm1, %v635_v1 }
  0x19   : > { %581 = vmatmul.mubr.msk.bf16.vlgmr.msra.gmra.mxu0 %vm260_vm2, %v610_v6 }
  0xd1   : > { %v302_v8 = vpop.f32.mrf.mxu0 }
  0xd2   : > { %v352_v10 = vpop.f32.mrf.mxu1  ;;  %v309_v20 = vrot.slane %v302_v8, 1 }
  0xd3   : > { %v570_v11 = vpop.f32.mrf.mxu0 }
  0xd4   : > { %v576_v12 = vpop.f32.mrf.mxu1 }
  0xd5   : > { %v305_v13 = vpop.f32.mrf.mxu0 }
  0xd6   : > { %v355_v15 = vpop.f32.mrf.mxu1  ;;  %v310_v18 = vrot.slane %v305_v13, 1 }
  0xd7   : > { %v571_v16 = vpop.f32.mrf.mxu0 }
  0xd8   : > { %v577_v17 = vpop.f32.mrf.mxu1  ;;  %v314_v22 = vsel %vm313_vm3, %v309_v20, %v310_v18 }
  0xd9   : > { %v397_v19 = vpop.f32.mrf.mxu0  ;;  %v353_v26 = vadd.f32 %v352_v10, %v314_v22 }
  0xda   : > { %v404_v24 = vrot.slane %v397_v19, 2 }
  0xdb   : > { %v582_v21 = vpop.f32.mrf.mxu0 }
  0xdd   : > { %v400_v23 = vpop.f32.mrf.mxu0 }
  0xde   : > { %v405_v25 = vrot.slane %v400_v23, 2 }
  0xdf   : > { %v583_v27 = vpop.f32.mrf.mxu0 }
  0xe0   : > { %v407_v28 = vsel %vm406_vm4, %v404_v24, %v405_v25 }
  0xe1   : > { %v408_v30 = vadd.f32 %v407_v28, %v353_v26 }
  0xe3   : > { %v416_v31 = vadd.f32 %v556_v29, %v408_v30 }
  0xe5   : > { %v417_v32 = vpack.c.bf16 %v416_v31, %v416_v31 }
  0xe7   : > { %418 = vst [vmem:[%s248_s4] sm:$0xf] %v417_v32 }
  0xe8 PF: > { %s13_s14 = sadd.s32 1, %s633_s14   ;;  %s716_s12 = smov %s629_s13 }
  0xe9   : > { %p10_p5 = scmp.ge.s32.totalorder %s13_s14, 4   ;;  %s717_s13 = smov %s719_s15 }
  0xeb   :  { %12 = sbr.rel (!%p10_p5) target bundleno = 2 (0x2), region = 70 }

// kernel: unet_forward.69
= control target key start
LH: loop header
LB: loop body
LE: loop exit
PB: predicated region body
PF: predicated region fallthrough
CT: control target
= control target key end

     0   :  { %s1711_s21 = smov 0   ;;  %s1961_s0 = inlined_call_operand.vmem [shape: bf16[2,16,8], index: 0, kind: input, shape index: {}]   ;;  %s1962_s1 = inlined_call_operand.vmem [shape: f32[1,8], index: 1, kind: input, shape index: {}]   ;;  %s1963_s2 = inlined_call_operand.vmem [shape: bf16[8,384], index: 2, kind: input, shape index: {}]   ;;  %s1964_s3 = inlined_call_operand.vmem [shape: bf16[128,8], index: 3, kind: input, shape index: {}]   ;;  %s1965_s4 = inlined_call_operand.vmem [shape: f32[1,8], index: 4, kind: input, shape index: {}]   ;;  %s1966_s5 = inlined_call_operand.vmem [shape: f32[1,8], index: 5, kind: input, shape index: {}]   ;;  %s1967_s6 = inlined_call_operand.vmem [shape: bf16[2,16,8], index: 6, kind: output, shape index: {}]  }
   0x1 LB: > { %s1391_s22 = sadd.s32 4294967295, %s1668_s21   ;;  %p1395_p0 = scmp.ge.s32.totalorder %s1668_s21, 1  ;;  %s1668_s21 = sphi %s1711_s21, %s16_s21  }
   0x2   : > { %p212_p1 = scmp.lt.s32.totalorder %s1668_s21, 3 }
   0x4   : > { %p213_p2 = pnand %p1395_p0, %p212_p1 }
   0x5   : > { %p242_p3 = scmp.lt.s32.totalorder (!%p213_p2), %s1391_s22, 1  ;;  %s1673_s9 = smov (!%p213_p2), 64  }
   0x6   : > { %216 = sbr.rel (%p213_p2) target bundleno = 2023 (0x7e7), region = 44  ;;  %s1674_s10 = smov (!%p213_p2), 96  }
   0x7   : > { %s1675_s11 = smov (!%p213_p2), 32  }
   0xb   : > { %s1969_s22 = smov (!%p242_p3, %s1391_s22), 1  ;;  %vm257_vm0 = vcmask 64512   ;;  %v295_v15 = vld [vmem:[%s1963_s2] sm:$0xff]  ;;  %vm308_vm1 = vcmask 1043456   ;;  %v1670_v18 = vmov 0   ;;  %v1671_v20 = vmov 0.0  }
   0xc   : > { %s1433_s23 = sshll.u32 %s1969_s22, 3  ;;  %v1402_v16 = vcombine.high %v295_v15, %v295_v15  ;;  %v1401_v17 = vcombine.low %v295_v15, %v295_v15  ;;  %350 = vmatprep.mubr.bf16.mxu1 %v1670_v18  ;;  %v1400_v30 = vld [vmem:[%s1962_s1] ss:$0 sm:$0xff]  ;;  %v1589_v32 = vld [vmem:[%s1963_s2 + $0x8] ss:$0 sps:$4 sm:$0xff]   ;;  %vm1672_vm2 = vmmov 0  }
   0xd   : > { %s246_s26 = scalar_lea.vmem %s1961_s0, %s1433_s23  ;;  %v316_v36 = vsel %vm308_vm1, %v1589_v32, 0  ;;  %vm575_vm3 = vcmask 523520   ;;  %vm402_vm4 = vcmask 261120   ;;  %vm765_vm5 = vcmask 785920   ;;  %s251_s13 = scalar_lea.vmem %s1967_s6, %s1433_s23 }
   0xe   : > { %v1438_v0 = vld [vmem:[%s246_s26] sm:$0xff]   ;;  %1404 = vmatprep.subr.msk.bf16.mxu1 %vm308_vm1, %v1402_v16  ;;  %v310_v19 = vsel %vm308_vm1, %v1401_v17, 0  ;;  %vm954_vm6 = vcmask 1048320   ;;  %vm472_vm7 = vcmask 130048   ;;  %vm1169_vm8 = vcmask 523264  }
   0xf   : > { %v1727_v1 = vunpack.c.l.bf16 %v1438_v0  ;;  %v1729_v2 = vunpack.c.h.bf16 %v1438_v0  ;;  %333 = vmatpush1.bf16.msra.mxu1 %v310_v19  ;;  %vm1172_vm9 = vcmask 785408   ;;  %vm1333_vm10 = vcmask 60416  }
  0x10   : > { %1476 = vmatprep.subr.bf16.mxu1 %v1671_v20 }
  0x11   : > { %v258_v3 = vsel %vm257_vm0, %v1727_v1, 0.0  ;;  %v261_v4 = vsel %vm257_vm0, %v1729_v2, 0.0 }
  0x12   : > { %259 = vadd.xlane.f32.xlu0 %v258_v3 }
  0x16   : > { %262 = vadd.xlane.f32.xlu0 %v261_v4 }
  0x9b   : > { %v260_v5 = vpop.xlane.xlu0 %259 }
  0x9c   : > { %v265_v6 = vmul.f32 0.125, %v260_v5 }
  0x9e   : > { %v267_v7 = vsub.f32 %v1727_v1, %v265_v6 }
  0x9f   : > { %v263_v8 = vpop.xlane.xlu0 %262 }
  0xa0   : > { %v266_v9 = vmul.f32 0.125, %v263_v8  ;;  %v269_v10 = vmul.f32 %v267_v7, %v267_v7 }
  0xa2   : > { %v268_v11 = vsub.f32 %v1729_v2, %v266_v9  ;;  %v271_v12 = vsel %vm257_vm0, %v269_v10, 0.0 }
  0xa3   : > { %272 = vadd.xlane.f32.xlu1 %v271_v12 }
  0xa4   : > { %v270_v13 = vmul.f32 %v268_v11, %v268_v11 }
  0xa6   : > { %v274_v14 = vsel %vm257_vm0, %v270_v13, 0.0 }
  0xa7   : > { %275 = vadd.xlane.f32.xlu1 %v274_v14 }
 0x12c   : > { %v273_v21 = vpop.xlane.xlu1 %272 }
 0x12d   : > { %v277_v22 = vmul.f32 0.125, %v273_v21 }
 0x12f   : > { %v279_v23 = vadd.f32 1e-05, %v277_v22 }
 0x130   : > { %v276_v24 = vpop.xlane.xlu1 %275 }
 0x131   : > { %1598 = vrsqrt.f32 %v279_v23  ;;  %v278_v25 = vmul.f32 0.125, %v276_v24 }
 0x133   : > { %v280_v26 = vadd.f32 1e-05, %v278_v25 }
 0x135   : > { %1600 = vrsqrt.f32 %v280_v26 }
 0x13e   : > { %v1599_v27 = vpop.eup %1598 }
 0x13f   : > { %v283_v28 = vmul.f32 %v1599_v27, %v267_v7 }
 0x141   : > { %v292_v33 = vmul.f32 %v1400_v30, %v283_v28 }
 0x142   : > { %v1601_v29 = vpop.eup %1600 }
 0x143   : > { %v284_v31 = vmul.f32 %v1601_v29, %v268_v11 }
 0x145   : > { %v293_v34 = vmul.f32 %v1400_v30, %v284_v31 }
 0x147   : > { %v294_v35 = vpack.c.bf16 %v293_v34, %v292_v33 }
 0x149   : > { %1405 = vmatmul.mubr.msk.bf16.vlgmr.msra.gmra.mxu1 %vm257_vm0, %v294_v35 }
 0x14a   : > { %1477 = vmatpush3.bf16.msra.mxu1 %v316_v36  ;;  %1478 = vmatprep.mubr.msk.bf16.mxu1 %vm1672_vm2, %v1671_v20 }
 0x151   : > { %1479 = vmatmul.mubr.msk.bf16.vlgmr.msra.gmra.mxu1 %vm257_vm0, %v294_v35 }
 0x209   : > { %v1756_v37 = vpop.f32.mrf.mxu1 }
 0x20a   : > { %v576_v38 = vsel %vm575_vm3, %v1756_v37, -inf  ;;  %v955_v6 = vsel %vm954_vm6, %v1756_v37, -inf }
 0x20b   : > { %577 = vmax.xlane.f32.xlu1 %v576_v38  ;;  %v1760_v39 = vpop.f32.mrf.mxu1 }
 0x20c   : > { %v427_v42 = vsel %vm402_vm4, %v1760_v39, -inf  ;;  %v608_v43 = vsel %vm575_vm3, %v1760_v39, -inf  ;;  %v798_v45 = vsel %vm765_vm5, %v1760_v39, -inf  ;;  %v987_v46 = vsel %vm954_vm6, %v1760_v39, -inf }
 0x20d   : > { %v1762_v40 = vpop.f32.mrf.mxu1 }
 0x20e   : > { %v579_v41 = vsel %vm575_vm3, %v1762_v40, -inf  ;;  %v769_v56 = vsel %vm765_vm5, %v1762_v40, -inf }
 0x20f   : > { %580 = vmax.xlane.f32.xlu1 %v579_v41  ;;  %v1770_v44 = vpop.f32.mrf.mxu1 }
 0x210   : > { %v428_v47 = vsel %vm402_vm4, %v1770_v44, -inf  ;;  %v609_v48 = vsel %vm575_vm3, %v1770_v44, -inf  ;;  %v799_v49 = vsel %vm765_vm5, %v1770_v44, -inf  ;;  %v988_v50 = vsel %vm954_vm6, %v1770_v44, -inf }
 0x211   : > { %v429_v51 = vmax.f32 %v427_v42, %v428_v47  ;;  %v610_v52 = vmax.f32 %v608_v43, %v609_v48  ;;  %v395_v53 = vpop.f32.mrf.mxu1  ;;  %v800_v54 = vmax.f32 %v798_v45, %v799_v49  ;;  %v989_v55 = vmax.f32 %v987_v46, %v988_v50 }
 0x213   : > { %v430_v57 = vrot.slane %v429_v51, 4  ;;  %v611_v58 = vrot.slane %v610_v52, 4  ;;  %770 = vmax.xlane.f32.xlu1 %v769_v56  ;;  %v801_v59 = vrot.slane %v800_v54, 4  ;;  %v1480_v60 = vpop.f32.mrf.mxu1  ;;  %v990_v61 = vrot.slane %v989_v55, 4 }
 0x215   : > { %v431_v62 = vmax.f32 %v429_v51, %v430_v57  ;;  %v612_v63 = vmax.f32 %v610_v52, %v611_v58  ;;  %v802_v0 = vmax.f32 %v800_v54, %v801_v59  ;;  %v398_v3 = vpop.f32.mrf.mxu1  ;;  %v991_v4 = vmax.f32 %v989_v55, %v990_v61 }
 0x216   : > { %v1786_v5 = vpack.c.bf16 %v398_v3, %v395_v53 }
 0x217   : > { %v613_v7 = vrot.slane %v612_v63, 2  ;;  %v803_v8 = vrot.slane %v802_v0, 2  ;;  %956 = vmax.xlane.f32.xlu1 %v955_v6  ;;  %v992_v9 = vrot.slane %v991_v4, 2  ;;  %v1481_v10 = vpop.f32.mrf.mxu1  ;;  %v432_v11 = vrot.slane %v431_v62, 2 }
 0x218   : > { %1482 = vmatprep.subr.bf16.mxu1 %v1786_v5 }
 0x219   : > { %v614_v12 = vmax.f32 %v612_v63, %v613_v7  ;;  %v804_v13 = vmax.f32 %v802_v0, %v803_v8  ;;  %v993_v14 = vmax.f32 %v991_v4, %v992_v9  ;;  %1483 = vmatpush3.bf16.msra.mxu1 %v1786_v5  ;;  %v433_v15 = vmax.f32 %v431_v62, %v432_v11 }
 0x21a   : > { %1488 = vmatprep.subr.bf16.mxu1 %v1671_v20 }
 0x21b   : > { %v615_v16 = vrot.slane %v614_v12, 1  ;;  %v805_v17 = vrot.slane %v804_v13, 1  ;;  %v994_v18 = vrot.slane %v993_v14, 1  ;;  %v434_v19 = vrot.slane %v433_v15, 1 }
 0x21d   : > { %v616_v21 = vmax.f32 %v614_v12, %v615_v16  ;;  %v806_v22 = vmax.f32 %v804_v13, %v805_v17  ;;  %v995_v23 = vmax.f32 %v993_v14, %v994_v18  ;;  %v435_v24 = vmax.f32 %v433_v15, %v434_v19 }
 0x21f   : > { %v618_v25 = vsub.f32 %v1770_v44, %v616_v21  ;;  %v807_v26 = vsub.f32 %v1760_v39, %v806_v22  ;;  %v808_v27 = vsub.f32 %v1770_v44, %v806_v22  ;;  %v996_v28 = vsub.f32 %v1760_v39, %v995_v23 }
 0x220   : > { %v997_v29 = vsub.f32 %v1770_v44, %v995_v23  ;;  %v617_v30 = vsub.f32 %v1760_v39, %v616_v21  ;;  %v436_v31 = vsub.f32 %v1760_v39, %v435_v24  ;;  %v437_v32 = vsub.f32 %v1770_v44, %v435_v24 }
 0x221   : > { %v809_v33 = vmul.f32 1.442695, %v807_v26  ;;  %v811_v34 = vmul.f32 1.442695, %v808_v27  ;;  %v998_v35 = vmul.f32 1.442695, %v996_v28 }
 0x222   : > { %v1000_v36 = vmul.f32 1.442695, %v997_v29  ;;  %v619_v38 = vmul.f32 1.442695, %v617_v30  ;;  %v621_v41 = vmul.f32 1.442695, %v618_v25 }
 0x223   : > { %1602 = vpow2.f32 %v809_v33  ;;  %v438_v42 = vmul.f32 1.442695, %v436_v31  ;;  %v440_v43 = vmul.f32 1.442695, %v437_v32 }
 0x224   : > { %1604 = vpow2.f32 %v811_v34 }
 0x225   : > { %1606 = vpow2.f32 %v998_v35 }
 0x226   : > { %1608 = vpow2.f32 %v1000_v36 }
 0x227   : > { %1610 = vpow2.f32 %v619_v38 }
 0x228   : > { %1612 = vpow2.f32 %v621_v41 }
 0x229   : > { %1614 = vpow2.f32 %v438_v42 }
 0x22a   : > { %1616 = vpow2.f32 %v440_v43 }
 0x230   : > { %v1603_v45 = vpop.eup %1602 }
 0x231   : > { %v1605_v39 = vpop.eup %1604  ;;  %v813_v44 = vsel %vm765_vm5, %v1603_v45, 0.0 }
 0x232   : > { %v1607_v46 = vpop.eup %1606  ;;  %v814_v47 = vsel %vm765_vm5, %v1605_v39, 0.0 }
 0x233   : > { %v1609_v48 = vpop.eup %1608  ;;  %v815_v49 = vadd.f32 %v814_v47, %v813_v44  ;;  %v1002_v50 = vsel %vm954_vm6, %v1607_v46, 0.0 }
 0x234   : > { %v1611_v51 = vpop.eup %1610  ;;  %v1003_v52 = vsel %vm954_vm6, %v1609_v48, 0.0 }
 0x235   : > { %v1613_v53 = vpop.eup %1612  ;;  %v816_v54 = vrot.slane %v815_v49, 4  ;;  %v1004_v55 = vadd.f32 %v1003_v52, %v1002_v50  ;;  %v623_v56 = vsel %vm575_vm3, %v1611_v51, 0.0 }
 0x236   : > { %v1615_v57 = vpop.eup %1614  ;;  %v624_v58 = vsel %vm575_vm3, %v1613_v53, 0.0 }
 0x237   : > { %v1617_v59 = vpop.eup %1616  ;;  %v817_v60 = vadd.f32 %v816_v54, %v815_v49  ;;  %v1005_v61 = vrot.slane %v1004_v55, 4  ;;  %v625_v62 = vadd.f32 %v624_v58, %v623_v56  ;;  %v442_v63 = vsel %vm402_vm4, %v1615_v57, 0.0 }
 0x238   : > { %v443_v0 = vsel %vm402_vm4, %v1617_v59, 0.0 }
 0x239   : > { %v818_v3 = vrot.slane %v817_v60, 2  ;;  %v1006_v4 = vadd.f32 %v1005_v61, %v1004_v55  ;;  %v626_v6 = vrot.slane %v625_v62, 4  ;;  %v444_v7 = vadd.f32 %v443_v0, %v442_v63 }
 0x23b   : > { %v1007_v8 = vrot.slane %v1006_v4, 2  ;;  %v819_v9 = vadd.f32 %v818_v3, %v817_v60  ;;  %v627_v10 = vadd.f32 %v626_v6, %v625_v62  ;;  %v445_v11 = vrot.slane %v444_v7, 4 }
 0x23d   : > { %v820_v12 = vrot.slane %v819_v9, 1  ;;  %v628_v13 = vrot.slane %v627_v10, 2  ;;  %v1008_v14 = vadd.f32 %v1007_v8, %v1006_v4  ;;  %v446_v15 = vadd.f32 %v445_v11, %v444_v7 }
 0x23f   : > { %v821_v16 = vadd.f32 %v820_v12, %v819_v9  ;;  %v629_v17 = vadd.f32 %v628_v13, %v627_v10  ;;  %v1009_v18 = vrot.slane %v1008_v14, 1  ;;  %v447_v19 = vrot.slane %v446_v15, 2 }
 0x241   : > { %1618 = vrcp.f32 %v821_v16  ;;  %v630_v21 = vrot.slane %v629_v17, 1  ;;  %v1010_v22 = vadd.f32 %v1009_v18, %v1008_v14  ;;  %v448_v23 = vadd.f32 %v447_v19, %v446_v15 }
 0x243   : > { %v631_v24 = vadd.f32 %v630_v21, %v629_v17  ;;  %1620 = vrcp.f32 %v1010_v22  ;;  %v449_v25 = vrot.slane %v448_v23, 1  ;;  %v406_v22 = vsel %vm402_vm4, %v1762_v40, -inf }
 0x245   : > { %1622 = vrcp.f32 %v631_v24  ;;  %v450_v26 = vadd.f32 %v449_v25, %v448_v23  ;;  %v403_v23 = vsel %vm402_vm4, %v1756_v37, -inf }
 0x247   : > { %1624 = vrcp.f32 %v450_v26 }
 0x24e   : > { %v1619_v27 = vpop.eup %1618 }
 0x24f   : > { %v823_v28 = vmul.f32 %v1619_v27, %v1603_v45  ;;  %v824_v29 = vmul.f32 %v1619_v27, %v1605_v39  ;;  %v766_v39 = vsel %vm765_vm5, %v1756_v37, -inf }
 0x250   : > { %v1621_v30 = vpop.eup %1620 }
 0x251   : > { %v825_v31 = vpack.c.bf16 %v824_v29, %v823_v28  ;;  %v1012_v32 = vmul.f32 %v1621_v30, %v1607_v46  ;;  %v1013_v33 = vmul.f32 %v1621_v30, %v1609_v48  ;;  %v958_v46 = vsel %vm954_vm6, %v1762_v40, -inf }
 0x252   : > { %v1623_v34 = vpop.eup %1622 }
 0x253   : > { %827 = vrot.lane.b32.xlu1 %v825_v31, %s1673_s9  ;;  %v633_v35 = vmul.f32 %v1623_v34, %v1611_v51  ;;  %v634_v36 = vmul.f32 %v1623_v34, %v1613_v53  ;;  %v1014_v38 = vpack.c.bf16 %v1013_v33, %v1012_v32 }
 0x254   : > { %v1625_v41 = vpop.eup %1624 }
 0x255   : > { %v635_v42 = vpack.c.bf16 %v634_v36, %v633_v35  ;;  %v452_v43 = vmul.f32 %v1625_v41, %v1615_v57  ;;  %v453_v44 = vmul.f32 %v1625_v41, %v1617_v59 }
 0x257   : > { %637 = vrot.lane.b32.xlu0 %v635_v42, %s1674_s10  ;;  %v454_v45 = vpack.c.bf16 %v453_v44, %v452_v43 }
 0x276   : > { %767 = vmax.xlane.f32.xlu0 %v766_v39 }
 0x277   : > { %959 = vmax.xlane.f32.xlu1 %v958_v46 }
 0x288   : > { %657 = vrot.lane.b32.xlu1 %v1786_v5, %s1674_s10 }
 0x28c   : > { %1016 = vrot.lane.b32.xlu0 %v1014_v38, %s1675_s11  ;;  %1035 = vrot.lane.b32.xlu1 %v1786_v5, %s1675_s11 }
 0x290   : > { %846 = vrot.lane.b32.xlu0 %v1786_v5, %s1673_s9 }
 0x294   : > { %v578_v47 = vpop.xlane.xlu1 %577 }
 0x295   : > { %v582_v58 = vsub.f32 %v1756_v37, %v578_v47 }
 0x297   : > { %v584_v59 = vmul.f32 1.442695, %v582_v58 }
 0x298   : > { %v581_v48 = vpop.xlane.xlu1 %580 }
 0x299   : > { %v583_v50 = vsub.f32 %v1762_v40, %v581_v48 }
 0x29b   : > { %v586_v51 = vmul.f32 1.442695, %v583_v50 }
 0x29c   : > { %v771_v49 = vpop.xlane.xlu1 %770 }
 0x29d   : > { %v773_v52 = vsub.f32 %v1762_v40, %v771_v49  ;;  %1626 = vpow2.f32 %v586_v51 }
 0x29f   : > { %v776_v54 = vmul.f32 1.442695, %v773_v52 }
 0x2a0   : > { %v957_v53 = vpop.xlane.xlu1 %956 }
 0x2a1   : > { %1628 = vpow2.f32 %v776_v54  ;;  %v961_v0 = vsub.f32 %v1756_v37, %v957_v53 }
 0x2a2   : > { %1630 = vpow2.f32 %v584_v59 }
 0x2a3   : > { %v963_v8 = vmul.f32 1.442695, %v961_v0 }
 0x2aa   : > { %v1824_v57 = vpop.eup %1626 }
 0x2ae   : > { %456 = vxpose.xlu0.c.b16.start.end [1/1] (short) (narrow) %v454_v45, 32  ;;  %v1828_v5 = vpop.eup %1628 }
 0x2af   : > { %v1836_v10 = vpop.eup %1630 }
 0x2c5   : > { %v828_v55 = vpop.permute.xlu1 %827 }
 0x2c6   : > { %830 = vxpose.xlu0.c.b16.start.end [1/1] (short) (narrow) %v828_v55, 32 }
 0x2c9   : > { %v638_v56 = vpop.permute.xlu0 %637 }
 0x2ca   : > { %640 = vxpose.xlu1.c.b16.start.end [1/1] (short) (narrow) %v638_v56, 32 }
 0x2d2   : > { %592 = vrot.lane.b32.xlu1 %v1824_v57, %s1674_s10 }
 0x2d6   : > { %782 = vrot.lane.b32.xlu1 %v1828_v5, %s1673_s9 }
 0x2ff   : > { %v768_v60 = vpop.xlane.xlu0 %767 }
 0x300   : > { %v772_v61 = vsub.f32 %v1756_v37, %v768_v60  ;;  %v960_v62 = vpop.xlane.xlu1 %959 }
 0x301   : > { %v962_v63 = vsub.f32 %v1762_v40, %v960_v62 }
 0x302   : > { %v774_v3 = vmul.f32 1.442695, %v772_v61 }
 0x303   : > { %v1017_v4 = vpop.permute.xlu0 %1016  ;;  %v965_v6 = vmul.f32 1.442695, %v962_v63 }
 0x304   : > { %1019 = vxpose.xlu0.c.b16.start.end [1/1] (short) (narrow) %v1017_v4, 32  ;;  %v658_v7 = vpop.permute.xlu1 %657 }
 0x305   : > { %1632 = vpow2.f32 %v965_v6  ;;  %1496 = vmatprep.subr.bf16.mxu0 %v658_v7 }
 0x306   : > { %1497 = vmatpush3.bf16.msra.mxu0 %v658_v7  ;;  %1634 = vpow2.f32 %v774_v3 }
 0x307   : > { %v847_v9 = vpop.permute.xlu0 %846  ;;  %1636 = vpow2.f32 %v963_v8 }
 0x308   : > { %1510 = vmatprep.subr.bf16.mxu0 %v847_v9  ;;  %v1036_v16 = vpop.permute.xlu1 %1035 }
 0x310   : > { %v464_v11 = vpop.trf.xlu0 }
 0x311   : > { %590 = vrot.lane.b32.xlu0 %v1836_v10, %s1674_s10  ;;  %1484 = vmatprep.mubr.msk.bf16.mxu1 %vm472_vm7, %v464_v11 }
 0x312   : > { %v1841_v12 = vpop.eup %1632 }
 0x313   : > { %971 = vrot.lane.b32.xlu1 %v1841_v12, %s1675_s11  ;;  %v1845_v13 = vpop.eup %1634 }
 0x314   : > { %v465_v14 = vpop.trf.xlu0  ;;  %v1852_v15 = vpop.eup %1636 }
 0x315   : > { %780 = vrot.lane.b32.xlu0 %v1845_v13, %s1673_s9  ;;  %1485 = vmatmul.mubr.msk.bf16.vlgmr.msra.gmra.mxu1 %vm472_vm7, %v465_v14 }
 0x316   : > { %1492 = vmatprep.mubr.msk.bf16.mxu1 %vm1672_vm2, %v1671_v20 }
 0x319   : > { %969 = vrot.lane.b32.xlu0 %v1852_v15, %s1675_s11 }
 0x328   : > { %v838_v19 = vpop.trf.xlu0 }
 0x32c   : > { %v648_v17 = vpop.trf.xlu1  ;;  %v839_v21 = vpop.trf.xlu0 }
 0x32d   : > { %1498 = vmatprep.mubr.msk.bf16.mxu0 %vm472_vm7, %v648_v17 }
 0x330   : > { %v649_v18 = vpop.trf.xlu1 }
 0x331   : > { %1499 = vmatmul.mubr.msk.bf16.vlgmr.msra.gmra.mxu0 %vm472_vm7, %v649_v18 }
 0x332   : > { %1511 = vmatpush3.bf16.msra.mxu0 %v847_v9  ;;  %1512 = vmatprep.mubr.msk.bf16.mxu0 %vm472_vm7, %v838_v19 }
 0x333   : > { %1524 = vmatprep.subr.bf16.mxu0 %v1036_v16 }
 0x337   : > { %407 = vmax.xlane.f32.xlu1 %v406_v22 }
 0x338   : > { %404 = vmax.xlane.f32.xlu0 %v403_v23 }
 0x339   : > { %1513 = vmatmul.mubr.msk.bf16.vlgmr.msra.gmra.mxu0 %vm472_vm7, %v839_v21 }
 0x33a   : > { %1525 = vmatpush3.bf16.msra.mxu0 %v1036_v16 }
 0x33b   : > { %1538 = vmatprep.subr.bf16.mxu0 %v1671_v20 }
 0x344   : > { %v593_v26 = vpop.permute.xlu1 %592 }
 0x345   : > { %v599_v31 = vsel %vm402_vm4, %v593_v26, 0.0 }
 0x348   : > { %v783_v32 = vpop.permute.xlu1 %782 }
 0x349   : > { %v789_v35 = vsel %vm402_vm4, %v783_v32, 0.0 }
 0x366   : > { %v1027_v24 = vpop.trf.xlu0 }
 0x367   : > { %1526 = vmatprep.mubr.msk.bf16.mxu0 %vm472_vm7, %v1027_v24 }
 0x36a   : > { %v1028_v25 = vpop.trf.xlu0 }
 0x36b   : > { %1527 = vmatmul.mubr.msk.bf16.vlgmr.msra.gmra.mxu0 %vm472_vm7, %v1028_v25 }
 0x36c   : > { %1554 = vmatprep.mubr.msk.bf16.mxu0 %vm1672_vm2, %v1671_v20 }
 0x383   : > { %v591_v27 = vpop.permute.xlu0 %590 }
 0x384   : > { %v596_v28 = vsel %vm402_vm4, %v591_v27, 0.0 }
 0x385   : > { %597 = vadd.xlane.f32.xlu0 %v596_v28  ;;  %v972_v36 = vpop.permute.xlu1 %971 }
 0x386   : > { %v978_v38 = vsel %vm402_vm4, %v972_v36, 0.0 }
 0x387   : > { %v781_v29 = vpop.permute.xlu0 %780 }
 0x388   : > { %v786_v30 = vsel %vm402_vm4, %v781_v29, 0.0 }
 0x389   : > { %787 = vadd.xlane.f32.xlu1 %v786_v30  ;;  %600 = vadd.xlane.f32.xlu0 %v599_v31 }
 0x38b   : > { %v970_v33 = vpop.permute.xlu0 %969 }
 0x38c   : > { %v975_v34 = vsel %vm402_vm4, %v970_v33, 0.0 }
 0x38d   : > { %976 = vadd.xlane.f32.xlu1 %v975_v34  ;;  %790 = vadd.xlane.f32.xlu0 %v789_v35 }
 0x391   : > { %979 = vadd.xlane.f32.xlu0 %v978_v38 }
 0x3c0   : > { %v408_v41 = vpop.xlane.xlu1 %407 }
 0x3c1   : > { %v405_v42 = vpop.xlane.xlu0 %404  ;;  %v410_v43 = vsub.f32 %v1762_v40, %v408_v41 }
 0x3c2   : > { %v409_v44 = vsub.f32 %v1756_v37, %v405_v42 }
 0x3c3   : > { %v413_v45 = vmul.f32 1.442695, %v410_v43 }
 0x3c4   : > { %v411_v39 = vmul.f32 1.442695, %v409_v44 }
 0x3c5   : > { %1638 = vpow2.f32 %v413_v45 }
 0x3c6   : > { %1640 = vpow2.f32 %v411_v39 }
 0x3d2   : > { %v1639_v46 = vpop.eup %1638 }
 0x3d3   : > { %v1641_v47 = vpop.eup %1640  ;;  %v418_v48 = vsel %vm402_vm4, %v1639_v46, 0.0 }
 0x3d4   : > { %v415_v49 = vsel %vm402_vm4, %v1641_v47, 0.0  ;;  %419 = vadd.xlane.f32.xlu0 %v418_v48 }
 0x3d5   : > { %416 = vadd.xlane.f32.xlu1 %v415_v49  ;;  %v1486_v50 = vpop.f32.mrf.mxu1 }
 0x3d7   : > { %v513_v51 = vpop.f32.mrf.mxu1 }
 0x3d9   : > { %v1487_v52 = vpop.f32.mrf.mxu1 }
 0x3da   : > { %v530_v53 = vpack.c.bf16 %v1487_v52, %v1486_v50  ;;  %v1590_v52 = vld [vmem:[%s1964_s3 + $0x38] sm:$0xff]  }
 0x3db   : > { %v516_v54 = vpop.f32.mrf.mxu1  ;;  %1539 = vmatpush3.bf16.msra.mxu0 %v1590_v52 }
 0x3dc   : > { %1489 = vmatpush3.bf16.msra.mxu1 %v530_v53  ;;  %v529_v40 = vpack.c.bf16 %v516_v54, %v513_v51  ;;  %v1591_v53 = vld [vmem:[%s1964_s3 + $0x30] sm:$0xff]   ;;  %1540 = vmatprep.subr.bf16.mxu0 %v1671_v20  ;;  %v1592_v54 = vld [vmem:[%s1964_s3 + $0x28] sm:$0xff]  }
 0x3dd   : > { %1490 = vmatprep.subr.bf16.mxu1 %v1671_v20 }
 0x3df   : > { %1541 = vmatpush3.bf16.msra.mxu0 %v1591_v53 }
 0x3e0   : > { %1491 = vmatpush3.bf16.msra.mxu1 %v529_v40  ;;  %1542 = vmatprep.subr.bf16.mxu0 %v1671_v20 }
 0x3e1   : > { %1502 = vmatprep.subr.bf16.mxu1 %v1671_v20 }
 0x3e3   : > { %1543 = vmatpush3.bf16.msra.mxu0 %v1592_v54 }
 0x3e4   : > { %1544 = vmatprep.subr.bf16.mxu0 %v1671_v20 }
 0x40e   : > { %v598_v37 = vpop.xlane.xlu0 %597 }
 0x40f   : > { %1642 = vrcp.f32 %v598_v37 }
 0x412   : > { %v601_v55 = vpop.xlane.xlu0 %600  ;;  %v788_v56 = vpop.xlane.xlu1 %787 }
 0x413   : > { %1644 = vrcp.f32 %v601_v55 }
 0x414   : > { %1646 = vrcp.f32 %v788_v56 }
 0x416   : > { %v791_v58 = vpop.xlane.xlu0 %790  ;;  %v977_v59 = vpop.xlane.xlu1 %976 }
 0x417   : > { %1648 = vrcp.f32 %v791_v58  ;;  %v1593_v58 = vld [vmem:[%s1964_s3 + $0x20] sm:$0xff]  }
 0x418   : > { %1650 = vrcp.f32 %v977_v59  ;;  %1545 = vmatpush3.bf16.msra.mxu0 %v1593_v58  ;;  %v1594_v59 = vld [vmem:[%s1964_s3 + $0x18] sm:$0xff]   ;;  %v1428_v58 = vld [vmem:[%s1966_s5] ss:$0 sm:$0xff] }
 0x419   : > { %1546 = vmatprep.subr.bf16.mxu0 %v1671_v20 }
 0x41a   : > { %v980_v60 = vpop.xlane.xlu0 %979 }
 0x41b   : > { %1652 = vrcp.f32 %v980_v60 }
 0x41c   : > { %v1643_v61 = vpop.eup %1642  ;;  %1547 = vmatpush3.bf16.msra.mxu0 %v1594_v59 }
 0x41d   : > { %v603_v62 = vmul.f32 %v1643_v61, %v1836_v10  ;;  %1548 = vmatprep.subr.bf16.mxu0 %v1671_v20 }
 0x41f   : > { %v606_v4 = vmul.f32 0.17677669, %v603_v62 }
 0x420   : > { %v1645_v63 = vpop.eup %1644 }
 0x421   : > { %v1647_v0 = vpop.eup %1646  ;;  %v605_v3 = vmul.f32 %v1645_v63, %v1824_v57  ;;  %v1595_v63 = vld [vmem:[%s1964_s3 + $0x10] sm:$0xff]  }
 0x422   : > { %v793_v7 = vmul.f32 %v1647_v0, %v1845_v13  ;;  %1549 = vmatpush3.bf16.msra.mxu0 %v1595_v63 }
 0x423   : > { %v607_v6 = vmul.f32 0.17677669, %v605_v3  ;;  %1550 = vmatprep.subr.bf16.mxu0 %v1671_v20 }
 0x424   : > { %v1649_v8 = vpop.eup %1648  ;;  %v796_v16 = vmul.f32 0.17677669, %v793_v7 }
 0x425   : > { %v1651_v9 = vpop.eup %1650  ;;  %v715_v11 = vpack.c.bf16 %v607_v6, %v606_v4  ;;  %v795_v14 = vmul.f32 %v1649_v8, %v1828_v5  ;;  %v1500_v5 = vpop.f32.mrf.mxu0  ;;  %v1596_v4 = vld [vmem:[%s1964_s3 + $0x8] sm:$0xff]  }
 0x426   : > { %v982_v18 = vmul.f32 %v1651_v9, %v1852_v15  ;;  %1551 = vmatpush3.bf16.msra.mxu0 %v1596_v4  ;;  %v1597_v9 = vld [vmem:[%s1964_s3] sm:$0xff]  }
 0x427   : > { %719 = vrot.lane.b32.xlu1 %v715_v11, %s1674_s10  ;;  %v797_v17 = vmul.f32 0.17677669, %v795_v14  ;;  %v700_v15 = vpop.f32.mrf.mxu0  ;;  %1552 = vmatprep.subr.bf16.mxu0 %v1671_v20 }
 0x428   : > { %v1653_v10 = vpop.eup %1652  ;;  %v985_v57 = vmul.f32 0.17677669, %v982_v18 }
 0x429   : > { %v904_v19 = vpack.c.bf16 %v797_v17, %v796_v16  ;;  %v984_v21 = vmul.f32 %v1653_v10, %v1841_v12  ;;  %v1501_v12 = vpop.f32.mrf.mxu0 }
 0x42a   : > { %v717_v32 = vpack.c.bf16 %v1501_v12, %v1500_v5  ;;  %1553 = vmatpush3.bf16.msra.mxu0 %v1597_v9 }
 0x42b   : > { %908 = vrot.lane.b32.xlu0 %v904_v19, %s1673_s9  ;;  %v986_v22 = vmul.f32 0.17677669, %v984_v21  ;;  %v703_v33 = vpop.f32.mrf.mxu0 }
 0x42c   : > { %v716_v34 = vpack.c.bf16 %v703_v33, %v700_v15 }
 0x42d   : > { %v1093_v13 = vpack.c.bf16 %v986_v22, %v985_v57  ;;  %v1514_v35 = vpop.f32.mrf.mxu0 }
 0x42f   : > { %1097 = vrot.lane.b32.xlu1 %v1093_v13, %s1675_s11  ;;  %v889_v36 = vpop.f32.mrf.mxu0 }
 0x431   : > { %v1515_v38 = vpop.f32.mrf.mxu0 }
 0x432   : > { %v906_v43 = vpack.c.bf16 %v1515_v38, %v1514_v35 }
 0x433   : > { %v892_v41 = vpop.f32.mrf.mxu0 }
 0x434   : > { %v905_v39 = vpack.c.bf16 %v892_v41, %v889_v36 }
 0x435   : > { %v1528_v42 = vpop.f32.mrf.mxu0 }
 0x437   : > { %v1078_v45 = vpop.f32.mrf.mxu0 }
 0x45d   : > { %v420_v23 = vpop.xlane.xlu0 %419 }
 0x45e   : > { %v417_v24 = vpop.xlane.xlu1 %416  ;;  %1654 = vrcp.f32 %v420_v23 }
 0x45f   : > { %1656 = vrcp.f32 %v417_v24 }
 0x46b   : > { %v1655_v25 = vpop.eup %1654 }
 0x46c   : > { %v1657_v26 = vpop.eup %1656  ;;  %v424_v27 = vmul.f32 %v1655_v25, %v1639_v46  ;;  %v1529_v46 = vpop.f32.mrf.mxu0 }
 0x46d   : > { %v422_v28 = vmul.f32 %v1657_v26, %v1641_v47  ;;  %v1095_v47 = vpack.c.bf16 %v1529_v46, %v1528_v42 }
 0x46e   : > { %v426_v29 = vmul.f32 0.17677669, %v424_v27  ;;  %v1081_v49 = vpop.f32.mrf.mxu0 }
 0x46f   : > { %v425_v30 = vmul.f32 0.17677669, %v422_v28  ;;  %v1094_v50 = vpack.c.bf16 %v1081_v49, %v1078_v45 }
 0x471   : > { %v528_v31 = vpack.c.bf16 %v426_v29, %v425_v30 }
 0x473   : > { %1493 = vmatmul.mubr.msk.bf16.vlgmr.msra.gmra.mxu1 %vm402_vm4, %v528_v31  ;;  %v1419_v31 = vld [vmem:[%s1965_s4] ss:$0 sm:$0xff] }
 0x474   : > { %1503 = vmatpush3.bf16.msra.mxu1 %v717_v32  ;;  %1506 = vmatprep.mubr.msk.bf16.mxu1 %vm1672_vm2, %v1671_v20 }
 0x475   : > { %1504 = vmatprep.subr.bf16.mxu1 %v1671_v20 }
 0x478   : > { %1505 = vmatpush3.bf16.msra.mxu1 %v716_v34 }
 0x479   : > { %1516 = vmatprep.subr.bf16.mxu1 %v1671_v20 }
 0x499   : > { %v720_v44 = vpop.permute.xlu1 %719 }
 0x49a   : > { %1507 = vmatmul.mubr.msk.bf16.vlgmr.msra.gmra.mxu1 %vm402_vm4, %v720_v44 }
 0x49b   : > { %1517 = vmatpush3.bf16.msra.mxu1 %v906_v43  ;;  %1520 = vmatprep.mubr.msk.bf16.mxu1 %vm1672_vm2, %v1671_v20 }
 0x49c   : > { %1518 = vmatprep.subr.bf16.mxu1 %v1671_v20 }
 0x49d   : > { %v909_v48 = vpop.permute.xlu0 %908 }
 0x49f   : > { %1519 = vmatpush3.bf16.msra.mxu1 %v905_v39 }
 0x4a0   : > { %1530 = vmatprep.subr.bf16.mxu1 %v1671_v20 }
 0x4a1   : > { %v1098_v51 = vpop.permute.xlu1 %1097 }
 0x4a2   : > { %1521 = vmatmul.mubr.msk.bf16.vlgmr.msra.gmra.mxu1 %vm402_vm4, %v909_v48 }
 0x4a3   : > { %1531 = vmatpush3.bf16.msra.mxu1 %v1095_v47  ;;  %1534 = vmatprep.mubr.msk.bf16.mxu1 %vm1672_vm2, %v1671_v20 }
 0x4a4   : > { %1532 = vmatprep.subr.bf16.mxu1 %v1671_v20 }
 0x4a7   : > { %1533 = vmatpush3.bf16.msra.mxu1 %v1094_v50 }
 0x4aa   : > { %1535 = vmatmul.mubr.msk.bf16.vlgmr.msra.gmra.mxu1 %vm402_vm4, %v1098_v51 }
 0x533   : > { %v568_v40 = vpop.f32.mrf.mxu1 }
 0x535   : > { %v1494_v37 = vpop.f32.mrf.mxu1 }
 0x537   : > { %v571_v55 = vpop.f32.mrf.mxu1 }
 0x539   : > { %v1495_v56 = vpop.f32.mrf.mxu1 }
 0x55a   : > { %v758_v60 = vpop.f32.mrf.mxu1 }
 0x55c   : > { %v1508_v61 = vpop.f32.mrf.mxu1 }
 0x55e   : > { %v761_v62 = vpop.f32.mrf.mxu1 }
 0x55f   : > { %v1572_v0 = vpack.i.bf16 %v761_v62, %v758_v60 }
 0x560   : > { %v1509_v3 = vpop.f32.mrf.mxu1 }
 0x561   : > { %1573 = vrot.lane.b32.xlu1 %v1572_v0, %s1675_s11 }
 0x562   : > { %v947_v6 = vpop.f32.mrf.mxu1 }
 0x564   : > { %v1522_v7 = vpop.f32.mrf.mxu1 }
 0x566   : > { %v950_v8 = vpop.f32.mrf.mxu1 }
 0x567   : > { %v1577_v11 = vpack.i.bf16 %v950_v8, %v947_v6 }
 0x568   : > { %v1523_v14 = vpop.f32.mrf.mxu1 }
 0x569   : > { %1578 = vrot.lane.b32.xlu0 %v1577_v11, %s1673_s9 }
 0x56a   : > { %v1136_v16 = vpop.f32.mrf.mxu1 }
 0x56c   : > { %v1536_v17 = vpop.f32.mrf.mxu1 }
 0x56e   : > { %v1139_v18 = vpop.f32.mrf.mxu1 }
 0x56f   : > { %v1582_v10 = vpack.i.bf16 %v1139_v18, %v1136_v16 }
 0x570   : > { %v1537_v19 = vpop.f32.mrf.mxu1 }
 0x571   : > { %1583 = vrot.lane.b32.xlu1 %v1582_v10, %s1674_s10 }
 0x5d3   : > { %v1574_v21 = vpop.permute.xlu1 %1573 }
 0x5d4   : > { %v1576_v20 = vunpack.i.h.bf16 %v1574_v21  ;;  %v1575_v22 = vunpack.i.l.bf16 %v1574_v21 }
 0x5d6   : > { %v1168_v5 = vsel %vm402_vm4, %v571_v55, %v1576_v20  ;;  %v1167_v25 = vsel %vm402_vm4, %v568_v40, %v1575_v22 }
 0x5db   : > { %v1579_v57 = vpop.permute.xlu0 %1578 }
 0x5dc   : > { %v1581_v13 = vunpack.i.h.bf16 %v1579_v57  ;;  %v1580_v23 = vunpack.i.l.bf16 %v1579_v57 }
 0x5de   : > { %v1171_v15 = vsel %vm1169_vm8, %v1168_v5, %v1581_v13  ;;  %v1170_v28 = vsel %vm1169_vm8, %v1167_v25, %v1580_v23 }
 0x5e3   : > { %v1584_v24 = vpop.permute.xlu1 %1583 }
 0x5e4   : > { %v1586_v26 = vunpack.i.h.bf16 %v1584_v24  ;;  %v1585_v27 = vunpack.i.l.bf16 %v1584_v24 }
 0x5e6   : > { %v1174_v29 = vsel %vm1172_vm9, %v1171_v15, %v1586_v26  ;;  %v1173_v30 = vsel %vm1172_vm9, %v1170_v28, %v1585_v27 }
 0x5e7   : > { %v1175_v12 = vpack.c.bf16 %v1174_v29, %v1173_v30 }
 0x5e9   : > { %1555 = vmatmul.mubr.bf16.vlgmr.msra.gmra.mxu0 %v1175_v12 }
 0x6a9   : > { %v1281_v32 = vpop.f32.mrf.mxu0 }
 0x6aa   : > { %v1282_v33 = vadd.f32 %v1419_v31, %v1281_v32 }
 0x6ab   : > { %v1556_v34 = vpop.f32.mrf.mxu0 }
 0x6ac   : > { %v1288_v35 = vsel %vm257_vm0, %v1282_v33, 0.0 }
 0x6ad   : > { %1289 = vadd.xlane.f32.xlu0 %v1288_v35  ;;  %v1284_v36 = vpop.f32.mrf.mxu0 }
 0x6ae   : > { %v1285_v38 = vadd.f32 %v1419_v31, %v1284_v36 }
 0x6af   : > { %v1557_v41 = vpop.f32.mrf.mxu0 }
 0x6b0   : > { %v1291_v42 = vsel %vm257_vm0, %v1285_v38, 0.0 }
 0x6b1   : > { %1292 = vadd.xlane.f32.xlu1 %v1291_v42 }
 0x736   : > { %v1290_v43 = vpop.xlane.xlu0 %1289 }
 0x737   : > { %v1294_v44 = vmul.f32 0.125, %v1290_v43 }
 0x739   : > { %v1296_v45 = vsub.f32 %v1282_v33, %v1294_v44 }
 0x73a   : > { %v1293_v39 = vpop.xlane.xlu1 %1292 }
 0x73b   : > { %v1295_v46 = vmul.f32 0.125, %v1293_v39  ;;  %v1298_v47 = vmul.f32 %v1296_v45, %v1296_v45 }
 0x73d   : > { %v1297_v48 = vsub.f32 %v1285_v38, %v1295_v46  ;;  %v1300_v49 = vsel %vm257_vm0, %v1298_v47, 0.0 }
 0x73e   : > { %1301 = vadd.xlane.f32.xlu0 %v1300_v49 }
 0x73f   : > { %v1299_v50 = vmul.f32 %v1297_v48, %v1297_v48 }
 0x741   : > { %v1303_v51 = vsel %vm257_vm0, %v1299_v50, 0.0 }
 0x742   : > { %1304 = vadd.xlane.f32.xlu0 %v1303_v51 }
 0x7c7   : > { %v1302_v52 = vpop.xlane.xlu0 %1301 }
 0x7c8   : > { %v1306_v53 = vmul.f32 0.125, %v1302_v52 }
 0x7ca   : > { %v1308_v54 = vadd.f32 1e-05, %v1306_v53 }
 0x7cb   : > { %v1305_v40 = vpop.xlane.xlu0 %1304 }
 0x7cc   : > { %1658 = vrsqrt.f32 %v1308_v54  ;;  %v1307_v37 = vmul.f32 0.125, %v1305_v40 }
 0x7ce   : > { %v1309_v55 = vadd.f32 1e-05, %v1307_v37 }
 0x7d0   : > { %1660 = vrsqrt.f32 %v1309_v55 }
 0x7d9   : > { %v1659_v56 = vpop.eup %1658 }
 0x7da   : > { %v1312_v59 = vmul.f32 %v1659_v56, %v1296_v45 }
 0x7dc   : > { %v1321_v60 = vmul.f32 %v1428_v58, %v1312_v59 }
 0x7dd   : > { %v1661_v61 = vpop.eup %1660 }
 0x7de   : > { %v1323_v62 = vadd.f32 %v1727_v1, %v1321_v60  ;;  %v1313_v63 = vmul.f32 %v1661_v61, %v1297_v48 }
 0x7e0   : > { %v1435_v0 = vpack.c.bf16 %v1323_v62, %v1323_v62  ;;  %v1322_v3 = vmul.f32 %v1428_v58, %v1313_v63 }
 0x7e2   : > { %1334 = vst.msk [vmem:[%s251_s13] sm:$0xf] %vm1333_vm10, %v1435_v0  ;;  %v1324_v4 = vadd.f32 %v1729_v2, %v1322_v3 }
 0x7e4   : > { %v1436_v6 = vpack.c.bf16 %v1324_v4, %v1324_v4 }
 0x7e6   : > { %1335 = vst.msk [vmem:[%s251_s13 + $0x4] sm:$0xf] %vm1333_vm10, %v1436_v6 }
 0x7e7 PF: > { %s16_s21 = sadd.s32 1, %s1668_s21  }
 0x7e8   : > { %p13_p4 = scmp.ge.s32.totalorder %s16_s21, 4  }
 0x7ea   :  { %15 = sbr.rel (!%p13_p4) target bundleno = 1 (0x1), region = 74 }

// kernel: unet_forward.72
= control target key start
LH: loop header
LB: loop body
LE: loop exit
PB: predicated region body
PF: predicated region fallthrough
CT: control target
= control target key end

     0   :  { %s470_s15 = smov 0   ;;  %s530_s0 = inlined_call_operand.vmem [shape: bf16[2,8,8], index: 0, kind: input, shape index: {}]   ;;  %s531_s1 = inlined_call_operand.vmem [shape: f32[1,8], index: 1, kind: input, shape index: {}]   ;;  %s532_s2 = inlined_call_operand.vmem [shape: f32[1,8], index: 2, kind: input, shape index: {}]   ;;  %s533_s3 = inlined_call_operand.vmem [shape: f32[2,2,8], index: 3, kind: input, shape index: {}]   ;;  %s534_s4 = inlined_call_operand.vmem [shape: bf16[2,8,8], index: 4, kind: output, shape index: {}]  }
   0x1 LB: > { %s404_s16 = sadd.s32 4294967295, %s440_s15   ;;  %p408_p0 = scmp.ge.s32.totalorder %s440_s15, 1  ;;  %s440_s15 = sphi %s470_s15, %s14_s15  }
   0x2   : > { %p170_p1 = scmp.lt.s32.totalorder %s440_s15, 3 }
   0x4   : > { %p171_p2 = pnand %p408_p0, %p170_p1 }
   0x5   : > { %p198_p3 = scmp.lt.s32.totalorder (!%p171_p2), %s404_s16, 1  ;;  %s442_s21 = smov (!%p171_p2), 126  }
   0x6   : > { %174 = sbr.rel (%p171_p2) target bundleno = 637 (0x27d), region = 36  ;;  %s443_s22 = smov (!%p171_p2), 122  }
   0x7   : > { %s444_s23 = smov (!%p171_p2), 124  }
   0xb   : > { %s536_s16 = smov (!%p198_p3, %s404_s16), 1  ;;  %vm212_vm0 = vcmask 64512   ;;  %vm220_vm1 = vcmask 15360   ;;  %v252_v17 = vlaneseq  ;;  %vm248_vm2 = vcmask 31744   ;;  %v412_v63 = vld [vmem:[%s531_s1] ss:$0 sm:$0xff] }
   0xc   : > { %s409_s17 = sshll.u32 %s536_s16, 2  ;;  %vm250_vm3 = vcmask 48128   ;;  %s410_s24 = sshll.u32 %s536_s16, 1  ;;  %vm337_vm4 = vcmask 60416  }
   0xd   : > { %s201_s20 = scalar_lea.vmem %s530_s0, %s409_s17  ;;  %v494_v19 = vshrl.u32 %v252_v17, 7  ;;  %s205_s27 = scalar_lea.vmem %s533_s3, %s410_s24 }
   0xe   : > { %v210_v0 = vld [vmem:[%s201_s20] sm:$0xf]  ;;  %s209_s8 = scalar_lea.vmem %s534_s4, %s409_s17 }
   0xf   : > { %v211_v1 = vunpack.c.l.bf16 %v210_v0  ;;  %v254_v26 = vsub.s32 0, %v494_v19  ;;  %v317_v59 = vld [vmem:[%s205_s27] sm:$0x3]  ;;  %v326_v0 = vsub.s32 1, %v494_v19 }
  0x10   : > { %v318_v61 = vadd.f32 1.0, %v317_v59 }
  0x11   : > { %v213_v2 = vsel %vm212_vm0, %v211_v1, 0.0 }
  0x12   : > { %v214_v3 = vrot.slane %v213_v2, 4 }
  0x14   : > { %v215_v4 = vadd.f32 %v214_v3, %v213_v2  ;;  %v413_v2 = vld [vmem:[%s532_s2] ss:$0 sm:$0xff]  ;;  %v322_v3 = vrot.slane %v318_v61, %v254_v26 }
  0x16   : > { %v216_v5 = vrot.slane %v215_v4, 2 }
  0x18   : > { %v217_v6 = vadd.f32 %v216_v5, %v215_v4  ;;  %v327_v5 = vrot.slane %v317_v59, %v326_v0 }
  0x1a   : > { %v218_v7 = vrot.slane %v217_v6, 1 }
  0x1c   : > { %v219_v8 = vadd.f32 %v218_v7, %v217_v6 }
  0x1e   : > { %226 = vrot.lane.b32.xlu0 %v219_v8, %s442_s21  ;;  %240 = vrot.lane.b32.xlu1 %v219_v8, %s443_s22  ;;  %v221_v9 = vsel %vm220_vm1, %v219_v8, 0.0 }
  0x22   : > { %233 = vrot.lane.b32.xlu0 %v219_v8, %s444_s23 }
  0x42   : > { %222 = vadd.xlane.f32.xlu1 %v221_v9 }
  0x90   : > { %v227_v10 = vpop.permute.xlu0 %226  ;;  %v241_v11 = vpop.permute.xlu1 %240 }
  0x91   : > { %v229_v12 = vsel %vm220_vm1, %v227_v10, 0.0  ;;  %v243_v13 = vsel %vm220_vm1, %v241_v11, 0.0 }
  0x92   : > { %230 = vadd.xlane.f32.xlu0 %v229_v12  ;;  %244 = vadd.xlane.f32.xlu1 %v243_v13 }
  0x94   : > { %v234_v14 = vpop.permute.xlu0 %233 }
  0x95   : > { %v236_v15 = vsel %vm220_vm1, %v234_v14, 0.0 }
  0x96   : > { %237 = vadd.xlane.f32.xlu0 %v236_v15 }
  0xcb   : > { %v223_v16 = vpop.xlane.xlu1 %222 }
  0xcc   : > { %v224_v22 = vmul.f32 0.0625, %v223_v16 }
 0x11b   : > { %v231_v18 = vpop.xlane.xlu0 %230  ;;  %v245_v20 = vpop.xlane.xlu1 %244 }
 0x11c   : > { %v232_v21 = vmul.f32 0.0625, %v231_v18  ;;  %v246_v24 = vmul.f32 0.0625, %v245_v20 }
 0x11e   : > { %v247_v27 = vsel %vm220_vm1, %v224_v22, %v232_v21 }
 0x11f   : > { %v238_v23 = vpop.xlane.xlu0 %237 }
 0x120   : > { %v239_v25 = vmul.f32 0.0625, %v238_v23 }
 0x122   : > { %v249_v28 = vsel %vm248_vm2, %v247_v27, %v239_v25 }
 0x123   : > { %v251_v29 = vsel %vm250_vm3, %v249_v28, %v246_v24 }
 0x124   : > { %v255_v30 = vrot.slane %v251_v29, %v254_v26 }
 0x126   : > { %v256_v31 = vsub.f32 %v211_v1, %v255_v30 }
 0x128   : > { %v257_v32 = vmul.f32 %v256_v31, %v256_v31 }
 0x12a   : > { %v258_v33 = vsel %vm212_vm0, %v257_v32, 0.0 }
 0x12b   : > { %v259_v34 = vrot.slane %v258_v33, 4 }
 0x12d   : > { %v260_v35 = vadd.f32 %v259_v34, %v258_v33 }
 0x12f   : > { %v261_v36 = vrot.slane %v260_v35, 2 }
 0x131   : > { %v262_v37 = vadd.f32 %v261_v36, %v260_v35 }
 0x133   : > { %v263_v38 = vrot.slane %v262_v37, 1 }
 0x135   : > { %v264_v39 = vadd.f32 %v263_v38, %v262_v37 }
 0x137   : > { %277 = vrot.lane.b32.xlu1 %v264_v39, %s444_s23  ;;  %270 = vrot.lane.b32.xlu0 %v264_v39, %s442_s21  ;;  %v265_v40 = vsel %vm220_vm1, %v264_v39, 0.0 }
 0x13b   : > { %284 = vrot.lane.b32.xlu1 %v264_v39, %s443_s22 }
 0x156   : > { %266 = vadd.xlane.f32.xlu0 %v265_v40 }
 0x1a9   : > { %v278_v41 = vpop.permute.xlu1 %277  ;;  %v271_v42 = vpop.permute.xlu0 %270 }
 0x1aa   : > { %v273_v43 = vsel %vm220_vm1, %v271_v42, 0.0  ;;  %v280_v44 = vsel %vm220_vm1, %v278_v41, 0.0 }
 0x1ab   : > { %274 = vadd.xlane.f32.xlu1 %v273_v43  ;;  %281 = vadd.xlane.f32.xlu0 %v280_v44 }
 0x1ad   : > { %v285_v45 = vpop.permute.xlu1 %284 }
 0x1ae   : > { %v287_v46 = vsel %vm220_vm1, %v285_v45, 0.0 }
 0x1af   : > { %288 = vadd.xlane.f32.xlu0 %v287_v46 }
 0x1df   : > { %v267_v47 = vpop.xlane.xlu0 %266 }
 0x1e0   : > { %v268_v50 = vmul.f32 0.0625, %v267_v47 }
 0x234   : > { %v275_v48 = vpop.xlane.xlu1 %274  ;;  %v282_v49 = vpop.xlane.xlu0 %281 }
 0x235   : > { %v276_v51 = vmul.f32 0.0625, %v275_v48  ;;  %v283_v52 = vmul.f32 0.0625, %v282_v49 }
 0x237   : > { %v291_v53 = vsel %vm220_vm1, %v268_v50, %v276_v51 }
 0x238   : > { %v289_v54 = vpop.xlane.xlu0 %288  ;;  %v292_v56 = vsel %vm248_vm2, %v291_v53, %v283_v52 }
 0x239   : > { %v290_v55 = vmul.f32 0.0625, %v289_v54 }
 0x23b   : > { %v293_v57 = vsel %vm250_vm3, %v292_v56, %v290_v55 }
 0x23c   : > { %v294_v58 = vadd.f32 1e-05, %v293_v57 }
 0x23e   : > { %428 = vrsqrt.f32 %v294_v58 }
 0x24b   : > { %v429_v60 = vpop.eup %428 }
 0x24c   : > { %v299_v62 = vrot.slane %v429_v60, %v254_v26 }
 0x24e   : > { %v300_v1 = vmul.f32 %v299_v62, %v256_v31 }
 0x250   : > { %v308_v4 = vmul.f32 %v412_v63, %v300_v1 }
 0x252   : > { %v316_v6 = vadd.f32 %v413_v2, %v308_v4 }
 0x254   : > { %v323_v7 = vmul.f32 %v322_v3, %v316_v6 }
 0x256   : > { %v328_v8 = vadd.f32 %v327_v5, %v323_v7 }
 0x258   : > { %v414_v9 = vmul.f32 -1.442695, %v328_v8 }
 0x25a   : > { %430 = vpow2.f32 %v414_v9 }
 0x267   : > { %v431_v10 = vpop.eup %430 }
 0x268   : > { %v332_v11 = vadd.f32 1.0, %v431_v10 }
 0x26a   : > { %432 = vrcp.f32 %v332_v11 }
 0x277   : > { %v433_v12 = vpop.eup %432 }
 0x278   : > { %v335_v13 = vmul.f32 %v433_v12, %v328_v8 }
 0x27a   : > { %v336_v14 = vpack.c.bf16 %v335_v13, %v335_v13 }
 0x27c   : > { %338 = vst.msk [vmem:[%s209_s8] sm:$0xf] %vm337_vm4, %v336_v14 }
 0x27d PF: > { %s14_s15 = sadd.s32 1, %s440_s15  }
 0x27e   : > { %p11_p4 = scmp.ge.s32.totalorder %s14_s15, 4  }
 0x280   :  { %13 = sbr.rel (!%p11_p4) target bundleno = 1 (0x1), region = 69 }

// kernel: unet_forward.81
= control target key start
LH: loop header
LB: loop body
LE: loop exit
PB: predicated region body
PF: predicated region fallthrough
CT: control target
= control target key end

     0   :  { %s676_s12 = smov 0   ;;  %s678_s13 = smov 0   ;;  %s725_s0 = inlined_call_operand.vmem [shape: bf16[2,1,16,16], index: 0, kind: input, shape index: {}]   ;;  %s726_s1 = inlined_call_operand.vmem [shape: bf16[3,16,128], index: 1, kind: input, shape index: {}]   ;;  %s727_s2 = inlined_call_operand.vmem [shape: f32[1,128], index: 2, kind: input, shape index: {}]   ;;  %s728_s3 = inlined_call_operand.vmem [shape: bf16[2,1,8,128], index: 3, kind: output, shape index: {}]  }
   0x1   :  { %s680_s14 = smov 0  }
   0x2 LB: > { %s32_s15 = sadd.s32 1, %s648_s13  ;;  %p557_p0 = scmp.ge.s32.totalorder %s652_s14, 1  ;;  %s652_s14 = sphi %s680_s14, %s13_s14   ;;  %s648_s13 = sphi %s678_s13, %s730_s13   ;;  %s644_s12 = sphi %s676_s12, %s729_s12  }
   0x3   : > { %p34_p1 = scmp.ge.s32.totalorder %s32_s15, 2  ;;  %p183_p2 = scmp.lt.s32.totalorder %s652_s14, 3 }
   0x5   : > { %s732_s15 = smov (%p34_p1, %s32_s15), 0  ;;  %p184_p3 = pnand %p557_p0, %p183_p2 }
   0x6   : > { %p223_p4 = scmp.lt.s32.totalorder (!%p184_p3), %s644_s12, 1 }
   0x7   : > { %187 = sbr.rel (%p184_p3) target bundleno = 232 (0xe8), region = 32 }
   0xc   : > { %v626_v0 = vld [vmem:[%s726_s1 + $0x8] sm:$0xff]   ;;  %v654_v1 = vmov 0.0   ;;  %vm655_vm0 = vmmov 0   ;;  %s734_s12 = smov (!%p223_p4, %s644_s12), 1  ;;  %v629_v2 = vld [vmem:[%s726_s1] sm:$0xff]   ;;  %vm268_vm1 = vcmask 130048   ;;  %v315_v6 = vlaneseq }
   0xd   : > { %582 = vmatprep.subr.bf16.mxu0 %v654_v1  ;;  %588 = vmatprep.subr.bf16.mxu1 %v654_v1  ;;  %s575_s20 = sshll.u32 %s734_s12, 3  ;;  %v628_v3 = vld [vmem:[%s726_s1 + $0x10] sm:$0xff]   ;;  %v572_v26 = vld [vmem:[%s727_s2] ss:$0 sm:$0xff]  ;;  %s560_s28 = sshll.u32 %s734_s12, 2 }
   0xe   : > { %583 = vmatpush3.bf16.msra.mxu0 %v626_v0  ;;  %584 = vmatprep.mubr.msk.bf16.mxu0 %vm655_vm0, %v654_v1  ;;  %s231_s23 = scalar_lea.vmem %s725_s0, %s575_s20  ;;  %v316_v11 = vshrl.u32 %v315_v6, 7  ;;  %s248_s4 = scalar_lea.vmem %s728_s3, %s560_s28 }
   0xf   : > { %594 = vmatprep.subr.bf16.mxu0 %v654_v1  ;;  %590 = vmatprep.mubr.msk.bf16.mxu1 %vm655_vm0, %v654_v1  ;;  %v627_v4 = vld [vmem:[%s231_s23] sm:$0xff]  }
  0x10   : > { %589 = vmatpush3.bf16.msra.mxu1 %v629_v2  ;;  %vm317_vm2 = vcmp.lt.s32.totalorder %v316_v11, 7  ;;  %vm417_vm3 = vcmp.lt.s32.totalorder %v316_v11, 6 }
  0x11   : > { %585 = vmatmul.mubr.msk.bf16.vlgmr.msra.gmra.mxu0 %vm268_vm1, %v627_v4 }
  0x12   : > { %595 = vmatpush3.bf16.msra.mxu0 %v628_v3  ;;  %596 = vmatprep.mubr.msk.bf16.mxu0 %vm655_vm0, %v654_v1 }
  0x13   : > { %591 = vmatmul.mubr.msk.bf16.vlgmr.msra.gmra.mxu1 %vm268_vm1, %v627_v4 }
  0x19   : > { %597 = vmatmul.mubr.msk.bf16.vlgmr.msra.gmra.mxu0 %vm268_vm1, %v627_v4 }
  0xd1   : > { %v306_v5 = vpop.f32.mrf.mxu0 }
  0xd2   : > { %v313_v17 = vrot.slane %v306_v5, 1 }
  0xd3   : > { %v359_v7 = vpop.f32.mrf.mxu1  ;;  %v586_v8 = vpop.f32.mrf.mxu0 }
  0xd5   : > { %v592_v9 = vpop.f32.mrf.mxu1  ;;  %v309_v10 = vpop.f32.mrf.mxu0 }
  0xd6   : > { %v314_v15 = vrot.slane %v309_v10, 1 }
  0xd7   : > { %v362_v12 = vpop.f32.mrf.mxu1  ;;  %v587_v13 = vpop.f32.mrf.mxu0 }
  0xd8   : > { %v318_v19 = vsel %vm317_vm2, %v313_v17, %v314_v15 }
  0xd9   : > { %v593_v14 = vpop.f32.mrf.mxu1  ;;  %v408_v16 = vpop.f32.mrf.mxu0  ;;  %v360_v23 = vadd.f32 %v359_v7, %v318_v19 }
  0xda   : > { %v415_v21 = vrot.slane %v408_v16, 2 }
  0xdb   : > { %v598_v18 = vpop.f32.mrf.mxu0 }
  0xdd   : > { %v411_v20 = vpop.f32.mrf.mxu0 }
  0xde   : > { %v416_v22 = vrot.slane %v411_v20, 2 }
  0xdf   : > { %v599_v24 = vpop.f32.mrf.mxu0 }
  0xe0   : > { %v418_v25 = vsel %vm417_vm3, %v415_v21, %v416_v22 }
  0xe1   : > { %v419_v27 = vadd.f32 %v418_v25, %v360_v23 }
  0xe3   : > { %v427_v28 = vadd.f32 %v572_v26, %v419_v27 }
  0xe5   : > { %v428_v29 = vpack.c.bf16 %v427_v28, %v427_v28 }
  0xe7   : > { %429 = vst [vmem:[%s248_s4] sm:$0xf] %v428_v29 }
  0xe8 PF: > { %s13_s14 = sadd.s32 1, %s652_s14   ;;  %s729_s12 = smov %s648_s13 }
  0xe9   : > { %p10_p5 = scmp.ge.s32.totalorder %s13_s14, 4   ;;  %s730_s13 = smov %s732_s15 }
  0xeb   :  { %12 = sbr.rel (!%p10_p5) target bundleno = 2 (0x2), region = 70 }

// kernel: unet_forward.82
= control target key start
LH: loop header
LB: loop body
LE: loop exit
PB: predicated region body
PF: predicated region fallthrough
CT: control target
= control target key end

     0   :  { %s470_s15 = smov 0   ;;  %s530_s0 = inlined_call_operand.vmem [shape: bf16[2,8,16], index: 0, kind: input, shape index: {}]   ;;  %s531_s1 = inlined_call_operand.vmem [shape: f32[1,16], index: 1, kind: input, shape index: {}]   ;;  %s532_s2 = inlined_call_operand.vmem [shape: f32[1,16], index: 2, kind: input, shape index: {}]   ;;  %s533_s3 = inlined_call_operand.vmem [shape: f32[2,2,16], index: 3, kind: input, shape index: {}]   ;;  %s534_s4 = inlined_call_operand.vmem [shape: bf16[2,8,16], index: 4, kind: output, shape index: {}]  }
   0x1 LB: > { %s404_s16 = sadd.s32 4294967295, %s440_s15   ;;  %p408_p0 = scmp.ge.s32.totalorder %s440_s15, 1  ;;  %s440_s15 = sphi %s470_s15, %s14_s15  }
   0x2   : > { %p170_p1 = scmp.lt.s32.totalorder %s440_s15, 3 }
   0x4   : > { %p171_p2 = pnand %p408_p0, %p170_p1 }
   0x5   : > { %p198_p3 = scmp.lt.s32.totalorder (!%p171_p2), %s404_s16, 1  ;;  %s442_s21 = smov (!%p171_p2), 124  }
   0x6   : > { %174 = sbr.rel (%p171_p2) target bundleno = 637 (0x27d), region = 36  ;;  %s443_s22 = smov (!%p171_p2), 116  }
   0x7   : > { %s444_s23 = smov (!%p171_p2), 120  }
   0xb   : > { %s536_s16 = smov (!%p198_p3, %s404_s16), 1  ;;  %vm212_vm0 = vcmask 130048   ;;  %vm220_vm1 = vcmask 31744   ;;  %v252_v17 = vlaneseq  ;;  %vm248_vm2 = vcmask 64512   ;;  %v412_v63 = vld [vmem:[%s531_s1] ss:$0 sm:$0xff] }
   0xc   : > { %s409_s17 = sshll.u32 %s536_s16, 2  ;;  %vm250_vm3 = vcmask 97280   ;;  %s410_s24 = sshll.u32 %s536_s16, 1  ;;  %vm337_vm4 = vcmask 125952  }
   0xd   : > { %s201_s20 = scalar_lea.vmem %s530_s0, %s409_s17  ;;  %v494_v19 = vshrl.u32 %v252_v17, 7  ;;  %s205_s27 = scalar_lea.vmem %s533_s3, %s410_s24 }
   0xe   : > { %v210_v0 = vld [vmem:[%s201_s20] sm:$0xf]  ;;  %s209_s8 = scalar_lea.vmem %s534_s4, %s409_s17 }
   0xf   : > { %v211_v1 = vunpack.c.l.bf16 %v210_v0  ;;  %v254_v26 = vsub.s32 0, %v494_v19  ;;  %v317_v59 = vld [vmem:[%s205_s27] sm:$0x3]  ;;  %v326_v0 = vsub.s32 1, %v494_v19 }
  0x10   : > { %v318_v61 = vadd.f32 1.0, %v317_v59 }
  0x11   : > { %v213_v2 = vsel %vm212_vm0, %v211_v1, 0.0 }
  0x12   : > { %v214_v3 = vrot.slane %v213_v2, 4 }
  0x14   : > { %v215_v4 = vadd.f32 %v214_v3, %v213_v2  ;;  %v413_v2 = vld [vmem:[%s532_s2] ss:$0 sm:$0xff]  ;;  %v322_v3 = vrot.slane %v318_v61, %v254_v26 }
  0x16   : > { %v216_v5 = vrot.slane %v215_v4, 2 }
  0x18   : > { %v217_v6 = vadd.f32 %v216_v5, %v215_v4  ;;  %v327_v5 = vrot.slane %v317_v59, %v326_v0 }
  0x1a   : > { %v218_v7 = vrot.slane %v217_v6, 1 }
  0x1c   : > { %v219_v8 = vadd.f32 %v218_v7, %v217_v6 }
  0x1e   : > { %226 = vrot.lane.b32.xlu0 %v219_v8, %s442_s21  ;;  %240 = vrot.lane.b32.xlu1 %v219_v8, %s443_s22  ;;  %v221_v9 = vsel %vm220_vm1, %v219_v8, 0.0 }
  0x22   : > { %233 = vrot.lane.b32.xlu0 %v219_v8, %s444_s23 }
  0x42   : > { %222 = vadd.xlane.f32.xlu1 %v221_v9 }
  0x90   : > { %v227_v10 = vpop.permute.xlu0 %226  ;;  %v241_v11 = vpop.permute.xlu1 %240 }
  0x91   : > { %v229_v12 = vsel %vm220_vm1, %v227_v10, 0.0  ;;  %v243_v13 = vsel %vm220_vm1, %v241_v11, 0.0 }
  0x92   : > { %230 = vadd.xlane.f32.xlu0 %v229_v12  ;;  %244 = vadd.xlane.f32.xlu1 %v243_v13 }
  0x94   : > { %v234_v14 = vpop.permute.xlu0 %233 }
  0x95   : > { %v236_v15 = vsel %vm220_vm1, %v234_v14, 0.0 }
  0x96   : > { %237 = vadd.xlane.f32.xlu0 %v236_v15 }
  0xcb   : > { %v223_v16 = vpop.xlane.xlu1 %222 }
  0xcc   : > { %v224_v22 = vmul.f32 0.03125, %v223_v16 }
 0x11b   : > { %v231_v18 = vpop.xlane.xlu0 %230  ;;  %v245_v20 = vpop.xlane.xlu1 %244 }
 0x11c   : > { %v232_v21 = vmul.f32 0.03125, %v231_v18  ;;  %v246_v24 = vmul.f32 0.03125, %v245_v20 }
 0x11e   : > { %v247_v27 = vsel %vm220_vm1, %v224_v22, %v232_v21 }
 0x11f   : > { %v238_v23 = vpop.xlane.xlu0 %237 }
 0x120   : > { %v239_v25 = vmul.f32 0.03125, %v238_v23 }
 0x122   : > { %v249_v28 = vsel %vm248_vm2, %v247_v27, %v239_v25 }
 0x123   : > { %v251_v29 = vsel %vm250_vm3, %v249_v28, %v246_v24 }
 0x124   : > { %v255_v30 = vrot.slane %v251_v29, %v254_v26 }
 0x126   : > { %v256_v31 = vsub.f32 %v211_v1, %v255_v30 }
 0x128   : > { %v257_v32 = vmul.f32 %v256_v31, %v256_v31 }
 0x12a   : > { %v258_v33 = vsel %vm212_vm0, %v257_v32, 0.0 }
 0x12b   : > { %v259_v34 = vrot.slane %v258_v33, 4 }
 0x12d   : > { %v260_v35 = vadd.f32 %v259_v34, %v258_v33 }
 0x12f   : > { %v261_v36 = vrot.slane %v260_v35, 2 }
 0x131   : > { %v262_v37 = vadd.f32 %v261_v36, %v260_v35 }
 0x133   : > { %v263_v38 = vrot.slane %v262_v37, 1 }
 0x135   : > { %v264_v39 = vadd.f32 %v263_v38, %v262_v37 }
 0x137   : > { %277 = vrot.lane.b32.xlu1 %v264_v39, %s444_s23  ;;  %270 = vrot.lane.b32.xlu0 %v264_v39, %s442_s21  ;;  %v265_v40 = vsel %vm220_vm1, %v264_v39, 0.0 }
 0x13b   : > { %284 = vrot.lane.b32.xlu1 %v264_v39, %s443_s22 }
 0x156   : > { %266 = vadd.xlane.f32.xlu0 %v265_v40 }
 0x1a9   : > { %v278_v41 = vpop.permute.xlu1 %277  ;;  %v271_v42 = vpop.permute.xlu0 %270 }
 0x1aa   : > { %v273_v43 = vsel %vm220_vm1, %v271_v42, 0.0  ;;  %v280_v44 = vsel %vm220_vm1, %v278_v41, 0.0 }
 0x1ab   : > { %274 = vadd.xlane.f32.xlu1 %v273_v43  ;;  %281 = vadd.xlane.f32.xlu0 %v280_v44 }
 0x1ad   : > { %v285_v45 = vpop.permute.xlu1 %284 }
 0x1ae   : > { %v287_v46 = vsel %vm220_vm1, %v285_v45, 0.0 }
 0x1af   : > { %288 = vadd.xlane.f32.xlu0 %v287_v46 }
 0x1df   : > { %v267_v47 = vpop.xlane.xlu0 %266 }
 0x1e0   : > { %v268_v50 = vmul.f32 0.03125, %v267_v47 }
 0x234   : > { %v275_v48 = vpop.xlane.xlu1 %274  ;;  %v282_v49 = vpop.xlane.xlu0 %281 }
 0x235   : > { %v276_v51 = vmul.f32 0.03125, %v275_v48  ;;  %v283_v52 = vmul.f32 0.03125, %v282_v49 }
 0x237   : > { %v291_v53 = vsel %vm220_vm1, %v268_v50, %v276_v51 }
 0x238   : > { %v289_v54 = vpop.xlane.xlu0 %288  ;;  %v292_v56 = vsel %vm248_vm2, %v291_v53, %v283_v52 }
 0x239   : > { %v290_v55 = vmul.f32 0.03125, %v289_v54 }
 0x23b   : > { %v293_v57 = vsel %vm250_vm3, %v292_v56, %v290_v55 }
 0x23c   : > { %v294_v58 = vadd.f32 1e-05, %v293_v57 }
 0x23e   : > { %428 = vrsqrt.f32 %v294_v58 }
 0x24b   : > { %v429_v60 = vpop.eup %428 }
 0x24c   : > { %v299_v62 = vrot.slane %v429_v60, %v254_v26 }
 0x24e   : > { %v300_v1 = vmul.f32 %v299_v62, %v256_v31 }
 0x250   : > { %v308_v4 = vmul.f32 %v412_v63, %v300_v1 }
 0x252   : > { %v316_v6 = vadd.f32 %v413_v2, %v308_v4 }
 0x254   : > { %v323_v7 = vmul.f32 %v322_v3, %v316_v6 }
 0x256   : > { %v328_v8 = vadd.f32 %v327_v5, %v323_v7 }
 0x258   : > { %v414_v9 = vmul.f32 -1.442695, %v328_v8 }
 0x25a   : > { %430 = vpow2.f32 %v414_v9 }
 0x267   : > { %v431_v10 = vpop.eup %430 }
 0x268   : > { %v332_v11 = vadd.f32 1.0, %v431_v10 }
 0x26a   : > { %432 = vrcp.f32 %v332_v11 }
 0x277   : > { %v433_v12 = vpop.eup %432 }
 0x278   : > { %v335_v13 = vmul.f32 %v433_v12, %v328_v8 }
 0x27a   : > { %v336_v14 = vpack.c.bf16 %v335_v13, %v335_v13 }
 0x27c   : > { %338 = vst.msk [vmem:[%s209_s8] sm:$0xf] %vm337_vm4, %v336_v14 }
 0x27d PF: > { %s14_s15 = sadd.s32 1, %s440_s15  }
 0x27e   : > { %p11_p4 = scmp.ge.s32.totalorder %s14_s15, 4  }
 0x280   :  { %13 = sbr.rel (!%p11_p4) target bundleno = 1 (0x1), region = 69 }

// kernel: unet_forward.79
= control target key start
LH: loop header
LB: loop body
LE: loop exit
PB: predicated region body
PF: predicated region fallthrough
CT: control target
= control target key end

     0   :  { %s1507_s21 = smov 0   ;;  %s1704_s0 = inlined_call_operand.vmem [shape: bf16[2,8,8], index: 0, kind: input, shape index: {}]   ;;  %s1705_s1 = inlined_call_operand.vmem [shape: f32[1,8], index: 1, kind: input, shape index: {}]   ;;  %s1706_s2 = inlined_call_operand.vmem [shape: bf16[8,384], index: 2, kind: input, shape index: {}]   ;;  %s1707_s3 = inlined_call_operand.vmem [shape: bf16[128,8], index: 3, kind: input, shape index: {}]   ;;  %s1708_s4 = inlined_call_operand.vmem [shape: f32[1,8], index: 4, kind: input, shape index: {}]   ;;  %s1709_s5 = inlined_call_operand.vmem [shape: f32[1,8], index: 5, kind: input, shape index: {}]   ;;  %s1710_s6 = inlined_call_operand.vmem [shape: bf16[2,8,8], index: 6, kind: output, shape index: {}]  }
   0x1 LB: > { %s1238_s22 = sadd.s32 4294967295, %s1464_s21   ;;  %p1242_p0 = scmp.ge.s32.totalorder %s1464_s21, 1  ;;  %s1464_s21 = sphi %s1507_s21, %s16_s21  }
   0x2   : > { %p211_p1 = scmp.lt.s32.totalorder %s1464_s21, 3 }
   0x4   : > { %p212_p2 = pnand %p1242_p0, %p211_p1 }
   0x5   : > { %p239_p3 = scmp.lt.s32.totalorder (!%p212_p2), %s1238_s22, 1  ;;  %s1469_s9 = smov (!%p212_p2), 64  }
   0x6   : > { %215 = sbr.rel (%p212_p2) target bundleno = 1985 (0x7c1), region = 44  ;;  %s1470_s10 = smov (!%p212_p2), 96  }
   0x7   : > { %s1471_s11 = smov (!%p212_p2), 32  }
   0xb   : > { %s1712_s22 = smov (!%p239_p3, %s1238_s22), 1  ;;  %vm250_vm0 = vcmask 64512   ;;  %v274_v8 = vld [vmem:[%s1706_s2] sm:$0xff]  ;;  %vm287_vm1 = vcmask 1043456   ;;  %v1466_v11 = vmov 0   ;;  %v1467_v13 = vmov 0.0  }
   0xc   : > { %s1243_s23 = sshll.u32 %s1712_s22, 2  ;;  %v1247_v9 = vcombine.high %v274_v8, %v274_v8  ;;  %v1246_v10 = vcombine.low %v274_v8, %v274_v8  ;;  %329 = vmatprep.mubr.bf16.mxu1 %v1466_v11  ;;  %v1245_v18 = vld [vmem:[%s1705_s1] ss:$0 sm:$0xff]  ;;  %v1413_v20 = vld [vmem:[%s1706_s2 + $0x8] ss:$0 sps:$4 sm:$0xff]   ;;  %vm1468_vm2 = vmmov 0  }
   0xd   : > { %s242_s26 = scalar_lea.vmem %s1704_s0, %s1243_s23  ;;  %v295_v23 = vsel %vm287_vm1, %v1413_v20, 0  ;;  %vm532_vm3 = vcmask 523520   ;;  %vm699_vm4 = vcmask 785920   ;;  %vm865_vm5 = vcmask 1048320   ;;  %s246_s13 = scalar_lea.vmem %s1710_s6, %s1243_s23 }
   0xe   : > { %v248_v0 = vld [vmem:[%s242_s26] sm:$0xf]  ;;  %1249 = vmatprep.subr.msk.bf16.mxu1 %vm287_vm1, %v1247_v9  ;;  %v289_v12 = vsel %vm287_vm1, %v1246_v10, 0  ;;  %vm378_vm6 = vcmask 261120   ;;  %vm1044_vm7 = vcmask 523264   ;;  %vm1046_vm8 = vcmask 785408  }
   0xf   : > { %v1523_v1 = vunpack.c.l.bf16 %v248_v0  ;;  %312 = vmatpush1.bf16.msra.mxu1 %v289_v12  ;;  %vm1183_vm9 = vcmask 60416  }
  0x10   : > { %1311 = vmatprep.subr.bf16.mxu1 %v1467_v13 }
  0x11   : > { %v251_v2 = vsel %vm250_vm0, %v1523_v1, 0.0 }
  0x12   : > { %252 = vadd.xlane.f32.xlu0 %v251_v2 }
  0x9b   : > { %v253_v3 = vpop.xlane.xlu0 %252 }
  0x9c   : > { %v255_v4 = vmul.f32 0.125, %v253_v3 }
  0x9e   : > { %v256_v5 = vsub.f32 %v1523_v1, %v255_v4 }
  0xa0   : > { %v257_v6 = vmul.f32 %v256_v5, %v256_v5 }
  0xa2   : > { %v258_v7 = vsel %vm250_vm0, %v257_v6, 0.0 }
  0xa3   : > { %259 = vadd.xlane.f32.xlu0 %v258_v7 }
 0x12c   : > { %v260_v14 = vpop.xlane.xlu0 %259 }
 0x12d   : > { %v261_v15 = vmul.f32 0.125, %v260_v14 }
 0x12f   : > { %v262_v16 = vadd.f32 1e-05, %v261_v15 }
 0x131   : > { %1422 = vrsqrt.f32 %v262_v16 }
 0x13e   : > { %v1423_v17 = vpop.eup %1422 }
 0x13f   : > { %v264_v19 = vmul.f32 %v1423_v17, %v256_v5 }
 0x141   : > { %v272_v21 = vmul.f32 %v1245_v18, %v264_v19 }
 0x143   : > { %v273_v22 = vpack.c.bf16 %v272_v21, %v272_v21 }
 0x145   : > { %1250 = vmatmul.mubr.msk.bf16.vlgmr.msra.gmra.mxu1 %vm250_vm0, %v273_v22 }
 0x146   : > { %1312 = vmatpush3.bf16.msra.mxu1 %v295_v23  ;;  %1313 = vmatprep.mubr.msk.bf16.mxu1 %vm1468_vm2, %v1467_v13 }
 0x14d   : > { %1314 = vmatmul.mubr.msk.bf16.vlgmr.msra.gmra.mxu1 %vm250_vm0, %v273_v22 }
 0x205   : > { %v1546_v24 = vpop.f32.mrf.mxu1 }
 0x206   : > { %v533_v25 = vsel %vm532_vm3, %v1546_v24, -inf }
 0x207   : > { %534 = vmax.xlane.f32.xlu1 %v533_v25  ;;  %v1550_v26 = vpop.f32.mrf.mxu1 }
 0x208   : > { %v549_v27 = vsel %vm532_vm3, %v1550_v26, -inf  ;;  %v716_v28 = vsel %vm699_vm4, %v1550_v26, -inf  ;;  %v882_v29 = vsel %vm865_vm5, %v1550_v26, -inf  ;;  %v391_v25 = vsel %vm378_vm6, %v1550_v26, -inf }
 0x209   : > { %v550_v30 = vrot.slane %v549_v27, 4  ;;  %v717_v31 = vrot.slane %v716_v28, 4  ;;  %v883_v32 = vrot.slane %v882_v29, 4  ;;  %v335_v33 = vpop.f32.mrf.mxu1 }
 0x20b   : > { %v551_v34 = vmax.f32 %v549_v27, %v550_v30  ;;  %v718_v35 = vmax.f32 %v716_v28, %v717_v31  ;;  %v884_v36 = vmax.f32 %v882_v29, %v883_v32  ;;  %v336_v37 = vpop.f32.mrf.mxu1  ;;  %v392_v27 = vrot.slane %v391_v25, 4 }
 0x20d   : > { %v552_v38 = vrot.slane %v551_v34, 2  ;;  %v719_v39 = vrot.slane %v718_v35, 2  ;;  %v885_v40 = vrot.slane %v884_v36, 2  ;;  %v372_v41 = vpop.f32.mrf.mxu1  ;;  %v393_v28 = vmax.f32 %v391_v25, %v392_v27 }
 0x20e   : > { %v1558_v42 = vpack.c.bf16 %v372_v41, %v372_v41 }
 0x20f   : > { %v553_v43 = vmax.f32 %v551_v34, %v552_v38  ;;  %v720_v44 = vmax.f32 %v718_v35, %v719_v39  ;;  %v886_v45 = vmax.f32 %v884_v36, %v885_v40  ;;  %v1315_v46 = vpop.f32.mrf.mxu1  ;;  %v394_v34 = vrot.slane %v393_v28, 2 }
 0x210   : > { %1393 = vmatprep.subr.msk.bf16.mxu1 %vm287_vm1, %v1558_v42  ;;  %v435_v47 = vsel %vm287_vm1, %v1558_v42, 0 }
 0x211   : > { %v375_v48 = vpop.f32.mrf.mxu1  ;;  %1318 = vmatpush3.bf16.msra.mxu1 %v435_v47  ;;  %v721_v49 = vrot.slane %v720_v44, 1  ;;  %v554_v50 = vrot.slane %v553_v43, 1  ;;  %v887_v51 = vrot.slane %v886_v45, 1  ;;  %v395_v38 = vmax.f32 %v393_v28, %v394_v34 }
 0x212   : > { %1323 = vmatprep.subr.bf16.mxu1 %v1467_v13  ;;  %v866_v48 = vsel %vm865_vm5, %v1546_v24, -inf }
 0x213   : > { %v1316_v52 = vpop.f32.mrf.mxu1  ;;  %v722_v53 = vmax.f32 %v720_v44, %v721_v49  ;;  %v555_v54 = vmax.f32 %v553_v43, %v554_v50  ;;  %v888_v55 = vmax.f32 %v886_v45, %v887_v51  ;;  %v396_v40 = vrot.slane %v395_v38, 1 }
 0x214   : > { %v700_v45 = vsel %vm699_vm4, %v1546_v24, -inf }
 0x215   : > { %v723_v56 = vsub.f32 %v1550_v26, %v722_v53  ;;  %v556_v57 = vsub.f32 %v1550_v26, %v555_v54  ;;  %v889_v58 = vsub.f32 %v1550_v26, %v888_v55  ;;  %v397_v41 = vmax.f32 %v395_v38, %v396_v40 }
 0x217   : > { %v724_v59 = vmul.f32 1.442695, %v723_v56  ;;  %v557_v60 = vmul.f32 1.442695, %v556_v57  ;;  %v890_v61 = vmul.f32 1.442695, %v889_v58  ;;  %v398_v43 = vsub.f32 %v1550_v26, %v397_v41 }
 0x219   : > { %1424 = vpow2.f32 %v724_v59  ;;  %v399_v44 = vmul.f32 1.442695, %v398_v43 }
 0x21a   : > { %1426 = vpow2.f32 %v557_v60 }
 0x21b   : > { %1428 = vpow2.f32 %v890_v61 }
 0x226   : > { %v1425_v62 = vpop.eup %1424 }
 0x227   : > { %v1427_v63 = vpop.eup %1426  ;;  %v726_v0 = vsel %vm699_vm4, %v1425_v62, 0.0 }
 0x228   : > { %v1429_v2 = vpop.eup %1428  ;;  %v727_v3 = vrot.slane %v726_v0, 4  ;;  %v559_v4 = vsel %vm532_vm3, %v1427_v63, 0.0 }
 0x229   : > { %v560_v5 = vrot.slane %v559_v4, 4  ;;  %v892_v6 = vsel %vm865_vm5, %v1429_v2, 0.0 }
 0x22a   : > { %v728_v7 = vadd.f32 %v727_v3, %v726_v0  ;;  %v893_v8 = vrot.slane %v892_v6, 4 }
 0x22b   : > { %v561_v9 = vadd.f32 %v560_v5, %v559_v4 }
 0x22c   : > { %v729_v10 = vrot.slane %v728_v7, 2  ;;  %v894_v11 = vadd.f32 %v893_v8, %v892_v6 }
 0x22d   : > { %v562_v12 = vrot.slane %v561_v9, 2 }
 0x22e   : > { %v730_v14 = vadd.f32 %v729_v10, %v728_v7  ;;  %v895_v15 = vrot.slane %v894_v11, 2 }
 0x22f   : > { %v563_v16 = vadd.f32 %v562_v12, %v561_v9 }
 0x230   : > { %v731_v17 = vrot.slane %v730_v14, 1  ;;  %v896_v18 = vadd.f32 %v895_v15, %v894_v11 }
 0x231   : > { %v564_v19 = vrot.slane %v563_v16, 1 }
 0x232   : > { %v732_v20 = vadd.f32 %v731_v17, %v730_v14  ;;  %v897_v21 = vrot.slane %v896_v18, 1 }
 0x233   : > { %v565_v22 = vadd.f32 %v564_v19, %v563_v16 }
 0x234   : > { %1430 = vrcp.f32 %v732_v20  ;;  %v898_v23 = vadd.f32 %v897_v21, %v896_v18 }
 0x235   : > { %1432 = vrcp.f32 %v565_v22 }
 0x236   : > { %1434 = vrcp.f32 %v898_v23 }
 0x237   : > { %1436 = vpow2.f32 %v399_v44 }
 0x241   : > { %v1431_v29 = vpop.eup %1430 }
 0x242   : > { %v1433_v30 = vpop.eup %1432  ;;  %v734_v31 = vmul.f32 %v1431_v29, %v1425_v62 }
 0x243   : > { %v1435_v32 = vpop.eup %1434  ;;  %v567_v33 = vmul.f32 %v1433_v30, %v1427_v63 }
 0x244   : > { %v735_v35 = vpack.c.bf16 %v734_v31, %v734_v31  ;;  %v900_v37 = vmul.f32 %v1435_v32, %v1429_v2  ;;  %v1437_v46 = vpop.eup %1436 }
 0x245   : > { %v568_v36 = vpack.c.bf16 %v567_v33, %v567_v33  ;;  %v401_v47 = vsel %vm378_vm6, %v1437_v46, 0.0 }
 0x246   : > { %737 = vrot.lane.b32.xlu0 %v735_v35, %s1469_s9  ;;  %v901_v39 = vpack.c.bf16 %v900_v37, %v900_v37  ;;  %v402_v49 = vrot.slane %v401_v47, 4 }
 0x247   : > { %570 = vrot.lane.b32.xlu1 %v568_v36, %s1470_s10 }
 0x248   : > { %v403_v50 = vadd.f32 %v402_v49, %v401_v47 }
 0x24a   : > { %v404_v51 = vrot.slane %v403_v50, 2 }
 0x24b   : > { %903 = vrot.lane.b32.xlu1 %v901_v39, %s1471_s11 }
 0x24c   : > { %v405_v26 = vadd.f32 %v404_v51, %v403_v50 }
 0x24e   : > { %v406_v52 = vrot.slane %v405_v26, 1 }
 0x250   : > { %v407_v53 = vadd.f32 %v406_v52, %v405_v26 }
 0x252   : > { %1438 = vrcp.f32 %v407_v53 }
 0x25f   : > { %v1439_v54 = vpop.eup %1438 }
 0x260   : > { %v409_v55 = vmul.f32 %v1439_v54, %v1437_v46 }
 0x262   : > { %v410_v56 = vpack.c.bf16 %v409_v55, %v409_v55 }
 0x265   : > { %701 = vmax.xlane.f32.xlu0 %v700_v45 }
 0x26f   : > { %867 = vmax.xlane.f32.xlu1 %v866_v48 }
 0x27b   : > { %590 = vrot.lane.b32.xlu0 %v1558_v42, %s1470_s10 }
 0x27f   : > { %756 = vrot.lane.b32.xlu0 %v1558_v42, %s1469_s9 }
 0x280   : > { %922 = vrot.lane.b32.xlu1 %v1558_v42, %s1471_s11  ;;  %v379_v42 = vsel %vm378_vm6, %v1546_v24, -inf }
 0x290   : > { %v535_v57 = vpop.xlane.xlu1 %534 }
 0x291   : > { %v536_v58 = vsub.f32 %v1546_v24, %v535_v57 }
 0x293   : > { %v537_v60 = vmul.f32 1.442695, %v536_v58 }
 0x295   : > { %1440 = vpow2.f32 %v537_v60 }
 0x29d   : > { %412 = vxpose.xlu0.c.b16.start.end [1/1] (short) (narrow) %v410_v56, 32 }
 0x2a2   : > { %v1589_v63 = vpop.eup %1440 }
 0x2b8   : > { %v738_v59 = vpop.permute.xlu0 %737 }
 0x2b9   : > { %v571_v61 = vpop.permute.xlu1 %570  ;;  %740 = vxpose.xlu0.c.b16.start.end [1/1] (short) (narrow) %v738_v59, 32 }
 0x2ba   : > { %573 = vxpose.xlu1.c.b16.start.end [1/1] (short) (narrow) %v571_v61, 32 }
 0x2bd   : > { %v904_v62 = vpop.permute.xlu1 %903 }
 0x2be   : > { %906 = vxpose.xlu0.c.b16.start.end [1/1] (short) (narrow) %v904_v62, 32 }
 0x2cb   : > { %380 = vmax.xlane.f32.xlu1 %v379_v42  ;;  %540 = vrot.lane.b32.xlu0 %v1589_v63, %s1470_s10 }
 0x2ee   : > { %v702_v0 = vpop.xlane.xlu0 %701 }
 0x2ef   : > { %v703_v2 = vsub.f32 %v1546_v24, %v702_v0 }
 0x2f1   : > { %v704_v3 = vmul.f32 1.442695, %v703_v2 }
 0x2f2   : > { %v591_v4 = vpop.permute.xlu0 %590 }
 0x2f3   : > { %1442 = vpow2.f32 %v704_v3  ;;  %1394 = vmatprep.subr.msk.bf16.mxu0 %vm287_vm1, %v591_v4  ;;  %v599_v5 = vsel %vm287_vm1, %v591_v4, 0 }
 0x2f4   : > { %1332 = vmatpush3.bf16.msra.mxu0 %v599_v5 }
 0x2f6   : > { %v757_v6 = vpop.permute.xlu0 %756 }
 0x2f7   : > { %1395 = vmatprep.subr.msk.bf16.mxu0 %vm287_vm1, %v757_v6  ;;  %v765_v19 = vsel %vm287_vm1, %v757_v6, 0 }
 0x2f8   : > { %v868_v7 = vpop.xlane.xlu1 %867 }
 0x2f9   : > { %v869_v8 = vsub.f32 %v1546_v24, %v868_v7 }
 0x2fb   : > { %v870_v9 = vmul.f32 1.442695, %v869_v8 }
 0x2fc   : > { %v923_v15 = vpop.permute.xlu1 %922 }
 0x2fd   : > { %1444 = vpow2.f32 %v870_v9  ;;  %v931_v21 = vsel %vm287_vm1, %v923_v15, 0 }
 0x2ff   : > { %v420_v10 = vpop.trf.xlu0 }
 0x300   : > { %v1600_v11 = vpop.eup %1442  ;;  %1319 = vmatprep.mubr.msk.bf16.mxu1 %vm250_vm0, %v420_v10 }
 0x301   : > { %707 = vrot.lane.b32.xlu0 %v1600_v11, %s1469_s9 }
 0x303   : > { %v421_v12 = vpop.trf.xlu0 }
 0x304   : > { %1320 = vmatmul.mubr.msk.bf16.vlgmr.msra.gmra.mxu1 %vm250_vm0, %v421_v12 }
 0x305   : > { %1327 = vmatprep.mubr.msk.bf16.mxu1 %vm1468_vm2, %v1467_v13 }
 0x30a   : > { %v1608_v14 = vpop.eup %1444 }
 0x30b   : > { %873 = vrot.lane.b32.xlu0 %v1608_v14, %s1471_s11 }
 0x31b   : > { %v748_v17 = vpop.trf.xlu0 }
 0x31c   : > { %v581_v16 = vpop.trf.xlu1 }
 0x31d   : > { %1333 = vmatprep.mubr.msk.bf16.mxu0 %vm250_vm0, %v581_v16 }
 0x31f   : > { %v749_v20 = vpop.trf.xlu0 }
 0x320   : > { %v582_v18 = vpop.trf.xlu1 }
 0x321   : > { %1334 = vmatmul.mubr.msk.bf16.vlgmr.msra.gmra.mxu0 %vm250_vm0, %v582_v18 }
 0x322   : > { %1346 = vmatpush3.bf16.msra.mxu0 %v765_v19  ;;  %1347 = vmatprep.mubr.msk.bf16.mxu0 %vm250_vm0, %v748_v17 }
 0x323   : > { %1396 = vmatprep.subr.msk.bf16.mxu0 %vm287_vm1, %v923_v15  ;;  %v914_v22 = vpop.trf.xlu0 }
 0x327   : > { %v915_v23 = vpop.trf.xlu0 }
 0x329   : > { %1348 = vmatmul.mubr.msk.bf16.vlgmr.msra.gmra.mxu0 %vm250_vm0, %v749_v20 }
 0x32a   : > { %1360 = vmatpush3.bf16.msra.mxu0 %v931_v21  ;;  %1361 = vmatprep.mubr.msk.bf16.mxu0 %vm250_vm0, %v914_v22 }
 0x32b   : > { %1373 = vmatprep.subr.bf16.mxu0 %v1467_v13 }
 0x331   : > { %1362 = vmatmul.mubr.msk.bf16.vlgmr.msra.gmra.mxu0 %vm250_vm0, %v915_v23 }
 0x332   : > { %1389 = vmatprep.mubr.msk.bf16.mxu0 %vm1468_vm2, %v1467_v13 }
 0x33d   : > { %v541_v25 = vpop.permute.xlu0 %540 }
 0x33e   : > { %v543_v27 = vsel %vm378_vm6, %v541_v25, 0.0  ;;  %v1414_v25 = vld [vmem:[%s1707_s3 + $0x38] sm:$0xff]  }
 0x33f   : > { %544 = vadd.xlane.f32.xlu0 %v543_v27  ;;  %1374 = vmatpush3.bf16.msra.mxu0 %v1414_v25  ;;  %v1415_v27 = vld [vmem:[%s1707_s3 + $0x30] sm:$0xff]  }
 0x340   : > { %1375 = vmatprep.subr.bf16.mxu0 %v1467_v13 }
 0x343   : > { %1376 = vmatpush3.bf16.msra.mxu0 %v1415_v27 }
 0x344   : > { %1377 = vmatprep.subr.bf16.mxu0 %v1467_v13 }
 0x354   : > { %v381_v28 = vpop.xlane.xlu1 %380 }
 0x355   : > { %v382_v29 = vsub.f32 %v1546_v24, %v381_v28  ;;  %v1416_v28 = vld [vmem:[%s1707_s3 + $0x28] sm:$0xff]  }
 0x356   : > { %1378 = vmatpush3.bf16.msra.mxu0 %v1416_v28 }
 0x357   : > { %v383_v30 = vmul.f32 1.442695, %v382_v29  ;;  %v1417_v29 = vld [vmem:[%s1707_s3 + $0x20] sm:$0xff]   ;;  %1379 = vmatprep.subr.bf16.mxu0 %v1467_v13 }
 0x359   : > { %1446 = vpow2.f32 %v383_v30 }
 0x35a   : > { %1380 = vmatpush3.bf16.msra.mxu0 %v1417_v29 }
 0x35b   : > { %1381 = vmatprep.subr.bf16.mxu0 %v1467_v13 }
 0x366   : > { %v1447_v35 = vpop.eup %1446 }
 0x367   : > { %v385_v36 = vsel %vm378_vm6, %v1447_v35, 0.0 }
 0x373   : > { %v708_v31 = vpop.permute.xlu0 %707 }
 0x374   : > { %v710_v32 = vsel %vm378_vm6, %v708_v31, 0.0 }
 0x375   : > { %711 = vadd.xlane.f32.xlu1 %v710_v32  ;;  %v1418_v32 = vld [vmem:[%s1707_s3 + $0x18] sm:$0xff]  }
 0x376   : > { %1382 = vmatpush3.bf16.msra.mxu0 %v1418_v32 }
 0x377   : > { %1383 = vmatprep.subr.bf16.mxu0 %v1467_v13 }
 0x37d   : > { %v874_v33 = vpop.permute.xlu0 %873 }
 0x37e   : > { %v876_v34 = vsel %vm378_vm6, %v874_v33, 0.0 }
 0x37f   : > { %877 = vadd.xlane.f32.xlu1 %v876_v34 }
 0x383   : > { %386 = vadd.xlane.f32.xlu1 %v385_v36  ;;  %v1420_v36 = vld [vmem:[%s1707_s3 + $0x8] sm:$0xff]  }
 0x3c4   : > { %v1321_v37 = vpop.f32.mrf.mxu1 }
 0x3c6   : > { %v471_v38 = vpop.f32.mrf.mxu1 }
 0x3c8   : > { %v545_v39 = vpop.xlane.xlu0 %544  ;;  %v1322_v40 = vpop.f32.mrf.mxu1 }
 0x3c9   : > { %1448 = vrcp.f32 %v545_v39  ;;  %v488_v24 = vpack.c.bf16 %v1322_v40, %v1321_v37  ;;  %v1421_v37 = vld [vmem:[%s1707_s3] sm:$0xff]  }
 0x3ca   : > { %v474_v41 = vpop.f32.mrf.mxu1 }
 0x3cb   : > { %1324 = vmatpush3.bf16.msra.mxu1 %v488_v24  ;;  %v487_v43 = vpack.c.bf16 %v474_v41, %v471_v38 }
 0x3cc   : > { %1325 = vmatprep.subr.bf16.mxu1 %v1467_v13 }
 0x3cf   : > { %1326 = vmatpush3.bf16.msra.mxu1 %v487_v43 }
 0x3d0   : > { %1337 = vmatprep.subr.bf16.mxu1 %v1467_v13 }
 0x3d6   : > { %v1449_v44 = vpop.eup %1448 }
 0x3d7   : > { %v547_v45 = vmul.f32 %v1449_v44, %v1589_v63 }
 0x3d9   : > { %v548_v46 = vmul.f32 0.17677669, %v547_v45 }
 0x3db   : > { %v650_v47 = vpack.c.bf16 %v548_v46, %v548_v46 }
 0x3dd   : > { %654 = vrot.lane.b32.xlu1 %v650_v47, %s1470_s10 }
 0x3e1   : > { %v1335_v54 = vpop.f32.mrf.mxu0 }
 0x3e3   : > { %v635_v57 = vpop.f32.mrf.mxu0 }
 0x3e5   : > { %v1336_v62 = vpop.f32.mrf.mxu0 }
 0x3e6   : > { %v652_v42 = vpack.c.bf16 %v1336_v62, %v1335_v54 }
 0x3e7   : > { %v638_v2 = vpop.f32.mrf.mxu0 }
 0x3e8   : > { %v651_v3 = vpack.c.bf16 %v638_v2, %v635_v57 }
 0x3e9   : > { %v1349_v4 = vpop.f32.mrf.mxu0 }
 0x3eb   : > { %v801_v5 = vpop.f32.mrf.mxu0 }
 0x3ed   : > { %v1350_v6 = vpop.f32.mrf.mxu0 }
 0x3ee   : > { %v818_v7 = vpack.c.bf16 %v1350_v6, %v1349_v4 }
 0x3ef   : > { %v804_v9 = vpop.f32.mrf.mxu0 }
 0x3f0   : > { %v817_v10 = vpack.c.bf16 %v804_v9, %v801_v5 }
 0x3fe   : > { %v712_v48 = vpop.xlane.xlu1 %711 }
 0x3ff   : > { %1450 = vrcp.f32 %v712_v48 }
 0x408   : > { %v878_v49 = vpop.xlane.xlu1 %877 }
 0x409   : > { %1452 = vrcp.f32 %v878_v49 }
 0x40c   : > { %v1451_v50 = vpop.eup %1450  ;;  %v387_v51 = vpop.xlane.xlu1 %386 }
 0x40d   : > { %1454 = vrcp.f32 %v387_v51  ;;  %v714_v26 = vmul.f32 %v1451_v50, %v1600_v11  ;;  %v1363_v11 = vpop.f32.mrf.mxu0 }
 0x40f   : > { %v715_v52 = vmul.f32 0.17677669, %v714_v26  ;;  %v967_v12 = vpop.f32.mrf.mxu0  ;;  %v1264_v26 = vld [vmem:[%s1708_s4] ss:$0 sm:$0xff] }
 0x411   : > { %v816_v53 = vpack.c.bf16 %v715_v52, %v715_v52 }
 0x413   : > { %820 = vrot.lane.b32.xlu0 %v816_v53, %s1469_s9 }
 0x416   : > { %v1453_v55 = vpop.eup %1452 }
 0x417   : > { %v880_v56 = vmul.f32 %v1453_v55, %v1608_v14  ;;  %v1364_v14 = vpop.f32.mrf.mxu0 }
 0x418   : > { %v984_v15 = vpack.c.bf16 %v1364_v14, %v1363_v11 }
 0x419   : > { %v881_v58 = vmul.f32 0.17677669, %v880_v56  ;;  %v970_v17 = vpop.f32.mrf.mxu0 }
 0x41a   : > { %v1455_v59 = vpop.eup %1454  ;;  %v983_v18 = vpack.c.bf16 %v970_v17, %v967_v12 }
 0x41b   : > { %v982_v60 = vpack.c.bf16 %v881_v58, %v881_v58  ;;  %v389_v61 = vmul.f32 %v1455_v59, %v1447_v35  ;;  %v1419_v35 = vld [vmem:[%s1707_s3 + $0x10] sm:$0xff]  }
 0x41c   : > { %1384 = vmatpush3.bf16.msra.mxu0 %v1419_v35 }
 0x41d   : > { %986 = vrot.lane.b32.xlu1 %v982_v60, %s1471_s11  ;;  %v390_v63 = vmul.f32 0.17677669, %v389_v61  ;;  %1385 = vmatprep.subr.bf16.mxu0 %v1467_v13 }
 0x41f   : > { %v486_v0 = vpack.c.bf16 %v390_v63, %v390_v63 }
 0x420   : > { %1386 = vmatpush3.bf16.msra.mxu0 %v1420_v36 }
 0x421   : > { %1328 = vmatmul.mubr.msk.bf16.vlgmr.msra.gmra.mxu1 %vm378_vm6, %v486_v0  ;;  %1387 = vmatprep.subr.bf16.mxu0 %v1467_v13 }
 0x422   : > { %1338 = vmatpush3.bf16.msra.mxu1 %v652_v42  ;;  %1341 = vmatprep.mubr.msk.bf16.mxu1 %vm1468_vm2, %v1467_v13 }
 0x423   : > { %1339 = vmatprep.subr.bf16.mxu1 %v1467_v13 }
 0x424   : > { %1388 = vmatpush3.bf16.msra.mxu0 %v1421_v37 }
 0x426   : > { %1340 = vmatpush3.bf16.msra.mxu1 %v651_v3  ;;  %v1273_v3 = vld [vmem:[%s1709_s5] ss:$0 sm:$0xff] }
 0x427   : > { %1351 = vmatprep.subr.bf16.mxu1 %v1467_v13 }
 0x44f   : > { %v655_v8 = vpop.permute.xlu1 %654 }
 0x450   : > { %1342 = vmatmul.mubr.msk.bf16.vlgmr.msra.gmra.mxu1 %vm378_vm6, %v655_v8 }
 0x451   : > { %1352 = vmatpush3.bf16.msra.mxu1 %v818_v7  ;;  %1355 = vmatprep.mubr.msk.bf16.mxu1 %vm1468_vm2, %v1467_v13 }
 0x452   : > { %1353 = vmatprep.subr.bf16.mxu1 %v1467_v13 }
 0x455   : > { %1354 = vmatpush3.bf16.msra.mxu1 %v817_v10 }
 0x456   : > { %1365 = vmatprep.subr.bf16.mxu1 %v1467_v13 }
 0x485   : > { %v821_v16 = vpop.permute.xlu0 %820 }
 0x486   : > { %1356 = vmatmul.mubr.msk.bf16.vlgmr.msra.gmra.mxu1 %vm378_vm6, %v821_v16 }
 0x487   : > { %1366 = vmatpush3.bf16.msra.mxu1 %v984_v15  ;;  %1369 = vmatprep.mubr.msk.bf16.mxu1 %vm1468_vm2, %v1467_v13 }
 0x488   : > { %1367 = vmatprep.subr.bf16.mxu1 %v1467_v13 }
 0x48b   : > { %1368 = vmatpush3.bf16.msra.mxu1 %v983_v18 }
 0x48f   : > { %v987_v19 = vpop.permute.xlu1 %986 }
 0x490   : > { %1370 = vmatmul.mubr.msk.bf16.vlgmr.msra.gmra.mxu1 %vm378_vm6, %v987_v19 }
 0x4e1   : > { %v526_v20 = vpop.f32.mrf.mxu1 }
 0x4e3   : > { %v1329_v21 = vpop.f32.mrf.mxu1 }
 0x4e5   : > { %v529_v22 = vpop.f32.mrf.mxu1 }
 0x4e7   : > { %v1330_v23 = vpop.f32.mrf.mxu1 }
 0x510   : > { %v693_v30 = vpop.f32.mrf.mxu1 }
 0x511   : > { %1032 = vrot.lane.b32.xlu1 %v693_v30, %s1471_s11 }
 0x512   : > { %v1343_v31 = vpop.f32.mrf.mxu1 }
 0x514   : > { %v696_v33 = vpop.f32.mrf.mxu1 }
 0x516   : > { %v1344_v34 = vpop.f32.mrf.mxu1 }
 0x546   : > { %v859_v38 = vpop.f32.mrf.mxu1 }
 0x547   : > { %1036 = vrot.lane.b32.xlu1 %v859_v38, %s1469_s9 }
 0x548   : > { %v1357_v39 = vpop.f32.mrf.mxu1 }
 0x54a   : > { %v862_v40 = vpop.f32.mrf.mxu1 }
 0x54c   : > { %v1358_v24 = vpop.f32.mrf.mxu1 }
 0x550   : > { %v1025_v41 = vpop.f32.mrf.mxu1 }
 0x551   : > { %1040 = vrot.lane.b32.xlu0 %v1025_v41, %s1470_s10 }
 0x552   : > { %v1371_v43 = vpop.f32.mrf.mxu1 }
 0x554   : > { %v1028_v44 = vpop.f32.mrf.mxu1 }
 0x556   : > { %v1372_v45 = vpop.f32.mrf.mxu1 }
 0x583   : > { %v1033_v46 = vpop.permute.xlu1 %1032 }
 0x584   : > { %v1043_v47 = vsel %vm378_vm6, %v526_v20, %v1033_v46 }
 0x5b9   : > { %v1037_v13 = vpop.permute.xlu1 %1036 }
 0x5ba   : > { %v1045_v48 = vsel %vm1044_vm7, %v1043_v47, %v1037_v13 }
 0x5c3   : > { %v1041_v49 = vpop.permute.xlu0 %1040 }
 0x5c4   : > { %v1047_v50 = vsel %vm1046_vm8, %v1045_v48, %v1041_v49 }
 0x5c5   : > { %v1048_v51 = vpack.c.bf16 %v1047_v50, %v1047_v50 }
 0x5c7   : > { %1390 = vmatmul.mubr.bf16.vlgmr.msra.gmra.mxu0 %v1048_v51 }
 0x687   : > { %v1154_v52 = vpop.f32.mrf.mxu0 }
 0x688   : > { %v1155_v53 = vadd.f32 %v1264_v26, %v1154_v52 }
 0x689   : > { %v1391_v54 = vpop.f32.mrf.mxu0 }
 0x68a   : > { %v1160_v55 = vsel %vm250_vm0, %v1155_v53, 0.0 }
 0x68b   : > { %1161 = vadd.xlane.f32.xlu1 %v1160_v55  ;;  %v1157_v56 = vpop.f32.mrf.mxu0 }
 0x68d   : > { %v1392_v57 = vpop.f32.mrf.mxu0 }
 0x714   : > { %v1162_v58 = vpop.xlane.xlu1 %1161 }
 0x715   : > { %v1163_v59 = vmul.f32 0.125, %v1162_v58 }
 0x717   : > { %v1164_v60 = vsub.f32 %v1155_v53, %v1163_v59 }
 0x719   : > { %v1165_v61 = vmul.f32 %v1164_v60, %v1164_v60 }
 0x71b   : > { %v1166_v62 = vsel %vm250_vm0, %v1165_v61, 0.0 }
 0x71c   : > { %1167 = vadd.xlane.f32.xlu0 %v1166_v62 }
 0x7a5   : > { %v1168_v63 = vpop.xlane.xlu0 %1167 }
 0x7a6   : > { %v1169_v42 = vmul.f32 0.125, %v1168_v63 }
 0x7a8   : > { %v1170_v0 = vadd.f32 1e-05, %v1169_v42 }
 0x7aa   : > { %1456 = vrsqrt.f32 %v1170_v0 }
 0x7b7   : > { %v1457_v2 = vpop.eup %1456 }
 0x7b8   : > { %v1172_v4 = vmul.f32 %v1457_v2, %v1164_v60 }
 0x7ba   : > { %v1180_v5 = vmul.f32 %v1273_v3, %v1172_v4 }
 0x7bc   : > { %v1181_v6 = vadd.f32 %v1180_v5, %v1523_v1 }
 0x7be   : > { %v1182_v7 = vpack.c.bf16 %v1181_v6, %v1181_v6 }
 0x7c0   : > { %1184 = vst.msk [vmem:[%s246_s13] sm:$0xf] %vm1183_vm9, %v1182_v7 }
 0x7c1 PF: > { %s16_s21 = sadd.s32 1, %s1464_s21  }
 0x7c2   : > { %p13_p4 = scmp.ge.s32.totalorder %s16_s21, 4  }
 0x7c4   :  { %15 = sbr.rel (!%p13_p4) target bundleno = 1 (0x1), region = 74 }

// kernel: unet_forward.94
= control target key start
LH: loop header
LB: loop body
LE: loop exit
PB: predicated region body
PF: predicated region fallthrough
CT: control target
= control target key end

     0   :  { %s529_s12 = smov 0   ;;  %s531_s13 = smov 0   ;;  %s571_s0 = inlined_call_operand.vmem [shape: bf16[2,1,8,24], index: 0, kind: input, shape index: {}]   ;;  %s572_s1 = inlined_call_operand.vmem [shape: bf16[1,24,128], index: 1, kind: input, shape index: {}]   ;;  %s573_s2 = inlined_call_operand.vmem [shape: f32[1,128], index: 2, kind: input, shape index: {}]   ;;  %s574_s3 = inlined_call_operand.vmem [shape: bf16[2,1,8,128], index: 3, kind: output, shape index: {}]  }
   0x1   :  { %s533_s14 = smov 0  }
   0x2 LB: > { %s32_s15 = sadd.s32 1, %s501_s13  ;;  %p435_p0 = scmp.ge.s32.totalorder %s505_s14, 1  ;;  %s505_s14 = sphi %s533_s14, %s13_s14   ;;  %s501_s13 = sphi %s531_s13, %s576_s13   ;;  %s497_s12 = sphi %s529_s12, %s575_s12  }
   0x3   : > { %p34_p1 = scmp.ge.s32.totalorder %s32_s15, 2  ;;  %p181_p2 = scmp.lt.s32.totalorder %s505_s14, 3 }
   0x5   : > { %s578_s15 = smov (%p34_p1, %s32_s15), 0  ;;  %p182_p3 = pnand %p435_p0, %p181_p2 }
   0x6   : > { %p219_p4 = scmp.lt.s32.totalorder (!%p182_p3), %s497_s12, 1 }
   0x7   : > { %185 = sbr.rel (%p182_p3) target bundleno = 220 (0xdc), region = 32 }
   0xc   : > { %v481_v0 = vld [vmem:[%s572_s1 + $0x8] ss:$0 sps:$4 sm:$0xff]   ;;  %vm268_vm0 = vcmask 1043456   ;;  %v507_v1 = vmov 0.0   ;;  %vm508_vm1 = vmmov 0   ;;  %v482_v3 = vld [vmem:[%s572_s1] sm:$0xff]  }
   0xd   : > { %447 = vmatprep.subr.bf16.mxu0 %v507_v1  ;;  %v270_v2 = vsel %vm268_vm0, %v481_v0, 0  ;;  %451 = vmatprep.mubr.msk.bf16.mxu0 %vm508_vm1, %v507_v1  ;;  %s580_s12 = smov (!%p219_p4, %s497_s12), 1  ;;  %vm264_vm2 = vcmask 195584   ;;  %v438_v5 = vld [vmem:[%s573_s2] ss:$0 sm:$0xff] }
   0xe   : > { %448 = vmatpush3.bf16.msra.mxu0 %v270_v2  ;;  %s436_s20 = sshll.u32 %s580_s12, 2 }
   0xf   : > { %449 = vmatprep.subr.bf16.mxu0 %v507_v1  ;;  %s225_s23 = scalar_lea.vmem %s571_s0, %s436_s20  ;;  %s242_s28 = scalar_lea.vmem %s574_s3, %s436_s20 }
  0x10   : > { %v244_v4 = vld [vmem:[%s225_s23] sm:$0xf] }
  0x12   : > { %450 = vmatpush3.bf16.msra.mxu0 %v482_v3 }
  0x15   : > { %452 = vmatmul.mubr.msk.bf16.vlgmr.msra.gmra.mxu0 %vm264_vm2, %v244_v4 }
  0xd5   : > { %v306_v6 = vpop.f32.mrf.mxu0 }
  0xd6   : > { %v307_v7 = vadd.f32 %v438_v5, %v306_v6 }
  0xd7   : > { %v453_v8 = vpop.f32.mrf.mxu0 }
  0xd8   : > { %v312_v9 = vpack.c.bf16 %v307_v7, %v307_v7 }
  0xd9   : > { %v309_v10 = vpop.f32.mrf.mxu0 }
  0xda   : > { %313 = vst [vmem:[%s242_s28] sm:$0xf] %v312_v9 }
  0xdb   : > { %v454_v11 = vpop.f32.mrf.mxu0 }
  0xdc PF: > { %s13_s14 = sadd.s32 1, %s505_s14   ;;  %s575_s12 = smov %s501_s13 }
  0xdd   : > { %p10_p5 = scmp.ge.s32.totalorder %s13_s14, 4   ;;  %s576_s13 = smov %s578_s15 }
  0xdf   :  { %12 = sbr.rel (!%p10_p5) target bundleno = 2 (0x2), region = 68 }

// kernel: unet_forward.85
= control target key start
LH: loop header
LB: loop body
LE: loop exit
PB: predicated region body
PF: predicated region fallthrough
CT: control target
= control target key end

     0   :  { %s1237_s21 = smov 0   ;;  %s1392_s0 = inlined_call_operand.vmem [shape: bf16[2,8,16], index: 0, kind: input, shape index: {}]   ;;  %s1393_s1 = inlined_call_operand.vmem [shape: f32[1,16], index: 1, kind: input, shape index: {}]   ;;  %s1394_s2 = inlined_call_operand.vmem [shape: bf16[16,384], index: 2, kind: input, shape index: {}]   ;;  %s1395_s3 = inlined_call_operand.vmem [shape: bf16[128,16], index: 3, kind: input, shape index: {}]   ;;  %s1396_s4 = inlined_call_operand.vmem [shape: f32[1,16], index: 4, kind: input, shape index: {}]   ;;  %s1397_s5 = inlined_call_operand.vmem [shape: f32[1,16], index: 5, kind: input, shape index: {}]   ;;  %s1398_s6 = inlined_call_operand.vmem [shape: bf16[2,8,16], index: 6, kind: output, shape index: {}]  }
   0x1 LB: > { %s1011_s22 = sadd.s32 4294967295, %s1194_s21   ;;  %p1015_p0 = scmp.ge.s32.totalorder %s1194_s21, 1  ;;  %s1194_s21 = sphi %s1237_s21, %s16_s21  }
   0x2   : > { %p211_p1 = scmp.lt.s32.totalorder %s1194_s21, 3 }
   0x4   : > { %p212_p2 = pnand %p1015_p0, %p211_p1 }
   0x5   : > { %p239_p3 = scmp.lt.s32.totalorder (!%p212_p2), %s1011_s22, 1  ;;  %s1199_s10 = smov (!%p212_p2), 96  }
   0x6   : > { %215 = sbr.rel (%p212_p2) target bundleno = 2083 (0x823), region = 44  ;;  %s1200_s11 = smov (!%p212_p2), 32  }
   0x7   : > { %s1201_s12 = smov (!%p212_p2), 64  }
   0xb   : > { %s1400_s22 = smov (!%p239_p3, %s1011_s22), 1  ;;  %vm250_vm0 = vcmask 130048   ;;  %v1158_v8 = vld [vmem:[%s1394_s2 + $0x4] ss:$12 sps:$4 sm:$0xff]   ;;  %v1160_v9 = vld [vmem:[%s1394_s2] ss:$12 sps:$4 sm:$0xff]  }
   0xc   : > { %s1016_s5 = sshll.u32 %s1400_s22, 2  ;;  %v1196_v10 = vmov 0.0   ;;  %v1161_v11 = vld [vmem:[%s1394_s2 + $0x8] ss:$12 sps:$4 sm:$0xff]   ;;  %v1197_v12 = vmov 0   ;;  %311 = vmatprep.subr.bf16.mxu0 %v1158_v8  ;;  %vm1198_vm1 = vmmov 0  }
   0xd   : > { %s242_s25 = scalar_lea.vmem %s1392_s0, %s1016_s5  ;;  %1070 = vmatprep.subr.bf16.mxu1 %v1196_v10  ;;  %329 = vmatprep.mubr.bf16.mxu0 %v1197_v12  ;;  %v1018_v17 = vld [vmem:[%s1393_s1] ss:$0 sm:$0xff]  ;;  %vm380_vm2 = vcmask 261120   ;;  %vm445_vm3 = vcmask 1043456   ;;  %vm428_vm4 = vcmask 64512   ;;  %vm838_vm5 = vcmask 523264  }
   0xe   : > { %v248_v0 = vld [vmem:[%s242_s25] sm:$0xf]  ;;  %1072 = vmatprep.mubr.msk.bf16.mxu1 %vm1198_vm1, %v1196_v10  ;;  %312 = vmatpush1.bf16.msra.mxu0 %v1160_v9  ;;  %vm840_vm6 = vcmask 785408   ;;  %vm956_vm7 = vcmask 125952  }
   0xf   : > { %v1253_v1 = vunpack.c.l.bf16 %v248_v0  ;;  %1071 = vmatpush3.bf16.msra.mxu1 %v1161_v11  ;;  %1100 = vmatprep.subr.bf16.mxu0 %v1196_v10 }
  0x10   : > { %1076 = vmatprep.subr.bf16.mxu1 %v1196_v10 }
  0x11   : > { %v251_v2 = vsel %vm250_vm0, %v1253_v1, 0.0 }
  0x12   : > { %252 = vadd.xlane.f32.xlu0 %v251_v2 }
  0x9b   : > { %v253_v3 = vpop.xlane.xlu0 %252 }
  0x9c   : > { %v255_v4 = vmul.f32 0.0625, %v253_v3 }
  0x9e   : > { %v256_v5 = vsub.f32 %v1253_v1, %v255_v4 }
  0xa0   : > { %v257_v6 = vmul.f32 %v256_v5, %v256_v5 }
  0xa2   : > { %v258_v7 = vsel %vm250_vm0, %v257_v6, 0.0 }
  0xa3   : > { %259 = vadd.xlane.f32.xlu0 %v258_v7 }
 0x12c   : > { %v260_v13 = vpop.xlane.xlu0 %259 }
 0x12d   : > { %v261_v14 = vmul.f32 0.0625, %v260_v13 }
 0x12f   : > { %v262_v15 = vadd.f32 1e-05, %v261_v14 }
 0x131   : > { %1170 = vrsqrt.f32 %v262_v15 }
 0x13e   : > { %v1171_v16 = vpop.eup %1170 }
 0x13f   : > { %v264_v18 = vmul.f32 %v1171_v16, %v256_v5 }
 0x141   : > { %v272_v19 = vmul.f32 %v1018_v17, %v264_v18 }
 0x143   : > { %v273_v20 = vpack.c.bf16 %v272_v19, %v272_v19 }
 0x145   : > { %1022 = vmatmul.mubr.msk.bf16.vlgmr.msra.gmra.mxu0 %vm250_vm0, %v273_v20  ;;  %1073 = vmatmul.mubr.msk.bf16.vlgmr.msra.gmra.mxu1 %vm250_vm0, %v273_v20 }
 0x146   : > { %1078 = vmatprep.mubr.msk.bf16.mxu1 %vm1198_vm1, %v1196_v10  ;;  %1102 = vmatprep.mubr.msk.bf16.mxu0 %vm1198_vm1, %v1196_v10 }
 0x205   : > { %v331_v21 = vpop.f32.mrf.mxu0  ;;  %v372_v22 = vpop.f32.mrf.mxu1 }
 0x206   : > { %v1285_v31 = vpack.c.bf16 %v372_v22, %v372_v22  ;;  %v378_v32 = vpack.c.bf16 %v331_v21, %v331_v21 }
 0x207   : > { %v333_v23 = vpop.f32.mrf.mxu0  ;;  %v1074_v24 = vpop.f32.mrf.mxu1 }
 0x208   : > { %v379_v25 = vpack.c.bf16 %v333_v23, %v333_v23  ;;  %v447_v33 = vsel %vm445_vm3, %v1285_v31, 0 }
 0x209   : > { %v335_v26 = vpop.f32.mrf.mxu0  ;;  %v375_v27 = vpop.f32.mrf.mxu1 }
 0x20a   : > { %493 = vrot.lane.b32.xlu0 %v379_v25, %s1199_s10  ;;  %v385_v28 = vsel %vm380_vm2, %v379_v25, 0 }
 0x20b   : > { %v336_v29 = vpop.f32.mrf.mxu0  ;;  %v1075_v30 = vpop.f32.mrf.mxu1  ;;  %1077 = vmatpush3.bf16.xpose.msra.mxu1 %v385_v28 }
 0x20c   : > { %1082 = vmatprep.subr.bf16.mxu1 %v1196_v10 }
 0x20e   : > { %716 = vrot.lane.b32.xlu0 %v379_v25, %s1200_s11 }
 0x212   : > { %1079 = vmatmul.mubr.msk.bf16.vlgmr.msra.gmra.mxu1 %vm380_vm2, %v378_v32 }
 0x213   : > { %1083 = vmatpush3.bf16.msra.mxu1 %v447_v33  ;;  %1084 = vmatprep.mubr.msk.bf16.mxu1 %vm1198_vm1, %v1196_v10 }
 0x214   : > { %1088 = vmatprep.subr.bf16.mxu1 %v1196_v10 }
 0x27c   : > { %v494_v47 = vpop.permute.xlu0 %493 }
 0x27d   : > { %v499_v56 = vsel %vm380_vm2, %v494_v47, 0 }
 0x280   : > { %v717_v51 = vpop.permute.xlu0 %716 }
 0x281   : > { %v722_v54 = vsel %vm380_vm2, %v717_v51, 0  ;;  %v1162_v51 = vld [vmem:[%s1395_s3 + $0x38] sm:$0xff]  }
 0x2d2   : > { %v421_v34 = vpop.f32.mrf.mxu1 }
 0x2d3   : > { %v427_v35 = vmul.f32 0.17677669, %v421_v34 }
 0x2d4   : > { %v1080_v36 = vpop.f32.mrf.mxu1 }
 0x2d5   : > { %v429_v37 = vsel %vm428_vm4, %v427_v35, -inf }
 0x2d6   : > { %430 = vmax.xlane.f32.xlu1 %v429_v37  ;;  %v424_v38 = vpop.f32.mrf.mxu1 }
 0x2d8   : > { %v1081_v39 = vpop.f32.mrf.mxu1 }
 0x35f   : > { %v431_v40 = vpop.xlane.xlu1 %430 }
 0x360   : > { %v432_v41 = vsub.f32 %v427_v35, %v431_v40 }
 0x362   : > { %v433_v42 = vmul.f32 1.442695, %v432_v41 }
 0x364   : > { %1172 = vpow2.f32 %v433_v42 }
 0x371   : > { %v1173_v43 = vpop.eup %1172 }
 0x372   : > { %v435_v44 = vsel %vm428_vm4, %v1173_v43, 0.0 }
 0x373   : > { %436 = vadd.xlane.f32.xlu1 %v435_v44 }
 0x384   : > { %490 = vrot.lane.b32.xlu1 %v378_v32, %s1199_s10 }
 0x388   : > { %605 = vrot.lane.b32.xlu1 %v379_v25, %s1201_s12 }
 0x38c   : > { %603 = vrot.lane.b32.xlu1 %v378_v32, %s1201_s12 }
 0x390   : > { %714 = vrot.lane.b32.xlu1 %v378_v32, %s1200_s11 }
 0x3fc   : > { %v437_v45 = vpop.xlane.xlu1 %436 }
 0x3fd   : > { %1174 = vrcp.f32 %v437_v45 }
 0x400   : > { %v491_v46 = vpop.permute.xlu1 %490 }
 0x404   : > { %v606_v48 = vpop.permute.xlu1 %605 }
 0x405   : > { %v611_v49 = vsel %vm380_vm2, %v606_v48, 0 }
 0x406   : > { %1101 = vmatpush3.bf16.xpose.msra.mxu0 %v611_v49 }
 0x407   : > { %1112 = vmatprep.subr.bf16.mxu0 %v1196_v10 }
 0x408   : > { %v604_v53 = vpop.permute.xlu1 %603 }
 0x40a   : > { %v1175_v50 = vpop.eup %1174 }
 0x40b   : > { %v439_v52 = vmul.f32 %v1175_v50, %v1173_v43 }
 0x40c   : > { %v715_v57 = vpop.permute.xlu1 %714 }
 0x40d   : > { %1103 = vmatmul.mubr.msk.bf16.vlgmr.msra.gmra.mxu0 %vm380_vm2, %v604_v53  ;;  %v440_v55 = vpack.c.bf16 %v439_v52, %v439_v52  ;;  %v1163_v52 = vld [vmem:[%s1395_s3 + $0x30] sm:$0xff]   ;;  %v1164_v53 = vld [vmem:[%s1395_s3 + $0x28] sm:$0xff]  }
 0x40e   : > { %1113 = vmatpush3.bf16.xpose.msra.mxu0 %v722_v54  ;;  %1114 = vmatprep.mubr.msk.bf16.mxu0 %vm1198_vm1, %v1196_v10  ;;  %v1165_v54 = vld [vmem:[%s1395_s3 + $0x20] sm:$0xff]  }
 0x40f   : > { %1085 = vmatmul.mubr.msk.bf16.vlgmr.msra.gmra.mxu1 %vm428_vm4, %v440_v55  ;;  %1124 = vmatprep.subr.bf16.mxu0 %v1196_v10  ;;  %v1166_v55 = vld [vmem:[%s1395_s3 + $0x18] sm:$0xff]  }
 0x410   : > { %1089 = vmatpush3.bf16.xpose.msra.mxu1 %v499_v56  ;;  %1090 = vmatprep.mubr.msk.bf16.mxu1 %vm1198_vm1, %v1196_v10  ;;  %v1167_v56 = vld [vmem:[%s1395_s3 + $0x10] sm:$0xff]  }
 0x411   : > { %1094 = vmatprep.subr.bf16.mxu1 %v1196_v10 }
 0x415   : > { %1115 = vmatmul.mubr.msk.bf16.vlgmr.msra.gmra.mxu0 %vm380_vm2, %v715_v57  ;;  %v1168_v57 = vld [vmem:[%s1395_s3 + $0x8] sm:$0xff]  }
 0x416   : > { %1140 = vmatprep.mubr.msk.bf16.mxu0 %vm1198_vm1, %v1196_v10  ;;  %1125 = vmatpush3.bf16.msra.mxu0 %v1162_v51 }
 0x417   : > { %1091 = vmatmul.mubr.msk.bf16.vlgmr.msra.gmra.mxu1 %vm380_vm2, %v491_v46  ;;  %1126 = vmatprep.subr.bf16.mxu0 %v1196_v10 }
 0x418   : > { %1096 = vmatprep.mubr.msk.bf16.mxu1 %vm1198_vm1, %v1196_v10 }
 0x41a   : > { %1127 = vmatpush3.bf16.msra.mxu0 %v1163_v52 }
 0x41b   : > { %1128 = vmatprep.subr.bf16.mxu0 %v1196_v10 }
 0x41e   : > { %1129 = vmatpush3.bf16.msra.mxu0 %v1164_v53 }
 0x41f   : > { %1130 = vmatprep.subr.bf16.mxu0 %v1196_v10 }
 0x422   : > { %1131 = vmatpush3.bf16.msra.mxu0 %v1165_v54 }
 0x423   : > { %1132 = vmatprep.subr.bf16.mxu0 %v1196_v10 }
 0x426   : > { %1133 = vmatpush3.bf16.msra.mxu0 %v1166_v55 }
 0x427   : > { %1134 = vmatprep.subr.bf16.mxu0 %v1196_v10 }
 0x42a   : > { %1135 = vmatpush3.bf16.msra.mxu0 %v1167_v56 }
 0x42b   : > { %1136 = vmatprep.subr.bf16.mxu0 %v1196_v10 }
 0x42e   : > { %1137 = vmatpush3.bf16.msra.mxu0 %v1168_v57 }
 0x42f   : > { %1138 = vmatprep.subr.bf16.mxu0 %v1196_v10 }
 0x4cd   : > { %v647_v58 = vpop.f32.mrf.mxu0 }
 0x4ce   : > { %v653_v59 = vmul.f32 0.17677669, %v647_v58 }
 0x4cf   : > { %v1318_v60 = vpop.f32.mrf.mxu1  ;;  %v1104_v61 = vpop.f32.mrf.mxu0 }
 0x4d0   : > { %v654_v62 = vsel %vm428_vm4, %v653_v59, -inf  ;;  %v1169_v61 = vld [vmem:[%s1395_s3] sm:$0xff]  }
 0x4d1   : > { %v1086_v63 = vpop.f32.mrf.mxu1  ;;  %655 = vmax.xlane.f32.xlu1 %v654_v62  ;;  %v650_v0 = vpop.f32.mrf.mxu0  ;;  %1139 = vmatpush3.bf16.msra.mxu0 %v1169_v61 }
 0x4d3   : > { %v486_v2 = vpop.f32.mrf.mxu1  ;;  %v1105_v3 = vpop.f32.mrf.mxu0 }
 0x4d5   : > { %v1087_v4 = vpop.f32.mrf.mxu1  ;;  %v758_v5 = vpop.f32.mrf.mxu0 }
 0x4d6   : > { %v764_v12 = vmul.f32 0.17677669, %v758_v5 }
 0x4d7   : > { %v535_v6 = vpop.f32.mrf.mxu1  ;;  %v1116_v7 = vpop.f32.mrf.mxu0 }
 0x4d8   : > { %v541_v8 = vmul.f32 0.17677669, %v535_v6  ;;  %v765_v17 = vsel %vm428_vm4, %v764_v12, -inf }
 0x4d9   : > { %v1092_v9 = vpop.f32.mrf.mxu1  ;;  %v761_v11 = vpop.f32.mrf.mxu0 }
 0x4da   : > { %v542_v13 = vsel %vm428_vm4, %v541_v8, -inf }
 0x4db   : > { %543 = vmax.xlane.f32.xlu0 %v542_v13  ;;  %v538_v14 = vpop.f32.mrf.mxu1  ;;  %v1117_v15 = vpop.f32.mrf.mxu0 }
 0x4dd   : > { %v1093_v16 = vpop.f32.mrf.mxu1 }
 0x4de   : > { %v1032_v16 = vld [vmem:[%s1396_s4] ss:$0 sm:$0xff] }
 0x4df   : > { %766 = vmax.xlane.f32.xlu0 %v765_v17 }
 0x55a   : > { %v656_v18 = vpop.xlane.xlu1 %655 }
 0x55b   : > { %v657_v19 = vsub.f32 %v653_v59, %v656_v18 }
 0x55d   : > { %v658_v20 = vmul.f32 1.442695, %v657_v19 }
 0x55f   : > { %1176 = vpow2.f32 %v658_v20 }
 0x564   : > { %v544_v21 = vpop.xlane.xlu0 %543 }
 0x565   : > { %v545_v22 = vsub.f32 %v541_v8, %v544_v21 }
 0x567   : > { %v546_v23 = vmul.f32 1.442695, %v545_v22 }
 0x568   : > { %v767_v24 = vpop.xlane.xlu0 %766 }
 0x569   : > { %1178 = vpow2.f32 %v546_v23  ;;  %v768_v25 = vsub.f32 %v764_v12, %v767_v24 }
 0x56b   : > { %v769_v26 = vmul.f32 1.442695, %v768_v25 }
 0x56c   : > { %v1177_v27 = vpop.eup %1176 }
 0x56d   : > { %1180 = vpow2.f32 %v769_v26  ;;  %v660_v28 = vsel %vm428_vm4, %v1177_v27, 0.0 }
 0x56e   : > { %661 = vadd.xlane.f32.xlu0 %v660_v28 }
 0x576   : > { %v1179_v29 = vpop.eup %1178 }
 0x577   : > { %v548_v30 = vsel %vm428_vm4, %v1179_v29, 0.0 }
 0x578   : > { %549 = vadd.xlane.f32.xlu0 %v548_v30 }
 0x57a   : > { %v1181_v32 = vpop.eup %1180 }
 0x57b   : > { %v771_v33 = vsel %vm428_vm4, %v1181_v32, 0.0 }
 0x57c   : > { %772 = vadd.xlane.f32.xlu1 %v771_v33 }
 0x58d   : > { %666 = vrot.lane.b32.xlu1 %v1285_v31, %s1201_s12 }
 0x58e   : > { %555 = vrot.lane.b32.xlu0 %v1285_v31, %s1199_s10 }
 0x591   : > { %777 = vrot.lane.b32.xlu1 %v1285_v31, %s1200_s11 }
 0x5f7   : > { %v662_v34 = vpop.xlane.xlu0 %661 }
 0x601   : > { %v550_v35 = vpop.xlane.xlu0 %549 }
 0x602   : > { %1182 = vrcp.f32 %v550_v35 }
 0x603   : > { %1184 = vrcp.f32 %v662_v34 }
 0x605   : > { %v556_v36 = vpop.permute.xlu0 %555  ;;  %v773_v38 = vpop.xlane.xlu1 %772 }
 0x606   : > { %v561_v37 = vsel %vm445_vm3, %v556_v36, 0  ;;  %1186 = vrcp.f32 %v773_v38 }
 0x607   : > { %1095 = vmatpush3.bf16.msra.mxu1 %v561_v37 }
 0x608   : > { %1106 = vmatprep.subr.bf16.mxu1 %v1196_v10 }
 0x609   : > { %v667_v41 = vpop.permute.xlu1 %666 }
 0x60a   : > { %v672_v44 = vsel %vm445_vm3, %v667_v41, 0 }
 0x60d   : > { %v778_v45 = vpop.permute.xlu1 %777 }
 0x60e   : > { %v783_v48 = vsel %vm445_vm3, %v778_v45, 0 }
 0x60f   : > { %v1183_v39 = vpop.eup %1182 }
 0x610   : > { %v552_v40 = vmul.f32 %v1183_v39, %v1179_v29  ;;  %v1185_v43 = vpop.eup %1184 }
 0x611   : > { %v664_v31 = vmul.f32 %v1185_v43, %v1177_v27 }
 0x612   : > { %v553_v42 = vpack.c.bf16 %v552_v40, %v552_v40 }
 0x613   : > { %v665_v46 = vpack.c.bf16 %v664_v31, %v664_v31  ;;  %v1187_v47 = vpop.eup %1186 }
 0x614   : > { %1097 = vmatmul.mubr.msk.bf16.vlgmr.msra.gmra.mxu1 %vm428_vm4, %v553_v42  ;;  %v775_v49 = vmul.f32 %v1187_v47, %v1181_v32 }
 0x615   : > { %1107 = vmatpush3.bf16.msra.mxu1 %v672_v44  ;;  %1108 = vmatprep.mubr.msk.bf16.mxu1 %vm1198_vm1, %v1196_v10 }
 0x616   : > { %1118 = vmatprep.subr.bf16.mxu1 %v1196_v10  ;;  %v776_v50 = vpack.c.bf16 %v775_v49, %v775_v49 }
 0x61c   : > { %1109 = vmatmul.mubr.msk.bf16.vlgmr.msra.gmra.mxu1 %vm428_vm4, %v665_v46 }
 0x61d   : > { %1119 = vmatpush3.bf16.msra.mxu1 %v783_v48  ;;  %1120 = vmatprep.mubr.msk.bf16.mxu1 %vm1198_vm1, %v1196_v10 }
 0x624   : > { %1121 = vmatmul.mubr.msk.bf16.vlgmr.msra.gmra.mxu1 %vm428_vm4, %v776_v50 }
 0x6d4   : > { %v597_v58 = vpop.f32.mrf.mxu1 }
 0x6d5   : > { %826 = vrot.lane.b32.xlu1 %v597_v58, %s1200_s11  ;;  %s246_s11 = scalar_lea.vmem %s1398_s6, %s1016_s5 }
 0x6d6   : > { %v1098_v59 = vpop.f32.mrf.mxu1 }
 0x6d8   : > { %v600_v62 = vpop.f32.mrf.mxu1 }
 0x6da   : > { %v1099_v63 = vpop.f32.mrf.mxu1 }
 0x6dc   : > { %v708_v0 = vpop.f32.mrf.mxu1 }
 0x6dd   : > { %830 = vrot.lane.b32.xlu0 %v708_v0, %s1201_s12 }
 0x6de   : > { %v1110_v2 = vpop.f32.mrf.mxu1 }
 0x6e0   : > { %v711_v3 = vpop.f32.mrf.mxu1 }
 0x6e2   : > { %v1111_v4 = vpop.f32.mrf.mxu1 }
 0x6e4   : > { %v819_v5 = vpop.f32.mrf.mxu1 }
 0x6e5   : > { %834 = vrot.lane.b32.xlu1 %v819_v5, %s1199_s10 }
 0x6e6   : > { %v1122_v6 = vpop.f32.mrf.mxu1 }
 0x6e8   : > { %v822_v7 = vpop.f32.mrf.mxu1 }
 0x6ea   : > { %v1123_v8 = vpop.f32.mrf.mxu1 }
 0x747   : > { %v827_v10 = vpop.permute.xlu1 %826 }
 0x748   : > { %v837_v11 = vsel %vm380_vm2, %v1318_v60, %v827_v10 }
 0x74f   : > { %v831_v9 = vpop.permute.xlu0 %830 }
 0x750   : > { %v839_v12 = vsel %vm838_vm5, %v837_v11, %v831_v9 }
 0x757   : > { %v835_v13 = vpop.permute.xlu1 %834 }
 0x758   : > { %v841_v14 = vsel %vm840_vm6, %v839_v12, %v835_v13 }
 0x759   : > { %v842_v15 = vpack.c.bf16 %v841_v14, %v841_v14 }
 0x75b   : > { %1141 = vmatmul.mubr.bf16.vlgmr.msra.gmra.mxu0 %v842_v15 }
 0x81b   : > { %v948_v17 = vpop.f32.mrf.mxu0 }
 0x81c   : > { %v949_v18 = vadd.f32 %v1032_v16, %v948_v17 }
 0x81d   : > { %v1142_v19 = vpop.f32.mrf.mxu0 }
 0x81e   : > { %v954_v20 = vadd.f32 %v949_v18, %v1253_v1 }
 0x81f   : > { %v951_v60 = vpop.f32.mrf.mxu0 }
 0x820   : > { %v955_v21 = vpack.c.bf16 %v954_v20, %v954_v20 }
 0x821   : > { %v1143_v22 = vpop.f32.mrf.mxu0 }
 0x822   : > { %957 = vst.msk [vmem:[%s246_s11] sm:$0xf] %vm956_vm7, %v955_v21 }
 0x823 PF: > { %s16_s21 = sadd.s32 1, %s1194_s21  }
 0x824   : > { %p13_p4 = scmp.ge.s32.totalorder %s16_s21, 4  }
 0x826   :  { %15 = sbr.rel (!%p13_p4) target bundleno = 1 (0x1), region = 74 }

// kernel: unet_forward.90
= control target key start
LH: loop header
LB: loop body
LE: loop exit
PB: predicated region body
PF: predicated region fallthrough
CT: control target
= control target key end

     0   :  { %s715_s12 = smov 0   ;;  %s717_s13 = smov 0   ;;  %s779_s0 = inlined_call_operand.vmem [shape: bf16[2,1,16,24], index: 0, kind: input, shape index: {}]   ;;  %s780_s1 = inlined_call_operand.vmem [shape: bf16[3,24,128], index: 1, kind: input, shape index: {}]   ;;  %s781_s2 = inlined_call_operand.vmem [shape: f32[1,128], index: 2, kind: input, shape index: {}]   ;;  %s782_s3 = inlined_call_operand.vmem [shape: bf16[2,1,8,128], index: 3, kind: output, shape index: {}]  }
   0x1   :  { %s719_s14 = smov 0  }
   0x2 LB: > { %s32_s15 = sadd.s32 1, %s687_s13  ;;  %p579_p0 = scmp.ge.s32.totalorder %s691_s14, 1  ;;  %s691_s14 = sphi %s719_s14, %s13_s14   ;;  %s687_s13 = sphi %s717_s13, %s784_s13   ;;  %s683_s12 = sphi %s715_s12, %s783_s12  }
   0x3   : > { %p34_p1 = scmp.ge.s32.totalorder %s32_s15, 2  ;;  %p183_p2 = scmp.lt.s32.totalorder %s691_s14, 3 }
   0x5   : > { %s786_s15 = smov (%p34_p1, %s32_s15), 0  ;;  %p184_p3 = pnand %p579_p0, %p183_p2 }
   0x6   : > { %p223_p4 = scmp.lt.s32.totalorder (!%p184_p3), %s683_s12, 1 }
   0x7   : > { %187 = sbr.rel (%p184_p3) target bundleno = 237 (0xed), region = 32 }
   0xc   : > { %v662_v0 = vld [vmem:[%s780_s1 + $0x14] ss:$0 sps:$4 sm:$0xff]   ;;  %vm277_vm0 = vcmask 1043456   ;;  %v693_v1 = vmov 0.0   ;;  %v663_v3 = vld [vmem:[%s780_s1 + $0xc] sm:$0xff]   ;;  %vm694_vm1 = vmmov 0   ;;  %v324_v12 = vlaneseq }
   0xd   : > { %612 = vmatprep.subr.bf16.mxu0 %v693_v1  ;;  %620 = vmatprep.subr.bf16.mxu1 %v693_v1  ;;  %v279_v2 = vsel %vm277_vm0, %v662_v0, 0  ;;  %v665_v4 = vld [vmem:[%s780_s1 + $0x8] ss:$0 sps:$4 sm:$0xff]   ;;  %v666_v5 = vld [vmem:[%s780_s1 + $0x20] ss:$0 sps:$4 sm:$0xff]   ;;  %s788_s12 = smov (!%p223_p4, %s683_s12), 1 }
   0xe   : > { %616 = vmatprep.mubr.msk.bf16.mxu0 %vm694_vm1, %v693_v1  ;;  %624 = vmatprep.mubr.msk.bf16.mxu1 %vm694_vm1, %v693_v1  ;;  %v338_v6 = vsel %vm277_vm0, %v665_v4, 0  ;;  %s602_s24 = sshll.u32 %s788_s12, 3  ;;  %v667_v7 = vld [vmem:[%s780_s1] sm:$0xff]   ;;  %vm273_vm2 = vcmask 195584   ;;  %v394_v9 = vsel %vm277_vm0, %v666_v5, 0  ;;  %v668_v10 = vld [vmem:[%s780_s1 + $0x18] sm:$0xff]  }
   0xf   : > { %613 = vmatpush3.bf16.msra.mxu0 %v279_v2  ;;  %621 = vmatpush3.bf16.msra.mxu1 %v338_v6  ;;  %s231_s29 = scalar_lea.vmem %s779_s0, %s602_s24  ;;  %v325_v16 = vshrl.u32 %v324_v12, 7  ;;  %v599_v32 = vld [vmem:[%s781_s2] ss:$0 sm:$0xff]  ;;  %s582_s7 = sshll.u32 %s788_s12, 2 }
  0x10   : > { %614 = vmatprep.subr.bf16.mxu0 %v693_v1  ;;  %622 = vmatprep.subr.bf16.mxu1 %v693_v1  ;;  %v664_v8 = vld [vmem:[%s231_s29] sm:$0xff]   ;;  %s248_s10 = scalar_lea.vmem %s782_s3, %s582_s7 }
  0x11   : > { %vm326_vm3 = vcmp.lt.s32.totalorder %v325_v16, 7  ;;  %vm439_vm4 = vcmp.lt.s32.totalorder %v325_v16, 6 }
  0x13   : > { %615 = vmatpush3.bf16.msra.mxu0 %v663_v3  ;;  %623 = vmatpush3.bf16.msra.mxu1 %v667_v7 }
  0x14   : > { %628 = vmatprep.subr.bf16.mxu0 %v693_v1 }
  0x16   : > { %617 = vmatmul.mubr.msk.bf16.vlgmr.msra.gmra.mxu0 %vm273_vm2, %v664_v8  ;;  %625 = vmatmul.mubr.msk.bf16.vlgmr.msra.gmra.mxu1 %vm273_vm2, %v664_v8 }
  0x17   : > { %629 = vmatpush3.bf16.msra.mxu0 %v394_v9  ;;  %632 = vmatprep.mubr.msk.bf16.mxu0 %vm694_vm1, %v693_v1 }
  0x18   : > { %630 = vmatprep.subr.bf16.mxu0 %v693_v1 }
  0x1b   : > { %631 = vmatpush3.bf16.msra.mxu0 %v668_v10 }
  0x1e   : > { %633 = vmatmul.mubr.msk.bf16.vlgmr.msra.gmra.mxu0 %vm273_vm2, %v664_v8 }
  0xd6   : > { %v315_v11 = vpop.f32.mrf.mxu0  ;;  %v374_v14 = vpop.f32.mrf.mxu1 }
  0xd7   : > { %v322_v22 = vrot.slane %v315_v11, 1 }
  0xd8   : > { %v618_v13 = vpop.f32.mrf.mxu0  ;;  %v626_v17 = vpop.f32.mrf.mxu1 }
  0xda   : > { %v318_v15 = vpop.f32.mrf.mxu0  ;;  %v377_v20 = vpop.f32.mrf.mxu1 }
  0xdb   : > { %v323_v19 = vrot.slane %v318_v15, 1 }
  0xdc   : > { %v619_v18 = vpop.f32.mrf.mxu0  ;;  %v627_v23 = vpop.f32.mrf.mxu1 }
  0xdd   : > { %v327_v25 = vsel %vm326_vm3, %v322_v22, %v323_v19 }
  0xde   : > { %v430_v21 = vpop.f32.mrf.mxu0  ;;  %v375_v29 = vadd.f32 %v374_v14, %v327_v25 }
  0xdf   : > { %v437_v27 = vrot.slane %v430_v21, 2 }
  0xe0   : > { %v634_v24 = vpop.f32.mrf.mxu0 }
  0xe2   : > { %v433_v26 = vpop.f32.mrf.mxu0 }
  0xe3   : > { %v438_v28 = vrot.slane %v433_v26, 2 }
  0xe4   : > { %v635_v30 = vpop.f32.mrf.mxu0 }
  0xe5   : > { %v440_v31 = vsel %vm439_vm4, %v437_v27, %v438_v28 }
  0xe6   : > { %v441_v33 = vadd.f32 %v440_v31, %v375_v29 }
  0xe8   : > { %v449_v34 = vadd.f32 %v599_v32, %v441_v33 }
  0xea   : > { %v450_v35 = vpack.c.bf16 %v449_v34, %v449_v34 }
  0xec   : > { %451 = vst [vmem:[%s248_s10] sm:$0xf] %v450_v35 }
  0xed PF: > { %s13_s14 = sadd.s32 1, %s691_s14   ;;  %s783_s12 = smov %s687_s13 }
  0xee   : > { %p10_p5 = scmp.ge.s32.totalorder %s13_s14, 4   ;;  %s784_s13 = smov %s786_s15 }
  0xf0   :  { %12 = sbr.rel (!%p10_p5) target bundleno = 2 (0x2), region = 70 }

// kernel: unet_forward.106
= control target key start
LH: loop header
LB: loop body
LE: loop exit
PB: predicated region body
PF: predicated region fallthrough
CT: control target
= control target key end

     0   :  { %s574_s12 = smov 0   ;;  %s576_s13 = smov 0   ;;  %s613_s0 = inlined_call_operand.vmem [shape: bf16[2,1,16,16], index: 0, kind: input, shape index: {}]   ;;  %s614_s1 = inlined_call_operand.vmem [shape: bf16[1,16,128], index: 1, kind: input, shape index: {}]   ;;  %s615_s2 = inlined_call_operand.vmem [shape: f32[1,128], index: 2, kind: input, shape index: {}]   ;;  %s616_s3 = inlined_call_operand.vmem [shape: bf16[2,1,16,128], index: 3, kind: output, shape index: {}]  }
   0x1   :  { %s578_s14 = smov 0  }
   0x2 LB: > { %s32_s15 = sadd.s32 1, %s546_s13  ;;  %p470_p0 = scmp.ge.s32.totalorder %s550_s14, 1  ;;  %s550_s14 = sphi %s578_s14, %s13_s14   ;;  %s546_s13 = sphi %s576_s13, %s618_s13   ;;  %s542_s12 = sphi %s574_s12, %s617_s12  }
   0x3   : > { %p34_p1 = scmp.ge.s32.totalorder %s32_s15, 2  ;;  %p183_p2 = scmp.lt.s32.totalorder %s550_s14, 3 }
   0x5   : > { %s620_s15 = smov (%p34_p1, %s32_s15), 0  ;;  %p184_p3 = pnand %p470_p0, %p183_p2 }
   0x6   : > { %p225_p4 = scmp.lt.s32.totalorder (!%p184_p3), %s542_s12, 1 }
   0x7   : > { %187 = sbr.rel (%p184_p3) target bundleno = 219 (0xdb), region = 32 }
   0xc   : > { %v526_v0 = vld [vmem:[%s614_s1] sm:$0xff]   ;;  %v552_v1 = vmov 0.0   ;;  %vm553_vm0 = vmmov 0   ;;  %s622_s12 = smov (!%p225_p4, %s542_s12), 1  ;;  %vm276_vm1 = vcmask 130048  }
   0xd   : > { %494 = vmatprep.subr.bf16.mxu0 %v552_v1  ;;  %496 = vmatprep.mubr.msk.bf16.mxu0 %vm553_vm0, %v552_v1  ;;  %s483_s18 = sshll.u32 %s622_s12, 3  ;;  %v475_v4 = vld [vmem:[%s615_s2] ss:$0 sm:$0xff] }
   0xe   : > { %495 = vmatpush3.bf16.msra.mxu0 %v526_v0  ;;  %s233_s21 = scalar_lea.vmem %s613_s0, %s483_s18  ;;  %s252_s26 = scalar_lea.vmem %s616_s3, %s483_s18 }
   0xf   : > { %v527_v2 = vld [vmem:[%s233_s21] sm:$0xff]  }
  0x11   : > { %497 = vmatmul.mubr.msk.bf16.vlgmr.msra.gmra.mxu0 %vm276_vm1, %v527_v2 }
  0xd1   : > { %v314_v3 = vpop.f32.mrf.mxu0 }
  0xd2   : > { %v315_v7 = vadd.f32 %v475_v4, %v314_v3 }
  0xd3   : > { %v498_v5 = vpop.f32.mrf.mxu0 }
  0xd5   : > { %v317_v6 = vpop.f32.mrf.mxu0 }
  0xd6   : > { %v318_v8 = vadd.f32 %v475_v4, %v317_v6 }
  0xd7   : > { %v499_v9 = vpop.f32.mrf.mxu0 }
  0xd8   : > { %v490_v10 = vpack.c.bf16 %v318_v8, %v315_v7 }
  0xda   : > { %491 = vst [vmem:[%s252_s26] sm:$0xff] %v490_v10  }
  0xdb PF: > { %s13_s14 = sadd.s32 1, %s550_s14   ;;  %s617_s12 = smov %s546_s13 }
  0xdc   : > { %p10_p5 = scmp.ge.s32.totalorder %s13_s14, 4   ;;  %s618_s13 = smov %s620_s15 }
  0xde   :  { %12 = sbr.rel (!%p10_p5) target bundleno = 2 (0x2), region = 68 }

// kernel: unet_forward.100
= control target key start
LH: loop header
LB: loop body
LE: loop exit
PB: predicated region body
PF: predicated region fallthrough
CT: control target
= control target key end

     0   :  { %s1509_s21 = smov 0   ;;  %s1706_s0 = inlined_call_operand.vmem [shape: bf16[2,8,16], index: 0, kind: input, shape index: {}]   ;;  %s1707_s1 = inlined_call_operand.vmem [shape: f32[1,16], index: 1, kind: input, shape index: {}]   ;;  %s1708_s2 = inlined_call_operand.vmem [shape: bf16[16,384], index: 2, kind: input, shape index: {}]   ;;  %s1709_s3 = inlined_call_operand.vmem [shape: bf16[128,16], index: 3, kind: input, shape index: {}]   ;;  %s1710_s4 = inlined_call_operand.vmem [shape: f32[1,16], index: 4, kind: input, shape index: {}]   ;;  %s1711_s5 = inlined_call_operand.vmem [shape: f32[1,16], index: 5, kind: input, shape index: {}]   ;;  %s1712_s6 = inlined_call_operand.vmem [shape: bf16[2,8,16], index: 6, kind: output, shape index: {}]  }
   0x1 LB: > { %s1240_s22 = sadd.s32 4294967295, %s1466_s21   ;;  %p1244_p0 = scmp.ge.s32.totalorder %s1466_s21, 1  ;;  %s1466_s21 = sphi %s1509_s21, %s16_s21  }
   0x2   : > { %p211_p1 = scmp.lt.s32.totalorder %s1466_s21, 3 }
   0x4   : > { %p212_p2 = pnand %p1244_p0, %p211_p1 }
   0x5   : > { %p239_p3 = scmp.lt.s32.totalorder (!%p212_p2), %s1240_s22, 1  ;;  %s1471_s11 = smov (!%p212_p2), 64  }
   0x6   : > { %215 = sbr.rel (%p212_p2) target bundleno = 1985 (0x7c1), region = 44  ;;  %s1472_s12 = smov (!%p212_p2), 96  }
   0x7   : > { %s1473_s13 = smov (!%p212_p2), 32  }
   0xb   : > { %s1714_s22 = smov (!%p239_p3, %s1240_s22), 1  ;;  %vm250_vm0 = vcmask 130048   ;;  %v1412_v8 = vld [vmem:[%s1708_s2 + $0x4] ss:$12 sps:$4 sm:$0xff]   ;;  %v1414_v9 = vld [vmem:[%s1708_s2] ss:$12 sps:$4 sm:$0xff]  }
   0xc   : > { %s1245_s23 = sshll.u32 %s1714_s22, 2  ;;  %v1468_v10 = vmov 0   ;;  %311 = vmatprep.subr.bf16.mxu1 %v1412_v8  ;;  %v1469_v11 = vmov 0.0   ;;  %v1247_v16 = vld [vmem:[%s1707_s1] ss:$0 sm:$0xff]  ;;  %vm1470_vm1 = vmmov 0  }
   0xd   : > { %s242_s26 = scalar_lea.vmem %s1706_s0, %s1245_s23  ;;  %329 = vmatprep.mubr.bf16.mxu1 %v1468_v10  ;;  %312 = vmatpush1.bf16.msra.mxu1 %v1414_v9  ;;  %v1415_v19 = vld [vmem:[%s1708_s2 + $0x8] ss:$12 sps:$4 sm:$0xff]   ;;  %vm534_vm2 = vcmask 523520   ;;  %vm701_vm3 = vcmask 785920   ;;  %vm867_vm4 = vcmask 1048320   ;;  %vm435_vm5 = vcmask 1043456   ;;  %s246_s15 = scalar_lea.vmem %s1712_s6, %s1245_s23 }
   0xe   : > { %v248_v0 = vld [vmem:[%s242_s26] sm:$0xf]  ;;  %1312 = vmatprep.subr.bf16.mxu1 %v1469_v11  ;;  %vm378_vm6 = vcmask 261120   ;;  %vm428_vm7 = vcmask 64512   ;;  %vm1046_vm8 = vcmask 523264   ;;  %vm1048_vm9 = vcmask 785408  }
   0xf   : > { %v1525_v1 = vunpack.c.l.bf16 %v248_v0  ;;  %vm1185_vm10 = vcmask 125952  }
  0x11   : > { %v251_v2 = vsel %vm250_vm0, %v1525_v1, 0.0 }
  0x12   : > { %252 = vadd.xlane.f32.xlu0 %v251_v2 }
  0x9b   : > { %v253_v3 = vpop.xlane.xlu0 %252 }
  0x9c   : > { %v255_v4 = vmul.f32 0.0625, %v253_v3 }
  0x9e   : > { %v256_v5 = vsub.f32 %v1525_v1, %v255_v4 }
  0xa0   : > { %v257_v6 = vmul.f32 %v256_v5, %v256_v5 }
  0xa2   : > { %v258_v7 = vsel %vm250_vm0, %v257_v6, 0.0 }
  0xa3   : > { %259 = vadd.xlane.f32.xlu0 %v258_v7 }
 0x12c   : > { %v260_v12 = vpop.xlane.xlu0 %259 }
 0x12d   : > { %v261_v13 = vmul.f32 0.0625, %v260_v12 }
 0x12f   : > { %v262_v14 = vadd.f32 1e-05, %v261_v13 }
 0x131   : > { %1424 = vrsqrt.f32 %v262_v14 }
 0x13e   : > { %v1425_v15 = vpop.eup %1424 }
 0x13f   : > { %v264_v17 = vmul.f32 %v1425_v15, %v256_v5 }
 0x141   : > { %v272_v18 = vmul.f32 %v1247_v16, %v264_v17 }
 0x143   : > { %v273_v20 = vpack.c.bf16 %v272_v18, %v272_v18 }
 0x145   : > { %1251 = vmatmul.mubr.msk.bf16.vlgmr.msra.gmra.mxu1 %vm250_vm0, %v273_v20 }
 0x146   : > { %1313 = vmatpush3.bf16.msra.mxu1 %v1415_v19  ;;  %1314 = vmatprep.mubr.msk.bf16.mxu1 %vm1470_vm1, %v1469_v11 }
 0x14d   : > { %1315 = vmatmul.mubr.msk.bf16.vlgmr.msra.gmra.mxu1 %vm250_vm0, %v273_v20 }
 0x205   : > { %v1548_v21 = vpop.f32.mrf.mxu1 }
 0x206   : > { %v535_v22 = vsel %vm534_vm2, %v1548_v21, -inf }
 0x207   : > { %536 = vmax.xlane.f32.xlu1 %v535_v22  ;;  %v1552_v23 = vpop.f32.mrf.mxu1 }
 0x208   : > { %v551_v24 = vsel %vm534_vm2, %v1552_v23, -inf  ;;  %v718_v25 = vsel %vm701_vm3, %v1552_v23, -inf  ;;  %v884_v26 = vsel %vm867_vm4, %v1552_v23, -inf  ;;  %v391_v22 = vsel %vm378_vm6, %v1552_v23, -inf }
 0x209   : > { %v552_v27 = vrot.slane %v551_v24, 4  ;;  %v719_v28 = vrot.slane %v718_v25, 4  ;;  %v885_v29 = vrot.slane %v884_v26, 4  ;;  %v335_v30 = vpop.f32.mrf.mxu1 }
 0x20b   : > { %v553_v31 = vmax.f32 %v551_v24, %v552_v27  ;;  %v720_v32 = vmax.f32 %v718_v25, %v719_v28  ;;  %v886_v33 = vmax.f32 %v884_v26, %v885_v29  ;;  %v336_v34 = vpop.f32.mrf.mxu1  ;;  %v392_v24 = vrot.slane %v391_v22, 4 }
 0x20d   : > { %v554_v35 = vrot.slane %v553_v31, 2  ;;  %v721_v36 = vrot.slane %v720_v32, 2  ;;  %v887_v37 = vrot.slane %v886_v33, 2  ;;  %v372_v38 = vpop.f32.mrf.mxu1  ;;  %v393_v25 = vmax.f32 %v391_v22, %v392_v24 }
 0x20e   : > { %v1560_v39 = vpack.c.bf16 %v372_v38, %v372_v38 }
 0x20f   : > { %v555_v40 = vmax.f32 %v553_v31, %v554_v35  ;;  %v722_v41 = vmax.f32 %v720_v32, %v721_v36  ;;  %v888_v42 = vmax.f32 %v886_v33, %v887_v37  ;;  %v1316_v43 = vpop.f32.mrf.mxu1  ;;  %v394_v31 = vrot.slane %v393_v25, 2 }
 0x210   : > { %1394 = vmatprep.subr.msk.bf16.mxu1 %vm435_vm5, %v1560_v39  ;;  %v437_v44 = vsel %vm435_vm5, %v1560_v39, 0 }
 0x211   : > { %v375_v45 = vpop.f32.mrf.mxu1  ;;  %1319 = vmatpush3.bf16.msra.mxu1 %v437_v44  ;;  %v723_v46 = vrot.slane %v722_v41, 1  ;;  %v556_v47 = vrot.slane %v555_v40, 1  ;;  %v889_v48 = vrot.slane %v888_v42, 1  ;;  %v395_v35 = vmax.f32 %v393_v25, %v394_v31 }
 0x212   : > { %1324 = vmatprep.subr.bf16.mxu1 %v1469_v11  ;;  %v868_v45 = vsel %vm867_vm4, %v1548_v21, -inf }
 0x213   : > { %v1317_v49 = vpop.f32.mrf.mxu1  ;;  %v724_v50 = vmax.f32 %v722_v41, %v723_v46  ;;  %v557_v51 = vmax.f32 %v555_v40, %v556_v47  ;;  %v890_v52 = vmax.f32 %v888_v42, %v889_v48  ;;  %v396_v37 = vrot.slane %v395_v35, 1 }
 0x214   : > { %v702_v42 = vsel %vm701_vm3, %v1548_v21, -inf }
 0x215   : > { %v725_v53 = vsub.f32 %v1552_v23, %v724_v50  ;;  %v558_v54 = vsub.f32 %v1552_v23, %v557_v51  ;;  %v891_v55 = vsub.f32 %v1552_v23, %v890_v52  ;;  %v397_v38 = vmax.f32 %v395_v35, %v396_v37 }
 0x217   : > { %v726_v56 = vmul.f32 1.442695, %v725_v53  ;;  %v559_v57 = vmul.f32 1.442695, %v558_v54  ;;  %v892_v58 = vmul.f32 1.442695, %v891_v55  ;;  %v398_v40 = vsub.f32 %v1552_v23, %v397_v38 }
 0x219   : > { %1426 = vpow2.f32 %v726_v56  ;;  %v399_v41 = vmul.f32 1.442695, %v398_v40 }
 0x21a   : > { %1428 = vpow2.f32 %v559_v57 }
 0x21b   : > { %1430 = vpow2.f32 %v892_v58 }
 0x226   : > { %v1427_v59 = vpop.eup %1426 }
 0x227   : > { %v1429_v60 = vpop.eup %1428  ;;  %v728_v61 = vsel %vm701_vm3, %v1427_v59, 0.0 }
 0x228   : > { %v1431_v62 = vpop.eup %1430  ;;  %v729_v63 = vrot.slane %v728_v61, 4  ;;  %v561_v0 = vsel %vm534_vm2, %v1429_v60, 0.0 }
 0x229   : > { %v562_v2 = vrot.slane %v561_v0, 4  ;;  %v894_v3 = vsel %vm867_vm4, %v1431_v62, 0.0 }
 0x22a   : > { %v730_v4 = vadd.f32 %v729_v63, %v728_v61  ;;  %v895_v5 = vrot.slane %v894_v3, 4 }
 0x22b   : > { %v563_v6 = vadd.f32 %v562_v2, %v561_v0 }
 0x22c   : > { %v731_v7 = vrot.slane %v730_v4, 2  ;;  %v896_v8 = vadd.f32 %v895_v5, %v894_v3 }
 0x22d   : > { %v564_v9 = vrot.slane %v563_v6, 2 }
 0x22e   : > { %v732_v10 = vadd.f32 %v731_v7, %v730_v4  ;;  %v897_v12 = vrot.slane %v896_v8, 2 }
 0x22f   : > { %v565_v13 = vadd.f32 %v564_v9, %v563_v6 }
 0x230   : > { %v733_v14 = vrot.slane %v732_v10, 1  ;;  %v898_v15 = vadd.f32 %v897_v12, %v896_v8 }
 0x231   : > { %v566_v16 = vrot.slane %v565_v13, 1 }
 0x232   : > { %v734_v17 = vadd.f32 %v733_v14, %v732_v10  ;;  %v899_v18 = vrot.slane %v898_v15, 1 }
 0x233   : > { %v567_v19 = vadd.f32 %v566_v16, %v565_v13 }
 0x234   : > { %1432 = vrcp.f32 %v734_v17  ;;  %v900_v20 = vadd.f32 %v899_v18, %v898_v15 }
 0x235   : > { %1434 = vrcp.f32 %v567_v19 }
 0x236   : > { %1436 = vrcp.f32 %v900_v20 }
 0x237   : > { %1438 = vpow2.f32 %v399_v41 }
 0x241   : > { %v1433_v26 = vpop.eup %1432 }
 0x242   : > { %v1435_v27 = vpop.eup %1434  ;;  %v736_v28 = vmul.f32 %v1433_v26, %v1427_v59 }
 0x243   : > { %v1437_v29 = vpop.eup %1436  ;;  %v569_v30 = vmul.f32 %v1435_v27, %v1429_v60 }
 0x244   : > { %v737_v32 = vpack.c.bf16 %v736_v28, %v736_v28  ;;  %v902_v34 = vmul.f32 %v1437_v29, %v1431_v62  ;;  %v1439_v43 = vpop.eup %1438 }
 0x245   : > { %v570_v33 = vpack.c.bf16 %v569_v30, %v569_v30  ;;  %v401_v44 = vsel %vm378_vm6, %v1439_v43, 0.0 }
 0x246   : > { %739 = vrot.lane.b32.xlu0 %v737_v32, %s1471_s11  ;;  %v903_v36 = vpack.c.bf16 %v902_v34, %v902_v34  ;;  %v402_v46 = vrot.slane %v401_v44, 4 }
 0x247   : > { %572 = vrot.lane.b32.xlu1 %v570_v33, %s1472_s12 }
 0x248   : > { %v403_v47 = vadd.f32 %v402_v46, %v401_v44 }
 0x24a   : > { %v404_v48 = vrot.slane %v403_v47, 2 }
 0x24b   : > { %905 = vrot.lane.b32.xlu1 %v903_v36, %s1473_s13 }
 0x24c   : > { %v405_v23 = vadd.f32 %v404_v48, %v403_v47 }
 0x24e   : > { %v406_v49 = vrot.slane %v405_v23, 1 }
 0x250   : > { %v407_v50 = vadd.f32 %v406_v49, %v405_v23 }
 0x252   : > { %1440 = vrcp.f32 %v407_v50 }
 0x25f   : > { %v1441_v51 = vpop.eup %1440 }
 0x260   : > { %v409_v52 = vmul.f32 %v1441_v51, %v1439_v43 }
 0x262   : > { %v410_v53 = vpack.c.bf16 %v409_v52, %v409_v52 }
 0x265   : > { %703 = vmax.xlane.f32.xlu0 %v702_v42 }
 0x26f   : > { %869 = vmax.xlane.f32.xlu1 %v868_v45 }
 0x27b   : > { %592 = vrot.lane.b32.xlu0 %v1560_v39, %s1472_s12 }
 0x27f   : > { %758 = vrot.lane.b32.xlu0 %v1560_v39, %s1471_s11 }
 0x280   : > { %924 = vrot.lane.b32.xlu1 %v1560_v39, %s1473_s13  ;;  %v379_v39 = vsel %vm378_vm6, %v1548_v21, -inf }
 0x290   : > { %v537_v54 = vpop.xlane.xlu1 %536 }
 0x291   : > { %v538_v55 = vsub.f32 %v1548_v21, %v537_v54 }
 0x293   : > { %v539_v57 = vmul.f32 1.442695, %v538_v55 }
 0x295   : > { %1442 = vpow2.f32 %v539_v57 }
 0x29d   : > { %412 = vxpose.xlu0.c.b16.start.end [1/1] (short) (narrow) %v410_v53, 32 }
 0x2a2   : > { %v1591_v60 = vpop.eup %1442 }
 0x2b8   : > { %v740_v56 = vpop.permute.xlu0 %739 }
 0x2b9   : > { %v573_v58 = vpop.permute.xlu1 %572  ;;  %742 = vxpose.xlu0.c.b16.start.end [1/1] (short) (narrow) %v740_v56, 32 }
 0x2ba   : > { %575 = vxpose.xlu1.c.b16.start.end [1/1] (short) (narrow) %v573_v58, 32 }
 0x2bd   : > { %v906_v59 = vpop.permute.xlu1 %905 }
 0x2be   : > { %908 = vxpose.xlu0.c.b16.start.end [1/1] (short) (narrow) %v906_v59, 32 }
 0x2cb   : > { %380 = vmax.xlane.f32.xlu1 %v379_v39  ;;  %542 = vrot.lane.b32.xlu0 %v1591_v60, %s1472_s12 }
 0x2ee   : > { %v704_v61 = vpop.xlane.xlu0 %703 }
 0x2ef   : > { %v705_v62 = vsub.f32 %v1548_v21, %v704_v61 }
 0x2f1   : > { %v706_v63 = vmul.f32 1.442695, %v705_v62 }
 0x2f2   : > { %v593_v0 = vpop.permute.xlu0 %592 }
 0x2f3   : > { %1444 = vpow2.f32 %v706_v63  ;;  %1395 = vmatprep.subr.msk.bf16.mxu0 %vm435_vm5, %v593_v0  ;;  %v601_v2 = vsel %vm435_vm5, %v593_v0, 0 }
 0x2f4   : > { %1333 = vmatpush3.bf16.msra.mxu0 %v601_v2 }
 0x2f6   : > { %v759_v3 = vpop.permute.xlu0 %758 }
 0x2f7   : > { %1396 = vmatprep.subr.msk.bf16.mxu0 %vm435_vm5, %v759_v3  ;;  %v767_v16 = vsel %vm435_vm5, %v759_v3, 0 }
 0x2f8   : > { %v870_v4 = vpop.xlane.xlu1 %869 }
 0x2f9   : > { %v871_v5 = vsub.f32 %v1548_v21, %v870_v4 }
 0x2fb   : > { %v872_v6 = vmul.f32 1.442695, %v871_v5 }
 0x2fc   : > { %v925_v12 = vpop.permute.xlu1 %924 }
 0x2fd   : > { %1446 = vpow2.f32 %v872_v6  ;;  %v933_v18 = vsel %vm435_vm5, %v925_v12, 0 }
 0x2ff   : > { %v420_v7 = vpop.trf.xlu0 }
 0x300   : > { %v1602_v8 = vpop.eup %1444  ;;  %1320 = vmatprep.mubr.msk.bf16.mxu1 %vm428_vm7, %v420_v7 }
 0x301   : > { %709 = vrot.lane.b32.xlu0 %v1602_v8, %s1471_s11 }
 0x303   : > { %v421_v9 = vpop.trf.xlu0 }
 0x304   : > { %1321 = vmatmul.mubr.msk.bf16.vlgmr.msra.gmra.mxu1 %vm428_vm7, %v421_v9 }
 0x305   : > { %1328 = vmatprep.mubr.msk.bf16.mxu1 %vm1470_vm1, %v1469_v11 }
 0x30a   : > { %v1610_v10 = vpop.eup %1446 }
 0x30b   : > { %875 = vrot.lane.b32.xlu0 %v1610_v10, %s1473_s13 }
 0x31b   : > { %v750_v14 = vpop.trf.xlu0 }
 0x31c   : > { %v583_v13 = vpop.trf.xlu1 }
 0x31d   : > { %1334 = vmatprep.mubr.msk.bf16.mxu0 %vm428_vm7, %v583_v13 }
 0x31f   : > { %v751_v17 = vpop.trf.xlu0 }
 0x320   : > { %v584_v15 = vpop.trf.xlu1 }
 0x321   : > { %1335 = vmatmul.mubr.msk.bf16.vlgmr.msra.gmra.mxu0 %vm428_vm7, %v584_v15 }
 0x322   : > { %1347 = vmatpush3.bf16.msra.mxu0 %v767_v16  ;;  %1348 = vmatprep.mubr.msk.bf16.mxu0 %vm428_vm7, %v750_v14 }
 0x323   : > { %1397 = vmatprep.subr.msk.bf16.mxu0 %vm435_vm5, %v925_v12  ;;  %v916_v19 = vpop.trf.xlu0 }
 0x327   : > { %v917_v20 = vpop.trf.xlu0 }
 0x329   : > { %1349 = vmatmul.mubr.msk.bf16.vlgmr.msra.gmra.mxu0 %vm428_vm7, %v751_v17 }
 0x32a   : > { %1361 = vmatpush3.bf16.msra.mxu0 %v933_v18  ;;  %1362 = vmatprep.mubr.msk.bf16.mxu0 %vm428_vm7, %v916_v19 }
 0x32b   : > { %1374 = vmatprep.subr.bf16.mxu0 %v1469_v11 }
 0x331   : > { %1363 = vmatmul.mubr.msk.bf16.vlgmr.msra.gmra.mxu0 %vm428_vm7, %v917_v20 }
 0x332   : > { %1390 = vmatprep.mubr.msk.bf16.mxu0 %vm1470_vm1, %v1469_v11 }
 0x33d   : > { %v543_v22 = vpop.permute.xlu0 %542 }
 0x33e   : > { %v545_v24 = vsel %vm378_vm6, %v543_v22, 0.0  ;;  %v1416_v22 = vld [vmem:[%s1709_s3 + $0x38] sm:$0xff]  }
 0x33f   : > { %546 = vadd.xlane.f32.xlu0 %v545_v24  ;;  %1375 = vmatpush3.bf16.msra.mxu0 %v1416_v22  ;;  %v1417_v24 = vld [vmem:[%s1709_s3 + $0x30] sm:$0xff]  }
 0x340   : > { %1376 = vmatprep.subr.bf16.mxu0 %v1469_v11 }
 0x343   : > { %1377 = vmatpush3.bf16.msra.mxu0 %v1417_v24 }
 0x344   : > { %1378 = vmatprep.subr.bf16.mxu0 %v1469_v11 }
 0x354   : > { %v381_v25 = vpop.xlane.xlu1 %380 }
 0x355   : > { %v382_v26 = vsub.f32 %v1548_v21, %v381_v25  ;;  %v1418_v25 = vld [vmem:[%s1709_s3 + $0x28] sm:$0xff]  }
 0x356   : > { %1379 = vmatpush3.bf16.msra.mxu0 %v1418_v25 }
 0x357   : > { %v383_v27 = vmul.f32 1.442695, %v382_v26  ;;  %v1419_v26 = vld [vmem:[%s1709_s3 + $0x20] sm:$0xff]   ;;  %1380 = vmatprep.subr.bf16.mxu0 %v1469_v11 }
 0x359   : > { %1448 = vpow2.f32 %v383_v27 }
 0x35a   : > { %1381 = vmatpush3.bf16.msra.mxu0 %v1419_v26 }
 0x35b   : > { %1382 = vmatprep.subr.bf16.mxu0 %v1469_v11 }
 0x366   : > { %v1449_v32 = vpop.eup %1448 }
 0x367   : > { %v385_v33 = vsel %vm378_vm6, %v1449_v32, 0.0 }
 0x373   : > { %v710_v28 = vpop.permute.xlu0 %709 }
 0x374   : > { %v712_v29 = vsel %vm378_vm6, %v710_v28, 0.0 }
 0x375   : > { %713 = vadd.xlane.f32.xlu1 %v712_v29  ;;  %v1420_v29 = vld [vmem:[%s1709_s3 + $0x18] sm:$0xff]  }
 0x376   : > { %1383 = vmatpush3.bf16.msra.mxu0 %v1420_v29 }
 0x377   : > { %1384 = vmatprep.subr.bf16.mxu0 %v1469_v11 }
 0x37d   : > { %v876_v30 = vpop.permute.xlu0 %875 }
 0x37e   : > { %v878_v31 = vsel %vm378_vm6, %v876_v30, 0.0 }
 0x37f   : > { %879 = vadd.xlane.f32.xlu1 %v878_v31 }
 0x383   : > { %386 = vadd.xlane.f32.xlu1 %v385_v33  ;;  %v1422_v33 = vld [vmem:[%s1709_s3 + $0x8] sm:$0xff]  }
 0x3c4   : > { %v1322_v34 = vpop.f32.mrf.mxu1 }
 0x3c6   : > { %v473_v35 = vpop.f32.mrf.mxu1 }
 0x3c8   : > { %v547_v36 = vpop.xlane.xlu0 %546  ;;  %v1323_v37 = vpop.f32.mrf.mxu1 }
 0x3c9   : > { %1450 = vrcp.f32 %v547_v36  ;;  %v490_v21 = vpack.c.bf16 %v1323_v37, %v1322_v34  ;;  %v1423_v34 = vld [vmem:[%s1709_s3] sm:$0xff]  }
 0x3ca   : > { %v476_v38 = vpop.f32.mrf.mxu1 }
 0x3cb   : > { %1325 = vmatpush3.bf16.msra.mxu1 %v490_v21  ;;  %v489_v40 = vpack.c.bf16 %v476_v38, %v473_v35 }
 0x3cc   : > { %1326 = vmatprep.subr.bf16.mxu1 %v1469_v11 }
 0x3cf   : > { %1327 = vmatpush3.bf16.msra.mxu1 %v489_v40 }
 0x3d0   : > { %1338 = vmatprep.subr.bf16.mxu1 %v1469_v11 }
 0x3d6   : > { %v1451_v41 = vpop.eup %1450 }
 0x3d7   : > { %v549_v42 = vmul.f32 %v1451_v41, %v1591_v60 }
 0x3d9   : > { %v550_v43 = vmul.f32 0.17677669, %v549_v42 }
 0x3db   : > { %v652_v44 = vpack.c.bf16 %v550_v43, %v550_v43 }
 0x3dd   : > { %656 = vrot.lane.b32.xlu1 %v652_v44, %s1472_s12 }
 0x3e1   : > { %v1336_v51 = vpop.f32.mrf.mxu0 }
 0x3e3   : > { %v637_v54 = vpop.f32.mrf.mxu0 }
 0x3e5   : > { %v1337_v59 = vpop.f32.mrf.mxu0 }
 0x3e6   : > { %v654_v39 = vpack.c.bf16 %v1337_v59, %v1336_v51 }
 0x3e7   : > { %v640_v62 = vpop.f32.mrf.mxu0 }
 0x3e8   : > { %v653_v63 = vpack.c.bf16 %v640_v62, %v637_v54 }
 0x3e9   : > { %v1350_v0 = vpop.f32.mrf.mxu0 }
 0x3eb   : > { %v803_v2 = vpop.f32.mrf.mxu0 }
 0x3ed   : > { %v1351_v3 = vpop.f32.mrf.mxu0 }
 0x3ee   : > { %v820_v4 = vpack.c.bf16 %v1351_v3, %v1350_v0 }
 0x3ef   : > { %v806_v6 = vpop.f32.mrf.mxu0 }
 0x3f0   : > { %v819_v7 = vpack.c.bf16 %v806_v6, %v803_v2 }
 0x3fe   : > { %v714_v45 = vpop.xlane.xlu1 %713 }
 0x3ff   : > { %1452 = vrcp.f32 %v714_v45 }
 0x408   : > { %v880_v46 = vpop.xlane.xlu1 %879 }
 0x409   : > { %1454 = vrcp.f32 %v880_v46 }
 0x40c   : > { %v1453_v47 = vpop.eup %1452  ;;  %v387_v48 = vpop.xlane.xlu1 %386 }
 0x40d   : > { %1456 = vrcp.f32 %v387_v48  ;;  %v716_v23 = vmul.f32 %v1453_v47, %v1602_v8  ;;  %v1364_v8 = vpop.f32.mrf.mxu0 }
 0x40f   : > { %v717_v49 = vmul.f32 0.17677669, %v716_v23  ;;  %v969_v9 = vpop.f32.mrf.mxu0  ;;  %v1265_v23 = vld [vmem:[%s1710_s4] ss:$0 sm:$0xff] }
 0x411   : > { %v818_v50 = vpack.c.bf16 %v717_v49, %v717_v49 }
 0x413   : > { %822 = vrot.lane.b32.xlu0 %v818_v50, %s1471_s11 }
 0x416   : > { %v1455_v52 = vpop.eup %1454 }
 0x417   : > { %v882_v53 = vmul.f32 %v1455_v52, %v1610_v10  ;;  %v1365_v10 = vpop.f32.mrf.mxu0 }
 0x418   : > { %v986_v12 = vpack.c.bf16 %v1365_v10, %v1364_v8 }
 0x419   : > { %v883_v55 = vmul.f32 0.17677669, %v882_v53  ;;  %v972_v14 = vpop.f32.mrf.mxu0 }
 0x41a   : > { %v1457_v56 = vpop.eup %1456  ;;  %v985_v15 = vpack.c.bf16 %v972_v14, %v969_v9 }
 0x41b   : > { %v984_v57 = vpack.c.bf16 %v883_v55, %v883_v55  ;;  %v389_v58 = vmul.f32 %v1457_v56, %v1449_v32  ;;  %v1421_v32 = vld [vmem:[%s1709_s3 + $0x10] sm:$0xff]  }
 0x41c   : > { %1385 = vmatpush3.bf16.msra.mxu0 %v1421_v32 }
 0x41d   : > { %988 = vrot.lane.b32.xlu1 %v984_v57, %s1473_s13  ;;  %v390_v60 = vmul.f32 0.17677669, %v389_v58  ;;  %1386 = vmatprep.subr.bf16.mxu0 %v1469_v11 }
 0x41f   : > { %v488_v61 = vpack.c.bf16 %v390_v60, %v390_v60 }
 0x420   : > { %1387 = vmatpush3.bf16.msra.mxu0 %v1422_v33 }
 0x421   : > { %1329 = vmatmul.mubr.msk.bf16.vlgmr.msra.gmra.mxu1 %vm378_vm6, %v488_v61  ;;  %1388 = vmatprep.subr.bf16.mxu0 %v1469_v11 }
 0x422   : > { %1339 = vmatpush3.bf16.msra.mxu1 %v654_v39  ;;  %1342 = vmatprep.mubr.msk.bf16.mxu1 %vm1470_vm1, %v1469_v11 }
 0x423   : > { %1340 = vmatprep.subr.bf16.mxu1 %v1469_v11 }
 0x424   : > { %1389 = vmatpush3.bf16.msra.mxu0 %v1423_v34 }
 0x426   : > { %1341 = vmatpush3.bf16.msra.mxu1 %v653_v63  ;;  %v1274_v63 = vld [vmem:[%s1711_s5] ss:$0 sm:$0xff] }
 0x427   : > { %1352 = vmatprep.subr.bf16.mxu1 %v1469_v11 }
 0x44f   : > { %v657_v5 = vpop.permute.xlu1 %656 }
 0x450   : > { %1343 = vmatmul.mubr.msk.bf16.vlgmr.msra.gmra.mxu1 %vm378_vm6, %v657_v5 }
 0x451   : > { %1353 = vmatpush3.bf16.msra.mxu1 %v820_v4  ;;  %1356 = vmatprep.mubr.msk.bf16.mxu1 %vm1470_vm1, %v1469_v11 }
 0x452   : > { %1354 = vmatprep.subr.bf16.mxu1 %v1469_v11 }
 0x455   : > { %1355 = vmatpush3.bf16.msra.mxu1 %v819_v7 }
 0x456   : > { %1366 = vmatprep.subr.bf16.mxu1 %v1469_v11 }
 0x485   : > { %v823_v13 = vpop.permute.xlu0 %822 }
 0x486   : > { %1357 = vmatmul.mubr.msk.bf16.vlgmr.msra.gmra.mxu1 %vm378_vm6, %v823_v13 }
 0x487   : > { %1367 = vmatpush3.bf16.msra.mxu1 %v986_v12  ;;  %1370 = vmatprep.mubr.msk.bf16.mxu1 %vm1470_vm1, %v1469_v11 }
 0x488   : > { %1368 = vmatprep.subr.bf16.mxu1 %v1469_v11 }
 0x48b   : > { %1369 = vmatpush3.bf16.msra.mxu1 %v985_v15 }
 0x48f   : > { %v989_v16 = vpop.permute.xlu1 %988 }
 0x490   : > { %1371 = vmatmul.mubr.msk.bf16.vlgmr.msra.gmra.mxu1 %vm378_vm6, %v989_v16 }
 0x4e1   : > { %v528_v17 = vpop.f32.mrf.mxu1 }
 0x4e3   : > { %v1330_v18 = vpop.f32.mrf.mxu1 }
 0x4e5   : > { %v531_v19 = vpop.f32.mrf.mxu1 }
 0x4e7   : > { %v1331_v20 = vpop.f32.mrf.mxu1 }
 0x510   : > { %v695_v27 = vpop.f32.mrf.mxu1 }
 0x511   : > { %1034 = vrot.lane.b32.xlu1 %v695_v27, %s1473_s13 }
 0x512   : > { %v1344_v28 = vpop.f32.mrf.mxu1 }
 0x514   : > { %v698_v30 = vpop.f32.mrf.mxu1 }
 0x516   : > { %v1345_v31 = vpop.f32.mrf.mxu1 }
 0x546   : > { %v861_v35 = vpop.f32.mrf.mxu1 }
 0x547   : > { %1038 = vrot.lane.b32.xlu1 %v861_v35, %s1471_s11 }
 0x548   : > { %v1358_v36 = vpop.f32.mrf.mxu1 }
 0x54a   : > { %v864_v37 = vpop.f32.mrf.mxu1 }
 0x54c   : > { %v1359_v21 = vpop.f32.mrf.mxu1 }
 0x550   : > { %v1027_v38 = vpop.f32.mrf.mxu1 }
 0x551   : > { %1042 = vrot.lane.b32.xlu0 %v1027_v38, %s1472_s12 }
 0x552   : > { %v1372_v40 = vpop.f32.mrf.mxu1 }
 0x554   : > { %v1030_v41 = vpop.f32.mrf.mxu1 }
 0x556   : > { %v1373_v42 = vpop.f32.mrf.mxu1 }
 0x583   : > { %v1035_v43 = vpop.permute.xlu1 %1034 }
 0x584   : > { %v1045_v44 = vsel %vm378_vm6, %v528_v17, %v1035_v43 }
 0x5b9   : > { %v1039_v11 = vpop.permute.xlu1 %1038 }
 0x5ba   : > { %v1047_v45 = vsel %vm1046_vm8, %v1045_v44, %v1039_v11 }
 0x5c3   : > { %v1043_v46 = vpop.permute.xlu0 %1042 }
 0x5c4   : > { %v1049_v47 = vsel %vm1048_vm9, %v1047_v45, %v1043_v46 }
 0x5c5   : > { %v1050_v48 = vpack.c.bf16 %v1049_v47, %v1049_v47 }
 0x5c7   : > { %1391 = vmatmul.mubr.bf16.vlgmr.msra.gmra.mxu0 %v1050_v48 }
 0x687   : > { %v1156_v49 = vpop.f32.mrf.mxu0 }
 0x688   : > { %v1157_v50 = vadd.f32 %v1265_v23, %v1156_v49 }
 0x689   : > { %v1392_v51 = vpop.f32.mrf.mxu0 }
 0x68a   : > { %v1162_v52 = vsel %vm250_vm0, %v1157_v50, 0.0 }
 0x68b   : > { %1163 = vadd.xlane.f32.xlu1 %v1162_v52  ;;  %v1159_v53 = vpop.f32.mrf.mxu0 }
 0x68d   : > { %v1393_v54 = vpop.f32.mrf.mxu0 }
 0x714   : > { %v1164_v55 = vpop.xlane.xlu1 %1163 }
 0x715   : > { %v1165_v56 = vmul.f32 0.0625, %v1164_v55 }
 0x717   : > { %v1166_v57 = vsub.f32 %v1157_v50, %v1165_v56 }
 0x719   : > { %v1167_v58 = vmul.f32 %v1166_v57, %v1166_v57 }
 0x71b   : > { %v1168_v59 = vsel %vm250_vm0, %v1167_v58, 0.0 }
 0x71c   : > { %1169 = vadd.xlane.f32.xlu0 %v1168_v59 }
 0x7a5   : > { %v1170_v60 = vpop.xlane.xlu0 %1169 }
 0x7a6   : > { %v1171_v39 = vmul.f32 0.0625, %v1170_v60 }
 0x7a8   : > { %v1172_v61 = vadd.f32 1e-05, %v1171_v39 }
 0x7aa   : > { %1458 = vrsqrt.f32 %v1172_v61 }
 0x7b7   : > { %v1459_v62 = vpop.eup %1458 }
 0x7b8   : > { %v1174_v0 = vmul.f32 %v1459_v62, %v1166_v57 }
 0x7ba   : > { %v1182_v2 = vmul.f32 %v1274_v63, %v1174_v0 }
 0x7bc   : > { %v1183_v3 = vadd.f32 %v1182_v2, %v1525_v1 }
 0x7be   : > { %v1184_v4 = vpack.c.bf16 %v1183_v3, %v1183_v3 }
 0x7c0   : > { %1186 = vst.msk [vmem:[%s246_s15] sm:$0xf] %vm1185_vm10, %v1184_v4 }
 0x7c1 PF: > { %s16_s21 = sadd.s32 1, %s1466_s21  }
 0x7c2   : > { %p13_p4 = scmp.ge.s32.totalorder %s16_s21, 4  }
 0x7c4   :  { %15 = sbr.rel (!%p13_p4) target bundleno = 1 (0x1), region = 74 }

// kernel: unet_forward.102
= control target key start
LH: loop header
LB: loop body
LE: loop exit
PB: predicated region body
PF: predicated region fallthrough
CT: control target
= control target key end

     0   :  { %s748_s12 = smov 0   ;;  %s750_s13 = smov 0   ;;  %s797_s0 = inlined_call_operand.vmem [shape: bf16[2,1,24,16], index: 0, kind: input, shape index: {}]   ;;  %s798_s1 = inlined_call_operand.vmem [shape: bf16[3,16,128], index: 1, kind: input, shape index: {}]   ;;  %s799_s2 = inlined_call_operand.vmem [shape: f32[1,128], index: 2, kind: input, shape index: {}]   ;;  %s800_s3 = inlined_call_operand.vmem [shape: bf16[2,1,16,128], index: 3, kind: output, shape index: {}]  }
   0x1   :  { %s752_s14 = smov 0  }
   0x2 LB: > { %s32_s15 = sadd.s32 1, %s722_s13  ;;  %p615_p0 = scmp.ge.s32.totalorder %s726_s14, 1  ;;  %s726_s14 = sphi %s752_s14, %s13_s14   ;;  %s722_s13 = sphi %s750_s13, %s802_s13   ;;  %s718_s12 = sphi %s748_s12, %s801_s12  }
   0x3   : > { %p34_p1 = scmp.ge.s32.totalorder %s32_s15, 2  ;;  %p183_p2 = scmp.lt.s32.totalorder %s726_s14, 3 }
   0x5   : > { %s804_s15 = smov (%p34_p1, %s32_s15), 0  ;;  %p184_p3 = pnand %p615_p0, %p183_p2 }
   0x6   : > { %p225_p4 = scmp.lt.s32.totalorder (!%p184_p3), %s718_s12, 1 }
   0x7   : > { %187 = sbr.rel (%p184_p3) target bundleno = 235 (0xeb), region = 32 }
   0xc   : > { %v699_v0 = vld [vmem:[%s798_s1 + $0x8] sm:$0xff]   ;;  %v701_v1 = vld [vmem:[%s798_s1] sm:$0xff]   ;;  %s806_s12 = smov (!%p225_p4, %s718_s12), 1  ;;  %v702_v2 = vld [vmem:[%s798_s1 + $0x10] sm:$0xff]   ;;  %vm276_vm0 = vcmask 130048   ;;  %v334_v9 = vlaneseq }
   0xd   : > { %656 = vmatprep.subr.bf16.mxu0 %v699_v0  ;;  %662 = vmatprep.subr.bf16.mxu1 %v701_v1  ;;  %s674_s22 = smul.u32 12, %s806_s12  ;;  %v634_v31 = vld [vmem:[%s799_s2] ss:$0 sm:$0xff]  ;;  %s639_s28 = sshll.u32 %s806_s12, 3 }
   0xe   : > { %657 = vmatpush3.bf16.msra.mxu0 %v699_v0  ;;  %663 = vmatpush3.bf16.msra.mxu1 %v701_v1  ;;  %v335_v13 = vshrl.u32 %v334_v9, 7  ;;  %s252_s4 = scalar_lea.vmem %s800_s3, %s639_s28 }
   0xf   : > { %668 = vmatprep.subr.bf16.mxu0 %v702_v2  ;;  %s233_s25 = scalar_lea.vmem %s797_s0, %s674_s22 }
  0x10   : > { %v700_v3 = vld [vmem:[%s233_s25] sm:$0xff]   ;;  %v703_v4 = vld [vmem:[%s233_s25 + $0x8] ss:$0 sps:$4 sm:$0xff]   ;;  %vm336_vm1 = vcmp.lt.s32.totalorder %v335_v13, 7  ;;  %vm452_vm2 = vcmp.lt.s32.totalorder %v335_v13, 6 }
  0x11   : > { %658 = vmatprep.mubr.msk.bf16.mxu0 %vm276_vm0, %v700_v3  ;;  %664 = vmatprep.mubr.msk.bf16.mxu1 %vm276_vm0, %v700_v3 }
  0x12   : > { %659 = vmatmul.mubr.msk.bf16.vlgmr.msra.gmra.mxu0 %vm276_vm0, %v703_v4  ;;  %665 = vmatmul.mubr.msk.bf16.vlgmr.msra.gmra.mxu1 %vm276_vm0, %v703_v4 }
  0x13   : > { %669 = vmatpush3.bf16.msra.mxu0 %v702_v2  ;;  %670 = vmatprep.mubr.msk.bf16.mxu0 %vm276_vm0, %v700_v3 }
  0x1a   : > { %671 = vmatmul.mubr.msk.bf16.vlgmr.msra.gmra.mxu0 %vm276_vm0, %v703_v4 }
  0xd2   : > { %v660_v5 = vpop.f32.mrf.mxu0  ;;  %v666_v6 = vpop.f32.mrf.mxu1 }
  0xd3   : > { %v333_v17 = vrot.slane %v660_v5, 1 }
  0xd4   : > { %v317_v7 = vpop.f32.mrf.mxu0  ;;  %v379_v8 = vpop.f32.mrf.mxu1 }
  0xd5   : > { %v331_v18 = vrot.slane %v317_v7, 1 }
  0xd6   : > { %v661_v10 = vpop.f32.mrf.mxu0  ;;  %v667_v11 = vpop.f32.mrf.mxu1 }
  0xd8   : > { %v320_v12 = vpop.f32.mrf.mxu0  ;;  %v382_v22 = vpop.f32.mrf.mxu1 }
  0xd9   : > { %v332_v15 = vrot.slane %v320_v12, 1 }
  0xda   : > { %v672_v14 = vpop.f32.mrf.mxu0 }
  0xdb   : > { %v337_v20 = vsel %vm336_vm1, %v332_v15, %v333_v17  ;;  %v338_v21 = vsel %vm336_vm1, %v331_v18, %v332_v15  ;;  %v451_v24 = vrot.slane %v672_v14, 2 }
  0xdc   : > { %v435_v16 = vpop.f32.mrf.mxu0  ;;  %v380_v27 = vadd.f32 %v379_v8, %v338_v21  ;;  %v383_v28 = vadd.f32 %v382_v22, %v337_v20 }
  0xdd   : > { %v449_v25 = vrot.slane %v435_v16, 2 }
  0xde   : > { %v673_v19 = vpop.f32.mrf.mxu0 }
  0xe0   : > { %v438_v23 = vpop.f32.mrf.mxu0 }
  0xe1   : > { %v450_v26 = vrot.slane %v438_v23, 2 }
  0xe3   : > { %v453_v29 = vsel %vm452_vm2, %v450_v26, %v451_v24  ;;  %v454_v30 = vsel %vm452_vm2, %v449_v25, %v450_v26 }
  0xe4   : > { %v455_v32 = vadd.f32 %v454_v30, %v380_v27  ;;  %v456_v33 = vadd.f32 %v453_v29, %v383_v28 }
  0xe6   : > { %v464_v34 = vadd.f32 %v634_v31, %v455_v32  ;;  %v465_v35 = vadd.f32 %v634_v31, %v456_v33 }
  0xe8   : > { %v645_v36 = vpack.c.bf16 %v465_v35, %v464_v34 }
  0xea   : > { %646 = vst [vmem:[%s252_s4] sm:$0xff] %v645_v36  }
  0xeb PF: > { %s13_s14 = sadd.s32 1, %s726_s14   ;;  %s801_s12 = smov %s722_s13 }
  0xec   : > { %p10_p5 = scmp.ge.s32.totalorder %s13_s14, 4   ;;  %s802_s13 = smov %s804_s15 }
  0xee   :  { %12 = sbr.rel (!%p10_p5) target bundleno = 2 (0x2), region = 70 }

// kernel: unet_forward.119
= control target key start
LH: loop header
LB: loop body
LE: loop exit
PB: predicated region body
PF: predicated region fallthrough
CT: control target
= control target key end

     0   :  { %s552_s12 = smov 0   ;;  %s554_s13 = smov 0   ;;  %s591_s0 = inlined_call_operand.vmem [shape: bf16[2,1,16,8], index: 0, kind: input, shape index: {}]   ;;  %s592_s1 = inlined_call_operand.vmem [shape: bf16[1,8,128], index: 1, kind: input, shape index: {}]   ;;  %s593_s2 = inlined_call_operand.vmem [shape: f32[1,128], index: 2, kind: input, shape index: {}]   ;;  %s594_s3 = inlined_call_operand.vmem [shape: f32[2,1,16,128], index: 3, kind: output, shape index: {}]  }
   0x1   :  { %s556_s14 = smov 0  }
   0x2 LB: > { %s32_s15 = sadd.s32 1, %s524_s13  ;;  %p459_p0 = scmp.ge.s32.totalorder %s528_s14, 1  ;;  %s528_s14 = sphi %s556_s14, %s13_s14   ;;  %s524_s13 = sphi %s554_s13, %s596_s13   ;;  %s520_s12 = sphi %s552_s12, %s595_s12  }
   0x3   : > { %p34_p1 = scmp.ge.s32.totalorder %s32_s15, 2  ;;  %p183_p2 = scmp.lt.s32.totalorder %s528_s14, 3 }
   0x5   : > { %s598_s15 = smov (%p34_p1, %s32_s15), 0  ;;  %p184_p3 = pnand %p459_p0, %p183_p2 }
   0x6   : > { %p225_p4 = scmp.lt.s32.totalorder (!%p184_p3), %s520_s12, 1 }
   0x7   : > { %187 = sbr.rel (%p184_p3) target bundleno = 217 (0xd9), region = 32 }
   0xc   : > { %v256_v0 = vld [vmem:[%s592_s1] sm:$0xf]  ;;  %vm273_vm0 = vcmask 1043456   ;;  %v530_v1 = vmov 0.0   ;;  %vm531_vm1 = vmmov 0   ;;  %s600_s12 = smov (!%p225_p4, %s520_s12), 1 }
   0xd   : > { %473 = vmatprep.subr.bf16.mxu0 %v530_v1  ;;  %v275_v2 = vsel %vm273_vm0, %v256_v0, 0  ;;  %475 = vmatprep.mubr.msk.bf16.mxu0 %vm531_vm1, %v530_v1  ;;  %s469_s18 = sshll.u32 %s600_s12, 3  ;;  %vm269_vm2 = vcmask 64512   ;;  %s470_s22 = sshll.u32 %s600_s12, 4  ;;  %v464_v4 = vld [vmem:[%s593_s2] ss:$0 sm:$0xff] }
   0xe   : > { %474 = vmatpush3.bf16.msra.mxu0 %v275_v2  ;;  %s233_s21 = scalar_lea.vmem %s591_s0, %s469_s18  ;;  %s252_s27 = scalar_lea.vmem %s594_s3, %s470_s22 }
   0xf   : > { %v505_v3 = vld [vmem:[%s233_s21] sm:$0xff]  }
  0x11   : > { %476 = vmatmul.mubr.msk.bf16.vlgmr.msra.gmra.mxu0 %vm269_vm2, %v505_v3 }
  0xd1   : > { %v311_v5 = vpop.f32.mrf.mxu0 }
  0xd2   : > { %v312_v6 = vadd.f32 %v464_v4, %v311_v5 }
  0xd3   : > { %v477_v7 = vpop.f32.mrf.mxu0 }
  0xd4   : > { %318 = vst [vmem:[%s252_s27] sm:$0xff] %v312_v6 }
  0xd5   : > { %v314_v8 = vpop.f32.mrf.mxu0 }
  0xd6   : > { %v315_v9 = vadd.f32 %v464_v4, %v314_v8 }
  0xd7   : > { %v478_v10 = vpop.f32.mrf.mxu0 }
  0xd8   : > { %319 = vst [vmem:[%s252_s27 + $0x8] sm:$0xff] %v315_v9 }
  0xd9 PF: > { %s13_s14 = sadd.s32 1, %s528_s14   ;;  %s595_s12 = smov %s524_s13 }
  0xda   : > { %p10_p5 = scmp.ge.s32.totalorder %s13_s14, 4   ;;  %s596_s13 = smov %s598_s15 }
  0xdc   :  { %12 = sbr.rel (!%p10_p5) target bundleno = 2 (0x2), region = 68 }

</bundles_post_ra>
